<compile_context>
chip_gen: v7x
topology: tpu7x:2x2x1
jax: 0.10.0
libtpu: 0.0.40
codegen_flags: <defaults>
</compile_context>

<pallas_src>
import functools

import jax
import jax.numpy as jnp
from jax.experimental import pallas as pl
from jax.experimental.pallas import tpu as pltpu


def _round_up(x, m):
    return ((x + m - 1) // m) * m


# ----------------------------------------------------------------------------
# Shared encoder math (runs inside both kernels)
#   x      : (BM, S, E)   tokens / representations (any float dtype)
#   wqkv   : (E, 3E)      bf16 fused Q|K|V projection
#   w_att  : (E, A)       bf16 additive attention (A padded to 128)
#   b_att  : (1, A)       f32
#   q_att  : (1, A)       f32
#   returns pooled representation (BM, E) f32
# ----------------------------------------------------------------------------
def _encode(x, wqkv, w_att, b_att, q_att, num_heads, head_dim):
    BM, S, E = x.shape

    # fused QKV projection: one big MXU matmul, bf16 operands, f32 accumulation
    x2 = x.reshape(BM * S, E).astype(jnp.bfloat16)
    qkv = jnp.dot(x2, wqkv, preferred_element_type=jnp.float32)  # (BM*S, 3E)
    qkv = qkv.reshape(BM, S, 3 * E)
    q = qkv[:, :, :E]
    k = qkv[:, :, E:2 * E]
    v = qkv[:, :, 2 * E:]

    scale = 1.0 / (float(head_dim) ** 0.5)
    ctx_heads = []
    for h in range(num_heads):                                   # static unroll
        lo = h * head_dim
        qh = q[:, :, lo:lo + head_dim]                           # (BM, S, d) f32
        kh = k[:, :, lo:lo + head_dim]
        vh = v[:, :, lo:lo + head_dim]
        s = jnp.einsum('mtd,msd->mts', qh, kh,
                       preferred_element_type=jnp.float32) * scale
        s = s - jnp.max(s, axis=-1, keepdims=True)
        p = jnp.exp(s)
        p = p * pl.reciprocal(jnp.sum(p, axis=-1, keepdims=True), approx=True)
        ctx_heads.append(jnp.einsum('mts,msd->mtd', p, vh,
                                    preferred_element_type=jnp.float32))
    ctx = jnp.concatenate(ctx_heads, axis=-1)                    # (BM, S, E) f32

    # additive attention pooling over the sequence axis (A is lane-dense / 128)
    A = w_att.shape[1]
    att_pre = jnp.dot(ctx.reshape(BM * S, E).astype(jnp.bfloat16), w_att,
                      preferred_element_type=jnp.float32).reshape(BM, S, A)
    att = jnp.tanh(att_pre + b_att[None])                        # (BM, S, A)
    sc = jnp.sum(att * q_att[None], axis=-1)                     # (BM, S)
    sc = sc - jnp.max(sc, axis=-1, keepdims=True)
    alpha = jnp.exp(sc)
    alpha = alpha * pl.reciprocal(jnp.sum(alpha, axis=-1, keepdims=True),
                                  approx=True)                   # softmax over S
    return jnp.sum(alpha[:, :, None] * ctx, axis=1)              # (BM, E) f32


# ----------------------------------------------------------------------------
# Kernel 1: news encoder  (BM, S, E) -> (BM, E)
# ----------------------------------------------------------------------------
def _news_encoder_kernel(x_ref, wqkv_ref, watt_ref, batt_ref, qatt_ref, out_ref,
                         *, num_heads, head_dim):
    pooled = _encode(x_ref[...], wqkv_ref[...], watt_ref[...],
                     batt_ref[...], qatt_ref[...], num_heads, head_dim)
    out_ref[...] = pooled.astype(out_ref.dtype)


# ----------------------------------------------------------------------------
# Kernel 2: user encoder + fused scoring
#   clicked (BB, H, E) f32, cand (BB, N, E) f32  ->  preds (BB, N) f32
# ----------------------------------------------------------------------------
def _user_score_kernel(x_ref, cand_ref, wqkv_ref, watt_ref, batt_ref, qatt_ref,
                       out_ref, *, num_heads, head_dim, use_softmax):
    user = _encode(x_ref[...], wqkv_ref[...], watt_ref[...],
                   batt_ref[...], qatt_ref[...], num_heads, head_dim)  # (BB, E)
    cand = cand_ref[...].astype(jnp.float32)                           # (BB, N, E)
    logits = jnp.sum(user[:, None, :] * cand, axis=-1)                 # (BB, N)
    if use_softmax:
        logits = logits - jnp.max(logits, axis=-1, keepdims=True)
        p = jnp.exp(logits)
        out_ref[...] = (p / jnp.sum(p, axis=-1, keepdims=True)).astype(out_ref.dtype)
    else:
        # TODO(synk): torch squeezes (B,1)->(B,) for npratio==1; we keep (B,1).
        out_ref[...] = (1.0 / (1.0 + jnp.exp(-logits))).astype(out_ref.dtype)


# ----------------------------------------------------------------------------
# Wrappers
# ----------------------------------------------------------------------------
def _pick_block(M, block_max):
    """Block size: multiple of 8, <= block_max, and >=2 grid steps when possible."""
    bm = min(block_max, _round_up(M, 8))
    if M > 8 and _round_up(M, bm) // bm < 2:
        bm = _round_up((M + 1) // 2, 8)
    return max(8, bm)


def encode_news(x, p, *, num_heads, head_dim, block_m=256):
    """x: (M, S, E) bf16 -> (M, E) f32."""
    M, S, E = x.shape
    A = p['w_att'].shape[1]
    bm = _pick_block(M, block_m)          # cap keeps v7x (64 MiB VMEM) safe
    Mp = _round_up(M, bm)
    if Mp != M:
        x = jnp.pad(x, ((0, Mp - M), (0, 0), (0, 0)))

    kernel = functools.partial(_news_encoder_kernel,
                               num_heads=num_heads, head_dim=head_dim)
    out = pl.pallas_call(
        kernel,
        out_shape=jax.ShapeDtypeStruct((Mp, E), jnp.float32),
        grid_spec=pltpu.PrefetchScalarGridSpec(
            num_scalar_prefetch=0,
            grid=(Mp // bm,),
            in_specs=[
                pl.BlockSpec((bm, S, E), lambda i: (i, 0, 0)),
                pl.BlockSpec((E, 3 * E), lambda i: (0, 0)),
                pl.BlockSpec((E, A), lambda i: (0, 0)),
                pl.BlockSpec((1, A), lambda i: (0, 0)),
                pl.BlockSpec((1, A), lambda i: (0, 0)),
            ],
            out_specs=pl.BlockSpec((bm, E), lambda i: (i, 0)),
        ),
        compiler_params=pltpu.CompilerParams(
            dimension_semantics=("parallel",)),
    )(x, p['wqkv'], p['w_att'], p['b_att'], p['q_att'])
    return out[:M]


def user_encode_and_score(clicked, cand, p, *, num_heads, head_dim, block_b=256):
    """clicked: (B, H, E) f32, cand: (B, N, E) f32 -> preds (B, N) f32."""
    B, H, E = clicked.shape
    _, N, _ = cand.shape
    A = p['w_att'].shape[1]
    bb = _pick_block(B, block_b)
    Bp = _round_up(B, bb)
    if Bp != B:
        clicked = jnp.pad(clicked, ((0, Bp - B), (0, 0), (0, 0)))
        cand = jnp.pad(cand, ((0, Bp - B), (0, 0), (0, 0)))

    kernel = functools.partial(_user_score_kernel, num_heads=num_heads,
                               head_dim=head_dim, use_softmax=(N > 1))
    out = pl.pallas_call(
        kernel,
        out_shape=jax.ShapeDtypeStruct((Bp, N), jnp.float32),
        grid_spec=pltpu.PrefetchScalarGridSpec(
            num_scalar_prefetch=0,
            grid=(Bp // bb,),
            in_specs=[
                pl.BlockSpec((bb, H, E), lambda i: (i, 0, 0)),
                pl.BlockSpec((bb, N, E), lambda i: (i, 0, 0)),
                pl.BlockSpec((E, 3 * E), lambda i: (0, 0)),
                pl.BlockSpec((E, A), lambda i: (0, 0)),
                pl.BlockSpec((1, A), lambda i: (0, 0)),
                pl.BlockSpec((1, A), lambda i: (0, 0)),
            ],
            out_specs=pl.BlockSpec((bb, N), lambda i: (i, 0)),
        ),
        compiler_params=pltpu.CompilerParams(
            dimension_semantics=("parallel",)),
    )(clicked, cand, p['wqkv'], p['w_att'], p['b_att'], p['q_att'])
    return out[:B]


# ----------------------------------------------------------------------------
# Parameters (deterministic, synthetic — no checkpoint load)
# ----------------------------------------------------------------------------
def _glorot(key, shape):
    fan_in, fan_out = shape[0], shape[-1]
    lim = (6.0 / (fan_in + fan_out)) ** 0.5
    return jax.random.uniform(key, shape, jnp.float32, -lim, lim)


def init_params(key, vocab_size, emb_dim, att_dim):
    ks = jax.random.split(key, 13)
    word2vec = jax.random.normal(ks[0], (vocab_size, emb_dim), jnp.float32) * 0.1

    def enc(keys):
        return dict(
            wq=_glorot(keys[0], (emb_dim, emb_dim)),
            wk=_glorot(keys[1], (emb_dim, emb_dim)),
            wv=_glorot(keys[2], (emb_dim, emb_dim)),
            w_att=_glorot(keys[3], (emb_dim, att_dim)),
            b_att=jnp.zeros((1, att_dim), jnp.float32),
            q_att=_glorot(keys[4], (1, att_dim)),
        )

    return dict(
        word2vec_embedding=word2vec,
        news=enc(ks[1:6]),
        user=enc(ks[6:11]),
    )


def _prep_encoder_params(p, lane=128):
    """Fuse Q/K/V weights, zero-pad additive-att dim to a lane multiple, cast
    matmul operands to bf16 (numerically identical up to bf16 rounding)."""
    A = p['w_att'].shape[1]
    A_pad = _round_up(A, lane)
    pad = A_pad - A
    return dict(
        wqkv=jnp.concatenate([p['wq'], p['wk'], p['wv']], axis=1).astype(jnp.bfloat16),
        w_att=jnp.pad(p['w_att'], ((0, 0), (0, pad))).astype(jnp.bfloat16),
        b_att=jnp.pad(p['b_att'], ((0, 0), (0, pad))),
        q_att=jnp.pad(p['q_att'], ((0, 0), (0, pad))),
    )


# ----------------------------------------------------------------------------
# NRMSModel.forward
# ----------------------------------------------------------------------------
def nrms_forward(his_input_title, pred_input_title, params, hp):
    B, H, T = his_input_title.shape
    _, N, _ = pred_input_title.shape
    E = hp['embedded_dimension']
    nh, hd = hp['head_num'], hp['head_dim']

    news_p = _prep_encoder_params(params['news'])
    user_p = _prep_encoder_params(params['user'])

    # frozen embedding lookup: single gather over concatenated indices
    # (history + candidate titles), bf16 tokens halve encoder DMA bytes.
    emb = params['word2vec_embedding'].astype(jnp.bfloat16)
    all_ids = jnp.concatenate(
        [his_input_title.reshape(B * H, T), pred_input_title.reshape(B * N, T)],
        axis=0)                                                  # (B*H+B*N, T)
    news_tokens = emb[all_ids]                                   # (B*H+B*N, T, E)

    # one news-encoder launch over history + candidate titles
    news_rep = encode_news(news_tokens, news_p,
                           num_heads=nh, head_dim=hd)            # (B*H+B*N, E) f32
    clicked_rep = news_rep[:B * H].reshape(B, H, E)
    cand_rep = news_rep[B * H:].reshape(B, N, E)

    # user encoder + fused scoring softmax (bf16 cast happens inside the kernel)
    return user_encode_and_score(clicked_rep, cand_rep, user_p,
                                 num_heads=nh, head_dim=hd)      # (B, N)


# ----------------------------------------------------------------------------
if __name__ == "__main__":
    hp = dict(embedded_dimension=32, head_num=4, head_dim=8,
              attention_hidden_dim=16, history_size=8, title_size=8)
    VOCAB = 50
    B, H, N, T, E = 2, hp['history_size'], 5, hp['title_size'], hp['embedded_dimension']

    key = jax.random.PRNGKey(0)
    k_par, k_his, k_pred = jax.random.split(key, 3)
    params = init_params(k_par, VOCAB, E, hp['attention_hidden_dim'])

    his_input_title = jax.random.randint(k_his, (B, H, T), 0, VOCAB, dtype=jnp.int32)
    pred_input_title = jax.random.randint(k_pred, (B, N, T), 0, VOCAB, dtype=jnp.int32)

    fwd = jax.jit(functools.partial(nrms_forward, hp=hp))
    preds = fwd(his_input_title, pred_input_title, params)
    preds = jax.block_until_ready(preds)

    assert preds.shape == (B, N), preds.shape
    assert bool(jnp.all(jnp.isfinite(preds)))
    # final softmax rows sum to 1 (exact division in the scoring epilogue)
    assert bool(jnp.allclose(jnp.sum(preds, axis=1), 1.0, atol=1e-4))
    print("KERNEL_OK")
</pallas_src>

<mosaic_0001>
module attributes {stable_mosaic.version = 11 : i64} {
  func.func @_news_encoder_kernel(%arg0: i32, %arg1: memref<16x8x32xbf16, #tpu.memory_space<vmem>>, %arg2: memref<32x96xbf16, #tpu.memory_space<vmem>>, %arg3: memref<32x128xbf16, #tpu.memory_space<vmem>>, %arg4: memref<1x128xf32, #tpu.memory_space<vmem>>, %arg5: memref<1x128xf32, #tpu.memory_space<vmem>>, %arg6: memref<16x32xf32, #tpu.memory_space<vmem>>) attributes {dimension_semantics = [#tpu.dimension_semantics<parallel>], iteration_bounds = array<i64: 2>, scalar_prefetch = 0 : i64, scratch_operands = 0 : i64, tpu.core_type = #tpu.core_type<tc>, window_params = [{transform_indices = @transform_0, window_bounds = array<i64: 16, 8, 32>}, {pipeline_mode = #tpu.pipeline_mode<synchronous>, transform_indices = @transform_1, window_bounds = array<i64: 32, 96>}, {pipeline_mode = #tpu.pipeline_mode<synchronous>, transform_indices = @transform_2, window_bounds = array<i64: 32, 128>}, {pipeline_mode = #tpu.pipeline_mode<synchronous>, transform_indices = @transform_3, window_bounds = array<i64: 1, 128>}, {pipeline_mode = #tpu.pipeline_mode<synchronous>, transform_indices = @transform_4, window_bounds = array<i64: 1, 128>}, {transform_indices = @transform_5, window_bounds = array<i64: 16, 32>}]} {
    %c0 = arith.constant 0 : index
    %c0_0 = arith.constant 0 : index
    %c0_1 = arith.constant 0 : index
    %0 = vector.load %arg1[%c0, %c0_0, %c0_1] : memref<16x8x32xbf16, #tpu.memory_space<vmem>>, vector<16x8x32xbf16>
    %c0_2 = arith.constant 0 : index
    %c0_3 = arith.constant 0 : index
    %1 = vector.load %arg2[%c0_2, %c0_3] : memref<32x96xbf16, #tpu.memory_space<vmem>>, vector<32x96xbf16>
    %c0_4 = arith.constant 0 : index
    %c0_5 = arith.constant 0 : index
    %2 = vector.load %arg3[%c0_4, %c0_5] : memref<32x128xbf16, #tpu.memory_space<vmem>>, vector<32x128xbf16>
    %c0_6 = arith.constant 0 : index
    %c0_7 = arith.constant 0 : index
    %3 = vector.load %arg4[%c0_6, %c0_7] : memref<1x128xf32, #tpu.memory_space<vmem>>, vector<1x128xf32>
    %c0_8 = arith.constant 0 : index
    %c0_9 = arith.constant 0 : index
    %4 = vector.load %arg5[%c0_8, %c0_9] : memref<1x128xf32, #tpu.memory_space<vmem>>, vector<1x128xf32>
    %5 = vector.shape_cast %0 : vector<16x8x32xbf16> to vector<128x32xbf16>
    %cst = arith.constant dense<0.000000e+00> : vector<128x96xf32>
    %6 = tpu.matmul %5, %1, %cst {dimension_numbers = #tpu.dot_dimension_numbers<[1], [0], [0], [1], [0, 0, 1, 1], [], []>} : vector<128x32xbf16>, vector<32x96xbf16>, vector<128x96xf32> -> vector<128x96xf32>
    %7 = vector.shape_cast %6 : vector<128x96xf32> to vector<16x8x96xf32>
    %8 = vector.extract_strided_slice %7 {offsets = [0, 0, 0], sizes = [16, 8, 32], strides = [1, 1, 1]} : vector<16x8x96xf32> to vector<16x8x32xf32>
    %9 = vector.extract_strided_slice %7 {offsets = [0, 0, 32], sizes = [16, 8, 32], strides = [1, 1, 1]} : vector<16x8x96xf32> to vector<16x8x32xf32>
    %10 = vector.extract_strided_slice %7 {offsets = [0, 0, 64], sizes = [16, 8, 32], strides = [1, 1, 1]} : vector<16x8x96xf32> to vector<16x8x32xf32>
    %11 = vector.extract_strided_slice %8 {offsets = [0, 0, 0], sizes = [16, 8, 8], strides = [1, 1, 1]} : vector<16x8x32xf32> to vector<16x8x8xf32>
    %12 = vector.extract_strided_slice %9 {offsets = [0, 0, 0], sizes = [16, 8, 8], strides = [1, 1, 1]} : vector<16x8x32xf32> to vector<16x8x8xf32>
    %13 = vector.extract_strided_slice %10 {offsets = [0, 0, 0], sizes = [16, 8, 8], strides = [1, 1, 1]} : vector<16x8x32xf32> to vector<16x8x8xf32>
    "tpu.trace_start"() <{level = 10 : i32, message = "mtd,msd->mts"}> : () -> ()
    %cst_10 = arith.constant dense<0.000000e+00> : vector<16x8x8xf32>
    %14 = tpu.matmul %11, %12, %cst_10 {dimension_numbers = #tpu.dot_dimension_numbers<[2], [2], [1], [1], [0, 0, 0, 1, 1, 1], [0], [0]>} : vector<16x8x8xf32>, vector<16x8x8xf32>, vector<16x8x8xf32> -> vector<16x8x8xf32>
    "tpu.trace_stop"() : () -> ()
    %cst_11 = arith.constant 0.353553385 : f32
    %15 = vector.broadcast %cst_11 : f32 to vector<16x8x8xf32>
    %16 = arith.mulf %14, %15 : vector<16x8x8xf32>
    %cst_12 = arith.constant dense<0xFF800000> : vector<16x8xf32>
    %17 = vector.multi_reduction <maximumf>, %16, %cst_12 [2] : vector<16x8x8xf32> to vector<16x8xf32>
    %18 = vector.shape_cast %17 : vector<16x8xf32> to vector<16x8x1xf32>
    %19 = vector.broadcast %18 : vector<16x8x1xf32> to vector<16x8x8xf32>
    %20 = arith.subf %16, %19 : vector<16x8x8xf32>
    %21 = math.exp %20 : vector<16x8x8xf32>
    %cst_13 = arith.constant dense<0.000000e+00> : vector<16x8xf32>
    %22 = vector.multi_reduction <add>, %21, %cst_13 [2] : vector<16x8x8xf32> to vector<16x8xf32>
    %23 = vector.shape_cast %22 : vector<16x8xf32> to vector<16x8x1xf32>
    %24 = tpu.reciprocal %23 {approx = true} : vector<16x8x1xf32> -> vector<16x8x1xf32>
    %25 = vector.broadcast %24 : vector<16x8x1xf32> to vector<16x8x8xf32>
    %26 = arith.mulf %21, %25 : vector<16x8x8xf32>
    "tpu.trace_start"() <{level = 10 : i32, message = "mts,msd->mtd"}> : () -> ()
    %cst_14 = arith.constant dense<0.000000e+00> : vector<16x8x8xf32>
    %27 = tpu.matmul %26, %13, %cst_14 {dimension_numbers = #tpu.dot_dimension_numbers<[2], [1], [1], [2], [0, 0, 0, 1, 1, 2], [0], [0]>} : vector<16x8x8xf32>, vector<16x8x8xf32>, vector<16x8x8xf32> -> vector<16x8x8xf32>
    "tpu.trace_stop"() : () -> ()
    %28 = vector.extract_strided_slice %8 {offsets = [0, 0, 8], sizes = [16, 8, 8], strides = [1, 1, 1]} : vector<16x8x32xf32> to vector<16x8x8xf32>
    %29 = vector.extract_strided_slice %9 {offsets = [0, 0, 8], sizes = [16, 8, 8], strides = [1, 1, 1]} : vector<16x8x32xf32> to vector<16x8x8xf32>
    %30 = vector.extract_strided_slice %10 {offsets = [0, 0, 8], sizes = [16, 8, 8], strides = [1, 1, 1]} : vector<16x8x32xf32> to vector<16x8x8xf32>
    "tpu.trace_start"() <{level = 10 : i32, message = "mtd,msd->mts"}> : () -> ()
    %cst_15 = arith.constant dense<0.000000e+00> : vector<16x8x8xf32>
    %31 = tpu.matmul %28, %29, %cst_15 {dimension_numbers = #tpu.dot_dimension_numbers<[2], [2], [1], [1], [0, 0, 0, 1, 1, 1], [0], [0]>} : vector<16x8x8xf32>, vector<16x8x8xf32>, vector<16x8x8xf32> -> vector<16x8x8xf32>
    "tpu.trace_stop"() : () -> ()
    %cst_16 = arith.constant 0.353553385 : f32
    %32 = vector.broadcast %cst_16 : f32 to vector<16x8x8xf32>
    %33 = arith.mulf %31, %32 : vector<16x8x8xf32>
    %cst_17 = arith.constant dense<0xFF800000> : vector<16x8xf32>
    %34 = vector.multi_reduction <maximumf>, %33, %cst_17 [2] : vector<16x8x8xf32> to vector<16x8xf32>
    %35 = vector.shape_cast %34 : vector<16x8xf32> to vector<16x8x1xf32>
    %36 = vector.broadcast %35 : vector<16x8x1xf32> to vector<16x8x8xf32>
    %37 = arith.subf %33, %36 : vector<16x8x8xf32>
    %38 = math.exp %37 : vector<16x8x8xf32>
    %cst_18 = arith.constant dense<0.000000e+00> : vector<16x8xf32>
    %39 = vector.multi_reduction <add>, %38, %cst_18 [2] : vector<16x8x8xf32> to vector<16x8xf32>
    %40 = vector.shape_cast %39 : vector<16x8xf32> to vector<16x8x1xf32>
    %41 = tpu.reciprocal %40 {approx = true} : vector<16x8x1xf32> -> vector<16x8x1xf32>
    %42 = vector.broadcast %41 : vector<16x8x1xf32> to vector<16x8x8xf32>
    %43 = arith.mulf %38, %42 : vector<16x8x8xf32>
    "tpu.trace_start"() <{level = 10 : i32, message = "mts,msd->mtd"}> : () -> ()
    %cst_19 = arith.constant dense<0.000000e+00> : vector<16x8x8xf32>
    %44 = tpu.matmul %43, %30, %cst_19 {dimension_numbers = #tpu.dot_dimension_numbers<[2], [1], [1], [2], [0, 0, 0, 1, 1, 2], [0], [0]>} : vector<16x8x8xf32>, vector<16x8x8xf32>, vector<16x8x8xf32> -> vector<16x8x8xf32>
    "tpu.trace_stop"() : () -> ()
    %45 = vector.extract_strided_slice %8 {offsets = [0, 0, 16], sizes = [16, 8, 8], strides = [1, 1, 1]} : vector<16x8x32xf32> to vector<16x8x8xf32>
    %46 = vector.extract_strided_slice %9 {offsets = [0, 0, 16], sizes = [16, 8, 8], strides = [1, 1, 1]} : vector<16x8x32xf32> to vector<16x8x8xf32>
    %47 = vector.extract_strided_slice %10 {offsets = [0, 0, 16], sizes = [16, 8, 8], strides = [1, 1, 1]} : vector<16x8x32xf32> to vector<16x8x8xf32>
    "tpu.trace_start"() <{level = 10 : i32, message = "mtd,msd->mts"}> : () -> ()
    %cst_20 = arith.constant dense<0.000000e+00> : vector<16x8x8xf32>
    %48 = tpu.matmul %45, %46, %cst_20 {dimension_numbers = #tpu.dot_dimension_numbers<[2], [2], [1], [1], [0, 0, 0, 1, 1, 1], [0], [0]>} : vector<16x8x8xf32>, vector<16x8x8xf32>, vector<16x8x8xf32> -> vector<16x8x8xf32>
    "tpu.trace_stop"() : () -> ()
    %cst_21 = arith.constant 0.353553385 : f32
    %49 = vector.broadcast %cst_21 : f32 to vector<16x8x8xf32>
    %50 = arith.mulf %48, %49 : vector<16x8x8xf32>
    %cst_22 = arith.constant dense<0xFF800000> : vector<16x8xf32>
    %51 = vector.multi_reduction <maximumf>, %50, %cst_22 [2] : vector<16x8x8xf32> to vector<16x8xf32>
    %52 = vector.shape_cast %51 : vector<16x8xf32> to vector<16x8x1xf32>
    %53 = vector.broadcast %52 : vector<16x8x1xf32> to vector<16x8x8xf32>
    %54 = arith.subf %50, %53 : vector<16x8x8xf32>
    %55 = math.exp %54 : vector<16x8x8xf32>
    %cst_23 = arith.constant dense<0.000000e+00> : vector<16x8xf32>
    %56 = vector.multi_reduction <add>, %55, %cst_23 [2] : vector<16x8x8xf32> to vector<16x8xf32>
    %57 = vector.shape_cast %56 : vector<16x8xf32> to vector<16x8x1xf32>
    %58 = tpu.reciprocal %57 {approx = true} : vector<16x8x1xf32> -> vector<16x8x1xf32>
    %59 = vector.broadcast %58 : vector<16x8x1xf32> to vector<16x8x8xf32>
    %60 = arith.mulf %55, %59 : vector<16x8x8xf32>
    "tpu.trace_start"() <{level = 10 : i32, message = "mts,msd->mtd"}> : () -> ()
    %cst_24 = arith.constant dense<0.000000e+00> : vector<16x8x8xf32>
    %61 = tpu.matmul %60, %47, %cst_24 {dimension_numbers = #tpu.dot_dimension_numbers<[2], [1], [1], [2], [0, 0, 0, 1, 1, 2], [0], [0]>} : vector<16x8x8xf32>, vector<16x8x8xf32>, vector<16x8x8xf32> -> vector<16x8x8xf32>
    "tpu.trace_stop"() : () -> ()
    %62 = vector.extract_strided_slice %8 {offsets = [0, 0, 24], sizes = [16, 8, 8], strides = [1, 1, 1]} : vector<16x8x32xf32> to vector<16x8x8xf32>
    %63 = vector.extract_strided_slice %9 {offsets = [0, 0, 24], sizes = [16, 8, 8], strides = [1, 1, 1]} : vector<16x8x32xf32> to vector<16x8x8xf32>
    %64 = vector.extract_strided_slice %10 {offsets = [0, 0, 24], sizes = [16, 8, 8], strides = [1, 1, 1]} : vector<16x8x32xf32> to vector<16x8x8xf32>
    "tpu.trace_start"() <{level = 10 : i32, message = "mtd,msd->mts"}> : () -> ()
    %cst_25 = arith.constant dense<0.000000e+00> : vector<16x8x8xf32>
    %65 = tpu.matmul %62, %63, %cst_25 {dimension_numbers = #tpu.dot_dimension_numbers<[2], [2], [1], [1], [0, 0, 0, 1, 1, 1], [0], [0]>} : vector<16x8x8xf32>, vector<16x8x8xf32>, vector<16x8x8xf32> -> vector<16x8x8xf32>
    "tpu.trace_stop"() : () -> ()
    %cst_26 = arith.constant 0.353553385 : f32
    %66 = vector.broadcast %cst_26 : f32 to vector<16x8x8xf32>
    %67 = arith.mulf %65, %66 : vector<16x8x8xf32>
    %cst_27 = arith.constant dense<0xFF800000> : vector<16x8xf32>
    %68 = vector.multi_reduction <maximumf>, %67, %cst_27 [2] : vector<16x8x8xf32> to vector<16x8xf32>
    %69 = vector.shape_cast %68 : vector<16x8xf32> to vector<16x8x1xf32>
    %70 = vector.broadcast %69 : vector<16x8x1xf32> to vector<16x8x8xf32>
    %71 = arith.subf %67, %70 : vector<16x8x8xf32>
    %72 = math.exp %71 : vector<16x8x8xf32>
    %cst_28 = arith.constant dense<0.000000e+00> : vector<16x8xf32>
    %73 = vector.multi_reduction <add>, %72, %cst_28 [2] : vector<16x8x8xf32> to vector<16x8xf32>
    %74 = vector.shape_cast %73 : vector<16x8xf32> to vector<16x8x1xf32>
    %75 = tpu.reciprocal %74 {approx = true} : vector<16x8x1xf32> -> vector<16x8x1xf32>
    %76 = vector.broadcast %75 : vector<16x8x1xf32> to vector<16x8x8xf32>
    %77 = arith.mulf %72, %76 : vector<16x8x8xf32>
    "tpu.trace_start"() <{level = 10 : i32, message = "mts,msd->mtd"}> : () -> ()
    %cst_29 = arith.constant dense<0.000000e+00> : vector<16x8x8xf32>
    %78 = tpu.matmul %77, %64, %cst_29 {dimension_numbers = #tpu.dot_dimension_numbers<[2], [1], [1], [2], [0, 0, 0, 1, 1, 2], [0], [0]>} : vector<16x8x8xf32>, vector<16x8x8xf32>, vector<16x8x8xf32> -> vector<16x8x8xf32>
    "tpu.trace_stop"() : () -> ()
    %79 = tpu.concatenate %27, %44, %61, %78 in 2 : vector<16x8x8xf32>, vector<16x8x8xf32>, vector<16x8x8xf32>, vector<16x8x8xf32> -> vector<16x8x32xf32>
    %80 = vector.shape_cast %79 : vector<16x8x32xf32> to vector<128x32xf32>
    %81 = arith.truncf %80 : vector<128x32xf32> to vector<128x32xbf16>
    %cst_30 = arith.constant dense<0.000000e+00> : vector<128x128xf32>
    %82 = tpu.matmul %81, %2, %cst_30 {dimension_numbers = #tpu.dot_dimension_numbers<[1], [0], [0], [1], [0, 0, 1, 1], [], []>} : vector<128x32xbf16>, vector<32x128xbf16>, vector<128x128xf32> -> vector<128x128xf32>
    %83 = vector.shape_cast %82 : vector<128x128xf32> to vector<16x8x128xf32>
    %84 = vector.shape_cast %3 : vector<1x128xf32> to vector<1x1x128xf32>
    %85 = vector.broadcast %84 : vector<1x1x128xf32> to vector<16x8x128xf32>
    %86 = arith.addf %83, %85 : vector<16x8x128xf32>
    %87 = math.tanh %86 : vector<16x8x128xf32>
    %88 = vector.shape_cast %4 : vector<1x128xf32> to vector<1x1x128xf32>
    %89 = vector.broadcast %88 : vector<1x1x128xf32> to vector<16x8x128xf32>
    %90 = arith.mulf %87, %89 : vector<16x8x128xf32>
    %cst_31 = arith.constant dense<0.000000e+00> : vector<16x8xf32>
    %91 = vector.multi_reduction <add>, %90, %cst_31 [2] : vector<16x8x128xf32> to vector<16x8xf32>
    %cst_32 = arith.constant dense<0xFF800000> : vector<16xf32>
    %92 = vector.multi_reduction <maximumf>, %91, %cst_32 [1] : vector<16x8xf32> to vector<16xf32>
    %93 = vector.shape_cast %92 : vector<16xf32> to vector<16x1xf32>
    %94 = vector.broadcast %93 : vector<16x1xf32> to vector<16x8xf32>
    %95 = arith.subf %91, %94 : vector<16x8xf32>
    %96 = math.exp %95 : vector<16x8xf32>
    %cst_33 = arith.constant dense<0.000000e+00> : vector<16xf32>
    %97 = vector.multi_reduction <add>, %96, %cst_33 [1] : vector<16x8xf32> to vector<16xf32>
    %98 = vector.shape_cast %97 : vector<16xf32> to vector<16x1xf32>
    %99 = tpu.reciprocal %98 {approx = true} : vector<16x1xf32> -> vector<16x1xf32>
    %100 = vector.broadcast %99 : vector<16x1xf32> to vector<16x8xf32>
    %101 = arith.mulf %96, %100 : vector<16x8xf32>
    %102 = vector.shape_cast %101 : vector<16x8xf32> to vector<16x8x1xf32>
    %103 = vector.broadcast %102 : vector<16x8x1xf32> to vector<16x8x32xf32>
    %104 = arith.mulf %103, %79 : vector<16x8x32xf32>
    %cst_34 = arith.constant dense<0.000000e+00> : vector<16x32xf32>
    %105 = vector.multi_reduction <add>, %104, %cst_34 [1] : vector<16x8x32xf32> to vector<16x32xf32>
    %c0_35 = arith.constant 0 : index
    %c0_36 = arith.constant 0 : index
    %106 = vector.load %arg6[%c0_35, %c0_36] : memref<16x32xf32, #tpu.memory_space<vmem>>, vector<16x32xf32>
    tpu.vector_store %arg6[%c0_35, %c0_36], %105 {strides = array<i32>} : memref<16x32xf32, #tpu.memory_space<vmem>>, vector<16x32xf32>,
    return
  }
  func.func @transform_0(%arg0: i32) -> (i32, i32, i32) {
    %c0_i32 = arith.constant 0 : i32
    %c0_i32_0 = arith.constant 0 : i32
    %c0_i32_1 = arith.constant 0 : i32
    return %arg0, %c0_i32, %c0_i32_0 : i32, i32, i32
  }
  func.func @transform_1(%arg0: i32) -> (i32, i32) {
    %c0_i32 = arith.constant 0 : i32
    %c0_i32_0 = arith.constant 0 : i32
    %c0_i32_1 = arith.constant 0 : i32
    return %c0_i32, %c0_i32_0 : i32, i32
  }
  func.func @transform_2(%arg0: i32) -> (i32, i32) {
    %c0_i32 = arith.constant 0 : i32
    %c0_i32_0 = arith.constant 0 : i32
    %c0_i32_1 = arith.constant 0 : i32
    return %c0_i32, %c0_i32_0 : i32, i32
  }
  func.func @transform_3(%arg0: i32) -> (i32, i32) {
    %c0_i32 = arith.constant 0 : i32
    %c0_i32_0 = arith.constant 0 : i32
    %c0_i32_1 = arith.constant 0 : i32
    return %c0_i32, %c0_i32_0 : i32, i32
  }
  func.func @transform_4(%arg0: i32) -> (i32, i32) {
    %c0_i32 = arith.constant 0 : i32
    %c0_i32_0 = arith.constant 0 : i32
    %c0_i32_1 = arith.constant 0 : i32
    return %c0_i32, %c0_i32_0 : i32, i32
  }
  func.func @transform_5(%arg0: i32) -> (i32, i32) {
    %c0_i32 = arith.constant 0 : i32
    %c0_i32_0 = arith.constant 0 : i32
    return %arg0, %c0_i32 : i32, i32
  }
}

module attributes {stable_mosaic.version = 11 : i64} {
  func.func @_user_score_kernel(%arg0: i32, %arg1: memref<8x8x32xf32, #tpu.memory_space<vmem>>, %arg2: memref<8x5x32xf32, #tpu.memory_space<vmem>>, %arg3: memref<32x96xbf16, #tpu.memory_space<vmem>>, %arg4: memref<32x128xbf16, #tpu.memory_space<vmem>>, %arg5: memref<1x128xf32, #tpu.memory_space<vmem>>, %arg6: memref<1x128xf32, #tpu.memory_space<vmem>>, %arg7: memref<8x5xf32, #tpu.memory_space<vmem>>) attributes {dimension_semantics = [#tpu.dimension_semantics<parallel>], iteration_bounds = array<i64: 1>, scalar_prefetch = 0 : i64, scratch_operands = 0 : i64, tpu.core_type = #tpu.core_type<tc>, window_params = [{transform_indices = @transform_0, window_bounds = array<i64: 8, 8, 32>}, {transform_indices = @transform_1, window_bounds = array<i64: 8, 5, 32>}, {pipeline_mode = #tpu.pipeline_mode<synchronous>, transform_indices = @transform_2, window_bounds = array<i64: 32, 96>}, {pipeline_mode = #tpu.pipeline_mode<synchronous>, transform_indices = @transform_3, window_bounds = array<i64: 32, 128>}, {pipeline_mode = #tpu.pipeline_mode<synchronous>, transform_indices = @transform_4, window_bounds = array<i64: 1, 128>}, {pipeline_mode = #tpu.pipeline_mode<synchronous>, transform_indices = @transform_5, window_bounds = array<i64: 1, 128>}, {transform_indices = @transform_6, window_bounds = array<i64: 8, 5>}]} {
    %c0 = arith.constant 0 : index
    %c0_0 = arith.constant 0 : index
    %c0_1 = arith.constant 0 : index
    %0 = vector.load %arg1[%c0, %c0_0, %c0_1] : memref<8x8x32xf32, #tpu.memory_space<vmem>>, vector<8x8x32xf32>
    %c0_2 = arith.constant 0 : index
    %c0_3 = arith.constant 0 : index
    %1 = vector.load %arg3[%c0_2, %c0_3] : memref<32x96xbf16, #tpu.memory_space<vmem>>, vector<32x96xbf16>
    %c0_4 = arith.constant 0 : index
    %c0_5 = arith.constant 0 : index
    %2 = vector.load %arg4[%c0_4, %c0_5] : memref<32x128xbf16, #tpu.memory_space<vmem>>, vector<32x128xbf16>
    %c0_6 = arith.constant 0 : index
    %c0_7 = arith.constant 0 : index
    %3 = vector.load %arg5[%c0_6, %c0_7] : memref<1x128xf32, #tpu.memory_space<vmem>>, vector<1x128xf32>
    %c0_8 = arith.constant 0 : index
    %c0_9 = arith.constant 0 : index
    %4 = vector.load %arg6[%c0_8, %c0_9] : memref<1x128xf32, #tpu.memory_space<vmem>>, vector<1x128xf32>
    %5 = vector.shape_cast %0 : vector<8x8x32xf32> to vector<64x32xf32>
    %6 = arith.truncf %5 : vector<64x32xf32> to vector<64x32xbf16>
    %cst = arith.constant dense<0.000000e+00> : vector<64x96xf32>
    %7 = tpu.matmul %6, %1, %cst {dimension_numbers = #tpu.dot_dimension_numbers<[1], [0], [0], [1], [0, 0, 1, 1], [], []>} : vector<64x32xbf16>, vector<32x96xbf16>, vector<64x96xf32> -> vector<64x96xf32>
    %8 = vector.shape_cast %7 : vector<64x96xf32> to vector<8x8x96xf32>
    %9 = vector.extract_strided_slice %8 {offsets = [0, 0, 0], sizes = [8, 8, 32], strides = [1, 1, 1]} : vector<8x8x96xf32> to vector<8x8x32xf32>
    %10 = vector.extract_strided_slice %8 {offsets = [0, 0, 32], sizes = [8, 8, 32], strides = [1, 1, 1]} : vector<8x8x96xf32> to vector<8x8x32xf32>
    %11 = vector.extract_strided_slice %8 {offsets = [0, 0, 64], sizes = [8, 8, 32], strides = [1, 1, 1]} : vector<8x8x96xf32> to vector<8x8x32xf32>
    %12 = vector.extract_strided_slice %9 {offsets = [0, 0, 0], sizes = [8, 8, 8], strides = [1, 1, 1]} : vector<8x8x32xf32> to vector<8x8x8xf32>
    %13 = vector.extract_strided_slice %10 {offsets = [0, 0, 0], sizes = [8, 8, 8], strides = [1, 1, 1]} : vector<8x8x32xf32> to vector<8x8x8xf32>
    %14 = vector.extract_strided_slice %11 {offsets = [0, 0, 0], sizes = [8, 8, 8], strides = [1, 1, 1]} : vector<8x8x32xf32> to vector<8x8x8xf32>
    "tpu.trace_start"() <{level = 10 : i32, message = "mtd,msd->mts"}> : () -> ()
    %cst_10 = arith.constant dense<0.000000e+00> : vector<8x8x8xf32>
    %15 = tpu.matmul %12, %13, %cst_10 {dimension_numbers = #tpu.dot_dimension_numbers<[2], [2], [1], [1], [0, 0, 0, 1, 1, 1], [0], [0]>} : vector<8x8x8xf32>, vector<8x8x8xf32>, vector<8x8x8xf32> -> vector<8x8x8xf32>
    "tpu.trace_stop"() : () -> ()
    %cst_11 = arith.constant 0.353553385 : f32
    %16 = vector.broadcast %cst_11 : f32 to vector<8x8x8xf32>
    %17 = arith.mulf %15, %16 : vector<8x8x8xf32>
    %cst_12 = arith.constant dense<0xFF800000> : vector<8x8xf32>
    %18 = vector.multi_reduction <maximumf>, %17, %cst_12 [2] : vector<8x8x8xf32> to vector<8x8xf32>
    %19 = vector.shape_cast %18 : vector<8x8xf32> to vector<8x8x1xf32>
    %20 = vector.broadcast %19 : vector<8x8x1xf32> to vector<8x8x8xf32>
    %21 = arith.subf %17, %20 : vector<8x8x8xf32>
    %22 = math.exp %21 : vector<8x8x8xf32>
    %cst_13 = arith.constant dense<0.000000e+00> : vector<8x8xf32>
    %23 = vector.multi_reduction <add>, %22, %cst_13 [2] : vector<8x8x8xf32> to vector<8x8xf32>
    %24 = vector.shape_cast %23 : vector<8x8xf32> to vector<8x8x1xf32>
    %25 = tpu.reciprocal %24 {approx = true} : vector<8x8x1xf32> -> vector<8x8x1xf32>
    %26 = vector.broadcast %25 : vector<8x8x1xf32> to vector<8x8x8xf32>
    %27 = arith.mulf %22, %26 : vector<8x8x8xf32>
    "tpu.trace_start"() <{level = 10 : i32, message = "mts,msd->mtd"}> : () -> ()
    %cst_14 = arith.constant dense<0.000000e+00> : vector<8x8x8xf32>
    %28 = tpu.matmul %27, %14, %cst_14 {dimension_numbers = #tpu.dot_dimension_numbers<[2], [1], [1], [2], [0, 0, 0, 1, 1, 2], [0], [0]>} : vector<8x8x8xf32>, vector<8x8x8xf32>, vector<8x8x8xf32> -> vector<8x8x8xf32>
    "tpu.trace_stop"() : () -> ()
    %29 = vector.extract_strided_slice %9 {offsets = [0, 0, 8], sizes = [8, 8, 8], strides = [1, 1, 1]} : vector<8x8x32xf32> to vector<8x8x8xf32>
    %30 = vector.extract_strided_slice %10 {offsets = [0, 0, 8], sizes = [8, 8, 8], strides = [1, 1, 1]} : vector<8x8x32xf32> to vector<8x8x8xf32>
    %31 = vector.extract_strided_slice %11 {offsets = [0, 0, 8], sizes = [8, 8, 8], strides = [1, 1, 1]} : vector<8x8x32xf32> to vector<8x8x8xf32>
    "tpu.trace_start"() <{level = 10 : i32, message = "mtd,msd->mts"}> : () -> ()
    %cst_15 = arith.constant dense<0.000000e+00> : vector<8x8x8xf32>
    %32 = tpu.matmul %29, %30, %cst_15 {dimension_numbers = #tpu.dot_dimension_numbers<[2], [2], [1], [1], [0, 0, 0, 1, 1, 1], [0], [0]>} : vector<8x8x8xf32>, vector<8x8x8xf32>, vector<8x8x8xf32> -> vector<8x8x8xf32>
    "tpu.trace_stop"() : () -> ()
    %cst_16 = arith.constant 0.353553385 : f32
    %33 = vector.broadcast %cst_16 : f32 to vector<8x8x8xf32>
    %34 = arith.mulf %32, %33 : vector<8x8x8xf32>
    %cst_17 = arith.constant dense<0xFF800000> : vector<8x8xf32>
    %35 = vector.multi_reduction <maximumf>, %34, %cst_17 [2] : vector<8x8x8xf32> to vector<8x8xf32>
    %36 = vector.shape_cast %35 : vector<8x8xf32> to vector<8x8x1xf32>
    %37 = vector.broadcast %36 : vector<8x8x1xf32> to vector<8x8x8xf32>
    %38 = arith.subf %34, %37 : vector<8x8x8xf32>
    %39 = math.exp %38 : vector<8x8x8xf32>
    %cst_18 = arith.constant dense<0.000000e+00> : vector<8x8xf32>
    %40 = vector.multi_reduction <add>, %39, %cst_18 [2] : vector<8x8x8xf32> to vector<8x8xf32>
    %41 = vector.shape_cast %40 : vector<8x8xf32> to vector<8x8x1xf32>
    %42 = tpu.reciprocal %41 {approx = true} : vector<8x8x1xf32> -> vector<8x8x1xf32>
    %43 = vector.broadcast %42 : vector<8x8x1xf32> to vector<8x8x8xf32>
    %44 = arith.mulf %39, %43 : vector<8x8x8xf32>
    "tpu.trace_start"() <{level = 10 : i32, message = "mts,msd->mtd"}> : () -> ()
    %cst_19 = arith.constant dense<0.000000e+00> : vector<8x8x8xf32>
    %45 = tpu.matmul %44, %31, %cst_19 {dimension_numbers = #tpu.dot_dimension_numbers<[2], [1], [1], [2], [0, 0, 0, 1, 1, 2], [0], [0]>} : vector<8x8x8xf32>, vector<8x8x8xf32>, vector<8x8x8xf32> -> vector<8x8x8xf32>
    "tpu.trace_stop"() : () -> ()
    %46 = vector.extract_strided_slice %9 {offsets = [0, 0, 16], sizes = [8, 8, 8], strides = [1, 1, 1]} : vector<8x8x32xf32> to vector<8x8x8xf32>
    %47 = vector.extract_strided_slice %10 {offsets = [0, 0, 16], sizes = [8, 8, 8], strides = [1, 1, 1]} : vector<8x8x32xf32> to vector<8x8x8xf32>
    %48 = vector.extract_strided_slice %11 {offsets = [0, 0, 16], sizes = [8, 8, 8], strides = [1, 1, 1]} : vector<8x8x32xf32> to vector<8x8x8xf32>
    "tpu.trace_start"() <{level = 10 : i32, message = "mtd,msd->mts"}> : () -> ()
    %cst_20 = arith.constant dense<0.000000e+00> : vector<8x8x8xf32>
    %49 = tpu.matmul %46, %47, %cst_20 {dimension_numbers = #tpu.dot_dimension_numbers<[2], [2], [1], [1], [0, 0, 0, 1, 1, 1], [0], [0]>} : vector<8x8x8xf32>, vector<8x8x8xf32>, vector<8x8x8xf32> -> vector<8x8x8xf32>
    "tpu.trace_stop"() : () -> ()
    %cst_21 = arith.constant 0.353553385 : f32
    %50 = vector.broadcast %cst_21 : f32 to vector<8x8x8xf32>
    %51 = arith.mulf %49, %50 : vector<8x8x8xf32>
    %cst_22 = arith.constant dense<0xFF800000> : vector<8x8xf32>
    %52 = vector.multi_reduction <maximumf>, %51, %cst_22 [2] : vector<8x8x8xf32> to vector<8x8xf32>
    %53 = vector.shape_cast %52 : vector<8x8xf32> to vector<8x8x1xf32>
    %54 = vector.broadcast %53 : vector<8x8x1xf32> to vector<8x8x8xf32>
    %55 = arith.subf %51, %54 : vector<8x8x8xf32>
    %56 = math.exp %55 : vector<8x8x8xf32>
    %cst_23 = arith.constant dense<0.000000e+00> : vector<8x8xf32>
    %57 = vector.multi_reduction <add>, %56, %cst_23 [2] : vector<8x8x8xf32> to vector<8x8xf32>
    %58 = vector.shape_cast %57 : vector<8x8xf32> to vector<8x8x1xf32>
    %59 = tpu.reciprocal %58 {approx = true} : vector<8x8x1xf32> -> vector<8x8x1xf32>
    %60 = vector.broadcast %59 : vector<8x8x1xf32> to vector<8x8x8xf32>
    %61 = arith.mulf %56, %60 : vector<8x8x8xf32>
    "tpu.trace_start"() <{level = 10 : i32, message = "mts,msd->mtd"}> : () -> ()
    %cst_24 = arith.constant dense<0.000000e+00> : vector<8x8x8xf32>
    %62 = tpu.matmul %61, %48, %cst_24 {dimension_numbers = #tpu.dot_dimension_numbers<[2], [1], [1], [2], [0, 0, 0, 1, 1, 2], [0], [0]>} : vector<8x8x8xf32>, vector<8x8x8xf32>, vector<8x8x8xf32> -> vector<8x8x8xf32>
    "tpu.trace_stop"() : () -> ()
    %63 = vector.extract_strided_slice %9 {offsets = [0, 0, 24], sizes = [8, 8, 8], strides = [1, 1, 1]} : vector<8x8x32xf32> to vector<8x8x8xf32>
    %64 = vector.extract_strided_slice %10 {offsets = [0, 0, 24], sizes = [8, 8, 8], strides = [1, 1, 1]} : vector<8x8x32xf32> to vector<8x8x8xf32>
    %65 = vector.extract_strided_slice %11 {offsets = [0, 0, 24], sizes = [8, 8, 8], strides = [1, 1, 1]} : vector<8x8x32xf32> to vector<8x8x8xf32>
    "tpu.trace_start"() <{level = 10 : i32, message = "mtd,msd->mts"}> : () -> ()
    %cst_25 = arith.constant dense<0.000000e+00> : vector<8x8x8xf32>
    %66 = tpu.matmul %63, %64, %cst_25 {dimension_numbers = #tpu.dot_dimension_numbers<[2], [2], [1], [1], [0, 0, 0, 1, 1, 1], [0], [0]>} : vector<8x8x8xf32>, vector<8x8x8xf32>, vector<8x8x8xf32> -> vector<8x8x8xf32>
    "tpu.trace_stop"() : () -> ()
    %cst_26 = arith.constant 0.353553385 : f32
    %67 = vector.broadcast %cst_26 : f32 to vector<8x8x8xf32>
    %68 = arith.mulf %66, %67 : vector<8x8x8xf32>
    %cst_27 = arith.constant dense<0xFF800000> : vector<8x8xf32>
    %69 = vector.multi_reduction <maximumf>, %68, %cst_27 [2] : vector<8x8x8xf32> to vector<8x8xf32>
    %70 = vector.shape_cast %69 : vector<8x8xf32> to vector<8x8x1xf32>
    %71 = vector.broadcast %70 : vector<8x8x1xf32> to vector<8x8x8xf32>
    %72 = arith.subf %68, %71 : vector<8x8x8xf32>
    %73 = math.exp %72 : vector<8x8x8xf32>
    %cst_28 = arith.constant dense<0.000000e+00> : vector<8x8xf32>
    %74 = vector.multi_reduction <add>, %73, %cst_28 [2] : vector<8x8x8xf32> to vector<8x8xf32>
    %75 = vector.shape_cast %74 : vector<8x8xf32> to vector<8x8x1xf32>
    %76 = tpu.reciprocal %75 {approx = true} : vector<8x8x1xf32> -> vector<8x8x1xf32>
    %77 = vector.broadcast %76 : vector<8x8x1xf32> to vector<8x8x8xf32>
    %78 = arith.mulf %73, %77 : vector<8x8x8xf32>
    "tpu.trace_start"() <{level = 10 : i32, message = "mts,msd->mtd"}> : () -> ()
    %cst_29 = arith.constant dense<0.000000e+00> : vector<8x8x8xf32>
    %79 = tpu.matmul %78, %65, %cst_29 {dimension_numbers = #tpu.dot_dimension_numbers<[2], [1], [1], [2], [0, 0, 0, 1, 1, 2], [0], [0]>} : vector<8x8x8xf32>, vector<8x8x8xf32>, vector<8x8x8xf32> -> vector<8x8x8xf32>
    "tpu.trace_stop"() : () -> ()
    %80 = tpu.concatenate %28, %45, %62, %79 in 2 : vector<8x8x8xf32>, vector<8x8x8xf32>, vector<8x8x8xf32>, vector<8x8x8xf32> -> vector<8x8x32xf32>
    %81 = vector.shape_cast %80 : vector<8x8x32xf32> to vector<64x32xf32>
    %82 = arith.truncf %81 : vector<64x32xf32> to vector<64x32xbf16>
    %cst_30 = arith.constant dense<0.000000e+00> : vector<64x128xf32>
    %83 = tpu.matmul %82, %2, %cst_30 {dimension_numbers = #tpu.dot_dimension_numbers<[1], [0], [0], [1], [0, 0, 1, 1], [], []>} : vector<64x32xbf16>, vector<32x128xbf16>, vector<64x128xf32> -> vector<64x128xf32>
    %84 = vector.shape_cast %83 : vector<64x128xf32> to vector<8x8x128xf32>
    %85 = vector.shape_cast %3 : vector<1x128xf32> to vector<1x1x128xf32>
    %86 = vector.broadcast %85 : vector<1x1x128xf32> to vector<8x8x128xf32>
    %87 = arith.addf %84, %86 : vector<8x8x128xf32>
    %88 = math.tanh %87 : vector<8x8x128xf32>
    %89 = vector.shape_cast %4 : vector<1x128xf32> to vector<1x1x128xf32>
    %90 = vector.broadcast %89 : vector<1x1x128xf32> to vector<8x8x128xf32>
    %91 = arith.mulf %88, %90 : vector<8x8x128xf32>
    %cst_31 = arith.constant dense<0.000000e+00> : vector<8x8xf32>
    %92 = vector.multi_reduction <add>, %91, %cst_31 [2] : vector<8x8x128xf32> to vector<8x8xf32>
    %cst_32 = arith.constant dense<0xFF800000> : vector<8xf32>
    %93 = vector.multi_reduction <maximumf>, %92, %cst_32 [1] : vector<8x8xf32> to vector<8xf32>
    %94 = vector.shape_cast %93 : vector<8xf32> to vector<8x1xf32>
    %95 = vector.broadcast %94 : vector<8x1xf32> to vector<8x8xf32>
    %96 = arith.subf %92, %95 : vector<8x8xf32>
    %97 = math.exp %96 : vector<8x8xf32>
    %cst_33 = arith.constant dense<0.000000e+00> : vector<8xf32>
    %98 = vector.multi_reduction <add>, %97, %cst_33 [1] : vector<8x8xf32> to vector<8xf32>
    %99 = vector.shape_cast %98 : vector<8xf32> to vector<8x1xf32>
    %100 = tpu.reciprocal %99 {approx = true} : vector<8x1xf32> -> vector<8x1xf32>
    %101 = vector.broadcast %100 : vector<8x1xf32> to vector<8x8xf32>
    %102 = arith.mulf %97, %101 : vector<8x8xf32>
    %103 = vector.shape_cast %102 : vector<8x8xf32> to vector<8x8x1xf32>
    %104 = vector.broadcast %103 : vector<8x8x1xf32> to vector<8x8x32xf32>
    %105 = arith.mulf %104, %80 : vector<8x8x32xf32>
    %cst_34 = arith.constant dense<0.000000e+00> : vector<8x32xf32>
    %106 = vector.multi_reduction <add>, %105, %cst_34 [1] : vector<8x8x32xf32> to vector<8x32xf32>
    %c0_35 = arith.constant 0 : index
    %c0_36 = arith.constant 0 : index
    %c0_37 = arith.constant 0 : index
    %107 = vector.load %arg2[%c0_35, %c0_36, %c0_37] : memref<8x5x32xf32, #tpu.memory_space<vmem>>, vector<8x5x32xf32>
    %108 = vector.shape_cast %106 : vector<8x32xf32> to vector<8x1x32xf32>
    %109 = vector.broadcast %108 : vector<8x1x32xf32> to vector<8x5x32xf32>
    %110 = arith.mulf %109, %107 : vector<8x5x32xf32>
    %cst_38 = arith.constant dense<0.000000e+00> : vector<8x5xf32>
    %111 = vector.multi_reduction <add>, %110, %cst_38 [2] : vector<8x5x32xf32> to vector<8x5xf32>
    %cst_39 = arith.constant dense<0xFF800000> : vector<8xf32>
    %112 = vector.multi_reduction <maximumf>, %111, %cst_39 [1] : vector<8x5xf32> to vector<8xf32>
    %113 = vector.shape_cast %112 : vector<8xf32> to vector<8x1xf32>
    %114 = vector.broadcast %113 : vector<8x1xf32> to vector<8x5xf32>
    %115 = arith.subf %111, %114 : vector<8x5xf32>
    %116 = math.exp %115 : vector<8x5xf32>
    %cst_40 = arith.constant dense<0.000000e+00> : vector<8xf32>
    %117 = vector.multi_reduction <add>, %116, %cst_40 [1] : vector<8x5xf32> to vector<8xf32>
    %118 = vector.shape_cast %117 : vector<8xf32> to vector<8x1xf32>
    %119 = vector.broadcast %118 : vector<8x1xf32> to vector<8x5xf32>
    %120 = arith.divf %116, %119 : vector<8x5xf32>
    %c0_41 = arith.constant 0 : index
    %c0_42 = arith.constant 0 : index
    %121 = vector.load %arg7[%c0_41, %c0_42] : memref<8x5xf32, #tpu.memory_space<vmem>>, vector<8x5xf32>
    tpu.vector_store %arg7[%c0_41, %c0_42], %120 {strides = array<i32>} : memref<8x5xf32, #tpu.memory_space<vmem>>, vector<8x5xf32>,
    return
  }
  func.func @transform_0(%arg0: i32) -> (i32, i32, i32) {
    %c0_i32 = arith.constant 0 : i32
    %c0_i32_0 = arith.constant 0 : i32
    %c0_i32_1 = arith.constant 0 : i32
    return %arg0, %c0_i32, %c0_i32_0 : i32, i32, i32
  }
  func.func @transform_1(%arg0: i32) -> (i32, i32, i32) {
    %c0_i32 = arith.constant 0 : i32
    %c0_i32_0 = arith.constant 0 : i32
    %c0_i32_1 = arith.constant 0 : i32
    return %arg0, %c0_i32, %c0_i32_0 : i32, i32, i32
  }
  func.func @transform_2(%arg0: i32) -> (i32, i32) {
    %c0_i32 = arith.constant 0 : i32
    %c0_i32_0 = arith.constant 0 : i32
    %c0_i32_1 = arith.constant 0 : i32
    return %c0_i32, %c0_i32_0 : i32, i32
  }
  func.func @transform_3(%arg0: i32) -> (i32, i32) {
    %c0_i32 = arith.constant 0 : i32
    %c0_i32_0 = arith.constant 0 : i32
    %c0_i32_1 = arith.constant 0 : i32
    return %c0_i32, %c0_i32_0 : i32, i32
  }
  func.func @transform_4(%arg0: i32) -> (i32, i32) {
    %c0_i32 = arith.constant 0 : i32
    %c0_i32_0 = arith.constant 0 : i32
    %c0_i32_1 = arith.constant 0 : i32
    return %c0_i32, %c0_i32_0 : i32, i32
  }
  func.func @transform_5(%arg0: i32) -> (i32, i32) {
    %c0_i32 = arith.constant 0 : i32
    %c0_i32_0 = arith.constant 0 : i32
    %c0_i32_1 = arith.constant 0 : i32
    return %c0_i32, %c0_i32_0 : i32, i32
  }
  func.func @transform_6(%arg0: i32) -> (i32, i32) {
    %c0_i32 = arith.constant 0 : i32
    %c0_i32_0 = arith.constant 0 : i32
    return %arg0, %c0_i32 : i32, i32
  }
}

</mosaic_0001>

<bundles_post_ra>
// kernel: nrms_forward.3
= control target key start
LH: loop header
LB: loop body
LE: loop exit
PB: predicated region body
PF: predicated region fallthrough
CT: control target
= control target key end

     0   :  { %vm58_vm0 = vcmask 261120   ;;  %v7240_v14 = vmov 0.0   ;;  %vm7241_vm1 = vmmov 0   ;;  %s7242_s16 = smov 96   ;;  %s7244_s17 = smov 88   ;;  %vm139_vm2 = vcmask 64512   ;;  %s8394_s2 = inlined_call_operand.vmem [shape: bf16[32,96], index: 2, kind: input, shape index: {}]   ;;  %s8395_s0 = inlined_call_operand.vmem [shape: f32[8,8,32], index: 0, kind: input, shape index: {}]   ;;  %s8396_s3 = inlined_call_operand.vmem [shape: bf16[32,128], index: 3, kind: input, shape index: {}]   ;;  %s8397_s4 = inlined_call_operand.vmem [shape: f32[1,128], index: 4, kind: input, shape index: {}]   ;;  %s8398_s5 = inlined_call_operand.vmem [shape: f32[1,128], index: 5, kind: input, shape index: {}]   ;;  %s8399_s1 = inlined_call_operand.vmem [shape: f32[8,5,32], index: 1, kind: input, shape index: {}]   ;;  %s8400_s6 = inlined_call_operand.vmem [shape: f32[8,5], index: 6, kind: output, shape index: {}]  }
   0x1   :  { %v7042_v0 = vld [vmem:[%s8394_s2] sm:$0xff]   ;;  %v7043_v1 = vld [vmem:[%s8394_s2 + $0x8] sm:$0xff]   ;;  %v26_v5 = vld [vmem:[%s8395_s0 + $0x10] sm:$0xff]  ;;  %6701 = vmatprep.subr.mxu1 %v7240_v14  ;;  %6703 = vmatprep.mubr.msk.f32.mxu1 %vm7241_vm1, %v7240_v14  ;;  %s7245_s18 = smov 120   ;;  %s7246_s19 = smov 56   ;;  %vm5545_vm3 = vcmask 130048  }
   0x2   :  { %6679 = vmatprep.subr.bf16.mxu0 %v7042_v0  ;;  %v24_v2 = vld [vmem:[%s8395_s0] sm:$0xff]  ;;  %v25_v3 = vld [vmem:[%s8395_s0 + $0x8] sm:$0xff]  ;;  %v27_v6 = vld [vmem:[%s8395_s0 + $0x18] sm:$0xff]  ;;  %s7247_s20 = smov 80   ;;  %s7248_s21 = smov 112   ;;  %vm5554_vm4 = vcmask 195584  }
   0x3   :  { %6680 = vmatpush3.bf16.msra.mxu0 %v7042_v0  ;;  %v42_v4 = vpack.c.bf16 %v25_v3, %v24_v2  ;;  %v28_v7 = vld [vmem:[%s8395_s0 + $0x20] sm:$0xff]  ;;  %v29_v8 = vld [vmem:[%s8395_s0 + $0x28] sm:$0xff]  ;;  %v43_v9 = vpack.c.bf16 %v27_v6, %v26_v5  ;;  %v30_v11 = vld [vmem:[%s8395_s0 + $0x30] sm:$0xff]  ;;  %s7249_s22 = smov 48   ;;  %s7250_s23 = smov 72   ;;  %vm5750_vm5 = vcmask 1041409  }
   0x4   :  { %6681 = vmatprep.subr.bf16.mxu0 %v7043_v1  ;;  %v44_v10 = vpack.c.bf16 %v29_v8, %v28_v7  ;;  %v31_v12 = vld [vmem:[%s8395_s0 + $0x38] sm:$0xff]  ;;  %s7243_s0 = smov 64   ;;  %s7251_s24 = smov 104   ;;  %vm5752_vm6 = vcmask 1042434   ;;  %vm5754_vm7 = vcmask 1043459   ;;  %vm5756_vm8 = vcmask 1044484  }
   0x5   :  { %6683 = vmatprep.mubr.msk.bf16.mxu0 %vm58_vm0, %v42_v4  ;;  %v45_v13 = vpack.c.bf16 %v31_v12, %v30_v11  ;;  %s7252_s25 = smov 40   ;;  %s7253_s26 = smov 8   ;;  %vm5758_vm9 = vcmask 1045509   ;;  %vm5760_vm10 = vcmask 1046534   ;;  %vm5762_vm11 = vcmask 1047559  }
   0x6   :  { %s7254_s27 = smov 16   ;;  %s7255_s8 = smov 24   ;;  %vm6078_vm12 = vcmask 258048   ;;  %vm6151_vm13 = vcmask 39936  }
   0x7   :  { %6682 = vmatpush3.bf16.msra.mxu0 %v7043_v1 }
   0x8   :  { %6691 = vmatprep.subr.mxu0 %v7240_v14 }
   0xa   :  { %6684 = vmatmul.mubr.msk.bf16.vlgmr.msra.gmra.mrb[0].mxu0 %vm58_vm0, %v43_v9 }
   0xb   :  { %6687 = vmatprep.mubr.msk.bf16.mxu0 %vm58_vm0, %v44_v10 }
  0x12   :  { %6688 = vmatmul.mubr.msk.bf16.gmra.mrb[4].mxu0 %vm58_vm0, %v45_v13 }
  0x13   :  { %6693 = vmatprep.mubr.msk.f32.mxu0 %vm7241_vm1, %v7240_v14 }
  0xdd   :  { %v7332_v15 = vpop.f32.mrb[0].mxu0 }
  0xde   :  { %292 = vrot.lane.b32.xlu1 %v7332_v15, %s7242_s16  ;;  %v7335_v16 = vpop.f32.mrb[1].mxu0 }
  0xdf   :  { %137 = vrot.lane.b32.xlu0 %v7335_v16, %s7242_s16  ;;  %v7338_v17 = vpop.f32.mrb[2].mxu0 }
  0xe0   :  { %v7340_v18 = vpop.f32.mrb[3].mxu0 }
  0xe2   :  { %369 = vrot.lane.b32.xlu1 %v7338_v17, %s7242_s16 }
  0xe3   :  { %215 = vrot.lane.b32.xlu0 %v7340_v18, %s7242_s16 }
  0xe5   :  { %v7344_v19 = vpop.f32.mrb[4].mxu0 }
  0xe6   :  { %v7346_v20 = vpop.f32.mrb[5].mxu0 }
  0xe7   :  { %446 = vrot.lane.b32.xlu0 %v7346_v20, %s7242_s16  ;;  %v7349_v21 = vpop.f32.mrb[6].mxu0 }
  0xe8   :  { %v7351_v22 = vpop.f32.mrb[7].mxu0 }
  0xe9   :  { %523 = vrot.lane.b32.xlu1 %v7351_v22, %s7242_s16 }
  0xeb   :  { %600 = vrot.lane.b32.xlu0 %v7344_v19, %s7242_s16 }
  0xed   :  { %677 = vrot.lane.b32.xlu1 %v7349_v21, %s7242_s16 }
  0xef   :  { %925 = vrot.lane.b32.xlu0 %v7340_v18, %s7243_s0 }
  0xf1   :  { %849 = vrot.lane.b32.xlu1 %v7335_v16, %s7243_s0 }
  0xf3   :  { %1153 = vrot.lane.b32.xlu0 %v7346_v20, %s7243_s0 }
  0xf5   :  { %1001 = vrot.lane.b32.xlu1 %v7332_v15, %s7243_s0 }
  0xf7   :  { %1305 = vrot.lane.b32.xlu0 %v7344_v19, %s7243_s0 }
  0xf9   :  { %1077 = vrot.lane.b32.xlu1 %v7338_v17, %s7243_s0 }
  0xfb   :  { %1459 = vrot.lane.b32.xlu0 %v7335_v16, %s7244_s17 }
  0xfd   :  { %1381 = vrot.lane.b32.xlu1 %v7349_v21, %s7243_s0 }
 0x101   :  { %1537 = vrot.lane.b32.xlu1 %v7340_v18, %s7244_s17 }
 0x105   :  { %1229 = vrot.lane.b32.xlu1 %v7351_v22, %s7243_s0 }
 0x150   :  { %v293_v23 = vpop.permute.xlu1 %292 }
 0x151   :  { %6702 = vmatpush3.xpose.msk.msra.mxu1 %vm139_vm2, %v293_v23  ;;  %v138_v24 = vpop.permute.xlu0 %137 }
 0x152   :  { %6692 = vmatpush3.xpose.msk.msra.mxu0 %vm139_vm2, %v138_v24  ;;  %6706 = vmatprep.subr.mxu1 %v7240_v14 }
 0x153   :  { %6696 = vmatprep.subr.mxu0 %v7240_v14 }
 0x154   :  { %6704 = vmatmul.mubr.msk.f32.vlgmr.msra.gmra.mrb[0].mxu1 %vm139_vm2, %v7332_v15  ;;  %v370_v25 = vpop.permute.xlu1 %369 }
 0x155   :  { %6694 = vmatmul.mubr.msk.f32.vlgmr.msra.gmra.mrb[8].mxu0 %vm139_vm2, %v7335_v16  ;;  %6707 = vmatpush3.xpose.msk.msra.mxu1 %vm139_vm2, %v370_v25  ;;  %v216_v26 = vpop.permute.xlu0 %215 }
 0x156   :  { %6697 = vmatpush3.xpose.msk.msra.mxu0 %vm139_vm2, %v216_v26  ;;  %6708 = vmatprep.mubr.msk.f32.mxu1 %vm7241_vm1, %v7240_v14 }
 0x157   :  { %6698 = vmatprep.mubr.msk.f32.mxu0 %vm7241_vm1, %v7240_v14  ;;  %6711 = vmatprep.subr.mxu1 %v7240_v14 }
 0x158   :  { %6709 = vmatmul.mubr.msk.f32.vlgmr.msra.gmra.mrb[2].mxu1 %vm139_vm2, %v7338_v17  ;;  %6716 = vmatprep.subr.mxu0 %v7240_v14 }
 0x159   :  { %6699 = vmatmul.mubr.msk.f32.vlgmr.msra.gmra.mrb[10].mxu0 %vm139_vm2, %v7340_v18  ;;  %v447_v27 = vpop.permute.xlu0 %446  ;;  %6713 = vmatprep.mubr.msk.f32.mxu1 %vm7241_vm1, %v7240_v14 }
 0x15a   :  { %6712 = vmatpush3.xpose.msk.msra.mxu1 %vm139_vm2, %v447_v27  ;;  %6718 = vmatprep.mubr.msk.f32.mxu0 %vm7241_vm1, %v7240_v14 }
 0x15b   :  { %v524_v28 = vpop.permute.xlu1 %523  ;;  %6721 = vmatprep.subr.mxu1 %v7240_v14 }
 0x15c   :  { %6717 = vmatpush3.xpose.msk.msra.mxu0 %vm139_vm2, %v524_v28 }
 0x15d   :  { %6714 = vmatmul.mubr.msk.f32.vlgmr.msra.gmra.mrb[4].mxu1 %vm139_vm2, %v7346_v20  ;;  %v601_v29 = vpop.permute.xlu0 %600  ;;  %6726 = vmatprep.subr.mxu0 %v7240_v14 }
 0x15e   :  { %6722 = vmatpush3.xpose.msk.msra.mxu1 %vm139_vm2, %v601_v29  ;;  %6723 = vmatprep.mubr.msk.f32.mxu1 %vm7241_vm1, %v7240_v14 }
 0x15f   :  { %6719 = vmatmul.mubr.msk.f32.vlgmr.msra.gmra.mrb[12].mxu0 %vm139_vm2, %v7351_v22  ;;  %v678_v30 = vpop.permute.xlu1 %677  ;;  %6731 = vmatprep.subr.mxu1 %v7240_v14 }
 0x160   :  { %6727 = vmatpush3.xpose.msk.msra.mxu0 %vm139_vm2, %v678_v30  ;;  %6728 = vmatprep.mubr.msk.f32.mxu0 %vm7241_vm1, %v7240_v14 }
 0x161   :  { %6724 = vmatmul.mubr.msk.f32.vlgmr.msra.gmra.mrb[6].mxu1 %vm139_vm2, %v7344_v19  ;;  %6736 = vmatprep.subr.mxu0 %v7240_v14  ;;  %v926_v31 = vpop.permute.xlu0 %925 }
 0x162   :  { %6733 = vmatprep.mubr.msk.f32.mxu1 %vm7241_vm1, %v7240_v14 }
 0x163   :  { %6729 = vmatmul.mubr.msk.f32.vlgmr.msra.gmra.mrb[14].mxu0 %vm139_vm2, %v7349_v21  ;;  %v850_v32 = vpop.permute.xlu1 %849 }
 0x164   :  { %6732 = vmatpush3.msra.mxu1 %v850_v32  ;;  %6737 = vmatpush3.msra.mxu0 %v926_v31 }
 0x165   :  { %6741 = vmatprep.subr.mxu1 %v7240_v14  ;;  %6738 = vmatprep.mubr.msk.f32.mxu0 %vm7241_vm1, %v7240_v14  ;;  %v7438_v2 = vpop.permute.xlu0 %1153 }
 0x166   :  { %6746 = vmatprep.subr.mxu0 %v7240_v14 }
 0x167   :  { %v7436_v1 = vpop.permute.xlu1 %1001 }
 0x169   :  { %v7442_v4 = vpop.permute.xlu0 %1305 }
 0x16b   :  { %v7440_v3 = vpop.permute.xlu1 %1077 }
 0x16d   :  { %v7446_v6 = vpop.permute.xlu0 %1459 }
 0x16f   :  { %v7444_v5 = vpop.permute.xlu1 %1381 }
 0x173   :  { %v7448_v7 = vpop.permute.xlu1 %1537 }
 0x177   :  { %v7450_v9 = vpop.permute.xlu1 %1229 }
 0x227   :  { %v364_v33 = vpop.f32.mrb[0].mxu1 }
 0x228   :  { %v755_v34 = vmul.f32 0.35355338, %v364_v33  ;;  %v210_v35 = vpop.f32.mrb[8].mxu0  ;;  %v6705_v36 = vpop.f32.mrb[1].mxu1 }
 0x229   :  { %v6695_v37 = vpop.f32.mrb[9].mxu0  ;;  %v753_v38 = vmul.f32 0.35355338, %v210_v35 }
 0x22a   :  { %v767_v39 = vsel %vm139_vm2, %v755_v34, -inf }
 0x22b   :  { %v441_v40 = vpop.f32.mrb[2].mxu1  ;;  %768 = vmax.xlane.f32.xlu0 %v767_v39  ;;  %v761_v46 = vsel %vm139_vm2, %v753_v38, -inf }
 0x22c   :  { %v287_v41 = vpop.f32.mrb[10].mxu0  ;;  %v6710_v42 = vpop.f32.mrb[3].mxu1  ;;  %v756_v45 = vmul.f32 0.35355338, %v441_v40 }
 0x22d   :  { %v754_v43 = vmul.f32 0.35355338, %v287_v41  ;;  %v6700_v44 = vpop.f32.mrb[11].mxu0 }
 0x22e   :  { %v770_v52 = vsel %vm139_vm2, %v756_v45, -inf }
 0x22f   :  { %762 = vmax.xlane.f32.xlu0 %v761_v46  ;;  %v764_v47 = vsel %vm139_vm2, %v754_v43, -inf }
 0x230   :  { %v518_v48 = vpop.f32.mrb[4].mxu1  ;;  %765 = vmax.xlane.f32.xlu1 %v764_v47 }
 0x231   :  { %v7421_v49 = vmul.f32 0.35355338, %v518_v48  ;;  %v6715_v50 = vpop.f32.mrb[5].mxu1 }
 0x232   :  { %v595_v51 = vpop.f32.mrb[12].mxu0 }
 0x233   :  { %v7424_v53 = vmul.f32 0.35355338, %v595_v51  ;;  %771 = vmax.xlane.f32.xlu0 %v770_v52  ;;  %v6720_v54 = vpop.f32.mrb[13].mxu0  ;;  %v773_v55 = vsel %vm139_vm2, %v7421_v49, -inf }
 0x234   :  { %v672_v56 = vpop.f32.mrb[6].mxu1  ;;  %774 = vmax.xlane.f32.xlu1 %v773_v55 }
 0x235   :  { %v759_v57 = vmul.f32 0.35355338, %v672_v56  ;;  %v6725_v58 = vpop.f32.mrb[7].mxu1  ;;  %v776_v59 = vsel %vm139_vm2, %v7424_v53, -inf }
 0x236   :  { %v749_v60 = vpop.f32.mrb[14].mxu0 }
 0x237   :  { %v760_v61 = vmul.f32 0.35355338, %v749_v60  ;;  %777 = vmax.xlane.f32.xlu0 %v776_v59  ;;  %v6730_v62 = vpop.f32.mrb[15].mxu0  ;;  %v779_v63 = vsel %vm139_vm2, %v759_v57, -inf }
 0x238   :  { %780 = vmax.xlane.f32.xlu1 %v779_v63 }
 0x239   :  { %v782_v0 = vsel %vm139_vm2, %v760_v61, -inf }
 0x23b   :  { %783 = vmax.xlane.f32.xlu0 %v782_v0 }
 0x249   :  { %1535 = vrot.lane.b32.xlu1 %v7340_v18, %s7245_s18 }
 0x251   :  { %1457 = vrot.lane.b32.xlu0 %v7335_v16, %s7245_s18 }
 0x2b8   :  { %v769_v8 = vpop.xlane.xlu0 %768 }
 0x2b9   :  { %v787_v10 = vsub.f32 %v755_v34, %v769_v8 }
 0x2bb   :  { %v797_v11 = vmul.f32 1.442695, %v787_v10 }
 0x2bc   :  { %v763_v12 = vpop.xlane.xlu0 %762 }
 0x2bd   :  { %7046 = vpow2.f32 %v797_v11  ;;  %v785_v13 = vsub.f32 %v753_v38, %v763_v12  ;;  %v766_v23 = vpop.xlane.xlu1 %765 }
 0x2be   :  { %v786_v25 = vsub.f32 %v754_v43, %v766_v23 }
 0x2bf   :  { %v793_v24 = vmul.f32 1.442695, %v785_v13 }
 0x2c0   :  { %v772_v26 = vpop.xlane.xlu0 %771  ;;  %v795_v28 = vmul.f32 1.442695, %v786_v25 }
 0x2c1   :  { %7048 = vpow2.f32 %v793_v24  ;;  %v788_v27 = vsub.f32 %v756_v45, %v772_v26  ;;  %v775_v38 = vpop.xlane.xlu1 %774 }
 0x2c2   :  { %v789_v39 = vsub.f32 %v7421_v49, %v775_v38 }
 0x2c3   :  { %v799_v29 = vmul.f32 1.442695, %v788_v27 }
 0x2c4   :  { %v778_v41 = vpop.xlane.xlu0 %777  ;;  %v801_v42 = vmul.f32 1.442695, %v789_v39 }
 0x2c5   :  { %7050 = vpow2.f32 %v799_v29  ;;  %v781_v40 = vpop.xlane.xlu1 %780  ;;  %v790_v44 = vsub.f32 %v7424_v53, %v778_v41 }
 0x2c6   :  { %7052 = vpow2.f32 %v795_v28  ;;  %v791_v43 = vsub.f32 %v759_v57, %v781_v40 }
 0x2c7   :  { %v7452_v30 = vpop.eup %7046  ;;  %7054 = vpow2.f32 %v801_v42  ;;  %v803_v47 = vmul.f32 1.442695, %v790_v44 }
 0x2c8   :  { %v815_v31 = vsel %vm139_vm2, %v7452_v30, 0.0  ;;  %v805_v45 = vmul.f32 1.442695, %v791_v43  ;;  %v784_v46 = vpop.xlane.xlu0 %783 }
 0x2c9   :  { %816 = vadd.xlane.f32.xlu1 %v815_v31  ;;  %v792_v48 = vsub.f32 %v760_v61, %v784_v46  ;;  %v7507_v58 = vpop.permute.xlu1 %1535 }
 0x2ca   :  { %7056 = vpow2.f32 %v805_v45 }
 0x2cb   :  { %v7049_v32 = vpop.eup %7048  ;;  %7058 = vpow2.f32 %v803_v47  ;;  %v807_v50 = vmul.f32 1.442695, %v792_v48 }
 0x2cc   :  { %v809_v33 = vsel %vm139_vm2, %v7049_v32, 0.0  ;;  %v7509_v60 = vpop.permute.xlu0 %1457 }
 0x2cd   :  { %810 = vadd.xlane.f32.xlu1 %v809_v33  ;;  %7060 = vpow2.f32 %v807_v50 }
 0x2cf   :  { %v7457_v34 = vpop.eup %7050 }
 0x2d0   :  { %v818_v35 = vsel %vm139_vm2, %v7457_v34, 0.0  ;;  %v7461_v36 = vpop.eup %7052 }
 0x2d1   :  { %819 = vadd.xlane.f32.xlu0 %v818_v35  ;;  %v812_v37 = vsel %vm139_vm2, %v7461_v36, 0.0  ;;  %v7471_v51 = vpop.eup %7054 }
 0x2d2   :  { %v821_v49 = vsel %vm139_vm2, %v7471_v51, 0.0 }
 0x2d4   :  { %v7475_v52 = vpop.eup %7056 }
 0x2d5   :  { %813 = vadd.xlane.f32.xlu0 %v812_v37  ;;  %v827_v54 = vsel %vm139_vm2, %v7475_v52, 0.0  ;;  %v7479_v53 = vpop.eup %7058 }
 0x2d6   :  { %v824_v55 = vsel %vm139_vm2, %v7479_v53, 0.0 }
 0x2d7   :  { %v7483_v56 = vpop.eup %7060 }
 0x2d8   :  { %v830_v57 = vsel %vm139_vm2, %v7483_v56, 0.0 }
 0x2de   :  { %1693 = vrot.lane.b32.xlu1 %v7338_v17, %s7244_s17 }
 0x2eb   :  { %1615 = vrot.lane.b32.xlu0 %v7332_v15, %s7244_s17 }
 0x302   :  { %822 = vadd.xlane.f32.xlu1 %v821_v49 }
 0x306   :  { %828 = vadd.xlane.f32.xlu1 %v827_v54 }
 0x30a   :  { %825 = vadd.xlane.f32.xlu0 %v824_v55 }
 0x30e   :  { %831 = vadd.xlane.f32.xlu0 %v830_v57 }
 0x317   :  { %1691 = vrot.lane.b32.xlu1 %v7338_v17, %s7245_s18 }
 0x31b   :  { %1849 = vrot.lane.b32.xlu1 %v7351_v22, %s7244_s17 }
 0x31f   :  { %1847 = vrot.lane.b32.xlu1 %v7351_v22, %s7245_s18 }
 0x323   :  { %2005 = vrot.lane.b32.xlu1 %v7349_v21, %s7244_s17 }
 0x324   :  { %1613 = vrot.lane.b32.xlu0 %v7332_v15, %s7245_s18 }
 0x327   :  { %2003 = vrot.lane.b32.xlu1 %v7349_v21, %s7245_s18 }
 0x328   :  { %1771 = vrot.lane.b32.xlu0 %v7346_v20, %s7244_s17 }
 0x32c   :  { %1769 = vrot.lane.b32.xlu0 %v7346_v20, %s7245_s18 }
 0x330   :  { %1927 = vrot.lane.b32.xlu0 %v7344_v19, %s7244_s17 }
 0x334   :  { %1925 = vrot.lane.b32.xlu0 %v7344_v19, %s7245_s18 }
 0x356   :  { %v817_v59 = vpop.xlane.xlu1 %816 }
 0x35a   :  { %v811_v61 = vpop.xlane.xlu1 %810 }
 0x35b   :  { %7062 = vrcp.f32 %v811_v61 }
 0x35c   :  { %7064 = vrcp.f32 %v817_v59 }
 0x35e   :  { %v820_v62 = vpop.xlane.xlu0 %819 }
 0x362   :  { %v814_v63 = vpop.xlane.xlu0 %813 }
 0x363   :  { %7066 = vrcp.f32 %v814_v63 }
 0x364   :  { %7068 = vrcp.f32 %v820_v62 }
 0x365   :  { %v7063_v0 = vpop.eup %7062 }
 0x366   :  { %v841_v8 = vmul.f32 %v7063_v0, %v7049_v32  ;;  %v7065_v10 = vpop.eup %7064 }
 0x367   :  { %v843_v11 = vmul.f32 %v7065_v10, %v7452_v30 }
 0x368   :  { %6734 = vmatmul.mubr.msk.f32.vlgmr.msra.gmra.mrb[8].mxu1 %vm139_vm2, %v841_v8 }
 0x369   :  { %6742 = vmatpush3.msra.mxu1 %v7436_v1  ;;  %6743 = vmatprep.mubr.msk.f32.mxu1 %vm7241_vm1, %v7240_v14 }
 0x36a   :  { %6751 = vmatprep.subr.mxu1 %v7240_v14 }
 0x36c   :  { %6744 = vmatmul.mubr.msk.f32.vlgmr.msra.gmra.mrb[10].mxu1 %vm139_vm2, %v843_v11 }
 0x36d   :  { %v7067_v12 = vpop.eup %7066  ;;  %6752 = vmatpush3.msra.mxu1 %v7438_v2  ;;  %6753 = vmatprep.mubr.msk.f32.mxu1 %vm7241_vm1, %v7240_v14  ;;  %v1694_v2 = vpop.permute.xlu1 %1693 }
 0x36e   :  { %v842_v13 = vmul.f32 %v7067_v12, %v7461_v36  ;;  %6761 = vmatprep.subr.mxu1 %v7240_v14  ;;  %v7069_v1 = vpop.eup %7068 }
 0x36f   :  { %v844_v23 = vmul.f32 %v7069_v1, %v7457_v34 }
 0x370   :  { %6739 = vmatmul.mubr.msk.f32.vlgmr.msra.gmra.mrb[16].mxu0 %vm139_vm2, %v842_v13 }
 0x371   :  { %6747 = vmatpush3.msra.mxu0 %v7440_v3  ;;  %6748 = vmatprep.mubr.msk.f32.mxu0 %vm7241_vm1, %v7240_v14  ;;  %v1616_v3 = vpop.permute.xlu0 %1615 }
 0x372   :  { %6756 = vmatprep.subr.mxu0 %v7240_v14 }
 0x374   :  { %6749 = vmatmul.mubr.msk.f32.vlgmr.msra.gmra.mrb[18].mxu0 %vm139_vm2, %v844_v23 }
 0x375   :  { %6757 = vmatpush3.msra.mxu0 %v7450_v9  ;;  %6758 = vmatprep.mubr.msk.f32.mxu0 %vm7241_vm1, %v7240_v14 }
 0x376   :  { %6766 = vmatprep.subr.mxu0 %v7240_v14 }
 0x38f   :  { %v823_v24 = vpop.xlane.xlu1 %822 }
 0x390   :  { %7070 = vrcp.f32 %v823_v24 }
 0x393   :  { %v829_v25 = vpop.xlane.xlu1 %828 }
 0x394   :  { %7072 = vrcp.f32 %v829_v25 }
 0x397   :  { %v826_v26 = vpop.xlane.xlu0 %825  ;;  %v1692_v33 = vpop.permute.xlu1 %1691 }
 0x398   :  { %7074 = vrcp.f32 %v826_v26 }
 0x39a   :  { %v7071_v27 = vpop.eup %7070 }
 0x39b   :  { %v832_v28 = vpop.xlane.xlu0 %831  ;;  %v845_v29 = vmul.f32 %v7071_v27, %v7471_v51  ;;  %v1850_v38 = vpop.permute.xlu1 %1849 }
 0x39c   :  { %7076 = vrcp.f32 %v832_v28 }
 0x39d   :  { %6754 = vmatmul.mubr.msk.f32.vlgmr.msra.gmra.mrb[12].mxu1 %vm139_vm2, %v845_v29 }
 0x39e   :  { %v7073_v9 = vpop.eup %7072  ;;  %6762 = vmatpush3.msra.mxu1 %v7442_v4  ;;  %6763 = vmatprep.mubr.msk.f32.mxu1 %vm7241_vm1, %v7240_v14 }
 0x39f   :  { %v1614_v30 = vpop.permute.xlu0 %1613  ;;  %v847_v31 = vmul.f32 %v7073_v9, %v7475_v52  ;;  %6771 = vmatprep.subr.mxu1 %v7240_v14 }
 0x3a1   :  { %6764 = vmatmul.mubr.msk.f32.vlgmr.msra.gmra.mrb[14].mxu1 %vm139_vm2, %v847_v31 }
 0x3a2   :  { %v7075_v32 = vpop.eup %7074  ;;  %6773 = vmatprep.mubr.msk.f32.mxu1 %vm7241_vm1, %v7240_v14 }
 0x3a3   :  { %v1772_v34 = vpop.permute.xlu0 %1771  ;;  %v846_v35 = vmul.f32 %v7075_v32, %v7479_v53 }
 0x3a5   :  { %6772 = vmatpush3.xpose.msk.msra.mxu1 %vm139_vm2, %v7446_v6  ;;  %6759 = vmatmul.mubr.msk.f32.vlgmr.msra.gmra.mrb[20].mxu0 %vm139_vm2, %v846_v35  ;;  %v1848_v6 = vpop.permute.xlu1 %1847 }
 0x3a6   :  { %v7077_v4 = vpop.eup %7076  ;;  %6767 = vmatpush3.msra.mxu0 %v7444_v5  ;;  %6781 = vmatprep.subr.mxu1 %v7240_v14 }
 0x3a7   :  { %v1770_v36 = vpop.permute.xlu0 %1769  ;;  %6768 = vmatprep.mubr.msk.f32.mxu0 %vm7241_vm1, %v7240_v14  ;;  %v848_v37 = vmul.f32 %v7077_v4, %v7483_v56  ;;  %6776 = vmatprep.subr.mxu0 %v7240_v14 }
 0x3a8   :  { %6774 = vmatmul.mubr.msk.f32.vlgmr.msra.gmra.mrb[16].mxu1 %vm139_vm2, %v7509_v60 }
 0x3a9   :  { %6782 = vmatpush3.xpose.msk.msra.mxu1 %vm139_vm2, %v1616_v3  ;;  %6769 = vmatmul.mubr.msk.f32.vlgmr.msra.gmra.mrb[22].mxu0 %vm139_vm2, %v848_v37  ;;  %v2006_v39 = vpop.permute.xlu1 %2005 }
 0x3aa   :  { %6783 = vmatprep.mubr.msk.f32.mxu1 %vm7241_vm1, %v7240_v14  ;;  %6791 = vmatprep.subr.mxu1 %v7240_v14 }
 0x3ab   :  { %6778 = vmatprep.mubr.msk.f32.mxu0 %vm7241_vm1, %v7240_v14  ;;  %v1928_v5 = vpop.permute.xlu0 %1927 }
 0x3ac   :  { %6784 = vmatmul.mubr.msk.f32.vlgmr.msra.gmra.mrb[18].mxu1 %vm139_vm2, %v1614_v30 }
 0x3ad   :  { %6777 = vmatpush3.xpose.msk.msra.mxu0 %vm139_vm2, %v7448_v7  ;;  %6792 = vmatpush3.xpose.msk.msra.mxu1 %vm139_vm2, %v1772_v34  ;;  %v2004_v40 = vpop.permute.xlu1 %2003 }
 0x3ae   :  { %6793 = vmatprep.mubr.msk.f32.mxu1 %vm7241_vm1, %v7240_v14  ;;  %6786 = vmatprep.subr.mxu0 %v7240_v14 }
 0x3af   :  { %6801 = vmatprep.subr.mxu1 %v7240_v14  ;;  %v1926_v7 = vpop.permute.xlu0 %1925 }
 0x3b0   :  { %6779 = vmatmul.mubr.msk.f32.vlgmr.msra.gmra.mrb[24].mxu0 %vm139_vm2, %v7507_v58  ;;  %6794 = vmatmul.mubr.msk.f32.vlgmr.msra.gmra.mrb[20].mxu1 %vm139_vm2, %v1770_v36 }
 0x3b1   :  { %6787 = vmatpush3.xpose.msk.msra.mxu0 %vm139_vm2, %v1694_v2  ;;  %6802 = vmatpush3.xpose.msk.msra.mxu1 %vm139_vm2, %v1928_v5 }
 0x3b2   :  { %6788 = vmatprep.mubr.msk.f32.mxu0 %vm7241_vm1, %v7240_v14  ;;  %6803 = vmatprep.mubr.msk.f32.mxu1 %vm7241_vm1, %v7240_v14 }
 0x3b3   :  { %6796 = vmatprep.subr.mxu0 %v7240_v14  ;;  %6811 = vmatprep.subr.mxu1 %v7240_v14 }
 0x3b4   :  { %6789 = vmatmul.mubr.msk.f32.vlgmr.msra.gmra.mrb[26].mxu0 %vm139_vm2, %v1692_v33  ;;  %6804 = vmatmul.mubr.msk.f32.vlgmr.msra.gmra.mrb[22].mxu1 %vm139_vm2, %v1926_v7 }
 0x3b5   :  { %6797 = vmatpush3.xpose.msk.msra.mxu0 %vm139_vm2, %v1850_v38  ;;  %6798 = vmatprep.mubr.msk.f32.mxu0 %vm7241_vm1, %v7240_v14 }
 0x3b6   :  { %6806 = vmatprep.subr.mxu0 %v7240_v14  ;;  %6813 = vmatprep.mubr.msk.f32.mxu1 %vm7241_vm1, %v7240_v14 }
 0x3b8   :  { %6799 = vmatmul.mubr.msk.f32.vlgmr.msra.gmra.mrb[28].mxu0 %vm139_vm2, %v1848_v6 }
 0x3b9   :  { %6807 = vmatpush3.xpose.msk.msra.mxu0 %vm139_vm2, %v2006_v39  ;;  %6808 = vmatprep.mubr.msk.f32.mxu0 %vm7241_vm1, %v7240_v14 }
 0x3ba   :  { %6816 = vmatprep.subr.mxu0 %v7240_v14 }
 0x3bc   :  { %6809 = vmatmul.mubr.msk.f32.vlgmr.msra.gmra.mrb[30].mxu0 %vm139_vm2, %v2004_v40 }
 0x3bd   :  { %6818 = vmatprep.mubr.msk.f32.mxu0 %vm7241_vm1, %v7240_v14 }
 0x43b   :  { %v7598_v41 = vpop.f32.mrb[8].mxu1 }
 0x43c   :  { %v6735_v42 = vpop.f32.mrb[9].mxu1 }
 0x43f   :  { %v7600_v43 = vpop.f32.mrb[10].mxu1 }
 0x440   :  { %v6745_v44 = vpop.f32.mrb[11].mxu1 }
 0x443   :  { %v7602_v45 = vpop.f32.mrb[16].mxu0 }
 0x444   :  { %v6740_v46 = vpop.f32.mrb[17].mxu0 }
 0x447   :  { %v7604_v47 = vpop.f32.mrb[18].mxu0 }
 0x448   :  { %v6750_v48 = vpop.f32.mrb[19].mxu0 }
 0x470   :  { %v7606_v50 = vpop.f32.mrb[12].mxu1 }
 0x471   :  { %v6755_v51 = vpop.f32.mrb[13].mxu1 }
 0x474   :  { %v7608_v49 = vpop.f32.mrb[14].mxu1 }
 0x475   :  { %v6765_v52 = vpop.f32.mrb[15].mxu1 }
 0x478   :  { %v7610_v54 = vpop.f32.mrb[20].mxu0 }
 0x479   :  { %v6760_v53 = vpop.f32.mrb[21].mxu0 }
 0x47b   :  { %v1531_v55 = vpop.f32.mrb[16].mxu1 }
 0x47c   :  { %v2081_v56 = vmul.f32 0.35355338, %v1531_v55  ;;  %v6775_v57 = vpop.f32.mrb[17].mxu1  ;;  %v7612_v58 = vpop.f32.mrb[22].mxu0 }
 0x47d   :  { %v6770_v59 = vpop.f32.mrb[23].mxu0 }
 0x47e   :  { %v2089_v60 = vsel %vm139_vm2, %v2081_v56, -inf }
 0x47f   :  { %2090 = vmax.xlane.f32.xlu0 %v2089_v60  ;;  %v1687_v61 = vpop.f32.mrb[18].mxu1 }
 0x480   :  { %v2083_v62 = vmul.f32 0.35355338, %v1687_v61  ;;  %v6785_v63 = vpop.f32.mrb[19].mxu1 }
 0x482   :  { %v2095_v0 = vsel %vm139_vm2, %v2083_v62, -inf }
 0x483   :  { %2096 = vmax.xlane.f32.xlu0 %v2095_v0  ;;  %v1609_v8 = vpop.f32.mrb[24].mxu0  ;;  %v1843_v10 = vpop.f32.mrb[20].mxu1 }
 0x484   :  { %v2082_v11 = vmul.f32 0.35355338, %v1609_v8  ;;  %v6780_v12 = vpop.f32.mrb[25].mxu0  ;;  %v6795_v13 = vpop.f32.mrb[21].mxu1  ;;  %v2085_v1 = vmul.f32 0.35355338, %v1843_v10 }
 0x486   :  { %v2092_v23 = vsel %vm139_vm2, %v2082_v11, -inf  ;;  %v2101_v28 = vsel %vm139_vm2, %v2085_v1, -inf }
 0x487   :  { %v1999_v2 = vpop.f32.mrb[22].mxu1  ;;  %2093 = vmax.xlane.f32.xlu1 %v2092_v23  ;;  %v1765_v24 = vpop.f32.mrb[26].mxu0 }
 0x488   :  { %v2084_v3 = vmul.f32 0.35355338, %v1765_v24  ;;  %v6790_v25 = vpop.f32.mrb[27].mxu0  ;;  %v6805_v26 = vpop.f32.mrb[23].mxu1  ;;  %v2087_v27 = vmul.f32 0.35355338, %v1999_v2 }
 0x48a   :  { %v2098_v29 = vsel %vm139_vm2, %v2084_v3, -inf  ;;  %v2107_v32 = vsel %vm139_vm2, %v2087_v27, -inf }
 0x48b   :  { %2102 = vmax.xlane.f32.xlu1 %v2101_v28  ;;  %2099 = vmax.xlane.f32.xlu0 %v2098_v29  ;;  %v1921_v9 = vpop.f32.mrb[28].mxu0 }
 0x48c   :  { %v2086_v30 = vmul.f32 0.35355338, %v1921_v9  ;;  %v6800_v31 = vpop.f32.mrb[29].mxu0 }
 0x48e   :  { %v2104_v33 = vsel %vm139_vm2, %v2086_v30, -inf }
 0x48f   :  { %2108 = vmax.xlane.f32.xlu1 %v2107_v32  ;;  %2105 = vmax.xlane.f32.xlu0 %v2104_v33  ;;  %v2077_v34 = vpop.f32.mrb[30].mxu0 }
 0x490   :  { %v2088_v35 = vmul.f32 0.35355338, %v2077_v34  ;;  %v6810_v4 = vpop.f32.mrb[31].mxu0 }
 0x492   :  { %v2110_v36 = vsel %vm139_vm2, %v2088_v35, -inf }
 0x493   :  { %2111 = vmax.xlane.f32.xlu0 %v2110_v36 }
 0x4a0   :  { %2177 = vrot.lane.b32.xlu1 %v7335_v16, %s7246_s19 }
 0x4a4   :  { %2329 = vrot.lane.b32.xlu1 %v7332_v15, %s7246_s19 }
 0x4a8   :  { %2405 = vrot.lane.b32.xlu1 %v7338_v17, %s7246_s19 }
 0x4a9   :  { %2253 = vrot.lane.b32.xlu0 %v7340_v18, %s7246_s19 }
 0x4ac   :  { %2557 = vrot.lane.b32.xlu1 %v7351_v22, %s7246_s19 }
 0x4ad   :  { %2481 = vrot.lane.b32.xlu0 %v7346_v20, %s7246_s19 }
 0x4b0   :  { %2709 = vrot.lane.b32.xlu1 %v7349_v21, %s7246_s19 }
 0x4b1   :  { %2633 = vrot.lane.b32.xlu0 %v7344_v19, %s7246_s19 }
 0x4b4   :  { %2865 = vrot.lane.b32.xlu1 %v7340_v18, %s7247_s20 }
 0x4b5   :  { %2787 = vrot.lane.b32.xlu0 %v7335_v16, %s7247_s20 }
 0x4b8   :  { %2863 = vrot.lane.b32.xlu1 %v7340_v18, %s7248_s21 }
 0x4b9   :  { %2785 = vrot.lane.b32.xlu0 %v7335_v16, %s7248_s21 }
 0x4bc   :  { %3021 = vrot.lane.b32.xlu1 %v7338_v17, %s7247_s20 }
 0x4bd   :  { %2943 = vrot.lane.b32.xlu0 %v7332_v15, %s7247_s20 }
 0x50c   :  { %v2091_v37 = vpop.xlane.xlu0 %2090 }
 0x50d   :  { %v2113_v38 = vsub.f32 %v2081_v56, %v2091_v37 }
 0x50f   :  { %v2121_v5 = vmul.f32 1.442695, %v2113_v38 }
 0x510   :  { %v2097_v6 = vpop.xlane.xlu0 %2096 }
 0x511   :  { %7078 = vpow2.f32 %v2121_v5  ;;  %v2115_v7 = vsub.f32 %v2083_v62, %v2097_v6 }
 0x513   :  { %v2125_v39 = vmul.f32 1.442695, %v2115_v7 }
 0x514   :  { %v2094_v40 = vpop.xlane.xlu1 %2093 }
 0x515   :  { %7080 = vpow2.f32 %v2125_v39  ;;  %v2114_v42 = vsub.f32 %v2082_v11, %v2094_v40 }
 0x517   :  { %v2123_v44 = vmul.f32 1.442695, %v2114_v42 }
 0x518   :  { %v2103_v46 = vpop.xlane.xlu1 %2102  ;;  %v2100_v48 = vpop.xlane.xlu0 %2099 }
 0x519   :  { %7082 = vpow2.f32 %v2123_v44  ;;  %v2117_v51 = vsub.f32 %v2085_v1, %v2103_v46  ;;  %v2116_v52 = vsub.f32 %v2084_v3, %v2100_v48 }
 0x51b   :  { %v7642_v53 = vpop.eup %7078  ;;  %v2129_v55 = vmul.f32 1.442695, %v2117_v51  ;;  %v2127_v57 = vmul.f32 1.442695, %v2116_v52 }
 0x51c   :  { %v2109_v59 = vpop.xlane.xlu1 %2108  ;;  %v2106_v56 = vpop.xlane.xlu0 %2105  ;;  %v2137_v60 = vsel %vm139_vm2, %v7642_v53, 0.0 }
 0x51d   :  { %7084 = vpow2.f32 %v2129_v55  ;;  %v2119_v61 = vsub.f32 %v2087_v27, %v2109_v59  ;;  %v2118_v62 = vsub.f32 %v2086_v30, %v2106_v56  ;;  %2138 = vadd.xlane.f32.xlu1 %v2137_v60 }
 0x51e   :  { %7086 = vpow2.f32 %v2127_v57 }
 0x51f   :  { %v7646_v63 = vpop.eup %7080  ;;  %v2133_v0 = vmul.f32 1.442695, %v2119_v61  ;;  %v2131_v8 = vmul.f32 1.442695, %v2118_v62 }
 0x520   :  { %v2178_v10 = vpop.permute.xlu1 %2177  ;;  %v2112_v11 = vpop.xlane.xlu0 %2111  ;;  %v2143_v12 = vsel %vm139_vm2, %v7646_v63, 0.0 }
 0x521   :  { %7088 = vpow2.f32 %v2133_v0  ;;  %v2120_v13 = vsub.f32 %v2088_v35, %v2112_v11  ;;  %2144 = vadd.xlane.f32.xlu1 %v2143_v12  ;;  %6812 = vmatpush3.msra.mxu1 %v2178_v10 }
 0x522   :  { %7090 = vpow2.f32 %v2131_v8  ;;  %6821 = vmatprep.subr.mxu1 %v7240_v14 }
 0x523   :  { %v7651_v1 = vpop.eup %7082  ;;  %v2135_v23 = vmul.f32 1.442695, %v2120_v13 }
 0x524   :  { %v2254_v2 = vpop.permute.xlu0 %2253  ;;  %v2140_v24 = vsel %vm139_vm2, %v7651_v1, 0.0  ;;  %v2330_v33 = vpop.permute.xlu1 %2329 }
 0x525   :  { %7092 = vpow2.f32 %v2135_v23  ;;  %2141 = vadd.xlane.f32.xlu0 %v2140_v24  ;;  %6817 = vmatpush3.msra.mxu0 %v2254_v2 }
 0x526   :  { %6826 = vmatprep.subr.mxu0 %v7240_v14 }
 0x527   :  { %v7656_v3 = vpop.eup %7084 }
 0x528   :  { %v7658_v25 = vpop.eup %7086  ;;  %v2149_v26 = vsel %vm139_vm2, %v7656_v3, 0.0  ;;  %v2406_v34 = vpop.permute.xlu1 %2405 }
 0x529   :  { %2150 = vadd.xlane.f32.xlu1 %v2149_v26  ;;  %v2146_v27 = vsel %vm139_vm2, %v7658_v25, 0.0  ;;  %v2482_v36 = vpop.permute.xlu0 %2481 }
 0x52a   :  { %2147 = vadd.xlane.f32.xlu0 %v2146_v27 }
 0x52b   :  { %v7664_v28 = vpop.eup %7088 }
 0x52c   :  { %v7666_v29 = vpop.eup %7090  ;;  %v2155_v9 = vsel %vm139_vm2, %v7664_v28, 0.0  ;;  %v2558_v35 = vpop.permute.xlu1 %2557 }
 0x52d   :  { %2156 = vadd.xlane.f32.xlu1 %v2155_v9  ;;  %v2152_v30 = vsel %vm139_vm2, %v7666_v29, 0.0  ;;  %v2634_v38 = vpop.permute.xlu0 %2633 }
 0x52e   :  { %2153 = vadd.xlane.f32.xlu0 %v2152_v30 }
 0x52f   :  { %v7672_v31 = vpop.eup %7092 }
 0x530   :  { %v2158_v32 = vsel %vm139_vm2, %v7672_v31, 0.0  ;;  %v7712_v4 = vpop.permute.xlu1 %2709 }
 0x531   :  { %v7718_v6 = vpop.permute.xlu0 %2787 }
 0x532   :  { %2159 = vadd.xlane.f32.xlu0 %v2158_v32 }
 0x534   :  { %v7714_v37 = vpop.permute.xlu1 %2865 }
 0x535   :  { %v7722_v39 = vpop.permute.xlu0 %2785 }
 0x538   :  { %v7716_v5 = vpop.permute.xlu1 %2863 }
 0x539   :  { %v7724_v42 = vpop.permute.xlu0 %2943 }
 0x53c   :  { %v7720_v7 = vpop.permute.xlu1 %3021 }
 0x53e   :  { %3019 = vrot.lane.b32.xlu1 %v7338_v17, %s7248_s21 }
 0x542   :  { %3177 = vrot.lane.b32.xlu1 %v7351_v22, %s7247_s20 }
 0x546   :  { %3175 = vrot.lane.b32.xlu1 %v7351_v22, %s7248_s21 }
 0x548   :  { %2941 = vrot.lane.b32.xlu0 %v7332_v15, %s7248_s21 }
 0x54a   :  { %3333 = vrot.lane.b32.xlu1 %v7349_v21, %s7247_s20 }
 0x54c   :  { %3099 = vrot.lane.b32.xlu0 %v7346_v20, %s7247_s20 }
 0x54e   :  { %3331 = vrot.lane.b32.xlu1 %v7349_v21, %s7248_s21 }
 0x550   :  { %3097 = vrot.lane.b32.xlu0 %v7346_v20, %s7248_s21 }
 0x552   :  { %3505 = vrot.lane.b32.xlu1 %v7335_v16, %s7249_s22 }
 0x554   :  { %3255 = vrot.lane.b32.xlu0 %v7344_v19, %s7247_s20 }
 0x556   :  { %3657 = vrot.lane.b32.xlu1 %v7332_v15, %s7249_s22 }
 0x558   :  { %3253 = vrot.lane.b32.xlu0 %v7344_v19, %s7248_s21 }
 0x55a   :  { %3733 = vrot.lane.b32.xlu1 %v7338_v17, %s7249_s22 }
 0x55c   :  { %3581 = vrot.lane.b32.xlu0 %v7340_v18, %s7249_s22 }
 0x55e   :  { %3885 = vrot.lane.b32.xlu1 %v7351_v22, %s7249_s22 }
 0x560   :  { %3809 = vrot.lane.b32.xlu0 %v7346_v20, %s7249_s22 }
 0x562   :  { %4037 = vrot.lane.b32.xlu1 %v7349_v21, %s7249_s22 }
 0x564   :  { %3961 = vrot.lane.b32.xlu0 %v7344_v19, %s7249_s22 }
 0x566   :  { %4193 = vrot.lane.b32.xlu1 %v7340_v18, %s7250_s23 }
 0x568   :  { %4115 = vrot.lane.b32.xlu0 %v7335_v16, %s7250_s23 }
 0x56a   :  { %4191 = vrot.lane.b32.xlu1 %v7340_v18, %s7251_s24 }
 0x56c   :  { %4113 = vrot.lane.b32.xlu0 %v7335_v16, %s7251_s24 }
 0x5aa   :  { %v2139_v40 = vpop.xlane.xlu1 %2138 }
 0x5ab   :  { %7094 = vrcp.f32 %v2139_v40 }
 0x5ae   :  { %v2145_v44 = vpop.xlane.xlu1 %2144 }
 0x5af   :  { %7096 = vrcp.f32 %v2145_v44 }
 0x5b2   :  { %v2142_v46 = vpop.xlane.xlu0 %2141 }
 0x5b3   :  { %7098 = vrcp.f32 %v2142_v46 }
 0x5b5   :  { %v7095_v48 = vpop.eup %7094 }
 0x5b6   :  { %v2151_v51 = vpop.xlane.xlu1 %2150  ;;  %v2169_v52 = vmul.f32 %v7095_v48, %v7642_v53 }
 0x5b7   :  { %7100 = vrcp.f32 %v2151_v51  ;;  %v2148_v55 = vpop.xlane.xlu0 %2147 }
 0x5b8   :  { %7102 = vrcp.f32 %v2148_v55  ;;  %6814 = vmatmul.mubr.msk.f32.vlgmr.msra.gmra.mrb[24].mxu1 %vm139_vm2, %v2169_v52 }
 0x5b9   :  { %v7097_v57 = vpop.eup %7096  ;;  %6822 = vmatpush3.msra.mxu1 %v2330_v33  ;;  %6823 = vmatprep.mubr.msk.f32.mxu1 %vm7241_vm1, %v7240_v14 }
 0x5ba   :  { %v2157_v59 = vpop.xlane.xlu1 %2156  ;;  %6831 = vmatprep.subr.mxu1 %v7240_v14  ;;  %v2171_v56 = vmul.f32 %v7097_v57, %v7646_v63 }
 0x5bb   :  { %7104 = vrcp.f32 %v2157_v59  ;;  %v2154_v60 = vpop.xlane.xlu0 %2153 }
 0x5bc   :  { %7106 = vrcp.f32 %v2154_v60  ;;  %6824 = vmatmul.mubr.msk.f32.vlgmr.msra.gmra.mrb[26].mxu1 %vm139_vm2, %v2171_v56 }
 0x5bd   :  { %v7099_v53 = vpop.eup %7098  ;;  %6832 = vmatpush3.msra.mxu1 %v2482_v36  ;;  %6833 = vmatprep.mubr.msk.f32.mxu1 %vm7241_vm1, %v7240_v14 }
 0x5be   :  { %v3020_v61 = vpop.permute.xlu1 %3019  ;;  %v2170_v62 = vmul.f32 %v7099_v53, %v7651_v1  ;;  %6841 = vmatprep.subr.mxu1 %v7240_v14 }
 0x5bf   :  { %v2160_v0 = vpop.xlane.xlu0 %2159 }
 0x5c0   :  { %7108 = vrcp.f32 %v2160_v0  ;;  %6819 = vmatmul.mubr.msk.f32.vlgmr.msra.gmra.mrb[32].mxu0 %vm139_vm2, %v2170_v62 }
 0x5c1   :  { %v7101_v63 = vpop.eup %7100  ;;  %6827 = vmatpush3.msra.mxu0 %v2406_v34  ;;  %6828 = vmatprep.mubr.msk.f32.mxu0 %vm7241_vm1, %v7240_v14 }
 0x5c2   :  { %v7103_v8 = vpop.eup %7102  ;;  %6836 = vmatprep.subr.mxu0 %v7240_v14  ;;  %v2173_v10 = vmul.f32 %v7101_v63, %v7656_v3  ;;  %v3178_v11 = vpop.permute.xlu1 %3177 }
 0x5c3   :  { %v2942_v12 = vpop.permute.xlu0 %2941  ;;  %v2172_v13 = vmul.f32 %v7103_v8, %v7658_v25 }
 0x5c4   :  { %6834 = vmatmul.mubr.msk.f32.vlgmr.msra.gmra.mrb[28].mxu1 %vm139_vm2, %v2173_v10 }
 0x5c5   :  { %v7105_v1 = vpop.eup %7104  ;;  %6829 = vmatmul.mubr.msk.f32.vlgmr.msra.gmra.mrb[34].mxu0 %vm139_vm2, %v2172_v13  ;;  %6842 = vmatpush3.msra.mxu1 %v2634_v38 }
 0x5c6   :  { %v7107_v23 = vpop.eup %7106  ;;  %6837 = vmatpush3.msra.mxu0 %v2558_v35  ;;  %6838 = vmatprep.mubr.msk.f32.mxu0 %vm7241_vm1, %v7240_v14  ;;  %v2175_v2 = vmul.f32 %v7105_v1, %v7664_v28  ;;  %v3176_v25 = vpop.permute.xlu1 %3175 }
 0x5c7   :  { %6843 = vmatprep.mubr.msk.f32.mxu1 %vm7241_vm1, %v7240_v14  ;;  %6846 = vmatprep.subr.mxu0 %v7240_v14  ;;  %v2174_v24 = vmul.f32 %v7107_v23, %v7666_v29  ;;  %v3100_v3 = vpop.permute.xlu0 %3099 }
 0x5c8   :  { %6844 = vmatmul.mubr.msk.f32.vlgmr.msra.gmra.mrb[30].mxu1 %vm139_vm2, %v2175_v2  ;;  %6851 = vmatprep.subr.mxu1 %v7240_v14 }
 0x5c9   :  { %6839 = vmatmul.mubr.msk.f32.vlgmr.msra.gmra.mrb[36].mxu0 %vm139_vm2, %v2174_v24  ;;  %6853 = vmatprep.mubr.msk.f32.mxu1 %vm7241_vm1, %v7240_v14 }
 0x5ca   :  { %v7109_v26 = vpop.eup %7108  ;;  %6847 = vmatpush3.msra.mxu0 %v7712_v4  ;;  %6848 = vmatprep.mubr.msk.f32.mxu0 %vm7241_vm1, %v7240_v14  ;;  %v3334_v29 = vpop.permute.xlu1 %3333 }
 0x5cb   :  { %v2176_v27 = vmul.f32 %v7109_v26, %v7672_v31  ;;  %6856 = vmatprep.subr.mxu0 %v7240_v14  ;;  %v3098_v28 = vpop.permute.xlu0 %3097 }
 0x5cc   :  { %6852 = vmatpush3.xpose.msk.msra.mxu1 %vm139_vm2, %v7718_v6 }
 0x5cd   :  { %6849 = vmatmul.mubr.msk.f32.vlgmr.msra.gmra.mrb[38].mxu0 %vm139_vm2, %v2176_v27  ;;  %6861 = vmatprep.subr.mxu1 %v7240_v14 }
 0x5ce   :  { %6858 = vmatprep.mubr.msk.f32.mxu0 %vm7241_vm1, %v7240_v14  ;;  %v3332_v30 = vpop.permute.xlu1 %3331 }
 0x5cf   :  { %6854 = vmatmul.mubr.msk.f32.vlgmr.msra.gmra.mrb[32].mxu1 %vm139_vm2, %v7722_v39  ;;  %v3256_v9 = vpop.permute.xlu0 %3255 }
 0x5d0   :  { %6862 = vmatpush3.xpose.msk.msra.mxu1 %vm139_vm2, %v7724_v42  ;;  %6863 = vmatprep.mubr.msk.f32.mxu1 %vm7241_vm1, %v7240_v14 }
 0x5d1   :  { %6857 = vmatpush3.xpose.msk.msra.mxu0 %vm139_vm2, %v7714_v37  ;;  %6871 = vmatprep.subr.mxu1 %v7240_v14 }
 0x5d2   :  { %6866 = vmatprep.subr.mxu0 %v7240_v14  ;;  %v3506_v32 = vpop.permute.xlu1 %3505 }
 0x5d3   :  { %6864 = vmatmul.mubr.msk.f32.vlgmr.msra.gmra.mrb[34].mxu1 %vm139_vm2, %v2942_v12  ;;  %v3254_v31 = vpop.permute.xlu0 %3253 }
 0x5d4   :  { %6859 = vmatmul.mubr.msk.f32.vlgmr.msra.gmra.mrb[40].mxu0 %vm139_vm2, %v7716_v5  ;;  %6872 = vmatpush3.xpose.msk.msra.mxu1 %vm139_vm2, %v3100_v3 }
 0x5d5   :  { %6867 = vmatpush3.xpose.msk.msra.mxu0 %vm139_vm2, %v7720_v7  ;;  %6868 = vmatprep.mubr.msk.f32.mxu0 %vm7241_vm1, %v7240_v14 }
 0x5d6   :  { %6873 = vmatprep.mubr.msk.f32.mxu1 %vm7241_vm1, %v7240_v14  ;;  %6876 = vmatprep.subr.mxu0 %v7240_v14 }
 0x5d7   :  { %6874 = vmatmul.mubr.msk.f32.vlgmr.msra.gmra.mrb[36].mxu1 %vm139_vm2, %v3098_v28  ;;  %6881 = vmatprep.subr.mxu1 %v7240_v14  ;;  %v3582_v33 = vpop.permute.xlu0 %3581 }
 0x5d8   :  { %6869 = vmatmul.mubr.msk.f32.vlgmr.msra.gmra.mrb[42].mxu0 %vm139_vm2, %v3020_v61  ;;  %6882 = vmatpush3.xpose.msk.msra.mxu1 %vm139_vm2, %v3256_v9 }
 0x5d9   :  { %6877 = vmatpush3.xpose.msk.msra.mxu0 %vm139_vm2, %v3178_v11  ;;  %6878 = vmatprep.mubr.msk.f32.mxu0 %vm7241_vm1, %v7240_v14 }
 0x5da   :  { %6883 = vmatprep.mubr.msk.f32.mxu1 %vm7241_vm1, %v7240_v14  ;;  %6886 = vmatprep.subr.mxu0 %v7240_v14 }
 0x5db   :  { %6884 = vmatmul.mubr.msk.f32.vlgmr.msra.gmra.mrb[38].mxu1 %vm139_vm2, %v3254_v31  ;;  %6891 = vmatprep.subr.mxu1 %v7240_v14 }
 0x5dc   :  { %6879 = vmatmul.mubr.msk.f32.vlgmr.msra.gmra.mrb[44].mxu0 %vm139_vm2, %v3176_v25  ;;  %6892 = vmatpush3.msra.mxu1 %v3506_v32 }
 0x5dd   :  { %6887 = vmatpush3.xpose.msk.msra.mxu0 %vm139_vm2, %v3334_v29  ;;  %6888 = vmatprep.mubr.msk.f32.mxu0 %vm7241_vm1, %v7240_v14 }
 0x5de   :  { %6896 = vmatprep.subr.mxu0 %v7240_v14  ;;  %6893 = vmatprep.mubr.msk.f32.mxu1 %vm7241_vm1, %v7240_v14 }
 0x5df   :  { %6901 = vmatprep.subr.mxu1 %v7240_v14 }
 0x5e0   :  { %6889 = vmatmul.mubr.msk.f32.vlgmr.msra.gmra.mrb[46].mxu0 %vm139_vm2, %v3332_v30 }
 0x5e1   :  { %6897 = vmatpush3.msra.mxu0 %v3582_v33  ;;  %6898 = vmatprep.mubr.msk.f32.mxu0 %vm7241_vm1, %v7240_v14 }
 0x5e2   :  { %6906 = vmatprep.subr.mxu0 %v7240_v14 }
 0x68b   :  { %v7813_v34 = vpop.f32.mrb[24].mxu1 }
 0x68c   :  { %v6815_v35 = vpop.f32.mrb[25].mxu1 }
 0x68f   :  { %v7815_v4 = vpop.f32.mrb[26].mxu1 }
 0x690   :  { %v6825_v36 = vpop.f32.mrb[27].mxu1 }
 0x691   :  { %v7847_v36 = vpop.permute.xlu1 %3657 }
 0x693   :  { %v7817_v37 = vpop.f32.mrb[32].mxu0 }
 0x694   :  { %v6820_v38 = vpop.f32.mrb[33].mxu0 }
 0x695   :  { %v7849_v38 = vpop.permute.xlu1 %3733 }
 0x697   :  { %v7819_v5 = vpop.f32.mrb[28].mxu1 }
 0x698   :  { %v7821_v6 = vpop.f32.mrb[34].mxu0  ;;  %v6835_v7 = vpop.f32.mrb[29].mxu1 }
 0x699   :  { %v6830_v39 = vpop.f32.mrb[35].mxu0  ;;  %v7851_v7 = vpop.permute.xlu0 %3809 }
 0x69a   :  { %v7853_v39 = vpop.permute.xlu1 %3885 }
 0x69b   :  { %v7823_v40 = vpop.f32.mrb[30].mxu1 }
 0x69c   :  { %v7825_v42 = vpop.f32.mrb[36].mxu0  ;;  %v6845_v44 = vpop.f32.mrb[31].mxu1 }
 0x69d   :  { %v6840_v46 = vpop.f32.mrb[37].mxu0  ;;  %v7855_v44 = vpop.permute.xlu0 %3961 }
 0x69e   :  { %v7857_v46 = vpop.permute.xlu1 %4037 }
 0x6a0   :  { %v7827_v48 = vpop.f32.mrb[38].mxu0 }
 0x6a1   :  { %v6850_v51 = vpop.f32.mrb[39].mxu0 }
 0x6a2   :  { %v2859_v52 = vpop.f32.mrb[32].mxu1  ;;  %v7859_v51 = vpop.permute.xlu0 %4115 }
 0x6a3   :  { %v3409_v55 = vmul.f32 0.35355338, %v2859_v52  ;;  %v6855_v57 = vpop.f32.mrb[33].mxu1  ;;  %v7861_v52 = vpop.permute.xlu1 %4193 }
 0x6a5   :  { %v3417_v59 = vsel %vm139_vm2, %v3409_v55, -inf }
 0x6a6   :  { %3418 = vmax.xlane.f32.xlu0 %v3417_v59  ;;  %v3015_v56 = vpop.f32.mrb[34].mxu1  ;;  %v7863_v57 = vpop.permute.xlu0 %4113 }
 0x6a7   :  { %v2937_v60 = vpop.f32.mrb[40].mxu0  ;;  %v3411_v53 = vmul.f32 0.35355338, %v3015_v56  ;;  %v6865_v61 = vpop.f32.mrb[35].mxu1 }
 0x6a8   :  { %v3410_v62 = vmul.f32 0.35355338, %v2937_v60  ;;  %v6860_v0 = vpop.f32.mrb[41].mxu0  ;;  %v7865_v56 = vpop.permute.xlu1 %4191 }
 0x6a9   :  { %v3423_v63 = vsel %vm139_vm2, %v3411_v53, -inf }
 0x6aa   :  { %3424 = vmax.xlane.f32.xlu0 %v3423_v63  ;;  %v3171_v8 = vpop.f32.mrb[36].mxu1  ;;  %v3420_v10 = vsel %vm139_vm2, %v3410_v62, -inf }
 0x6ab   :  { %v3413_v11 = vmul.f32 0.35355338, %v3171_v8  ;;  %3421 = vmax.xlane.f32.xlu1 %v3420_v10  ;;  %v3093_v12 = vpop.f32.mrb[42].mxu0  ;;  %v6875_v13 = vpop.f32.mrb[37].mxu1 }
 0x6ac   :  { %v3412_v1 = vmul.f32 0.35355338, %v3093_v12  ;;  %v6870_v23 = vpop.f32.mrb[43].mxu0 }
 0x6ad   :  { %v3429_v2 = vsel %vm139_vm2, %v3413_v11, -inf }
 0x6ae   :  { %v3327_v24 = vpop.f32.mrb[38].mxu1  ;;  %v3426_v3 = vsel %vm139_vm2, %v3412_v1, -inf }
 0x6af   :  { %v7834_v25 = vmul.f32 0.35355338, %v3327_v24  ;;  %3430 = vmax.xlane.f32.xlu1 %v3429_v2  ;;  %3427 = vmax.xlane.f32.xlu0 %v3426_v3  ;;  %v3249_v26 = vpop.f32.mrb[44].mxu0  ;;  %v6885_v27 = vpop.f32.mrb[39].mxu1 }
 0x6b0   :  { %v3414_v28 = vmul.f32 0.35355338, %v3249_v26  ;;  %v6880_v29 = vpop.f32.mrb[45].mxu0 }
 0x6b1   :  { %v3435_v9 = vsel %vm139_vm2, %v7834_v25, -inf }
 0x6b2   :  { %v3432_v30 = vsel %vm139_vm2, %v3414_v28, -inf }
 0x6b3   :  { %3436 = vmax.xlane.f32.xlu1 %v3435_v9  ;;  %3433 = vmax.xlane.f32.xlu0 %v3432_v30  ;;  %v3405_v31 = vpop.f32.mrb[46].mxu0 }
 0x6b4   :  { %v7839_v32 = vmul.f32 0.35355338, %v3405_v31  ;;  %v6890_v33 = vpop.f32.mrb[47].mxu0 }
 0x6b6   :  { %v3438_v35 = vsel %vm139_vm2, %v7839_v32, -inf }
 0x6b7   :  { %3439 = vmax.xlane.f32.xlu0 %v3438_v35 }
 0x6c4   :  { %4349 = vrot.lane.b32.xlu1 %v7338_v17, %s7250_s23 }
 0x6cd   :  { %4271 = vrot.lane.b32.xlu0 %v7332_v15, %s7250_s23 }
 0x733   :  { %v3419_v59 = vpop.xlane.xlu0 %3418 }
 0x734   :  { %v3441_v60 = vsub.f32 %v3409_v55, %v3419_v59 }
 0x736   :  { %v3449_v61 = vmul.f32 1.442695, %v3441_v60 }
 0x737   :  { %v3425_v0 = vpop.xlane.xlu0 %3424 }
 0x738   :  { %7110 = vpow2.f32 %v3449_v61  ;;  %v3443_v63 = vsub.f32 %v3411_v53, %v3425_v0  ;;  %v3422_v8 = vpop.xlane.xlu1 %3421 }
 0x739   :  { %v3442_v10 = vsub.f32 %v3410_v62, %v3422_v8 }
 0x73a   :  { %v3453_v12 = vmul.f32 1.442695, %v3443_v63 }
 0x73b   :  { %v3451_v13 = vmul.f32 1.442695, %v3442_v10 }
 0x73c   :  { %7112 = vpow2.f32 %v3453_v12  ;;  %v3431_v23 = vpop.xlane.xlu1 %3430  ;;  %v3428_v2 = vpop.xlane.xlu0 %3427 }
 0x73d   :  { %7114 = vpow2.f32 %v3451_v13  ;;  %v3445_v24 = vsub.f32 %v3413_v11, %v3431_v23  ;;  %v3444_v3 = vsub.f32 %v3412_v1, %v3428_v2 }
 0x73f   :  { %v3457_v26 = vmul.f32 1.442695, %v3445_v24  ;;  %v3455_v27 = vmul.f32 1.442695, %v3444_v3 }
 0x740   :  { %v3434_v29 = vpop.xlane.xlu0 %3433  ;;  %v3437_v0 = vpop.xlane.xlu1 %3436 }
 0x741   :  { %7116 = vpow2.f32 %v3457_v26  ;;  %v3446_v9 = vsub.f32 %v3414_v28, %v3434_v29  ;;  %v3447_v63 = vsub.f32 %v7834_v25, %v3437_v0 }
 0x742   :  { %v7111_v55 = vpop.eup %7110  ;;  %7118 = vpow2.f32 %v3455_v27 }
 0x743   :  { %v3459_v30 = vmul.f32 1.442695, %v3446_v9  ;;  %v3465_v53 = vsel %vm139_vm2, %v7111_v55, 0.0  ;;  %v3461_v10 = vmul.f32 1.442695, %v3447_v63 }
 0x744   :  { %3466 = vadd.xlane.f32.xlu1 %v3465_v53  ;;  %v3440_v8 = vpop.xlane.xlu0 %3439  ;;  %v7912_v25 = vpop.permute.xlu1 %4349 }
 0x745   :  { %7120 = vpow2.f32 %v3459_v30  ;;  %v3448_v12 = vsub.f32 %v7839_v32, %v3440_v8 }
 0x746   :  { %v7113_v62 = vpop.eup %7112  ;;  %7122 = vpow2.f32 %v3461_v10 }
 0x747   :  { %v7115_v31 = vpop.eup %7114  ;;  %v3471_v33 = vsel %vm139_vm2, %v7113_v62, 0.0  ;;  %v3463_v13 = vmul.f32 1.442695, %v3448_v12 }
 0x748   :  { %3472 = vadd.xlane.f32.xlu1 %v3471_v33  ;;  %v3468_v11 = vsel %vm139_vm2, %v7115_v31, 0.0  ;;  %v7914_v26 = vpop.permute.xlu0 %4271 }
 0x749   :  { %3469 = vadd.xlane.f32.xlu0 %v3468_v11  ;;  %7124 = vpow2.f32 %v3463_v13 }
 0x74b   :  { %v7870_v1 = vpop.eup %7116 }
 0x74c   :  { %v7872_v35 = vpop.eup %7118  ;;  %v3477_v28 = vsel %vm139_vm2, %v7870_v1, 0.0 }
 0x74d   :  { %3478 = vadd.xlane.f32.xlu1 %v3477_v28  ;;  %v3474_v59 = vsel %vm139_vm2, %v7872_v35, 0.0 }
 0x74e   :  { %3475 = vadd.xlane.f32.xlu0 %v3474_v59 }
 0x74f   :  { %v7878_v60 = vpop.eup %7120 }
 0x750   :  { %v3480_v61 = vsel %vm139_vm2, %v7878_v60, 0.0  ;;  %v7888_v23 = vpop.eup %7122 }
 0x751   :  { %v3483_v2 = vsel %vm139_vm2, %v7888_v23, 0.0 }
 0x752   :  { %3481 = vadd.xlane.f32.xlu0 %v3480_v61 }
 0x753   :  { %v7892_v24 = vpop.eup %7124 }
 0x754   :  { %v3486_v3 = vsel %vm139_vm2, %v7892_v24, 0.0 }
 0x75e   :  { %4347 = vrot.lane.b32.xlu1 %v7338_v17, %s7251_s24 }
 0x768   :  { %4269 = vrot.lane.b32.xlu0 %v7332_v15, %s7251_s24 }
 0x782   :  { %3484 = vadd.xlane.f32.xlu1 %v3483_v2 }
 0x787   :  { %3487 = vadd.xlane.f32.xlu0 %v3486_v3 }
 0x793   :  { %4505 = vrot.lane.b32.xlu1 %v7351_v22, %s7250_s23 }
 0x797   :  { %4503 = vrot.lane.b32.xlu1 %v7351_v22, %s7251_s24 }
 0x79b   :  { %4661 = vrot.lane.b32.xlu1 %v7349_v21, %s7250_s23 }
 0x79d   :  { %4427 = vrot.lane.b32.xlu0 %v7346_v20, %s7250_s23 }
 0x79f   :  { %4659 = vrot.lane.b32.xlu1 %v7349_v21, %s7251_s24 }
 0x7a1   :  { %4425 = vrot.lane.b32.xlu0 %v7346_v20, %s7251_s24 }
 0x7a5   :  { %4583 = vrot.lane.b32.xlu0 %v7344_v19, %s7250_s23 }
 0x7a9   :  { %4581 = vrot.lane.b32.xlu0 %v7344_v19, %s7251_s24 }
 0x7d1   :  { %v3467_v32 = vpop.xlane.xlu1 %3466 }
 0x7d2   :  { %7126 = vrcp.f32 %v3467_v32 }
 0x7d5   :  { %v3473_v27 = vpop.xlane.xlu1 %3472 }
 0x7d6   :  { %7128 = vrcp.f32 %v3473_v27  ;;  %v3470_v29 = vpop.xlane.xlu0 %3469 }
 0x7d7   :  { %7130 = vrcp.f32 %v3470_v29 }
 0x7da   :  { %v3479_v9 = vpop.xlane.xlu1 %3478 }
 0x7db   :  { %7132 = vrcp.f32 %v3479_v9  ;;  %v3476_v30 = vpop.xlane.xlu0 %3475 }
 0x7dc   :  { %v7127_v53 = vpop.eup %7126  ;;  %7134 = vrcp.f32 %v3476_v30 }
 0x7dd   :  { %v3497_v33 = vmul.f32 %v7127_v53, %v7111_v55 }
 0x7df   :  { %v3482_v11 = vpop.xlane.xlu0 %3481  ;;  %6894 = vmatmul.mubr.msk.f32.vlgmr.msra.gmra.mrb[40].mxu1 %vm139_vm2, %v3497_v33 }
 0x7e0   :  { %v7129_v28 = vpop.eup %7128  ;;  %7136 = vrcp.f32 %v3482_v11  ;;  %6902 = vmatpush3.msra.mxu1 %v7847_v36  ;;  %6903 = vmatprep.mubr.msk.f32.mxu1 %vm7241_vm1, %v7240_v14 }
 0x7e1   :  { %v7131_v59 = vpop.eup %7130  ;;  %6911 = vmatprep.subr.mxu1 %v7240_v14  ;;  %v3499_v61 = vmul.f32 %v7129_v28, %v7113_v62 }
 0x7e2   :  { %v3498_v0 = vmul.f32 %v7131_v59, %v7115_v31 }
 0x7e3   :  { %6904 = vmatmul.mubr.msk.f32.vlgmr.msra.gmra.mrb[42].mxu1 %vm139_vm2, %v3499_v61 }
 0x7e4   :  { %6899 = vmatmul.mubr.msk.f32.vlgmr.msra.gmra.mrb[48].mxu0 %vm139_vm2, %v3498_v0  ;;  %6912 = vmatpush3.msra.mxu1 %v7851_v7 }
 0x7e5   :  { %v7133_v55 = vpop.eup %7132  ;;  %6907 = vmatpush3.msra.mxu0 %v7849_v38  ;;  %6908 = vmatprep.mubr.msk.f32.mxu0 %vm7241_vm1, %v7240_v14 }
 0x7e6   :  { %v7135_v36 = vpop.eup %7134  ;;  %6913 = vmatprep.mubr.msk.f32.mxu1 %vm7241_vm1, %v7240_v14  ;;  %6916 = vmatprep.subr.mxu0 %v7240_v14  ;;  %v3501_v62 = vmul.f32 %v7133_v55, %v7870_v1  ;;  %v4270_v1 = vpop.permute.xlu0 %4269 }
 0x7e7   :  { %6921 = vmatprep.subr.mxu1 %v7240_v14  ;;  %v3500_v31 = vmul.f32 %v7135_v36, %v7872_v35 }
 0x7e8   :  { %6914 = vmatmul.mubr.msk.f32.vlgmr.msra.gmra.mrb[44].mxu1 %vm139_vm2, %v3501_v62 }
 0x7e9   :  { %6909 = vmatmul.mubr.msk.f32.vlgmr.msra.gmra.mrb[50].mxu0 %vm139_vm2, %v3500_v31  ;;  %6922 = vmatpush3.msra.mxu1 %v7855_v44 }
 0x7ea   :  { %v7137_v38 = vpop.eup %7136  ;;  %6917 = vmatpush3.msra.mxu0 %v7853_v39  ;;  %6918 = vmatprep.mubr.msk.f32.mxu0 %vm7241_vm1, %v7240_v14  ;;  %v4348_v39 = vpop.permute.xlu1 %4347 }
 0x7eb   :  { %6926 = vmatprep.subr.mxu0 %v7240_v14  ;;  %v3502_v7 = vmul.f32 %v7137_v38, %v7878_v60  ;;  %6923 = vmatprep.mubr.msk.f32.mxu1 %vm7241_vm1, %v7240_v14 }
 0x7ec   :  { %6931 = vmatprep.subr.mxu1 %v7240_v14 }
 0x7ed   :  { %6919 = vmatmul.mubr.msk.f32.vlgmr.msra.gmra.mrb[52].mxu0 %vm139_vm2, %v3502_v7 }
 0x7ee   :  { %6927 = vmatpush3.msra.mxu0 %v7857_v46  ;;  %6928 = vmatprep.mubr.msk.f32.mxu0 %vm7241_vm1, %v7240_v14 }
 0x7ef   :  { %6936 = vmatprep.subr.mxu0 %v7240_v14 }
 0x80f   :  { %v3485_v44 = vpop.xlane.xlu1 %3484 }
 0x810   :  { %7138 = vrcp.f32 %v3485_v44 }
 0x813   :  { %v4506_v10 = vpop.permute.xlu1 %4505 }
 0x814   :  { %v3488_v35 = vpop.xlane.xlu0 %3487 }
 0x815   :  { %7140 = vrcp.f32 %v3488_v35 }
 0x818   :  { %v4428_v63 = vpop.permute.xlu0 %4427 }
 0x81a   :  { %v7139_v60 = vpop.eup %7138 }
 0x81b   :  { %v3503_v8 = vmul.f32 %v7139_v60, %v7888_v23 }
 0x81c   :  { %v4426_v12 = vpop.permute.xlu0 %4425 }
 0x81d   :  { %6924 = vmatmul.mubr.msk.f32.vlgmr.msra.gmra.mrb[46].mxu1 %vm139_vm2, %v3503_v8 }
 0x81e   :  { %6932 = vmatpush3.xpose.msk.msra.mxu1 %vm139_vm2, %v7859_v51  ;;  %6933 = vmatprep.mubr.msk.f32.mxu1 %vm7241_vm1, %v7240_v14  ;;  %v4504_v51 = vpop.permute.xlu1 %4503 }
 0x81f   :  { %v7141_v46 = vpop.eup %7140  ;;  %6941 = vmatprep.subr.mxu1 %v7240_v14 }
 0x820   :  { %v3504_v13 = vmul.f32 %v7141_v46, %v7892_v24 }
 0x821   :  { %6934 = vmatmul.mubr.msk.f32.vlgmr.msra.gmra.mrb[48].mxu1 %vm139_vm2, %v7863_v57  ;;  %v4584_v57 = vpop.permute.xlu0 %4583 }
 0x822   :  { %6929 = vmatmul.mubr.msk.f32.vlgmr.msra.gmra.mrb[54].mxu0 %vm139_vm2, %v3504_v13  ;;  %6942 = vmatpush3.xpose.msk.msra.mxu1 %vm139_vm2, %v7914_v26 }
 0x823   :  { %6937 = vmatpush3.xpose.msk.msra.mxu0 %vm139_vm2, %v7861_v52  ;;  %6938 = vmatprep.mubr.msk.f32.mxu0 %vm7241_vm1, %v7240_v14  ;;  %v4662_v52 = vpop.permute.xlu1 %4661 }
 0x824   :  { %6943 = vmatprep.mubr.msk.f32.mxu1 %vm7241_vm1, %v7240_v14  ;;  %6946 = vmatprep.subr.mxu0 %v7240_v14 }
 0x825   :  { %6951 = vmatprep.subr.mxu1 %v7240_v14  ;;  %6944 = vmatmul.mubr.msk.f32.vlgmr.msra.gmra.mrb[50].mxu1 %vm139_vm2, %v4270_v1 }
 0x826   :  { %6939 = vmatmul.mubr.msk.f32.vlgmr.msra.gmra.mrb[56].mxu0 %vm139_vm2, %v7865_v56  ;;  %6952 = vmatpush3.xpose.msk.msra.mxu1 %vm139_vm2, %v4428_v63  ;;  %v4582_v56 = vpop.permute.xlu0 %4581 }
 0x827   :  { %6947 = vmatpush3.xpose.msk.msra.mxu0 %vm139_vm2, %v7912_v25  ;;  %6948 = vmatprep.mubr.msk.f32.mxu0 %vm7241_vm1, %v7240_v14  ;;  %v4660_v23 = vpop.permute.xlu1 %4659 }
 0x828   :  { %6953 = vmatprep.mubr.msk.f32.mxu1 %vm7241_vm1, %v7240_v14  ;;  %6956 = vmatprep.subr.mxu0 %v7240_v14 }
 0x829   :  { %6961 = vmatprep.subr.mxu1 %v7240_v14  ;;  %6954 = vmatmul.mubr.msk.f32.vlgmr.msra.gmra.mrb[52].mxu1 %vm139_vm2, %v4426_v12 }
 0x82a   :  { %6949 = vmatmul.mubr.msk.f32.vlgmr.msra.gmra.mrb[58].mxu0 %vm139_vm2, %v4348_v39  ;;  %6962 = vmatpush3.xpose.msk.msra.mxu1 %vm139_vm2, %v4584_v57 }
 0x82b   :  { %6957 = vmatpush3.xpose.msk.msra.mxu0 %vm139_vm2, %v4506_v10  ;;  %6958 = vmatprep.mubr.msk.f32.mxu0 %vm7241_vm1, %v7240_v14 }
 0x82c   :  { %6963 = vmatprep.mubr.msk.f32.mxu1 %vm7241_vm1, %v7240_v14  ;;  %6966 = vmatprep.subr.mxu0 %v7240_v14 }
 0x82d   :  { %6964 = vmatmul.mubr.msk.f32.vlgmr.msra.gmra.mrb[54].mxu1 %vm139_vm2, %v4582_v56  ;;  %6971 = vmatprep.subr.mxu1 %v7240_v14 }
 0x82e   :  { %6959 = vmatmul.mubr.msk.f32.vlgmr.msra.gmra.mrb[60].mxu0 %vm139_vm2, %v4504_v51  ;;  %6973 = vmatprep.mubr.msk.f32.mxu1 %vm7241_vm1, %v7240_v14 }
 0x82f   :  { %6967 = vmatpush3.xpose.msk.msra.mxu0 %vm139_vm2, %v4662_v52  ;;  %6968 = vmatprep.mubr.msk.f32.mxu0 %vm7241_vm1, %v7240_v14 }
 0x830   :  { %6976 = vmatprep.subr.mxu0 %v7240_v14 }
 0x832   :  { %6969 = vmatmul.mubr.msk.f32.vlgmr.msra.gmra.mrb[62].mxu0 %vm139_vm2, %v4660_v23 }
 0x833   :  { %6978 = vmatprep.mubr.msk.f32.mxu0 %vm7241_vm1, %v7240_v14 }
 0x8b2   :  { %v8003_v2 = vpop.f32.mrb[40].mxu1 }
 0x8b3   :  { %v6895_v24 = vpop.f32.mrb[41].mxu1 }
 0x8b6   :  { %v8005_v3 = vpop.f32.mrb[42].mxu1 }
 0x8b7   :  { %v8007_v25 = vpop.f32.mrb[48].mxu0  ;;  %v6905_v32 = vpop.f32.mrb[43].mxu1 }
 0x8b8   :  { %v6900_v26 = vpop.f32.mrb[49].mxu0 }
 0x8bb   :  { %v8009_v27 = vpop.f32.mrb[44].mxu1 }
 0x8bc   :  { %v8011_v29 = vpop.f32.mrb[50].mxu0  ;;  %v6915_v9 = vpop.f32.mrb[45].mxu1 }
 0x8bd   :  { %v6910_v30 = vpop.f32.mrb[51].mxu0 }
 0x8c0   :  { %v8013_v53 = vpop.f32.mrb[52].mxu0 }
 0x8c1   :  { %v6920_v33 = vpop.f32.mrb[53].mxu0 }
 0x8f0   :  { %v8015_v11 = vpop.f32.mrb[46].mxu1 }
 0x8f1   :  { %v6925_v28 = vpop.f32.mrb[47].mxu1 }
 0x8f4   :  { %v4187_v59 = vpop.f32.mrb[48].mxu1 }
 0x8f5   :  { %v8017_v61 = vpop.f32.mrb[54].mxu0  ;;  %v4737_v0 = vmul.f32 0.35355338, %v4187_v59  ;;  %v6935_v55 = vpop.f32.mrb[49].mxu1 }
 0x8f6   :  { %v6930_v36 = vpop.f32.mrb[55].mxu0 }
 0x8f7   :  { %v4745_v62 = vsel %vm139_vm2, %v4737_v0, -inf }
 0x8f8   :  { %4746 = vmax.xlane.f32.xlu0 %v4745_v62  ;;  %v4343_v31 = vpop.f32.mrb[50].mxu1 }
 0x8f9   :  { %v4265_v38 = vpop.f32.mrb[56].mxu0  ;;  %v4739_v7 = vmul.f32 0.35355338, %v4343_v31  ;;  %v6945_v39 = vpop.f32.mrb[51].mxu1 }
 0x8fa   :  { %v4738_v44 = vmul.f32 0.35355338, %v4265_v38  ;;  %v6940_v1 = vpop.f32.mrb[57].mxu0 }
 0x8fb   :  { %v4751_v35 = vsel %vm139_vm2, %v4739_v7, -inf }
 0x8fc   :  { %4752 = vmax.xlane.f32.xlu0 %v4751_v35  ;;  %v4499_v60 = vpop.f32.mrb[52].mxu1  ;;  %v4748_v63 = vsel %vm139_vm2, %v4738_v44, -inf }
 0x8fd   :  { %v4741_v8 = vmul.f32 0.35355338, %v4499_v60  ;;  %4749 = vmax.xlane.f32.xlu1 %v4748_v63  ;;  %v4421_v46 = vpop.f32.mrb[58].mxu0  ;;  %v6955_v10 = vpop.f32.mrb[53].mxu1 }
 0x8fe   :  { %v4740_v12 = vmul.f32 0.35355338, %v4421_v46  ;;  %v6950_v13 = vpop.f32.mrb[59].mxu0 }
 0x8ff   :  { %v4757_v51 = vsel %vm139_vm2, %v4741_v8, -inf }
 0x900   :  { %v4655_v57 = vpop.f32.mrb[54].mxu1  ;;  %v4754_v52 = vsel %vm139_vm2, %v4740_v12, -inf }
 0x901   :  { %v4743_v56 = vmul.f32 0.35355338, %v4655_v57  ;;  %4758 = vmax.xlane.f32.xlu1 %v4757_v51  ;;  %4755 = vmax.xlane.f32.xlu0 %v4754_v52  ;;  %v4577_v23 = vpop.f32.mrb[60].mxu0  ;;  %v6965_v24 = vpop.f32.mrb[55].mxu1 }
 0x902   :  { %v4742_v32 = vmul.f32 0.35355338, %v4577_v23  ;;  %v6960_v26 = vpop.f32.mrb[61].mxu0 }
 0x903   :  { %v4763_v9 = vsel %vm139_vm2, %v4743_v56, -inf }
 0x904   :  { %v4760_v30 = vsel %vm139_vm2, %v4742_v32, -inf }
 0x905   :  { %4764 = vmax.xlane.f32.xlu1 %v4763_v9  ;;  %4761 = vmax.xlane.f32.xlu0 %v4760_v30  ;;  %v4733_v33 = vpop.f32.mrb[62].mxu0 }
 0x906   :  { %v4744_v28 = vmul.f32 0.35355338, %v4733_v33  ;;  %v6970_v59 = vpop.f32.mrb[63].mxu0 }
 0x908   :  { %v4766_v55 = vsel %vm139_vm2, %v4744_v28, -inf }
 0x909   :  { %4767 = vmax.xlane.f32.xlu0 %v4766_v55 }
 0x916   :  { %4833 = vrot.lane.b32.xlu1 %v7335_v16, %s7252_s25 }
 0x91a   :  { %4985 = vrot.lane.b32.xlu1 %v7332_v15, %s7252_s25 }
 0x91e   :  { %5061 = vrot.lane.b32.xlu1 %v7338_v17, %s7252_s25 }
 0x91f   :  { %4909 = vrot.lane.b32.xlu0 %v7340_v18, %s7252_s25 }
 0x922   :  { %5213 = vrot.lane.b32.xlu1 %v7351_v22, %s7252_s25 }
 0x923   :  { %5137 = vrot.lane.b32.xlu0 %v7346_v20, %s7252_s25 }
 0x985   :  { %v4747_v36 = vpop.xlane.xlu0 %4746 }
 0x986   :  { %v4769_v62 = vsub.f32 %v4737_v0, %v4747_v36 }
 0x988   :  { %v4777_v31 = vmul.f32 1.442695, %v4769_v62 }
 0x989   :  { %v4753_v38 = vpop.xlane.xlu0 %4752 }
 0x98a   :  { %7142 = vpow2.f32 %v4777_v31  ;;  %v4771_v16 = vsub.f32 %v4739_v7, %v4753_v38  ;;  %v4750_v39 = vpop.xlane.xlu1 %4749 }
 0x98b   :  { %v4770_v15 = vsub.f32 %v4738_v44, %v4750_v39 }
 0x98c   :  { %v4781_v1 = vmul.f32 1.442695, %v4771_v16 }
 0x98d   :  { %v4779_v35 = vmul.f32 1.442695, %v4770_v15 }
 0x98e   :  { %7144 = vpow2.f32 %v4781_v1  ;;  %v4759_v17 = vpop.xlane.xlu1 %4758  ;;  %v4756_v60 = vpop.xlane.xlu0 %4755 }
 0x98f   :  { %7146 = vpow2.f32 %v4779_v35  ;;  %v4773_v18 = vsub.f32 %v4741_v8, %v4759_v17  ;;  %v4772_v63 = vsub.f32 %v4740_v12, %v4756_v60 }
 0x991   :  { %v4785_v22 = vmul.f32 1.442695, %v4773_v18  ;;  %v4783_v46 = vmul.f32 1.442695, %v4772_v63 }
 0x992   :  { %v4765_v10 = vpop.xlane.xlu1 %4764  ;;  %v4762_v20 = vpop.xlane.xlu0 %4761 }
 0x993   :  { %7148 = vpow2.f32 %v4785_v22  ;;  %v4775_v0 = vsub.f32 %v4743_v56, %v4765_v10  ;;  %v4774_v13 = vsub.f32 %v4742_v32, %v4762_v20 }
 0x994   :  { %v8039_v51 = vpop.eup %7142  ;;  %7150 = vpow2.f32 %v4783_v46 }
 0x995   :  { %v4789_v7 = vmul.f32 1.442695, %v4775_v0  ;;  %v4787_v44 = vmul.f32 1.442695, %v4774_v13  ;;  %v4793_v57 = vsel %vm139_vm2, %v8039_v51, 0.0  ;;  %v7044_v0 = vld [vmem:[%s8396_s3] sm:$0xff]  }
 0x996   :  { %v4834_v52 = vpop.permute.xlu1 %4833  ;;  %v4768_v23 = vpop.xlane.xlu0 %4767  ;;  %4794 = vadd.xlane.f32.xlu1 %v4793_v57  ;;  %v7045_v13 = vld [vmem:[%s8396_s3 + $0x8] sm:$0xff]  }
 0x997   :  { %7152 = vpow2.f32 %v4789_v7  ;;  %v4776_v8 = vsub.f32 %v4744_v28, %v4768_v23  ;;  %6972 = vmatpush3.msra.mxu1 %v4834_v52 }
 0x998   :  { %v8043_v12 = vpop.eup %7144  ;;  %7154 = vpow2.f32 %v4787_v44  ;;  %6981 = vmatprep.subr.mxu1 %v7240_v14 }
 0x999   :  { %v8046_v56 = vpop.eup %7146  ;;  %v4791_v24 = vmul.f32 1.442695, %v4776_v8  ;;  %v4799_v32 = vsel %vm139_vm2, %v8043_v12, 0.0 }
 0x99a   :  { %v4910_v26 = vpop.permute.xlu0 %4909  ;;  %4800 = vadd.xlane.f32.xlu1 %v4799_v32  ;;  %v4796_v9 = vsel %vm139_vm2, %v8046_v56, 0.0 }
 0x99b   :  { %7156 = vpow2.f32 %v4791_v24  ;;  %4797 = vadd.xlane.f32.xlu0 %v4796_v9  ;;  %6977 = vmatpush3.msra.mxu0 %v4910_v26 }
 0x99c   :  { %6986 = vmatprep.subr.mxu0 %v7240_v14 }
 0x99d   :  { %v8053_v30 = vpop.eup %7148 }
 0x99e   :  { %v8055_v33 = vpop.eup %7150  ;;  %v4805_v28 = vsel %vm139_vm2, %v8053_v30, 0.0 }
 0x99f   :  { %4806 = vadd.xlane.f32.xlu1 %v4805_v28  ;;  %v4802_v59 = vsel %vm139_vm2, %v8055_v33, 0.0 }
 0x9a0   :  { %4803 = vadd.xlane.f32.xlu0 %v4802_v59 }
 0x9a1   :  { %v8061_v55 = vpop.eup %7152 }
 0x9a2   :  { %v8063_v36 = vpop.eup %7154  ;;  %v4811_v62 = vsel %vm139_vm2, %v8061_v55, 0.0 }
 0x9a3   :  { %4812 = vadd.xlane.f32.xlu1 %v4811_v62  ;;  %v4808_v31 = vsel %vm139_vm2, %v8063_v36, 0.0 }
 0x9a4   :  { %4809 = vadd.xlane.f32.xlu0 %v4808_v31 }
 0x9a5   :  { %v8069_v38 = vpop.eup %7156 }
 0x9a6   :  { %v4814_v16 = vsel %vm139_vm2, %v8069_v38, 0.0 }
 0x9a8   :  { %4815 = vadd.xlane.f32.xlu0 %v4814_v16 }
 0x9b4   :  { %5365 = vrot.lane.b32.xlu1 %v7349_v21, %s7252_s25 }
 0x9b8   :  { %5451 = vrot.lane.b32.xlu1 %v7817_v37, %s7253_s26  ;;  %v5138_v37 = vpop.permute.xlu0 %5137 }
 0x9bc   :  { %5455 = vrot.lane.b32.xlu1 %v7821_v6, %s7253_s26 }
 0x9be   :  { %5289 = vrot.lane.b32.xlu0 %v7344_v19, %s7252_s25  ;;  %v4986_v19 = vpop.permute.xlu1 %4985 }
 0x9c0   :  { %5483 = vrot.lane.b32.xlu1 %v8007_v25, %s7254_s27 }
 0x9c2   :  { %5449 = vrot.lane.b32.xlu0 %v7813_v34, %s7253_s26  ;;  %v5062_v21 = vpop.permute.xlu1 %5061 }
 0x9c4   :  { %5487 = vrot.lane.b32.xlu1 %v8011_v29, %s7254_s27 }
 0x9c6   :  { %5453 = vrot.lane.b32.xlu0 %v7815_v4, %s7253_s26  ;;  %v5214_v34 = vpop.permute.xlu1 %5213 }
 0x9c8   :  { %5459 = vrot.lane.b32.xlu1 %v7825_v42, %s7253_s26 }
 0x9ca   :  { %5481 = vrot.lane.b32.xlu0 %v8003_v2, %s7254_s27 }
 0x9cc   :  { %5463 = vrot.lane.b32.xlu1 %v7827_v48, %s7253_s26 }
 0x9ce   :  { %5485 = vrot.lane.b32.xlu0 %v8005_v3, %s7254_s27 }
 0x9d0   :  { %5491 = vrot.lane.b32.xlu1 %v8013_v53, %s7254_s27 }
 0x9d2   :  { %5457 = vrot.lane.b32.xlu0 %v7819_v5, %s7253_s26 }
 0x9d4   :  { %5495 = vrot.lane.b32.xlu1 %v8017_v61, %s7254_s27 }
 0x9d6   :  { %5461 = vrot.lane.b32.xlu0 %v7823_v40, %s7253_s26 }
 0x9da   :  { %5489 = vrot.lane.b32.xlu0 %v8009_v27, %s7254_s27 }
 0x9de   :  { %5493 = vrot.lane.b32.xlu0 %v8015_v11, %s7254_s27 }
 0xa23   :  { %v4795_v4 = vpop.xlane.xlu1 %4794 }
 0xa24   :  { %7158 = vrcp.f32 %v4795_v4 }
 0xa27   :  { %v4801_v6 = vpop.xlane.xlu1 %4800 }
 0xa28   :  { %7160 = vrcp.f32 %v4801_v6  ;;  %v4798_v42 = vpop.xlane.xlu0 %4797 }
 0xa29   :  { %7162 = vrcp.f32 %v4798_v42 }
 0xa2c   :  { %v4807_v48 = vpop.xlane.xlu1 %4806 }
 0xa2d   :  { %7164 = vrcp.f32 %v4807_v48  ;;  %v4804_v5 = vpop.xlane.xlu0 %4803 }
 0xa2e   :  { %v7159_v2 = vpop.eup %7158  ;;  %7166 = vrcp.f32 %v4804_v5 }
 0xa2f   :  { %v4825_v40 = vmul.f32 %v7159_v2, %v8039_v51 }
 0xa30   :  { %v4813_v3 = vpop.xlane.xlu1 %4812 }
 0xa31   :  { %7168 = vrcp.f32 %v4813_v3  ;;  %v4810_v25 = vpop.xlane.xlu0 %4809  ;;  %6974 = vmatmul.mubr.msk.f32.vlgmr.msra.gmra.mrb[56].mxu1 %vm139_vm2, %v4825_v40 }
 0xa32   :  { %v7161_v27 = vpop.eup %7160  ;;  %7170 = vrcp.f32 %v4810_v25  ;;  %6982 = vmatpush3.msra.mxu1 %v4986_v19  ;;  %6983 = vmatprep.mubr.msk.f32.mxu1 %vm7241_vm1, %v7240_v14 }
 0xa33   :  { %v7163_v29 = vpop.eup %7162  ;;  %v4827_v53 = vmul.f32 %v7161_v27, %v8043_v12  ;;  %6991 = vmatprep.subr.mxu1 %v7240_v14 }
 0xa34   :  { %v4826_v11 = vmul.f32 %v7163_v29, %v8046_v56  ;;  %v5366_v46 = vpop.permute.xlu1 %5365 }
 0xa35   :  { %v4816_v61 = vpop.xlane.xlu0 %4815  ;;  %6984 = vmatmul.mubr.msk.f32.vlgmr.msra.gmra.mrb[58].mxu1 %vm139_vm2, %v4827_v53 }
 0xa36   :  { %7172 = vrcp.f32 %v4816_v61  ;;  %6979 = vmatmul.mubr.msk.f32.vlgmr.msra.gmra.mrb[64].mxu0 %vm139_vm2, %v4826_v11  ;;  %6992 = vmatpush3.msra.mxu1 %v5138_v37 }
 0xa37   :  { %v7165_v39 = vpop.eup %7164  ;;  %6987 = vmatpush3.msra.mxu0 %v5062_v21  ;;  %6988 = vmatprep.mubr.msk.f32.mxu0 %vm7241_vm1, %v7240_v14 }
 0xa38   :  { %v7167_v15 = vpop.eup %7166  ;;  %v4829_v1 = vmul.f32 %v7165_v39, %v8053_v30  ;;  %6993 = vmatprep.mubr.msk.f32.mxu1 %vm7241_vm1, %v7240_v14  ;;  %6996 = vmatprep.subr.mxu0 %v7240_v14  ;;  %v5452_v59 = vpop.permute.xlu1 %5451 }
 0xa39   :  { %v4828_v35 = vmul.f32 %v7167_v15, %v8055_v33  ;;  %v5290_v17 = vpop.permute.xlu0 %5289  ;;  %7001 = vmatprep.subr.mxu1 %v7240_v14  ;;  %v5538_v2 = vsel %vm139_vm2, %v7602_v45, %v5452_v59 }
 0xa3a   :  { %6994 = vmatmul.mubr.msk.f32.vlgmr.msra.gmra.mrb[60].mxu1 %vm139_vm2, %v4829_v1 }
 0xa3b   :  { %v7169_v60 = vpop.eup %7168  ;;  %6989 = vmatmul.mubr.msk.f32.vlgmr.msra.gmra.mrb[66].mxu0 %vm139_vm2, %v4828_v35  ;;  %7002 = vmatpush3.msra.mxu1 %v5290_v17 }
 0xa3c   :  { %v7171_v18 = vpop.eup %7170  ;;  %v4831_v63 = vmul.f32 %v7169_v60, %v8061_v55  ;;  %6997 = vmatpush3.msra.mxu0 %v5214_v34  ;;  %6998 = vmatprep.mubr.msk.f32.mxu0 %vm7241_vm1, %v7240_v14 }
 0xa3d   :  { %v4830_v22 = vmul.f32 %v7171_v18, %v8063_v36  ;;  %7003 = vmatprep.mubr.msk.f32.mxu1 %vm7241_vm1, %v7240_v14  ;;  %7006 = vmatprep.subr.mxu0 %v7240_v14  ;;  %v5450_v28 = vpop.permute.xlu0 %5449  ;;  %v5456_v36 = vpop.permute.xlu1 %5455 }
 0xa3e   :  { %7004 = vmatmul.mubr.msk.f32.vlgmr.msra.gmra.mrb[62].mxu1 %vm139_vm2, %v4831_v63  ;;  %7011 = vmatprep.subr.bf16.mxu1 %v7044_v0  ;;  %v5537_v40 = vsel %vm139_vm2, %v7598_v41, %v5450_v28  ;;  %v5540_v45 = vsel %vm139_vm2, %v7604_v47, %v5456_v36  ;;  %v6538_v36 = vld [vmem:[%s8398_s5] ss:$0 sm:$0xff] }
 0xa3f   :  { %6999 = vmatmul.mubr.msk.f32.vlgmr.msra.gmra.mrb[68].mxu0 %vm139_vm2, %v4830_v22  ;;  %7012 = vmatpush3.bf16.msra.mxu1 %v7044_v0 }
 0xa40   :  { %v7173_v10 = vpop.eup %7172  ;;  %7007 = vmatpush3.msra.mxu0 %v5366_v46  ;;  %7008 = vmatprep.mubr.msk.f32.mxu0 %vm7241_vm1, %v7240_v14 }
 0xa41   :  { %v4832_v20 = vmul.f32 %v7173_v10, %v8069_v38  ;;  %7013 = vmatprep.subr.bf16.mxu1 %v7045_v13  ;;  %v5454_v55 = vpop.permute.xlu0 %5453  ;;  %v5484_v31 = vpop.permute.xlu1 %5483 }
 0xa42   :  { %v5547_v25 = vsel %vm5545_vm3, %v5538_v2, %v5484_v31  ;;  %v5539_v41 = vsel %vm139_vm2, %v7600_v43, %v5454_v55 }
 0xa43   :  { %7009 = vmatmul.mubr.msk.f32.vlgmr.msra.gmra.mrb[70].mxu0 %vm139_vm2, %v4832_v20  ;;  %7014 = vmatpush3.bf16.msra.mxu1 %v7045_v13 }
 0xa45   :  { %v5482_v62 = vpop.permute.xlu0 %5481  ;;  %v5488_v16 = vpop.permute.xlu1 %5487 }
 0xa46   :  { %v5546_v27 = vsel %vm5545_vm3, %v5537_v40, %v5482_v62  ;;  %v5549_v39 = vsel %vm5545_vm3, %v5540_v45, %v5488_v16 }
 0xa49   :  { %v5486_v38 = vpop.permute.xlu0 %5485  ;;  %v5460_v21 = vpop.permute.xlu1 %5459 }
 0xa4a   :  { %v5548_v15 = vsel %vm5545_vm3, %v5539_v41, %v5486_v38  ;;  %v5542_v43 = vsel %vm139_vm2, %v7610_v54, %v5460_v21 }
 0xa4d   :  { %v5458_v19 = vpop.permute.xlu0 %5457  ;;  %v5464_v4 = vpop.permute.xlu1 %5463 }
 0xa4e   :  { %v5541_v18 = vsel %vm139_vm2, %v7606_v50, %v5458_v19  ;;  %v5544_v50 = vsel %vm139_vm2, %v7612_v58, %v5464_v4 }
 0xa51   :  { %v5462_v34 = vpop.permute.xlu0 %5461  ;;  %v5492_v6 = vpop.permute.xlu1 %5491 }
 0xa52   :  { %v5551_v63 = vsel %vm5545_vm3, %v5542_v43, %v5492_v6  ;;  %v5543_v13 = vsel %vm139_vm2, %v7608_v49, %v5462_v34  ;;  %v6537_v49 = vld [vmem:[%s8397_s4] ss:$0 sm:$0xff] }
 0xa55   :  { %v5490_v37 = vpop.permute.xlu0 %5489  ;;  %v5496_v5 = vpop.permute.xlu1 %5495 }
 0xa56   :  { %v5550_v22 = vsel %vm5545_vm3, %v5541_v18, %v5490_v37 }
 0xa59   :  { %v5494_v42 = vpop.permute.xlu0 %5493 }
 0xb04   :  { %v4905_v51 = vpop.f32.mrb[56].mxu1 }
 0xb05   :  { %v6975_v7 = vpop.f32.mrb[57].mxu1  ;;  %5513 = vrot.lane.b32.xlu0 %v4905_v51, %s7255_s8  ;;  %v5553_v51 = vsel %vm5545_vm3, %v5544_v50, %v5496_v5 }
 0xb06   :  { %v5552_v7 = vsel %vm5545_vm3, %v5543_v13, %v5494_v42 }
 0xb08   :  { %v5057_v14 = vpop.f32.mrb[58].mxu1 }
 0xb09   :  { %v4981_v44 = vpop.f32.mrb[64].mxu0  ;;  %v6985_v57 = vpop.f32.mrb[59].mxu1  ;;  %5517 = vrot.lane.b32.xlu0 %v5057_v14, %s7255_s8 }
 0xb0a   :  { %5515 = vrot.lane.b32.xlu1 %v4981_v44, %s7255_s8  ;;  %v6980_v52 = vpop.f32.mrb[65].mxu0 }
 0xb0d   :  { %v5209_v23 = vpop.f32.mrb[60].mxu1 }
 0xb0e   :  { %v5133_v8 = vpop.f32.mrb[66].mxu0  ;;  %5521 = vrot.lane.b32.xlu0 %v5209_v23, %s7255_s8  ;;  %v6995_v12 = vpop.f32.mrb[61].mxu1 }
 0xb0f   :  { %5519 = vrot.lane.b32.xlu1 %v5133_v8, %s7255_s8  ;;  %v6990_v56 = vpop.f32.mrb[67].mxu0 }
 0xb11   :  { %v5361_v24 = vpop.f32.mrb[62].mxu1 }
 0xb12   :  { %v5285_v32 = vpop.f32.mrb[68].mxu0  ;;  %5525 = vrot.lane.b32.xlu0 %v5361_v24, %s7255_s8  ;;  %v7005_v26 = vpop.f32.mrb[63].mxu1 }
 0xb13   :  { %5523 = vrot.lane.b32.xlu1 %v5285_v32, %s7255_s8  ;;  %v7000_v9 = vpop.f32.mrb[69].mxu0 }
 0xb16   :  { %v5437_v30 = vpop.f32.mrb[70].mxu0 }
 0xb17   :  { %5527 = vrot.lane.b32.xlu1 %v5437_v30, %s7255_s8  ;;  %v7010_v33 = vpop.f32.mrb[71].mxu0 }
 0xb77   :  { %v5514_v48 = vpop.permute.xlu0 %5513 }
 0xb78   :  { %v8138_v53 = vsel %vm5554_vm4, %v5546_v27, %v5514_v48 }
 0xb7b   :  { %v5518_v3 = vpop.permute.xlu0 %5517 }
 0xb7c   :  { %v5516_v29 = vpop.permute.xlu1 %5515  ;;  %v8153_v17 = vsel %vm5554_vm4, %v5548_v15, %v5518_v3 }
 0xb7d   :  { %v8141_v11 = vsel %vm5554_vm4, %v5547_v25, %v5516_v29  ;;  %v5716_v29 = vlaneseq }
 0xb7e   :  { %v5563_v61 = vpack.c.bf16 %v8141_v11, %v8138_v53 }
 0xb7f   :  { %v5719_v45 = vshrl.u32 %v5716_v29, 7 }
 0xb80   :  { %7015 = vmatprep.mubr.msk.bf16.mxu1 %vm58_vm0, %v5563_v61  ;;  %v5522_v1 = vpop.permute.xlu0 %5521  ;;  %v5717_v61 = vand.u32 127, %v5716_v29 }
 0xb81   :  { %v5520_v35 = vpop.permute.xlu1 %5519  ;;  %v8168_v10 = vsel %vm5554_vm4, %v5550_v22, %v5522_v1 }
 0xb82   :  { %v8156_v60 = vsel %vm5554_vm4, %v5549_v39, %v5520_v35  ;;  %v8197_v39 = vsub.s32 %v5717_v61, %v5719_v45 }
 0xb83   :  { %v5564_v47 = vpack.c.bf16 %v8156_v60, %v8153_v17 }
 0xb84   :  { %v5526_v0 = vpop.permute.xlu0 %5525 }
 0xb85   :  { %7016 = vmatmul.mubr.msk.bf16.vlgmr.msra.gmra.mrb[64].mxu1 %vm58_vm0, %v5564_v47  ;;  %v5524_v46 = vpop.permute.xlu1 %5523  ;;  %v8183_v44 = vsel %vm5554_vm4, %v5552_v7, %v5526_v0 }
 0xb86   :  { %v8171_v20 = vsel %vm5554_vm4, %v5551_v63, %v5524_v46 }
 0xb87   :  { %v5565_v54 = vpack.c.bf16 %v8171_v20, %v8168_v10 }
 0xb89   :  { %7019 = vmatprep.mubr.msk.bf16.mxu1 %vm58_vm0, %v5565_v54  ;;  %v5528_v14 = vpop.permute.xlu1 %5527 }
 0xb8a   :  { %v8186_v57 = vsel %vm5554_vm4, %v5553_v51, %v5528_v14 }
 0xb8b   :  { %v5566_v52 = vpack.c.bf16 %v8186_v57, %v8183_v44 }
 0xb8d   :  { %7020 = vmatmul.mubr.msk.bf16.gmra.mrb[68].mxu1 %vm58_vm0, %v5566_v52 }
 0xc58   :  { %v7017_v58 = vpop.f32.mrb[64].mxu1 }
 0xc59   :  { %v5664_v23 = vadd.f32 %v7017_v58, %v6537_v49  ;;  %v5625_v8 = vpop.f32.mrb[65].mxu1 }
 0xc5a   :  { %v5662_v12 = vadd.f32 %v6537_v49, %v5625_v8  ;;  %v7018_v56 = vpop.f32.mrb[66].mxu1 }
 0xc5b   :  { %7174 = vtanh.f32 %v5664_v23  ;;  %v5628_v24 = vpop.f32.mrb[67].mxu1  ;;  %v5665_v26 = vadd.f32 %v7018_v56, %v6537_v49 }
 0xc5c   :  { %v5663_v32 = vadd.f32 %v6537_v49, %v5628_v24  ;;  %7176 = vtanh.f32 %v5662_v12  ;;  %v7256_v24 = vmov 0  }
 0xc5d   :  { %7041 = vset.pattern.permute.xlu1 %v7256_v24  ;;  %7040 = vset.pattern.permute.xlu0 %v7256_v24 }
 0xc5e   :  { %7178 = vtanh.f32 %v5663_v32  ;;  %v8215_v32 = vsub.s32 0, %v5719_v45 }
 0xc5f   :  { %7180 = vtanh.f32 %v5665_v26  ;;  %v8217_v26 = vsub.s32 1, %v5719_v45 }
 0xc60   :  { %v7021_v9 = vpop.f32.mrb[68].mxu1 }
 0xc61   :  { %v5668_v30 = vadd.f32 %v7021_v9, %v6537_v49  ;;  %v5641_v33 = vpop.f32.mrb[69].mxu1  ;;  %v8219_v9 = vsub.s32 2, %v5719_v45 }
 0xc62   :  { %v5666_v28 = vadd.f32 %v6537_v49, %v5641_v33  ;;  %v7022_v59 = vpop.f32.mrb[70].mxu1 }
 0xc63   :  { %v5644_v55 = vpop.f32.mrb[71].mxu1  ;;  %v5669_v38 = vadd.f32 %v7022_v59, %v6537_v49 }
 0xc64   :  { %7182 = vtanh.f32 %v5666_v28  ;;  %v5667_v62 = vadd.f32 %v6537_v49, %v5644_v55 }
 0xc65   :  { %v7175_v31 = vpop.eup %7174  ;;  %7184 = vtanh.f32 %v5668_v30  ;;  %v8221_v30 = vsub.s32 3, %v5719_v45 }
 0xc66   :  { %7186 = vtanh.f32 %v5667_v62  ;;  %v5686_v16 = vmul.f32 %v7175_v31, %v6538_v36  ;;  %v7177_v19 = vpop.eup %7176  ;;  %v8226_v31 = vsub.s32 4, %v5719_v45 }
 0xc67   :  { %7188 = vtanh.f32 %v5669_v38  ;;  %v5684_v4 = vmul.f32 %v7177_v19, %v6538_v36 }
 0xc68   :  { %v7179_v21 = vpop.eup %7178  ;;  %5696 = vadd.xlane.f32.xlu0 %v5686_v16 }
 0xc69   :  { %v5685_v34 = vmul.f32 %v7179_v21, %v6538_v36  ;;  %v7181_v37 = vpop.eup %7180 }
 0xc6a   :  { %v5687_v42 = vmul.f32 %v7181_v37, %v6538_v36 }
 0xc6b   :  { %5694 = vadd.xlane.f32.xlu1 %v5685_v34  ;;  %v8229_v34 = vsub.s32 5, %v5719_v45 }
 0xc6c   :  { %5692 = vadd.xlane.f32.xlu0 %v5684_v4 }
 0xc6e   :  { %v7183_v6 = vpop.eup %7182 }
 0xc6f   :  { %v7185_v48 = vpop.eup %7184  ;;  %v5688_v5 = vmul.f32 %v7183_v6, %v6538_v36 }
 0xc70   :  { %v7187_v2 = vpop.eup %7186  ;;  %5698 = vadd.xlane.f32.xlu0 %v5687_v42  ;;  %v5690_v25 = vmul.f32 %v7185_v48, %v6538_v36  ;;  %v8232_v42 = vsub.s32 6, %v5719_v45 }
 0xc71   :  { %5700 = vadd.xlane.f32.xlu1 %v5688_v5  ;;  %v5689_v40 = vmul.f32 %v7187_v2, %v6538_v36  ;;  %v7189_v3 = vpop.eup %7188 }
 0xc72   :  { %v5691_v27 = vmul.f32 %v7189_v3, %v6538_v36 }
 0xc74   :  { %5702 = vadd.xlane.f32.xlu0 %v5689_v40  ;;  %v8235_v40 = vsub.s32 7, %v5719_v45 }
 0xc75   :  { %5704 = vadd.xlane.f32.xlu1 %v5690_v25 }
 0xc78   :  { %5706 = vadd.xlane.f32.xlu0 %v5691_v27 }
 0xcf5   :  { %v5697_v41 = vpop.xlane.xlu0 %5696 }
 0xcf6   :  { %v5729_v18 = vrot.slane %v5697_v41, %v8197_v39 }
 0xcf8   :  { %v5695_v15 = vpop.xlane.xlu1 %5694 }
 0xcf9   :  { %v5725_v1 = vrot.slane %v5695_v15, %v8197_v39  ;;  %v5693_v35 = vpop.xlane.xlu0 %5692 }
 0xcfa   :  { %v5721_v47 = vrot.slane %v5693_v35, %v8197_v39 }
 0xcfc   :  { %v5751_v43 = vsel %vm5750_vm5, %v5725_v1, %v5721_v47 }
 0xcfd   :  { %v5699_v63 = vpop.xlane.xlu0 %5698  ;;  %v5753_v0 = vsel %vm5752_vm6, %v5729_v18, %v5751_v43 }
 0xcfe   :  { %v5733_v22 = vrot.slane %v5699_v63, %v8197_v39  ;;  %v5701_v46 = vpop.xlane.xlu1 %5700 }
 0xcff   :  { %v5737_v54 = vrot.slane %v5701_v46, %v8197_v39 }
 0xd00   :  { %v5755_v50 = vsel %vm5754_vm7, %v5733_v22, %v5753_v0 }
 0xd01   :  { %v5703_v13 = vpop.xlane.xlu0 %5702  ;;  %v5757_v14 = vsel %vm5756_vm8, %v5737_v54, %v5755_v50 }
 0xd02   :  { %v5741_v51 = vrot.slane %v5703_v13, %v8197_v39  ;;  %v5705_v7 = vpop.xlane.xlu1 %5704 }
 0xd03   :  { %v5745_v52 = vrot.slane %v5705_v7, %v8197_v39 }
 0xd04   :  { %v5759_v49 = vsel %vm5758_vm9, %v5741_v51, %v5757_v14 }
 0xd05   :  { %v5707_v58 = vpop.xlane.xlu0 %5706  ;;  %v5761_v8 = vsel %vm5760_vm10, %v5745_v52, %v5759_v49 }
 0xd06   :  { %v5749_v23 = vrot.slane %v5707_v58, %v8197_v39 }
 0xd08   :  { %v5763_v12 = vsel %vm5762_vm11, %v5749_v23, %v5761_v8 }
 0xd09   :  { %v5765_v56 = vsel %vm139_vm2, %v5763_v12, -inf }
 0xd0a   :  { %5766 = vmax.xlane.f32.xlu1 %v5765_v56 }
 0xd97   :  { %v5767_v33 = vpop.xlane.xlu1 %5766 }
 0xd98   :  { %v5772_v28 = vrot.slane %v5767_v33, %v8215_v32  ;;  %v5776_v59 = vrot.slane %v5767_v33, %v8217_v26  ;;  %v5780_v55 = vrot.slane %v5767_v33, %v8219_v9  ;;  %v5784_v38 = vrot.slane %v5767_v33, %v8221_v30 }
 0xd99   :  { %v5788_v4 = vrot.slane %v5767_v33, %v8226_v31  ;;  %v5792_v48 = vrot.slane %v5767_v33, %v8229_v34  ;;  %v5796_v3 = vrot.slane %v5767_v33, %v8232_v42 }
 0xd9a   :  { %v5809_v36 = vsub.f32 %v5693_v35, %v5772_v28  ;;  %v5810_v62 = vsub.f32 %v5695_v15, %v5776_v59  ;;  %v5811_v16 = vsub.f32 %v5697_v41, %v5780_v55  ;;  %v5812_v37 = vsub.f32 %v5699_v63, %v5784_v38 }
 0xd9b   :  { %v5813_v5 = vsub.f32 %v5701_v46, %v5788_v4  ;;  %v5814_v25 = vsub.f32 %v5703_v13, %v5792_v48  ;;  %v5800_v41 = vrot.slane %v5767_v33, %v8235_v40  ;;  %v5815_v15 = vsub.f32 %v5705_v7, %v5796_v3 }
 0xd9c   :  { %v5817_v19 = vmul.f32 1.442695, %v5809_v36  ;;  %v5819_v21 = vmul.f32 1.442695, %v5810_v62  ;;  %v5821_v6 = vmul.f32 1.442695, %v5811_v16 }
 0xd9d   :  { %v5823_v2 = vmul.f32 1.442695, %v5812_v37  ;;  %v5825_v27 = vmul.f32 1.442695, %v5813_v5  ;;  %v5827_v1 = vmul.f32 1.442695, %v5814_v25  ;;  %v5816_v47 = vsub.f32 %v5707_v58, %v5800_v41 }
 0xd9e   :  { %7190 = vpow2.f32 %v5817_v19  ;;  %v5829_v45 = vmul.f32 1.442695, %v5815_v15 }
 0xd9f   :  { %7192 = vpow2.f32 %v5819_v21  ;;  %v5831_v18 = vmul.f32 1.442695, %v5816_v47 }
 0xda0   :  { %7194 = vpow2.f32 %v5821_v6 }
 0xda1   :  { %7196 = vpow2.f32 %v5823_v2 }
 0xda2   :  { %7198 = vpow2.f32 %v5825_v27 }
 0xda3   :  { %7200 = vpow2.f32 %v5827_v1 }
 0xda4   :  { %7202 = vpow2.f32 %v5829_v45 }
 0xda5   :  { %7204 = vpow2.f32 %v5831_v18 }
 0xda8   :  { %v7191_v29 = vpop.eup %7190 }
 0xda9   :  { %v7193_v61 = vpop.eup %7192  ;;  %5842 = vperm.xlu0 %7040, %v7191_v29  }
 0xdaa   :  { %5845 = vperm.xlu1 %7041, %v7193_v61   ;;  %v7195_v35 = vpop.eup %7194 }
 0xdab   :  { %v7197_v43 = vpop.eup %7196 }
 0xdac   :  { %v7199_v63 = vpop.eup %7198 }
 0xdad   :  { %v7201_v22 = vpop.eup %7200 }
 0xdae   :  { %5848 = vperm.xlu1 %7041, %v7195_v35   ;;  %v7203_v46 = vpop.eup %7202 }
 0xdaf   :  { %v7205_v0 = vpop.eup %7204 }
 0xdb2   :  { %5851 = vperm.xlu1 %7041, %v7197_v43  }
 0xdb6   :  { %5854 = vperm.xlu1 %7041, %v7199_v63  }
 0xdba   :  { %5857 = vperm.xlu1 %7041, %v7201_v22  }
 0xdbe   :  { %5860 = vperm.xlu1 %7041, %v7203_v46  }
 0xdc2   :  { %5863 = vperm.xlu1 %7041, %v7205_v0  }
 0xe28   :  { %v5843_v7 = vpop.permute.xlu0 %5842 }
 0xe29   :  { %v5846_v54 = vpop.permute.xlu1 %5845  ;;  %v5868_v49 = vrot.slane %v5843_v7, %v8197_v39 }
 0xe2a   :  { %v5872_v52 = vrot.slane %v5846_v54, %v8197_v39 }
 0xe2c   :  { %v5897_v56 = vsel %vm5750_vm5, %v5872_v52, %v5868_v49 }
 0xe2d   :  { %v5849_v50 = vpop.permute.xlu1 %5848 }
 0xe2e   :  { %v5876_v58 = vrot.slane %v5849_v50, %v8197_v39 }
 0xe30   :  { %v5898_v33 = vsel %vm5752_vm6, %v5876_v58, %v5897_v56 }
 0xe31   :  { %v5852_v13 = vpop.permute.xlu1 %5851 }
 0xe32   :  { %v5880_v23 = vrot.slane %v5852_v13, %v8197_v39 }
 0xe34   :  { %v5899_v59 = vsel %vm5754_vm7, %v5880_v23, %v5898_v33 }
 0xe35   :  { %v5855_v51 = vpop.permute.xlu1 %5854 }
 0xe36   :  { %v5884_v8 = vrot.slane %v5855_v51, %v8197_v39 }
 0xe38   :  { %v5900_v55 = vsel %vm5756_vm8, %v5884_v8, %v5899_v59 }
 0xe39   :  { %v5858_v14 = vpop.permute.xlu1 %5857 }
 0xe3a   :  { %v5888_v24 = vrot.slane %v5858_v14, %v8197_v39 }
 0xe3c   :  { %v5901_v62 = vsel %vm5758_vm9, %v5888_v24, %v5900_v55 }
 0xe3d   :  { %v5861_v12 = vpop.permute.xlu1 %5860 }
 0xe3e   :  { %v5892_v28 = vrot.slane %v5861_v12, %v8197_v39 }
 0xe40   :  { %v5902_v16 = vsel %vm5760_vm10, %v5892_v28, %v5901_v62 }
 0xe41   :  { %v5864_v36 = vpop.permute.xlu1 %5863 }
 0xe42   :  { %v5896_v38 = vrot.slane %v5864_v36, %v8197_v39 }
 0xe44   :  { %v5903_v19 = vsel %vm5762_vm11, %v5896_v38, %v5902_v16 }
 0xe45   :  { %v5905_v21 = vsel %vm139_vm2, %v5903_v19, 0.0 }
 0xe46   :  { %5906 = vadd.xlane.f32.xlu1 %v5905_v21 }
 0xed3   :  { %v5907_v4 = vpop.xlane.xlu1 %5906 }
 0xed4   :  { %7206 = vrcp.f32 %v5907_v4 }
 0xede   :  { %v7207_v37 = vpop.eup %7206 }
 0xedf   :  { %v5913_v6 = vrot.slane %v7207_v37, %v8215_v32  ;;  %v5917_v5 = vrot.slane %v7207_v37, %v8217_v26  ;;  %v5921_v3 = vrot.slane %v7207_v37, %v8219_v9  ;;  %v5925_v27 = vrot.slane %v7207_v37, %v8221_v30 }
 0xee0   :  { %v5929_v15 = vrot.slane %v7207_v37, %v8226_v31  ;;  %v5933_v47 = vrot.slane %v7207_v37, %v8229_v34  ;;  %v5937_v45 = vrot.slane %v7207_v37, %v8232_v42  ;;  %v5941_v18 = vrot.slane %v7207_v37, %v8235_v40 }
 0xee1   :  { %v5950_v48 = vmul.f32 %v7191_v29, %v5913_v6  ;;  %v5951_v2 = vmul.f32 %v7193_v61, %v5917_v5  ;;  %v5952_v25 = vmul.f32 %v7195_v35, %v5921_v3  ;;  %v5953_v41 = vmul.f32 %v7197_v43, %v5925_v27 }
 0xee2   :  { %v5954_v1 = vmul.f32 %v7199_v63, %v5929_v15  ;;  %v5955_v29 = vmul.f32 %v7201_v22, %v5933_v47  ;;  %v5956_v61 = vmul.f32 %v7203_v46, %v5937_v45  ;;  %v5957_v35 = vmul.f32 %v7205_v0, %v5941_v18 }
 0xee3   :  { %5960 = vperm.xlu0 %7040, %v5950_v48  }
 0xee7   :  { %5965 = vperm.xlu0 %7040, %v5951_v2  }
 0xeeb   :  { %5970 = vperm.xlu0 %7040, %v5952_v25  }
 0xeef   :  { %5975 = vperm.xlu0 %7040, %v5953_v41  }
 0xef3   :  { %5980 = vperm.xlu0 %7040, %v5954_v1  }
 0xef7   :  { %5985 = vperm.xlu0 %7040, %v5955_v29  }
 0xefb   :  { %5990 = vperm.xlu0 %7040, %v5956_v61  }
 0xeff   :  { %5995 = vperm.xlu0 %7040, %v5957_v35  }
 0xf62   :  { %v5961_v54 = vpop.permute.xlu0 %5960 }
 0xf63   :  { %v5998_v43 = vmul.f32 %v5961_v54, %v8138_v53 }
 0xf65   :  { %v6006_v50 = vsel %vm58_vm0, %v5998_v43, 0.0 }
 0xf66   :  { %v6007_v13 = vrot.slane %v6006_v50, 4  ;;  %v5966_v63 = vpop.permute.xlu0 %5965 }
 0xf67   :  { %v5999_v51 = vmul.f32 %v5966_v63, %v8141_v11  ;;  %v6062_v11 = vld [vmem:[%s8399_s1] sm:$0x1f] }
 0xf68   :  { %v6008_v7 = vadd.f32 %v6007_v13, %v6006_v50 }
 0xf69   :  { %v6013_v22 = vsel %vm58_vm0, %v5999_v51, 0.0 }
 0xf6a   :  { %v6009_v14 = vrot.slane %v6008_v7, 2  ;;  %v6014_v52 = vrot.slane %v6013_v22, 4  ;;  %v5971_v46 = vpop.permute.xlu0 %5970 }
 0xf6b   :  { %v6000_v49 = vmul.f32 %v5971_v46, %v8153_v17 }
 0xf6c   :  { %v6010_v58 = vadd.f32 %v6009_v14, %v6008_v7  ;;  %v6015_v0 = vadd.f32 %v6014_v52, %v6013_v22 }
 0xf6d   :  { %v6020_v23 = vsel %vm58_vm0, %v6000_v49, 0.0 }
 0xf6e   :  { %v6011_v8 = vrot.slane %v6010_v58, 1  ;;  %v6016_v53 = vrot.slane %v6015_v0, 2  ;;  %v6021_v12 = vrot.slane %v6020_v23, 4  ;;  %v5976_v56 = vpop.permute.xlu0 %5975 }
 0xf6f   :  { %v6001_v24 = vmul.f32 %v5976_v56, %v8156_v60  ;;  %v6063_v60 = vld [vmem:[%s8399_s1 + $0x8] sm:$0x1f] }
 0xf70   :  { %v6017_v33 = vadd.f32 %v6016_v53, %v6015_v0  ;;  %v6022_v28 = vadd.f32 %v6021_v12, %v6020_v23  ;;  %v6012_v59 = vadd.f32 %v6011_v8, %v6010_v58 }
 0xf71   :  { %v6027_v55 = vsel %vm58_vm0, %v6001_v24, 0.0 }
 0xf72   :  { %v6018_v17 = vrot.slane %v6017_v33, 1  ;;  %v6023_v36 = vrot.slane %v6022_v28, 2  ;;  %v6028_v62 = vrot.slane %v6027_v55, 4  ;;  %v5981_v38 = vpop.permute.xlu0 %5980  ;;  %v6070_v16 = vmul.f32 %v6062_v11, %v6012_v59 }
 0xf73   :  { %v6002_v19 = vmul.f32 %v5981_v38, %v8168_v10  ;;  %v6064_v10 = vld [vmem:[%s8399_s1 + $0x10] sm:$0x1f] }
 0xf74   :  { %v6024_v21 = vadd.f32 %v6023_v36, %v6022_v28  ;;  %v6029_v4 = vadd.f32 %v6028_v62, %v6027_v55  ;;  %v6079_v37 = vsel %vm6078_vm12, %v6070_v16, 0.0  ;;  %v6019_v6 = vadd.f32 %v6018_v17, %v6017_v33 }
 0xf75   :  { %v6034_v48 = vsel %vm58_vm0, %v6002_v19, 0.0  ;;  %6080 = vadd.xlane.f32.xlu0 %v6079_v37  ;;  %v6068_v19 = vld [vmem:[%s8399_s1 + $0x30] sm:$0x1f] }
 0xf76   :  { %v6025_v5 = vrot.slane %v6024_v21, 1  ;;  %v6030_v2 = vrot.slane %v6029_v4, 2  ;;  %v6035_v3 = vrot.slane %v6034_v48, 4  ;;  %v5986_v25 = vpop.permute.xlu0 %5985  ;;  %v6071_v27 = vmul.f32 %v6063_v60, %v6019_v6 }
 0xf77   :  { %v6003_v41 = vmul.f32 %v5986_v25, %v8171_v20  ;;  %v6065_v20 = vld [vmem:[%s8399_s1 + $0x18] sm:$0x1f] }
 0xf78   :  { %v6031_v15 = vadd.f32 %v6030_v2, %v6029_v4  ;;  %v6036_v1 = vadd.f32 %v6035_v3, %v6034_v48  ;;  %v6082_v47 = vsel %vm6078_vm12, %v6071_v27, 0.0  ;;  %v6026_v29 = vadd.f32 %v6025_v5, %v6024_v21  ;;  %v6069_v48 = vld [vmem:[%s8399_s1 + $0x38] sm:$0x1f] }
 0xf79   :  { %v6041_v45 = vsel %vm58_vm0, %v6003_v41, 0.0  ;;  %6083 = vadd.xlane.f32.xlu1 %v6082_v47 }
 0xf7a   :  { %v6032_v61 = vrot.slane %v6031_v15, 1  ;;  %v6037_v18 = vrot.slane %v6036_v1, 2  ;;  %v6042_v35 = vrot.slane %v6041_v45, 4  ;;  %v5991_v54 = vpop.permute.xlu0 %5990  ;;  %v6072_v43 = vmul.f32 %v6064_v10, %v6026_v29 }
 0xf7b   :  { %v6004_v50 = vmul.f32 %v5991_v54, %v8183_v44  ;;  %v6066_v44 = vld [vmem:[%s8399_s1 + $0x20] sm:$0x1f] }
 0xf7c   :  { %v6038_v13 = vadd.f32 %v6037_v18, %v6036_v1  ;;  %v6043_v63 = vadd.f32 %v6042_v35, %v6041_v45  ;;  %v6085_v51 = vsel %vm6078_vm12, %v6072_v43, 0.0  ;;  %v6033_v7 = vadd.f32 %v6032_v61, %v6031_v15 }
 0xf7d   :  { %v6048_v22 = vsel %vm58_vm0, %v6004_v50, 0.0  ;;  %6086 = vadd.xlane.f32.xlu1 %v6085_v51 }
 0xf7e   :  { %v6039_v14 = vrot.slane %v6038_v13, 1  ;;  %v6044_v52 = vrot.slane %v6043_v63, 2  ;;  %v6049_v46 = vrot.slane %v6048_v22, 4  ;;  %v5996_v49 = vpop.permute.xlu0 %5995  ;;  %v6073_v58 = vmul.f32 %v6065_v20, %v6033_v7 }
 0xf7f   :  { %v6005_v0 = vmul.f32 %v5996_v49, %v8186_v57  ;;  %v6067_v57 = vld [vmem:[%s8399_s1 + $0x28] sm:$0x1f] }
 0xf80   :  { %v6045_v23 = vadd.f32 %v6044_v52, %v6043_v63  ;;  %v6050_v8 = vadd.f32 %v6049_v46, %v6048_v22  ;;  %v6088_v53 = vsel %vm6078_vm12, %v6073_v58, 0.0  ;;  %v6040_v12 = vadd.f32 %v6039_v14, %v6038_v13 }
 0xf81   :  { %v6055_v56 = vsel %vm58_vm0, %v6005_v0, 0.0  ;;  %6089 = vadd.xlane.f32.xlu1 %v6088_v53 }
 0xf82   :  { %v6046_v24 = vrot.slane %v6045_v23, 1  ;;  %v6051_v11 = vrot.slane %v6050_v8, 2  ;;  %v6056_v33 = vrot.slane %v6055_v56, 4  ;;  %v6074_v28 = vmul.f32 %v6066_v44, %v6040_v12 }
 0xf84   :  { %v6052_v59 = vadd.f32 %v6051_v11, %v6050_v8  ;;  %v6057_v55 = vadd.f32 %v6056_v33, %v6055_v56  ;;  %v6091_v17 = vsel %vm6078_vm12, %v6074_v28, 0.0  ;;  %v6047_v36 = vadd.f32 %v6046_v24, %v6045_v23 }
 0xf85   :  { %6092 = vadd.xlane.f32.xlu1 %v6091_v17 }
 0xf86   :  { %v6053_v62 = vrot.slane %v6052_v59, 1  ;;  %v6058_v38 = vrot.slane %v6057_v55, 2  ;;  %v6075_v16 = vmul.f32 %v6067_v57, %v6047_v36 }
 0xf88   :  { %v6059_v60 = vadd.f32 %v6058_v38, %v6057_v55  ;;  %v6094_v21 = vsel %vm6078_vm12, %v6075_v16, 0.0  ;;  %v6054_v4 = vadd.f32 %v6053_v62, %v6052_v59 }
 0xf89   :  { %6095 = vadd.xlane.f32.xlu1 %v6094_v21 }
 0xf8a   :  { %v6060_v37 = vrot.slane %v6059_v60, 1  ;;  %v6076_v6 = vmul.f32 %v6068_v19, %v6054_v4 }
 0xf8c   :  { %v6097_v5 = vsel %vm6078_vm12, %v6076_v6, 0.0  ;;  %v6061_v2 = vadd.f32 %v6060_v37, %v6059_v60 }
 0xf8d   :  { %6098 = vadd.xlane.f32.xlu1 %v6097_v5 }
 0xf8e   :  { %v6077_v3 = vmul.f32 %v6069_v48, %v6061_v2 }
 0xf90   :  { %v6100_v25 = vsel %vm6078_vm12, %v6077_v3, 0.0 }
 0xf91   :  { %6101 = vadd.xlane.f32.xlu1 %v6100_v25 }
0x1002   :  { %v6081_v1 = vpop.xlane.xlu0 %6080 }
0x1003   :  { %v6114_v61 = vrot.slane %v6081_v1, %v8197_v39 }
0x1006   :  { %v6084_v27 = vpop.xlane.xlu1 %6083 }
0x1007   :  { %v6118_v29 = vrot.slane %v6084_v27, %v8197_v39 }
0x1009   :  { %v6143_v43 = vsel %vm5750_vm5, %v6118_v29, %v6114_v61 }
0x100a   :  { %v6087_v41 = vpop.xlane.xlu1 %6086 }
0x100b   :  { %v6122_v45 = vrot.slane %v6087_v41, %v8197_v39 }
0x100d   :  { %v6144_v20 = vsel %vm5752_vm6, %v6122_v45, %v6143_v43 }
0x100e   :  { %v6090_v10 = vpop.xlane.xlu1 %6089 }
0x100f   :  { %v6126_v18 = vrot.slane %v6090_v10, %v8197_v39 }
0x1011   :  { %v6145_v63 = vsel %vm5754_vm7, %v6126_v18, %v6144_v20 }
0x1012   :  { %v6093_v15 = vpop.xlane.xlu1 %6092 }
0x1013   :  { %v6130_v35 = vrot.slane %v6093_v15, %v8197_v39 }
0x1015   :  { %v6146_v51 = vsel %vm5756_vm8, %v6130_v35, %v6145_v63 }
0x1016   :  { %v6096_v47 = vpop.xlane.xlu1 %6095 }
0x1017   :  { %v6134_v50 = vrot.slane %v6096_v47, %v8197_v39 }
0x1019   :  { %v6147_v22 = vsel %vm5758_vm9, %v6134_v50, %v6146_v51 }
0x101a   :  { %v6099_v54 = vpop.xlane.xlu1 %6098 }
0x101b   :  { %v6138_v13 = vrot.slane %v6099_v54, %v8197_v39 }
0x101d   :  { %v6148_v52 = vsel %vm5760_vm10, %v6138_v13, %v6147_v22 }
0x101e   :  { %v6102_v7 = vpop.xlane.xlu1 %6101 }
0x101f   :  { %v6142_v14 = vrot.slane %v6102_v7, %v8197_v39 }
0x1021   :  { %v6149_v46 = vsel %vm5762_vm11, %v6142_v14, %v6148_v52 }
0x1022   :  { %v6152_v49 = vsel %vm6151_vm13, %v6149_v46, -inf }
0x1023   :  { %6153 = vmax.xlane.f32.xlu1 %v6152_v49 }
0x10b0   :  { %v6154_v58 = vpop.xlane.xlu1 %6153 }
0x10b1   :  { %v6159_v0 = vrot.slane %v6154_v58, %v8215_v32  ;;  %v6163_v44 = vrot.slane %v6154_v58, %v8217_v26  ;;  %v6167_v23 = vrot.slane %v6154_v58, %v8219_v9  ;;  %v6171_v8 = vrot.slane %v6154_v58, %v8221_v30 }
0x10b2   :  { %v6179_v53 = vrot.slane %v6154_v58, %v8229_v34  ;;  %v6175_v11 = vrot.slane %v6154_v58, %v8226_v31  ;;  %v6187_v59 = vrot.slane %v6154_v58, %v8235_v40  ;;  %v6183_v36 = vrot.slane %v6154_v58, %v8232_v42 }
0x10b3   :  { %v6196_v12 = vsub.f32 %v6081_v1, %v6159_v0  ;;  %v6197_v56 = vsub.f32 %v6084_v27, %v6163_v44  ;;  %v6199_v24 = vsub.f32 %v6090_v10, %v6171_v8  ;;  %v6198_v33 = vsub.f32 %v6087_v41, %v6167_v23 }
0x10b4   :  { %v6201_v55 = vsub.f32 %v6096_v47, %v6179_v53  ;;  %v6200_v62 = vsub.f32 %v6093_v15, %v6175_v11  ;;  %v6203_v16 = vsub.f32 %v6102_v7, %v6187_v59  ;;  %v6202_v60 = vsub.f32 %v6099_v54, %v6183_v36 }
0x10b5   :  { %v6204_v28 = vmul.f32 1.442695, %v6196_v12  ;;  %v6206_v57 = vmul.f32 1.442695, %v6197_v56  ;;  %v6210_v17 = vmul.f32 1.442695, %v6199_v24 }
0x10b6   :  { %v6208_v38 = vmul.f32 1.442695, %v6198_v33  ;;  %v6214_v19 = vmul.f32 1.442695, %v6201_v55  ;;  %v6212_v21 = vmul.f32 1.442695, %v6200_v62 }
0x10b7   :  { %7208 = vpow2.f32 %v6204_v28  ;;  %v6218_v4 = vmul.f32 1.442695, %v6203_v16  ;;  %v6216_v37 = vmul.f32 1.442695, %v6202_v60 }
0x10b8   :  { %7210 = vpow2.f32 %v6206_v57 }
0x10b9   :  { %7212 = vpow2.f32 %v6210_v17 }
0x10ba   :  { %7214 = vpow2.f32 %v6208_v38 }
0x10bb   :  { %7216 = vpow2.f32 %v6214_v19 }
0x10bc   :  { %7218 = vpow2.f32 %v6212_v21 }
0x10bd   :  { %7220 = vpow2.f32 %v6218_v4 }
0x10be   :  { %7222 = vpow2.f32 %v6216_v37 }
0x10c1   :  { %v7209_v6 = vpop.eup %7208 }
0x10c2   :  { %v7211_v48 = vpop.eup %7210  ;;  %6229 = vperm.xlu0 %7040, %v7209_v6  }
0x10c3   :  { %6232 = vperm.xlu1 %7041, %v7211_v48   ;;  %v8335_v5 = vpop.eup %7212 }
0x10c4   :  { %v7215_v2 = vpop.eup %7214 }
0x10c5   :  { %v8338_v3 = vpop.eup %7216 }
0x10c6   :  { %6238 = vperm.xlu0 %7040, %v8335_v5   ;;  %v7219_v25 = vpop.eup %7218 }
0x10c7   :  { %6235 = vperm.xlu1 %7041, %v7215_v2   ;;  %v8341_v27 = vpop.eup %7220 }
0x10c8   :  { %v8343_v41 = vpop.eup %7222 }
0x10ca   :  { %6244 = vperm.xlu0 %7040, %v8338_v3  }
0x10cb   :  { %6241 = vperm.xlu1 %7041, %v7219_v25  }
0x10ce   :  { %6250 = vperm.xlu0 %7040, %v8341_v27  }
0x10cf   :  { %6247 = vperm.xlu1 %7041, %v8343_v41  }
0x1141   :  { %v6230_v10 = vpop.permute.xlu0 %6229 }
0x1142   :  { %v6233_v15 = vpop.permute.xlu1 %6232  ;;  %v6255_v47 = vrot.slane %v6230_v10, %v8197_v39 }
0x1143   :  { %v6259_v1 = vrot.slane %v6233_v15, %v8197_v39 }
0x1145   :  { %v6239_v29 = vpop.permute.xlu0 %6238  ;;  %v6284_v18 = vsel %vm5750_vm5, %v6259_v1, %v6255_v47 }
0x1146   :  { %v6236_v45 = vpop.permute.xlu1 %6235  ;;  %v6267_v35 = vrot.slane %v6239_v29, %v8197_v39 }
0x1147   :  { %v6263_v61 = vrot.slane %v6236_v45, %v8197_v39 }
0x1149   :  { %v6285_v54 = vsel %vm5752_vm6, %v6263_v61, %v6284_v18  ;;  %v6245_v43 = vpop.permute.xlu0 %6244 }
0x114a   :  { %v6242_v50 = vpop.permute.xlu1 %6241  ;;  %v6286_v13 = vsel %vm5754_vm7, %v6267_v35, %v6285_v54  ;;  %v6275_v63 = vrot.slane %v6245_v43, %v8197_v39 }
0x114b   :  { %v6271_v20 = vrot.slane %v6242_v50, %v8197_v39 }
0x114d   :  { %v6287_v51 = vsel %vm5756_vm8, %v6271_v20, %v6286_v13  ;;  %v6251_v7 = vpop.permute.xlu0 %6250 }
0x114e   :  { %v6248_v22 = vpop.permute.xlu1 %6247  ;;  %v6283_v14 = vrot.slane %v6251_v7, %v8197_v39  ;;  %v6288_v46 = vsel %vm5758_vm9, %v6275_v63, %v6287_v51 }
0x114f   :  { %v6279_v52 = vrot.slane %v6248_v22, %v8197_v39 }
0x1151   :  { %v6289_v49 = vsel %vm5760_vm10, %v6279_v52, %v6288_v46 }
0x1152   :  { %v6290_v58 = vsel %vm5762_vm11, %v6283_v14, %v6289_v49 }
0x1153   :  { %v6292_v0 = vsel %vm6151_vm13, %v6290_v58, 0.0 }
0x1154   :  { %6293 = vadd.xlane.f32.xlu1 %v6292_v0 }
0x11e1   :  { %v6294_v44 = vpop.xlane.xlu1 %6293 }
0x11e2   :  { %v6299_v23 = vrot.slane %v6294_v44, %v8215_v32  ;;  %v6303_v8 = vrot.slane %v6294_v44, %v8217_v26  ;;  %v6307_v53 = vrot.slane %v6294_v44, %v8219_v9  ;;  %v6311_v12 = vrot.slane %v6294_v44, %v8221_v30 }
0x11e3   :  { %v6315_v24 = vrot.slane %v6294_v44, %v8226_v31  ;;  %v6319_v28 = vrot.slane %v6294_v44, %v8229_v34  ;;  %v6323_v26 = vrot.slane %v6294_v44, %v8232_v42  ;;  %v6327_v30 = vrot.slane %v6294_v44, %v8235_v40 }
0x11e4   :  { %7224 = vrcp.f32 %v6299_v23 }
0x11e5   :  { %7226 = vrcp.f32 %v6303_v8 }
0x11e6   :  { %7228 = vrcp.f32 %v6307_v53 }
0x11e7   :  { %7230 = vrcp.f32 %v6311_v12 }
0x11e8   :  { %7232 = vrcp.f32 %v6315_v24 }
0x11e9   :  { %7234 = vrcp.f32 %v6319_v28 }
0x11ea   :  { %7236 = vrcp.f32 %v6323_v26 }
0x11eb   :  { %7238 = vrcp.f32 %v6327_v30 }
0x11ee   :  { %v7225_v56 = vpop.eup %7224 }
0x11ef   :  { %v6337_v11 = vmul.f32 %v7225_v56, %v7209_v6  ;;  %v7227_v33 = vpop.eup %7226 }
0x11f0   :  { %v6339_v32 = vmul.f32 %v7227_v33, %v7211_v48  ;;  %v7229_v57 = vpop.eup %7228 }
0x11f1   :  { %6361 = vperm.xlu0 %7040, %v6337_v11   ;;  %v6341_v9 = vmul.f32 %v7229_v57, %v7215_v2  ;;  %v7231_v59 = vpop.eup %7230 }
0x11f2   :  { %v6343_v31 = vmul.f32 %v7231_v59, %v8335_v5  ;;  %v7233_v55 = vpop.eup %7232 }
0x11f3   :  { %v6345_v17 = vmul.f32 %v7233_v55, %v7219_v25  ;;  %v7235_v34 = vpop.eup %7234 }
0x11f4   :  { %v6347_v36 = vmul.f32 %v7235_v34, %v8338_v3  ;;  %v7237_v62 = vpop.eup %7236 }
0x11f5   :  { %6364 = vperm.xlu0 %7040, %v6339_v32   ;;  %v6349_v42 = vmul.f32 %v7237_v62, %v8343_v41  ;;  %v7239_v38 = vpop.eup %7238 }
0x11f6   :  { %v6351_v16 = vmul.f32 %v7239_v38, %v8341_v27 }
0x11f9   :  { %6367 = vperm.xlu0 %7040, %v6341_v9  }
0x11fd   :  { %6370 = vperm.xlu0 %7040, %v6343_v31  }
0x1201   :  { %6373 = vperm.xlu0 %7040, %v6345_v17  }
0x1205   :  { %6376 = vperm.xlu0 %7040, %v6347_v36  }
0x1209   :  { %6379 = vperm.xlu0 %7040, %v6349_v42  }
0x120d   :  { %6382 = vperm.xlu0 %7040, %v6351_v16  }
0x1270   :  { %v6362_v40 = vpop.permute.xlu0 %6361 }
0x1271   :  { %v6387_v5 = vrot.slane %v6362_v40, %v8197_v39 }
0x1274   :  { %v6365_v19 = vpop.permute.xlu0 %6364 }
0x1275   :  { %v6391_v6 = vrot.slane %v6365_v19, %v8197_v39 }
0x1277   :  { %v6416_v27 = vsel %vm5750_vm5, %v6391_v6, %v6387_v5 }
0x1278   :  { %v6368_v60 = vpop.permute.xlu0 %6367 }
0x1279   :  { %v6395_v48 = vrot.slane %v6368_v60, %v8197_v39 }
0x127b   :  { %v6417_v10 = vsel %vm5752_vm6, %v6395_v48, %v6416_v27 }
0x127c   :  { %v6371_v21 = vpop.permute.xlu0 %6370 }
0x127d   :  { %v6399_v2 = vrot.slane %v6371_v21, %v8197_v39 }
0x127f   :  { %v6418_v1 = vsel %vm5754_vm7, %v6399_v2, %v6417_v10 }
0x1280   :  { %v6374_v4 = vpop.permute.xlu0 %6373 }
0x1281   :  { %v6403_v3 = vrot.slane %v6374_v4, %v8197_v39 }
0x1283   :  { %v6419_v47 = vsel %vm5756_vm8, %v6403_v3, %v6418_v1 }
0x1284   :  { %v6377_v37 = vpop.permute.xlu0 %6376 }
0x1285   :  { %v6407_v41 = vrot.slane %v6377_v37, %v8197_v39 }
0x1287   :  { %v6420_v45 = vsel %vm5758_vm9, %v6407_v41, %v6419_v47 }
0x1288   :  { %v6380_v25 = vpop.permute.xlu0 %6379 }
0x1289   :  { %v6411_v15 = vrot.slane %v6380_v25, %v8197_v39 }
0x128b   :  { %v6421_v18 = vsel %vm5760_vm10, %v6411_v15, %v6420_v45 }
0x128c   :  { %v6383_v29 = vpop.permute.xlu0 %6382 }
0x128d   :  { %v6415_v61 = vrot.slane %v6383_v29, %v8197_v39 }
0x128f   :  { %v6422_v35 = vsel %vm5762_vm11, %v6415_v61, %v6421_v18 }
0x1290   :  { %6424 = vst.msk [vmem:[%s8400_s6] sm:$0xff] %vm6151_vm13, %v6422_v35 }

// kernel: nrms_forward.2
= control target key start
LH: loop header
LB: loop body
LE: loop exit
PB: predicated region body
PF: predicated region fallthrough
CT: control target
= control target key end

     0   :  { %s13913_s18 = smov 0   ;;  %s16508_s0 = inlined_call_operand.vmem [shape: bf16[32,8,32], index: 0, kind: input, shape index: {}]   ;;  %s16509_s1 = inlined_call_operand.vmem [shape: bf16[32,96], index: 1, kind: input, shape index: {}]   ;;  %s16510_s2 = inlined_call_operand.vmem [shape: bf16[32,128], index: 2, kind: input, shape index: {}]   ;;  %s16511_s3 = inlined_call_operand.vmem [shape: f32[1,128], index: 3, kind: input, shape index: {}]   ;;  %s16512_s4 = inlined_call_operand.vmem [shape: f32[1,128], index: 4, kind: input, shape index: {}]   ;;  %s16513_s5 = inlined_call_operand.vmem [shape: f32[32,32], index: 5, kind: output, shape index: {}]  }
   0x1 LB: > { %s12302_s19 = sadd.s32 4294967295, %s13864_s18   ;;  %p12306_p0 = scmp.ge.s32.totalorder %s13864_s18, 1  ;;  %s13864_s18 = sphi %s13913_s18, %s15_s18  }
   0x2   : > { %p188_p1 = scmp.lt.s32.totalorder %s13864_s18, 3 }
   0x4   : > { %p189_p2 = pnand %p12306_p0, %p188_p1 }
   0x6   : > { %192 = sbr.rel (%p189_p2) target bundleno = 4124 (0x101c), region = 40 }
   0xd   : > { %v13522_v0 = vld [vmem:[%s16509_s1] sm:$0xff]   ;;  %s12307_s22 = sshll.u32 %s12302_s19, 4  ;;  %v13523_v1 = vld [vmem:[%s16509_s1 + $0x8] sm:$0xff]   ;;  %vm307_vm0 = vcmask 261120   ;;  %v16514_v10 = vmov 0.0   ;;  %vm13867_vm1 = vmmov 0  }
   0xe   : > { %p217_p3 = scmp.lt.s32.totalorder %s12307_s22, 31  ;;  %12811 = vmatprep.subr.bf16.mxu0 %v13522_v0  ;;  %12836 = vmatprep.subr.mxu1 %v16514_v10  ;;  %s13868_s29 = smov 96   ;;  %vm432_vm2 = vcmask 64512   ;;  %vm11246_vm3 = vcmask 130048   ;;  %vm11263_vm4 = vcmask 195584   ;;  %vm11595_vm5 = vcmask 1041409  }
   0xf   : > { %12812 = vmatpush3.bf16.msra.mxu0 %v13522_v0  ;;  %12838 = vmatprep.mubr.msk.f32.mxu1 %vm13867_vm1, %v16514_v10  ;;  %s13869_s30 = smov 64   ;;  %s13870_s6 = smov 88   ;;  %vm11597_vm6 = vcmask 1042434   ;;  %vm11599_vm7 = vcmask 1043459   ;;  %vm11601_vm8 = vcmask 1044484   ;;  %vm11603_vm9 = vcmask 1045509  }
  0x10   : > { %s16622_s22 = smov (!%p217_p3, %s12307_s22), 31  ;;  %12813 = vmatprep.subr.bf16.mxu0 %v13523_v1  ;;  %s13871_s7 = smov 120   ;;  %vm11605_vm10 = vcmask 1046534   ;;  %vm11607_vm11 = vcmask 1047559  }
  0x11   : > { %s12308_s25 = sshll.u32 %s16622_s22, 2  ;;  %s13872_s8 = smov 56  }
  0x12   : > { %s220_s28 = scalar_lea.vmem %s16508_s0, %s12308_s25  ;;  %s13873_s9 = smov 80  }
  0x13   : > { %12814 = vmatpush3.bf16.msra.mxu0 %v13523_v1  ;;  %v13524_v2 = vld [vmem:[%s220_s28] sm:$0xff]   ;;  %v13525_v3 = vld [vmem:[%s220_s28 + $0x8] sm:$0xff]   ;;  %v13526_v4 = vld [vmem:[%s220_s28 + $0x10] sm:$0xff]   ;;  %s13874_s10 = smov 112   ;;  %s13875_s11 = smov 48  }
  0x14   : > { %12815 = vmatprep.mubr.msk.bf16.mxu0 %vm307_vm0, %v13524_v2  ;;  %v13527_v5 = vld [vmem:[%s220_s28 + $0x18] sm:$0xff]   ;;  %v13528_v6 = vld [vmem:[%s220_s28 + $0x20] sm:$0xff]   ;;  %v13529_v7 = vld [vmem:[%s220_s28 + $0x28] sm:$0xff]   ;;  %12831 = vmatprep.subr.mxu0 %v16514_v10  ;;  %s13876_s12 = smov 72   ;;  %s13877_s13 = smov 104  }
  0x15   : > { %v13530_v8 = vld [vmem:[%s220_s28 + $0x30] sm:$0xff]   ;;  %v13531_v9 = vld [vmem:[%s220_s28 + $0x38] sm:$0xff]   ;;  %s13878_s14 = smov 40   ;;  %s13879_s15 = smov 8  }
  0x16   : > { %12816 = vmatmul.mubr.msk.bf16.vlgmr.msra.gmra.mrb[0].mxu0 %vm307_vm0, %v13525_v3  ;;  %s13880_s16 = smov 16   ;;  %s13881_s23 = smov 24  }
  0x17   : > { %12819 = vmatprep.mubr.msk.bf16.mxu0 %vm307_vm0, %v13526_v4  ;;  %s12309_s28 = sshll.u32 %s12302_s19, 1 }
  0x18   : > { %p223_p4 = scmp.lt.s32.totalorder %s12309_s28, 3 }
  0x1a   : > { %s16624_s28 = smov (!%p223_p4, %s12309_s28), 3 }
  0x1b   : > { %s12310_s19 = sshll.u32 %s16624_s28, 3 }
  0x1e   : > { %12820 = vmatmul.mubr.msk.bf16.gmra.mrb[4].mxu0 %vm307_vm0, %v13527_v5 }
  0x1f   : > { %12823 = vmatprep.mubr.msk.bf16.mxu0 %vm307_vm0, %v13528_v6 }
  0x26   : > { %12824 = vmatmul.mubr.msk.bf16.gmra.mrb[8].mxu0 %vm307_vm0, %v13529_v7 }
  0x27   : > { %12827 = vmatprep.mubr.msk.bf16.mxu0 %vm307_vm0, %v13530_v8 }
  0x2e   : > { %12828 = vmatmul.mubr.msk.bf16.gmra.mrb[12].mxu0 %vm307_vm0, %v13531_v9 }
  0x2f   : > { %12833 = vmatprep.mubr.msk.f32.mxu0 %vm13867_vm1, %v16514_v10 }
  0xe9   : > { %v13946_v11 = vpop.f32.mrb[0].mxu0 }
  0xea   : > { %v13948_v12 = vpop.f32.mrb[1].mxu0 }
  0xeb   : > { %v13950_v13 = vpop.f32.mrb[2].mxu0 }
  0xec   : > { %662 = vrot.lane.b32.xlu1 %v13950_v13, %s13868_s29  ;;  %v13953_v14 = vpop.f32.mrb[3].mxu0 }
  0xed   : > { %508 = vrot.lane.b32.xlu0 %v13953_v14, %s13868_s29 }
  0xf0   : > { %430 = vrot.lane.b32.xlu1 %v13948_v12, %s13868_s29 }
  0xf1   : > { %585 = vrot.lane.b32.xlu0 %v13946_v11, %s13868_s29  ;;  %v13958_v15 = vpop.f32.mrb[4].mxu0 }
  0xf2   : > { %v13960_v16 = vpop.f32.mrb[5].mxu0 }
  0xf3   : > { %v13962_v17 = vpop.f32.mrb[6].mxu0 }
  0xf4   : > { %v13964_v18 = vpop.f32.mrb[7].mxu0 }
  0xf5   : > { %739 = vrot.lane.b32.xlu0 %v13960_v16, %s13868_s29  ;;  %816 = vrot.lane.b32.xlu1 %v13964_v18, %s13868_s29 }
  0xf9   : > { %893 = vrot.lane.b32.xlu0 %v13958_v15, %s13868_s29  ;;  %970 = vrot.lane.b32.xlu1 %v13962_v17, %s13868_s29  ;;  %v13970_v19 = vpop.f32.mrb[8].mxu0 }
  0xfa   : > { %v13972_v20 = vpop.f32.mrb[9].mxu0 }
  0xfb   : > { %v13974_v21 = vpop.f32.mrb[10].mxu0 }
  0xfc   : > { %v13976_v22 = vpop.f32.mrb[11].mxu0 }
  0xfd   : > { %1047 = vrot.lane.b32.xlu0 %v13972_v20, %s13868_s29  ;;  %1124 = vrot.lane.b32.xlu1 %v13976_v22, %s13868_s29 }
 0x101   : > { %1201 = vrot.lane.b32.xlu0 %v13970_v19, %s13868_s29  ;;  %1278 = vrot.lane.b32.xlu1 %v13974_v21, %s13868_s29  ;;  %v13982_v23 = vpop.f32.mrb[12].mxu0 }
 0x102   : > { %v13984_v24 = vpop.f32.mrb[13].mxu0 }
 0x103   : > { %v13986_v25 = vpop.f32.mrb[14].mxu0 }
 0x104   : > { %v13988_v26 = vpop.f32.mrb[15].mxu0 }
 0x105   : > { %1355 = vrot.lane.b32.xlu0 %v13984_v24, %s13868_s29  ;;  %1432 = vrot.lane.b32.xlu1 %v13988_v26, %s13868_s29 }
 0x109   : > { %1509 = vrot.lane.b32.xlu0 %v13982_v23, %s13868_s29  ;;  %1586 = vrot.lane.b32.xlu1 %v13986_v25, %s13868_s29 }
 0x10d   : > { %1930 = vrot.lane.b32.xlu0 %v13953_v14, %s13869_s30  ;;  %1854 = vrot.lane.b32.xlu1 %v13948_v12, %s13869_s30 }
 0x111   : > { %2082 = vrot.lane.b32.xlu0 %v13950_v13, %s13869_s30  ;;  %2006 = vrot.lane.b32.xlu1 %v13946_v11, %s13869_s30 }
 0x115   : > { %2310 = vrot.lane.b32.xlu0 %v13958_v15, %s13869_s30  ;;  %2158 = vrot.lane.b32.xlu1 %v13960_v16, %s13869_s30 }
 0x119   : > { %2462 = vrot.lane.b32.xlu0 %v13972_v20, %s13869_s30  ;;  %2234 = vrot.lane.b32.xlu1 %v13964_v18, %s13869_s30 }
 0x11d   : > { %2614 = vrot.lane.b32.xlu0 %v13970_v19, %s13869_s30  ;;  %2386 = vrot.lane.b32.xlu1 %v13962_v17, %s13869_s30 }
 0x121   : > { %2766 = vrot.lane.b32.xlu0 %v13984_v24, %s13869_s30  ;;  %2538 = vrot.lane.b32.xlu1 %v13976_v22, %s13869_s30 }
 0x125   : > { %2918 = vrot.lane.b32.xlu0 %v13982_v23, %s13869_s30  ;;  %2690 = vrot.lane.b32.xlu1 %v13974_v21, %s13869_s30 }
 0x129   : > { %3072 = vrot.lane.b32.xlu0 %v13948_v12, %s13870_s6  ;;  %2994 = vrot.lane.b32.xlu1 %v13986_v25, %s13869_s30 }
 0x12d   : > { %3070 = vrot.lane.b32.xlu0 %v13948_v12, %s13871_s7  ;;  %3150 = vrot.lane.b32.xlu1 %v13953_v14, %s13870_s6 }
 0x131   : > { %3228 = vrot.lane.b32.xlu0 %v13946_v11, %s13870_s6  ;;  %3148 = vrot.lane.b32.xlu1 %v13953_v14, %s13871_s7 }
 0x135   : > { %3226 = vrot.lane.b32.xlu0 %v13946_v11, %s13871_s7  ;;  %3306 = vrot.lane.b32.xlu1 %v13950_v13, %s13870_s6 }
 0x139   : > { %3384 = vrot.lane.b32.xlu0 %v13960_v16, %s13870_s6  ;;  %3304 = vrot.lane.b32.xlu1 %v13950_v13, %s13871_s7 }
 0x13d   : > { %3462 = vrot.lane.b32.xlu1 %v13964_v18, %s13870_s6 }
 0x141   : > { %2842 = vrot.lane.b32.xlu1 %v13988_v26, %s13869_s30 }
 0x15e   : > { %v663_v27 = vpop.permute.xlu1 %662 }
 0x15f   : > { %v509_v28 = vpop.permute.xlu0 %508 }
 0x160   : > { %12837 = vmatpush3.xpose.msk.msra.mxu1 %vm432_vm2, %v509_v28 }
 0x161   : > { %12841 = vmatprep.subr.mxu1 %v16514_v10 }
 0x162   : > { %v431_v29 = vpop.permute.xlu1 %430 }
 0x163   : > { %12832 = vmatpush3.xpose.msk.msra.mxu0 %vm432_vm2, %v431_v29  ;;  %12839 = vmatmul.mubr.msk.f32.vlgmr.msra.gmra.mrb[0].mxu1 %vm432_vm2, %v13953_v14  ;;  %v586_v30 = vpop.permute.xlu0 %585 }
 0x164   : > { %12842 = vmatpush3.xpose.msk.msra.mxu1 %vm432_vm2, %v586_v30  ;;  %12843 = vmatprep.mubr.msk.f32.mxu1 %vm13867_vm1, %v16514_v10 }
 0x165   : > { %12846 = vmatprep.subr.mxu1 %v16514_v10  ;;  %12876 = vmatprep.subr.mxu0 %v16514_v10 }
 0x166   : > { %12834 = vmatmul.mubr.msk.f32.vlgmr.msra.gmra.mrb[16].mxu0 %vm432_vm2, %v13948_v12 }
 0x167   : > { %12844 = vmatmul.mubr.msk.f32.vlgmr.msra.gmra.mrb[2].mxu1 %vm432_vm2, %v13946_v11  ;;  %v740_v31 = vpop.permute.xlu0 %739  ;;  %v817_v32 = vpop.permute.xlu1 %816  ;;  %12878 = vmatprep.mubr.msk.f32.mxu0 %vm13867_vm1, %v16514_v10 }
 0x168   : > { %12847 = vmatpush3.xpose.msk.msra.mxu1 %vm432_vm2, %v663_v27  ;;  %12848 = vmatprep.mubr.msk.f32.mxu1 %vm13867_vm1, %v16514_v10 }
 0x169   : > { %12851 = vmatprep.subr.mxu1 %v16514_v10 }
 0x16b   : > { %12849 = vmatmul.mubr.msk.f32.vlgmr.msra.gmra.mrb[4].mxu1 %vm432_vm2, %v13950_v13  ;;  %v894_v33 = vpop.permute.xlu0 %893  ;;  %v971_v34 = vpop.permute.xlu1 %970 }
 0x16c   : > { %12852 = vmatpush3.xpose.msk.msra.mxu1 %vm432_vm2, %v740_v31  ;;  %12853 = vmatprep.mubr.msk.f32.mxu1 %vm13867_vm1, %v16514_v10 }
 0x16d   : > { %12856 = vmatprep.subr.mxu1 %v16514_v10 }
 0x16f   : > { %12854 = vmatmul.mubr.msk.f32.vlgmr.msra.gmra.mrb[6].mxu1 %vm432_vm2, %v13960_v16  ;;  %v1048_v35 = vpop.permute.xlu0 %1047  ;;  %v1125_v36 = vpop.permute.xlu1 %1124 }
 0x170   : > { %12857 = vmatpush3.xpose.msk.msra.mxu1 %vm432_vm2, %v817_v32  ;;  %12877 = vmatpush3.xpose.msk.msra.mxu0 %vm432_vm2, %v1125_v36 }
 0x171   : > { %12858 = vmatprep.mubr.msk.f32.mxu1 %vm13867_vm1, %v16514_v10  ;;  %12861 = vmatprep.subr.mxu1 %v16514_v10 }
 0x172   : > { %12886 = vmatprep.subr.mxu0 %v16514_v10 }
 0x173   : > { %12859 = vmatmul.mubr.msk.f32.vlgmr.msra.gmra.mrb[8].mxu1 %vm432_vm2, %v13964_v18  ;;  %v1202_v37 = vpop.permute.xlu0 %1201  ;;  %12879 = vmatmul.mubr.msk.f32.vlgmr.msra.gmra.mrb[18].mxu0 %vm432_vm2, %v13976_v22  ;;  %v1279_v38 = vpop.permute.xlu1 %1278 }
 0x174   : > { %12862 = vmatpush3.xpose.msk.msra.mxu1 %vm432_vm2, %v894_v33  ;;  %12887 = vmatpush3.xpose.msk.msra.mxu0 %vm432_vm2, %v1279_v38 }
 0x175   : > { %12863 = vmatprep.mubr.msk.f32.mxu1 %vm13867_vm1, %v16514_v10  ;;  %12888 = vmatprep.mubr.msk.f32.mxu0 %vm13867_vm1, %v16514_v10 }
 0x176   : > { %12866 = vmatprep.subr.mxu1 %v16514_v10  ;;  %12896 = vmatprep.subr.mxu0 %v16514_v10 }
 0x177   : > { %12864 = vmatmul.mubr.msk.f32.vlgmr.msra.gmra.mrb[10].mxu1 %vm432_vm2, %v13958_v15  ;;  %12889 = vmatmul.mubr.msk.f32.vlgmr.msra.gmra.mrb[20].mxu0 %vm432_vm2, %v13974_v21  ;;  %v1356_v39 = vpop.permute.xlu0 %1355  ;;  %v1433_v40 = vpop.permute.xlu1 %1432 }
 0x178   : > { %12867 = vmatpush3.xpose.msk.msra.mxu1 %vm432_vm2, %v971_v34  ;;  %12897 = vmatpush3.xpose.msk.msra.mxu0 %vm432_vm2, %v1433_v40 }
 0x179   : > { %12868 = vmatprep.mubr.msk.f32.mxu1 %vm13867_vm1, %v16514_v10  ;;  %12871 = vmatprep.subr.mxu1 %v16514_v10 }
 0x17a   : > { %12898 = vmatprep.mubr.msk.f32.mxu0 %vm13867_vm1, %v16514_v10  ;;  %12906 = vmatprep.subr.mxu0 %v16514_v10 }
 0x17b   : > { %12869 = vmatmul.mubr.msk.f32.vlgmr.msra.gmra.mrb[12].mxu1 %vm432_vm2, %v13962_v17  ;;  %v1510_v41 = vpop.permute.xlu0 %1509  ;;  %v1587_v42 = vpop.permute.xlu1 %1586  ;;  %12899 = vmatmul.mubr.msk.f32.vlgmr.msra.gmra.mrb[22].mxu0 %vm432_vm2, %v13988_v26 }
 0x17c   : > { %12872 = vmatpush3.xpose.msk.msra.mxu1 %vm432_vm2, %v1048_v35  ;;  %12907 = vmatpush3.xpose.msk.msra.mxu0 %vm432_vm2, %v1587_v42 }
 0x17d   : > { %12873 = vmatprep.mubr.msk.f32.mxu1 %vm13867_vm1, %v16514_v10  ;;  %12881 = vmatprep.subr.mxu1 %v16514_v10 }
 0x17e   : > { %12908 = vmatprep.mubr.msk.f32.mxu0 %vm13867_vm1, %v16514_v10  ;;  %12916 = vmatprep.subr.mxu0 %v16514_v10 }
 0x17f   : > { %12874 = vmatmul.mubr.msk.f32.vlgmr.msra.gmra.mrb[14].mxu1 %vm432_vm2, %v13972_v20  ;;  %v1931_v43 = vpop.permute.xlu0 %1930  ;;  %12909 = vmatmul.mubr.msk.f32.vlgmr.msra.gmra.mrb[24].mxu0 %vm432_vm2, %v13986_v25  ;;  %v1855_v44 = vpop.permute.xlu1 %1854 }
 0x180   : > { %12882 = vmatpush3.xpose.msk.msra.mxu1 %vm432_vm2, %v1202_v37  ;;  %12917 = vmatpush3.msra.mxu0 %v1931_v43 }
 0x181   : > { %12883 = vmatprep.mubr.msk.f32.mxu1 %vm13867_vm1, %v16514_v10  ;;  %12891 = vmatprep.subr.mxu1 %v16514_v10 }
 0x182   : > { %12918 = vmatprep.mubr.msk.f32.mxu0 %vm13867_vm1, %v16514_v10  ;;  %12926 = vmatprep.subr.mxu0 %v16514_v10 }
 0x183   : > { %12884 = vmatmul.mubr.msk.f32.vlgmr.msra.gmra.mrb[16].mxu1 %vm432_vm2, %v13970_v19 }
 0x184   : > { %12892 = vmatpush3.xpose.msk.msra.mxu1 %vm432_vm2, %v1356_v39  ;;  %12893 = vmatprep.mubr.msk.f32.mxu1 %vm13867_vm1, %v16514_v10 }
 0x185   : > { %12901 = vmatprep.subr.mxu1 %v16514_v10 }
 0x187   : > { %12894 = vmatmul.mubr.msk.f32.vlgmr.msra.gmra.mrb[18].mxu1 %vm432_vm2, %v13984_v24 }
 0x188   : > { %12902 = vmatpush3.xpose.msk.msra.mxu1 %vm432_vm2, %v1510_v41  ;;  %12903 = vmatprep.mubr.msk.f32.mxu1 %vm13867_vm1, %v16514_v10 }
 0x189   : > { %12911 = vmatprep.subr.mxu1 %v16514_v10 }
 0x18b   : > { %12904 = vmatmul.mubr.msk.f32.vlgmr.msra.gmra.mrb[20].mxu1 %vm432_vm2, %v13982_v23 }
 0x18c   : > { %12912 = vmatpush3.msra.mxu1 %v1855_v44  ;;  %12913 = vmatprep.mubr.msk.f32.mxu1 %vm13867_vm1, %v16514_v10 }
 0x18d   : > { %12921 = vmatprep.subr.mxu1 %v16514_v10 }
 0x236   : > { %v580_v45 = vpop.f32.mrb[0].mxu1 }
 0x237   : > { %v14128_v46 = vmul.f32 0.35355338, %v580_v45  ;;  %v12840_v47 = vpop.f32.mrb[1].mxu1 }
 0x239   : > { %v503_v48 = vpop.f32.mrb[16].mxu0  ;;  %v1681_v49 = vsel %vm432_vm2, %v14128_v46, -inf }
 0x23a   : > { %v14132_v50 = vmul.f32 0.35355338, %v503_v48  ;;  %v657_v51 = vpop.f32.mrb[2].mxu1  ;;  %1682 = vmax.xlane.f32.xlu1 %v1681_v49  ;;  %v12835_v52 = vpop.f32.mrb[17].mxu0 }
 0x23b   : > { %v12845_v53 = vpop.f32.mrb[3].mxu1  ;;  %v14134_v54 = vmul.f32 0.35355338, %v657_v51 }
 0x23c   : > { %v1678_v55 = vsel %vm432_vm2, %v14132_v50, -inf }
 0x23d   : > { %1679 = vmax.xlane.f32.xlu0 %v1678_v55  ;;  %v1684_v59 = vsel %vm432_vm2, %v14134_v54, -inf }
 0x23e   : > { %v734_v56 = vpop.f32.mrb[4].mxu1 }
 0x23f   : > { %v12850_v57 = vpop.f32.mrb[5].mxu1  ;;  %v14138_v58 = vmul.f32 0.35355338, %v734_v56 }
 0x241   : > { %1685 = vmax.xlane.f32.xlu0 %v1684_v59  ;;  %v1687_v63 = vsel %vm432_vm2, %v14138_v58, -inf }
 0x242   : > { %v811_v60 = vpop.f32.mrb[6].mxu1 }
 0x243   : > { %v14142_v61 = vmul.f32 0.35355338, %v811_v60  ;;  %v12855_v62 = vpop.f32.mrb[7].mxu1  ;;  %v14184_v60 = vpop.permute.xlu1 %2006 }
 0x245   : > { %1688 = vmax.xlane.f32.xlu0 %v1687_v63  ;;  %v1690_v0 = vsel %vm432_vm2, %v14142_v61, -inf }
 0x246   : > { %v888_v1 = vpop.f32.mrb[8].mxu1  ;;  %1691 = vmax.xlane.f32.xlu1 %v1690_v0  ;;  %v1196_v2 = vpop.f32.mrb[18].mxu0 }
 0x247   : > { %v14148_v3 = vmul.f32 0.35355338, %v888_v1  ;;  %v12860_v4 = vpop.f32.mrb[9].mxu1  ;;  %v12880_v5 = vpop.f32.mrb[19].mxu0  ;;  %v14150_v6 = vmul.f32 0.35355338, %v1196_v2 }
 0x248   : > { %v14186_v62 = vpop.permute.xlu1 %2158  ;;  %v14192_v1 = vpop.permute.xlu0 %2082 }
 0x249   : > { %v1693_v7 = vsel %vm432_vm2, %v14148_v3, -inf  ;;  %v1705_v32 = vsel %vm432_vm2, %v14150_v6, -inf }
 0x24a   : > { %v965_v8 = vpop.f32.mrb[10].mxu1  ;;  %1694 = vmax.xlane.f32.xlu0 %v1693_v7  ;;  %v1350_v9 = vpop.f32.mrb[20].mxu0 }
 0x24b   : > { %v14154_v27 = vmul.f32 0.35355338, %v965_v8  ;;  %v12865_v28 = vpop.f32.mrb[11].mxu1  ;;  %v12890_v29 = vpop.f32.mrb[21].mxu0  ;;  %v14156_v30 = vmul.f32 0.35355338, %v1350_v9 }
 0x24c   : > { %v14190_v0 = vpop.permute.xlu1 %2234  ;;  %v14204_v9 = vpop.permute.xlu0 %2310 }
 0x24d   : > { %v1696_v31 = vsel %vm432_vm2, %v14154_v27, -inf  ;;  %v1711_v38 = vsel %vm432_vm2, %v14156_v30, -inf }
 0x24e   : > { %v1042_v33 = vpop.f32.mrb[12].mxu1  ;;  %1697 = vmax.xlane.f32.xlu1 %v1696_v31  ;;  %1706 = vmax.xlane.f32.xlu0 %v1705_v32  ;;  %v1504_v34 = vpop.f32.mrb[22].mxu0 }
 0x24f   : > { %v12870_v35 = vpop.f32.mrb[13].mxu1  ;;  %v12900_v36 = vpop.f32.mrb[23].mxu0  ;;  %v14162_v37 = vmul.f32 0.35355338, %v1042_v33  ;;  %v14168_v44 = vmul.f32 0.35355338, %v1504_v34 }
 0x250   : > { %v14202_v8 = vpop.permute.xlu1 %2386  ;;  %v14210_v31 = vpop.permute.xlu0 %2462 }
 0x251   : > { %v1699_v47 = vsel %vm432_vm2, %v14162_v37, -inf  ;;  %v1717_v52 = vsel %vm432_vm2, %v14168_v44, -inf }
 0x252   : > { %v1119_v39 = vpop.f32.mrb[14].mxu1  ;;  %1712 = vmax.xlane.f32.xlu0 %v1711_v38  ;;  %v1658_v40 = vpop.f32.mrb[24].mxu0 }
 0x253   : > { %v14166_v41 = vmul.f32 0.35355338, %v1119_v39  ;;  %v12875_v42 = vpop.f32.mrb[15].mxu1  ;;  %v12910_v43 = vpop.f32.mrb[25].mxu0  ;;  %v14174_v51 = vmul.f32 0.35355338, %v1658_v40 }
 0x254   : > { %v14208_v29 = vpop.permute.xlu1 %2538  ;;  %v14214_v33 = vpop.permute.xlu0 %2614 }
 0x255   : > { %v1702_v45 = vsel %vm432_vm2, %v14166_v41, -inf  ;;  %v1723_v56 = vsel %vm432_vm2, %v14174_v51, -inf }
 0x256   : > { %v1273_v48 = vpop.f32.mrb[16].mxu1  ;;  %1703 = vmax.xlane.f32.xlu1 %v1702_v45  ;;  %1700 = vmax.xlane.f32.xlu0 %v1699_v47 }
 0x257   : > { %v12885_v49 = vpop.f32.mrb[17].mxu1  ;;  %v14188_v63 = vmul.f32 0.35355338, %v1273_v48 }
 0x258   : > { %v14212_v32 = vpop.permute.xlu1 %2690  ;;  %v14218_v35 = vpop.permute.xlu0 %2766 }
 0x259   : > { %v1708_v4 = vsel %vm432_vm2, %v14188_v63, -inf }
 0x25a   : > { %v1427_v53 = vpop.f32.mrb[18].mxu1  ;;  %1718 = vmax.xlane.f32.xlu0 %v1717_v52 }
 0x25b   : > { %v12895_v55 = vpop.f32.mrb[19].mxu1  ;;  %v14194_v2 = vmul.f32 0.35355338, %v1427_v53 }
 0x25c   : > { %v14216_v34 = vpop.permute.xlu1 %2994  ;;  %v14222_v38 = vpop.permute.xlu0 %2918 }
 0x25d   : > { %v1714_v7 = vsel %vm432_vm2, %v14194_v2, -inf  ;;  %16516 = vst [vmem:[#allocation2_spill] sm:$0xff] %v14222_v38 }
 0x25e   : > { %v1581_v57 = vpop.f32.mrb[20].mxu1  ;;  %1724 = vmax.xlane.f32.xlu0 %v1723_v56 }
 0x25f   : > { %v12905_v59 = vpop.f32.mrb[21].mxu1  ;;  %v14198_v5 = vmul.f32 0.35355338, %v1581_v57 }
 0x260   : > { %v14220_v36 = vpop.permute.xlu1 %3150  ;;  %v14226_v40 = vpop.permute.xlu0 %3072 }
 0x261   : > { %v1720_v28 = vsel %vm432_vm2, %v14198_v5, -inf  ;;  %16517 = vst [vmem:[#allocation3_spill] sm:$0xff] %v14226_v40 }
 0x264   : > { %v14224_v39 = vpop.permute.xlu1 %3148  ;;  %v14230_v43 = vpop.permute.xlu0 %3070 }
 0x265   : > { %16518 = vst [vmem:[#allocation4_spill] sm:$0xff] %v14230_v43 }
 0x267   : > { %3460 = vrot.lane.b32.xlu1 %v13964_v18, %s13871_s7 }
 0x268   : > { %v14228_v42 = vpop.permute.xlu1 %3306  ;;  %v14234_v47 = vpop.permute.xlu0 %3228 }
 0x269   : > { %16519 = vst [vmem:[#allocation5_spill] sm:$0xff] %v14234_v47 }
 0x26c   : > { %v14232_v45 = vpop.permute.xlu1 %3304  ;;  %v14238_v49 = vpop.permute.xlu0 %3226 }
 0x26d   : > { %16520 = vst [vmem:[#allocation6_spill] sm:$0xff] %v14238_v49 }
 0x270   : > { %v14236_v48 = vpop.permute.xlu1 %3462  ;;  %v14242_v53 = vpop.permute.xlu0 %3384 }
 0x271   : > { %16521 = vst [vmem:[#allocation7_spill] sm:$0xff] %v14242_v53 }
 0x274   : > { %3382 = vrot.lane.b32.xlu0 %v13960_v16, %s13871_s7  ;;  %v14240_v52 = vpop.permute.xlu1 %2842 }
 0x28b   : > { %1709 = vmax.xlane.f32.xlu1 %v1708_v4 }
 0x28f   : > { %1715 = vmax.xlane.f32.xlu1 %v1714_v7 }
 0x293   : > { %1721 = vmax.xlane.f32.xlu1 %v1720_v28 }
 0x2c7   : > { %v1683_v55 = vpop.xlane.xlu1 %1682 }
 0x2c8   : > { %v1727_v56 = vsub.f32 %v14128_v46, %v1683_v55 }
 0x2ca   : > { %v1744_v57 = vmul.f32 1.442695, %v1727_v56  ;;  %v1680_v59 = vpop.xlane.xlu0 %1679 }
 0x2cb   : > { %v1726_v4 = vsub.f32 %v14132_v50, %v1680_v59 }
 0x2cc   : > { %13534 = vpow2.f32 %v1744_v57 }
 0x2cd   : > { %v1742_v7 = vmul.f32 1.442695, %v1726_v4 }
 0x2ce   : > { %v1686_v28 = vpop.xlane.xlu0 %1685 }
 0x2cf   : > { %13536 = vpow2.f32 %v1742_v7  ;;  %v1728_v10 = vsub.f32 %v14134_v54, %v1686_v28 }
 0x2d1   : > { %v1746_v47 = vmul.f32 1.442695, %v1728_v10 }
 0x2d2   : > { %v1689_v43 = vpop.xlane.xlu0 %1688 }
 0x2d3   : > { %13538 = vpow2.f32 %v1746_v47  ;;  %v1729_v49 = vsub.f32 %v14138_v58, %v1689_v43  ;;  %v1692_v40 = vpop.xlane.xlu1 %1691 }
 0x2d4   : > { %v1730_v53 = vsub.f32 %v14142_v61, %v1692_v40 }
 0x2d5   : > { %v1748_v38 = vmul.f32 1.442695, %v1729_v49 }
 0x2d6   : > { %v14249_v46 = vpop.eup %13534  ;;  %v1750_v55 = vmul.f32 1.442695, %v1730_v53 }
 0x2d7   : > { %13540 = vpow2.f32 %v1748_v38  ;;  %v1695_v50 = vpop.xlane.xlu0 %1694  ;;  %v1777_v56 = vsel %vm432_vm2, %v14249_v46, 0.0 }
 0x2d8   : > { %13542 = vpow2.f32 %v1750_v55  ;;  %v1731_v54 = vsub.f32 %v14148_v3, %v1695_v50  ;;  %1778 = vadd.xlane.f32.xlu0 %v1777_v56 }
 0x2d9   : > { %v14254_v10 = vpop.eup %13536 }
 0x2da   : > { %v1752_v47 = vmul.f32 1.442695, %v1731_v54  ;;  %v1774_v58 = vsel %vm432_vm2, %v14254_v10, 0.0 }
 0x2db   : > { %v1698_v61 = vpop.xlane.xlu1 %1697  ;;  %1775 = vadd.xlane.f32.xlu1 %v1774_v58  ;;  %v1707_v40 = vpop.xlane.xlu0 %1706 }
 0x2dc   : > { %13544 = vpow2.f32 %v1752_v47  ;;  %v1732_v38 = vsub.f32 %v14154_v27, %v1698_v61  ;;  %v1735_v43 = vsub.f32 %v14150_v6, %v1707_v40 }
 0x2dd   : > { %v14260_v49 = vpop.eup %13538 }
 0x2de   : > { %v1754_v53 = vmul.f32 1.442695, %v1732_v38  ;;  %v1760_v57 = vmul.f32 1.442695, %v1735_v43  ;;  %v1780_v3 = vsel %vm432_vm2, %v14260_v49, 0.0 }
 0x2df   : > { %1781 = vadd.xlane.f32.xlu1 %v1780_v3  ;;  %v1713_v59 = vpop.xlane.xlu0 %1712 }
 0x2e0   : > { %13546 = vpow2.f32 %v1754_v53  ;;  %v1737_v4 = vsub.f32 %v14156_v30, %v1713_v59 }
 0x2e1   : > { %v14265_v7 = vpop.eup %13540  ;;  %13548 = vpow2.f32 %v1760_v57 }
 0x2e2   : > { %v14267_v28 = vpop.eup %13542  ;;  %v1764_v27 = vmul.f32 1.442695, %v1737_v4  ;;  %v1783_v6 = vsel %vm432_vm2, %v14265_v7, 0.0 }
 0x2e3   : > { %v1701_v55 = vpop.xlane.xlu0 %1700  ;;  %1784 = vadd.xlane.f32.xlu0 %v1783_v6  ;;  %v1786_v50 = vsel %vm432_vm2, %v14267_v28, 0.0  ;;  %v1704_v3 = vpop.xlane.xlu1 %1703 }
 0x2e4   : > { %13550 = vpow2.f32 %v1764_v27  ;;  %v1733_v56 = vsub.f32 %v14162_v37, %v1701_v55  ;;  %1787 = vadd.xlane.f32.xlu1 %v1786_v50  ;;  %v1734_v59 = vsub.f32 %v14166_v41, %v1704_v3 }
 0x2e6   : > { %v14274_v54 = vpop.eup %13544  ;;  %v1756_v30 = vmul.f32 1.442695, %v1733_v56  ;;  %v1758_v4 = vmul.f32 1.442695, %v1734_v59 }
 0x2e7   : > { %v1789_v47 = vsel %vm432_vm2, %v14274_v54, 0.0  ;;  %v1719_v27 = vpop.xlane.xlu0 %1718 }
 0x2e8   : > { %1790 = vadd.xlane.f32.xlu0 %v1789_v47  ;;  %13552 = vpow2.f32 %v1756_v30  ;;  %v1739_v6 = vsub.f32 %v14168_v44, %v1719_v27 }
 0x2e9   : > { %13554 = vpow2.f32 %v1758_v4 }
 0x2ea   : > { %v14278_v58 = vpop.eup %13546  ;;  %v1768_v50 = vmul.f32 1.442695, %v1739_v6 }
 0x2eb   : > { %v14280_v61 = vpop.eup %13548  ;;  %v1792_v40 = vsel %vm432_vm2, %v14278_v58, 0.0  ;;  %v1725_v55 = vpop.xlane.xlu0 %1724 }
 0x2ec   : > { %1793 = vadd.xlane.f32.xlu1 %v1792_v40  ;;  %v1801_v37 = vsel %vm432_vm2, %v14280_v61, 0.0  ;;  %v1741_v56 = vsub.f32 %v14174_v51, %v1725_v55  ;;  %13556 = vpow2.f32 %v1768_v50  ;;  %v14315_v51 = vpop.permute.xlu1 %3460 }
 0x2ed   : > { %1802 = vadd.xlane.f32.xlu0 %v1801_v37 }
 0x2ee   : > { %v14286_v38 = vpop.eup %13550  ;;  %v1772_v30 = vmul.f32 1.442695, %v1741_v56 }
 0x2ef   : > { %v1807_v43 = vsel %vm432_vm2, %v14286_v38, 0.0 }
 0x2f0   : > { %13558 = vpow2.f32 %v1772_v30 }
 0x2f1   : > { %1808 = vadd.xlane.f32.xlu0 %v1807_v43 }
 0x2f2   : > { %v14290_v53 = vpop.eup %13552 }
 0x2f3   : > { %v1795_v57 = vsel %vm432_vm2, %v14290_v53, 0.0  ;;  %v14301_v47 = vpop.eup %13554 }
 0x2f4   : > { %v1798_v41 = vsel %vm432_vm2, %v14301_v47, 0.0 }
 0x2f5   : > { %1796 = vadd.xlane.f32.xlu0 %v1795_v57 }
 0x2f6   : > { %v14305_v40 = vpop.eup %13556 }
 0x2f7   : > { %v1813_v37 = vsel %vm432_vm2, %v14305_v40, 0.0 }
 0x2fa   : > { %v14309_v43 = vpop.eup %13558 }
 0x2fb   : > { %v1819_v44 = vsel %vm432_vm2, %v14309_v43, 0.0 }
 0x2fd   : > { %3618 = vrot.lane.b32.xlu1 %v13962_v17, %s13870_s6 }
 0x30b   : > { %3540 = vrot.lane.b32.xlu0 %v13958_v15, %s13870_s6 }
 0x318   : > { %v1710_v57 = vpop.xlane.xlu1 %1709 }
 0x319   : > { %v1736_v59 = vsub.f32 %v14188_v63, %v1710_v57 }
 0x31b   : > { %v1762_v4 = vmul.f32 1.442695, %v1736_v59 }
 0x31c   : > { %v1716_v3 = vpop.xlane.xlu1 %1715 }
 0x31d   : > { %v1738_v27 = vsub.f32 %v14194_v2, %v1716_v3  ;;  %13560 = vpow2.f32 %v1762_v4 }
 0x31f   : > { %v1766_v55 = vmul.f32 1.442695, %v1738_v27 }
 0x320   : > { %v1722_v6 = vpop.xlane.xlu1 %1721 }
 0x321   : > { %1799 = vadd.xlane.f32.xlu1 %v1798_v41  ;;  %v1740_v50 = vsub.f32 %v14198_v5, %v1722_v6  ;;  %13562 = vpow2.f32 %v1766_v55 }
 0x323   : > { %v1770_v56 = vmul.f32 1.442695, %v1740_v50 }
 0x325   : > { %13564 = vpow2.f32 %v1770_v56 }
 0x327   : > { %v14328_v63 = vpop.eup %13560 }
 0x328   : > { %v1804_v2 = vsel %vm432_vm2, %v14328_v63, 0.0 }
 0x32a   : > { %1814 = vadd.xlane.f32.xlu0 %v1813_v37 }
 0x32b   : > { %v14334_v5 = vpop.eup %13562 }
 0x32c   : > { %v1810_v30 = vsel %vm432_vm2, %v14334_v5, 0.0 }
 0x32e   : > { %1820 = vadd.xlane.f32.xlu0 %v1819_v44  ;;  %v14348_v44 = vpop.permute.xlu0 %3382 }
 0x32f   : > { %v14340_v41 = vpop.eup %13564 }
 0x330   : > { %v1816_v37 = vsel %vm432_vm2, %v14340_v41, 0.0 }
 0x332   : > { %3616 = vrot.lane.b32.xlu1 %v13962_v17, %s13871_s7 }
 0x344   : > { %3538 = vrot.lane.b32.xlu0 %v13958_v15, %s13871_s7 }
 0x348   : > { %3696 = vrot.lane.b32.xlu0 %v13972_v20, %s13870_s6 }
 0x34c   : > { %3694 = vrot.lane.b32.xlu0 %v13972_v20, %s13871_s7 }
 0x350   : > { %3852 = vrot.lane.b32.xlu0 %v13970_v19, %s13870_s6 }
 0x354   : > { %3850 = vrot.lane.b32.xlu0 %v13970_v19, %s13871_s7 }
 0x356   : > { %1805 = vadd.xlane.f32.xlu1 %v1804_v2 }
 0x358   : > { %4008 = vrot.lane.b32.xlu0 %v13984_v24, %s13870_s6 }
 0x35a   : > { %1811 = vadd.xlane.f32.xlu1 %v1810_v30  ;;  %v16522_v30 = vmov 0.0  }
 0x35c   : > { %4006 = vrot.lane.b32.xlu0 %v13984_v24, %s13871_s7 }
 0x35e   : > { %1817 = vadd.xlane.f32.xlu1 %v1816_v37 }
 0x360   : > { %4164 = vrot.lane.b32.xlu0 %v13982_v23, %s13870_s6 }
 0x364   : > { %4162 = vrot.lane.b32.xlu0 %v13982_v23, %s13871_s7 }
 0x365   : > { %v1779_v57 = vpop.xlane.xlu0 %1778 }
 0x366   : > { %13566 = vrcp.f32 %v1779_v57 }
 0x368   : > { %4586 = vrot.lane.b32.xlu0 %v13953_v14, %s13872_s8  ;;  %v1776_v3 = vpop.xlane.xlu1 %1775 }
 0x369   : > { %13568 = vrcp.f32 %v1776_v3 }
 0x36c   : > { %4738 = vrot.lane.b32.xlu0 %v13950_v13, %s13872_s8  ;;  %v1782_v59 = vpop.xlane.xlu1 %1781 }
 0x36d   : > { %13570 = vrcp.f32 %v1782_v59 }
 0x36f   : > { %3774 = vrot.lane.b32.xlu1 %v13976_v22, %s13870_s6 }
 0x370   : > { %v13567_v4 = vpop.eup %13566  ;;  %4966 = vrot.lane.b32.xlu0 %v13958_v15, %s13872_s8  ;;  %v1785_v27 = vpop.xlane.xlu0 %1784 }
 0x371   : > { %13572 = vrcp.f32 %v1785_v27  ;;  %v1788_v6 = vpop.xlane.xlu1 %1787  ;;  %v1839_v55 = vmul.f32 %v13567_v4, %v14249_v46 }
 0x372   : > { %13574 = vrcp.f32 %v1788_v6 }
 0x373   : > { %v13569_v50 = vpop.eup %13568  ;;  %3772 = vrot.lane.b32.xlu1 %v13976_v22, %s13871_s7  ;;  %12919 = vmatmul.mubr.msk.f32.vlgmr.msra.gmra.mrb[26].mxu0 %vm432_vm2, %v1839_v55 }
 0x374   : > { %5118 = vrot.lane.b32.xlu0 %v13972_v20, %s13872_s8  ;;  %12927 = vmatpush3.msra.mxu0 %v14192_v1  ;;  %v1838_v56 = vmul.f32 %v13569_v50, %v14254_v10 }
 0x375   : > { %v1791_v2 = vpop.xlane.xlu0 %1790  ;;  %12928 = vmatprep.mubr.msk.f32.mxu0 %vm13867_vm1, %v16522_v30  ;;  %12936 = vmatprep.subr.mxu0 %v16522_v30 }
 0x376   : > { %13576 = vrcp.f32 %v1791_v2  ;;  %12914 = vmatmul.mubr.msk.f32.vlgmr.msra.gmra.mrb[22].mxu1 %vm432_vm2, %v1838_v56 }
 0x377   : > { %v13571_v46 = vpop.eup %13570  ;;  %12922 = vmatpush3.msra.mxu1 %v14184_v60  ;;  %3930 = vrot.lane.b32.xlu1 %v13974_v21, %s13870_s6 }
 0x378   : > { %5270 = vrot.lane.b32.xlu0 %v13970_v19, %s13872_s8  ;;  %12923 = vmatprep.mubr.msk.f32.mxu1 %vm13867_vm1, %v16522_v30  ;;  %v1840_v1 = vmul.f32 %v13571_v46, %v14260_v49 }
 0x379   : > { %12931 = vmatprep.subr.mxu1 %v16522_v30  ;;  %v1794_v10 = vpop.xlane.xlu1 %1793 }
 0x37a   : > { %13578 = vrcp.f32 %v1794_v10  ;;  %v1803_v37 = vpop.xlane.xlu0 %1802  ;;  %12924 = vmatmul.mubr.msk.f32.vlgmr.msra.gmra.mrb[24].mxu1 %vm432_vm2, %v1840_v1 }
 0x37b   : > { %v13573_v57 = vpop.eup %13572  ;;  %12932 = vmatpush3.msra.mxu1 %v14186_v62  ;;  %3928 = vrot.lane.b32.xlu1 %v13974_v21, %s13871_s7 }
 0x37c   : > { %v13575_v60 = vpop.eup %13574  ;;  %5422 = vrot.lane.b32.xlu0 %v13984_v24, %s13872_s8  ;;  %v1841_v3 = vmul.f32 %v13573_v57, %v14265_v7  ;;  %12933 = vmatprep.mubr.msk.f32.mxu1 %vm13867_vm1, %v16522_v30 }
 0x37d   : > { %12941 = vmatprep.subr.mxu1 %v16522_v30  ;;  %v1842_v49 = vmul.f32 %v13575_v60, %v14267_v28  ;;  %v16523_v60 = vld [vmem:[#allocation2_spill] sm:$0xff] }
 0x37e   : > { %v1809_v59 = vpop.xlane.xlu0 %1808  ;;  %12929 = vmatmul.mubr.msk.f32.vlgmr.msra.gmra.mrb[28].mxu0 %vm432_vm2, %v1841_v3 }
 0x37f   : > { %12937 = vmatpush3.msra.mxu0 %v14190_v0  ;;  %4086 = vrot.lane.b32.xlu1 %v13988_v26, %s13870_s6 }
 0x380   : > { %v13577_v62 = vpop.eup %13576  ;;  %12934 = vmatmul.mubr.msk.f32.vlgmr.msra.gmra.mrb[26].mxu1 %vm432_vm2, %v1842_v49  ;;  %5574 = vrot.lane.b32.xlu0 %v13982_v23, %s13872_s8 }
 0x381   : > { %12942 = vmatpush3.msra.mxu1 %v14204_v9  ;;  %12938 = vmatprep.mubr.msk.f32.mxu0 %vm13867_vm1, %v16522_v30  ;;  %v1843_v7 = vmul.f32 %v13577_v62, %v14274_v54 }
 0x382   : > { %v1797_v28 = vpop.xlane.xlu0 %1796  ;;  %12946 = vmatprep.subr.mxu0 %v16522_v30  ;;  %12943 = vmatprep.mubr.msk.f32.mxu1 %vm13867_vm1, %v16522_v30 }
 0x383   : > { %13580 = vrcp.f32 %v1797_v28  ;;  %4084 = vrot.lane.b32.xlu1 %v13988_v26, %s13871_s7  ;;  %12939 = vmatmul.mubr.msk.f32.vlgmr.msra.gmra.mrb[30].mxu0 %vm432_vm2, %v1843_v7  ;;  %v16525_v7 = vld [vmem:[#allocation4_spill] sm:$0xff]  ;;  %v16526_v28 = vld [vmem:[#allocation5_spill] sm:$0xff] }
 0x384   : > { %v13579_v0 = vpop.eup %13578  ;;  %5728 = vrot.lane.b32.xlu0 %v13948_v12, %s13873_s9  ;;  %12947 = vmatpush3.msra.mxu0 %v14202_v8  ;;  %13582 = vrcp.f32 %v1803_v37 }
 0x385   : > { %12951 = vmatprep.subr.mxu1 %v16522_v30  ;;  %v1844_v9 = vmul.f32 %v13579_v0, %v14278_v58  ;;  %12948 = vmatprep.mubr.msk.f32.mxu0 %vm13867_vm1, %v16522_v30  ;;  %13584 = vrcp.f32 %v1809_v59  ;;  %v16524_v59 = vld [vmem:[#allocation3_spill] sm:$0xff] }
 0x386   : > { %12956 = vmatprep.subr.mxu0 %v16522_v30 }
 0x387   : > { %4242 = vrot.lane.b32.xlu1 %v13986_v25, %s13870_s6  ;;  %12944 = vmatmul.mubr.msk.f32.vlgmr.msra.gmra.mrb[28].mxu1 %vm432_vm2, %v1844_v9  ;;  %v16527_v9 = vld [vmem:[#allocation6_spill] sm:$0xff]  ;;  %s16487_s6 = scalar_lea.vmem %s16513_s5, %s12310_s19 }
 0x388   : > { %12952 = vmatpush3.msra.mxu1 %v14210_v31  ;;  %5726 = vrot.lane.b32.xlu0 %v13948_v12, %s13874_s10 }
 0x389   : > { %12953 = vmatprep.mubr.msk.f32.mxu1 %vm13867_vm1, %v16522_v30  ;;  %12961 = vmatprep.subr.mxu1 %v16522_v30 }
 0x38b   : > { %4240 = vrot.lane.b32.xlu1 %v13986_v25, %s13871_s7 }
 0x38c   : > { %5884 = vrot.lane.b32.xlu0 %v13946_v11, %s13873_s9 }
 0x38d   : > { %v13581_v8 = vpop.eup %13580 }
 0x38e   : > { %v1845_v54 = vmul.f32 %v13581_v8, %v14290_v53  ;;  %v13583_v31 = vpop.eup %13582  ;;  %v16528_v8 = vld [vmem:[#allocation7_spill] sm:$0xff] }
 0x38f   : > { %4510 = vrot.lane.b32.xlu1 %v13948_v12, %s13872_s8  ;;  %v1847_v58 = vmul.f32 %v13583_v31, %v14280_v61  ;;  %v13585_v4 = vpop.eup %13584  ;;  %v14468_v61 = vpop.permute.xlu0 %3540 }
 0x390   : > { %5882 = vrot.lane.b32.xlu0 %v13946_v11, %s13874_s10  ;;  %12949 = vmatmul.mubr.msk.f32.vlgmr.msra.gmra.mrb[32].mxu0 %vm432_vm2, %v1845_v54 }
 0x391   : > { %12957 = vmatpush3.msra.mxu0 %v14208_v29  ;;  %12958 = vmatprep.mubr.msk.f32.mxu0 %vm13867_vm1, %v16522_v30  ;;  %v1849_v29 = vmul.f32 %v13585_v4, %v14286_v38 }
 0x392   : > { %12966 = vmatprep.subr.mxu0 %v16522_v30 }
 0x393   : > { %4662 = vrot.lane.b32.xlu1 %v13946_v11, %s13872_s8 }
 0x394   : > { %12959 = vmatmul.mubr.msk.f32.vlgmr.msra.gmra.mrb[34].mxu0 %vm432_vm2, %v1847_v58 }
 0x395   : > { %12967 = vmatpush3.msra.mxu0 %v14212_v32  ;;  %12968 = vmatprep.mubr.msk.f32.mxu0 %vm13867_vm1, %v16522_v30  ;;  %v3619_v32 = vpop.permute.xlu1 %3618 }
 0x396   : > { %12976 = vmatprep.subr.mxu0 %v16522_v30 }
 0x397   : > { %4814 = vrot.lane.b32.xlu1 %v13960_v16, %s13872_s8 }
 0x398   : > { %12969 = vmatmul.mubr.msk.f32.vlgmr.msra.gmra.mrb[36].mxu0 %vm432_vm2, %v1849_v29 }
 0x399   : > { %12977 = vmatpush3.msra.mxu0 %v14240_v52  ;;  %12978 = vmatprep.mubr.msk.f32.mxu0 %vm13867_vm1, %v16522_v30 }
 0x39a   : > { %12986 = vmatprep.subr.mxu0 %v16522_v30 }
 0x39b   : > { %4890 = vrot.lane.b32.xlu1 %v13964_v18, %s13872_s8 }
 0x39f   : > { %5042 = vrot.lane.b32.xlu1 %v13962_v17, %s13872_s8 }
 0x3a3   : > { %5194 = vrot.lane.b32.xlu1 %v13976_v22, %s13872_s8 }
 0x3a7   : > { %5346 = vrot.lane.b32.xlu1 %v13974_v21, %s13872_s8 }
 0x3ab   : > { %5498 = vrot.lane.b32.xlu1 %v13988_v26, %s13872_s8 }
 0x3ae   : > { %v1800_v52 = vpop.xlane.xlu1 %1799 }
 0x3af   : > { %13586 = vrcp.f32 %v1800_v52  ;;  %5650 = vrot.lane.b32.xlu1 %v13986_v25, %s13872_s8 }
 0x3b3   : > { %5806 = vrot.lane.b32.xlu1 %v13953_v14, %s13873_s9 }
 0x3b7   : > { %v1815_v38 = vpop.xlane.xlu0 %1814  ;;  %5804 = vrot.lane.b32.xlu1 %v13953_v14, %s13874_s10 }
 0x3b8   : > { %13588 = vrcp.f32 %v1815_v38 }
 0x3b9   : > { %v13587_v53 = vpop.eup %13586 }
 0x3ba   : > { %v1846_v27 = vmul.f32 %v13587_v53, %v14301_v47 }
 0x3bb   : > { %v1821_v6 = vpop.xlane.xlu0 %1820  ;;  %5962 = vrot.lane.b32.xlu1 %v13950_v13, %s13873_s9 }
 0x3bc   : > { %13590 = vrcp.f32 %v1821_v6  ;;  %12954 = vmatmul.mubr.msk.f32.vlgmr.msra.gmra.mrb[30].mxu1 %vm432_vm2, %v1846_v27 }
 0x3bd   : > { %12962 = vmatpush3.msra.mxu1 %v14214_v33  ;;  %12963 = vmatprep.mubr.msk.f32.mxu1 %vm13867_vm1, %v16522_v30 }
 0x3be   : > { %12971 = vmatprep.subr.mxu1 %v16522_v30 }
 0x3bf   : > { %5960 = vrot.lane.b32.xlu1 %v13950_v13, %s13874_s10 }
 0x3c2   : > { %v13589_v55 = vpop.eup %13588 }
 0x3c3   : > { %v1851_v47 = vmul.f32 %v13589_v55, %v14305_v40 }
 0x3c5   : > { %12979 = vmatmul.mubr.msk.f32.vlgmr.msra.gmra.mrb[38].mxu0 %vm432_vm2, %v1851_v47 }
 0x3c6   : > { %v13591_v50 = vpop.eup %13590  ;;  %12987 = vmatpush3.msra.mxu0 %v14216_v34  ;;  %12988 = vmatprep.mubr.msk.f32.mxu0 %vm13867_vm1, %v16522_v30  ;;  %v14510_v34 = vpop.permute.xlu0 %3538 }
 0x3c7   : > { %v1853_v33 = vmul.f32 %v13591_v50, %v14309_v43  ;;  %12996 = vmatprep.subr.mxu0 %v16522_v30 }
 0x3c9   : > { %12989 = vmatmul.mubr.msk.f32.vlgmr.msra.gmra.mrb[40].mxu0 %vm432_vm2, %v1853_v33 }
 0x3ca   : > { %12998 = vmatprep.mubr.msk.f32.mxu0 %vm13867_vm1, %v16522_v30 }
 0x3cd   : > { %12997 = vmatpush3.xpose.msk.msra.mxu0 %vm432_vm2, %v14220_v36  ;;  %v3617_v36 = vpop.permute.xlu1 %3616 }
 0x3ce   : > { %13006 = vmatprep.subr.mxu0 %v16522_v30 }
 0x3d0   : > { %12999 = vmatmul.mubr.msk.f32.vlgmr.msra.gmra.mrb[42].mxu0 %vm432_vm2, %v14224_v39  ;;  %v14519_v39 = vpop.permute.xlu0 %3696 }
 0x3d1   : > { %13007 = vmatpush3.xpose.msk.msra.mxu0 %vm432_vm2, %v14228_v42  ;;  %13008 = vmatprep.mubr.msk.f32.mxu0 %vm13867_vm1, %v16522_v30 }
 0x3d2   : > { %13016 = vmatprep.subr.mxu0 %v16522_v30 }
 0x3d4   : > { %13009 = vmatmul.mubr.msk.f32.vlgmr.msra.gmra.mrb[44].mxu0 %vm432_vm2, %v14232_v45  ;;  %v14524_v42 = vpop.permute.xlu0 %3694 }
 0x3d5   : > { %13017 = vmatpush3.xpose.msk.msra.mxu0 %vm432_vm2, %v14236_v48  ;;  %13018 = vmatprep.mubr.msk.f32.mxu0 %vm13867_vm1, %v16522_v30 }
 0x3d6   : > { %13026 = vmatprep.subr.mxu0 %v16522_v30 }
 0x3d8   : > { %13019 = vmatmul.mubr.msk.f32.vlgmr.msra.gmra.mrb[46].mxu0 %vm432_vm2, %v14315_v51  ;;  %v14526_v40 = vpop.permute.xlu0 %3852 }
 0x3d9   : > { %13027 = vmatpush3.xpose.msk.msra.mxu0 %vm432_vm2, %v3619_v32  ;;  %13028 = vmatprep.mubr.msk.f32.mxu0 %vm13867_vm1, %v16522_v30 }
 0x3da   : > { %13036 = vmatprep.subr.mxu0 %v16522_v30 }
 0x3dc   : > { %13029 = vmatmul.mubr.msk.f32.vlgmr.msra.gmra.mrb[48].mxu0 %vm432_vm2, %v3617_v36  ;;  %v14528_v56 = vpop.permute.xlu0 %3850 }
 0x3dd   : > { %13038 = vmatprep.mubr.msk.f32.mxu0 %vm13867_vm1, %v16522_v30 }
 0x3e0   : > { %v4009_v57 = vpop.permute.xlu0 %4008 }
 0x3e3   : > { %v1806_v45 = vpop.xlane.xlu1 %1805 }
 0x3e4   : > { %13592 = vrcp.f32 %v1806_v45 }
 0x3e7   : > { %v1812_v48 = vpop.xlane.xlu1 %1811 }
 0x3e8   : > { %13594 = vrcp.f32 %v1812_v48 }
 0x3eb   : > { %v1818_v43 = vpop.xlane.xlu1 %1817 }
 0x3ec   : > { %13596 = vrcp.f32 %v1818_v43 }
 0x3ee   : > { %v13593_v51 = vpop.eup %13592 }
 0x3ef   : > { %v3775_v2 = vpop.permute.xlu1 %3774  ;;  %v1848_v46 = vmul.f32 %v13593_v51, %v14328_v63 }
 0x3f0   : > { %13037 = vmatpush3.xpose.msk.msra.mxu0 %vm432_vm2, %v3775_v2 }
 0x3f1   : > { %12964 = vmatmul.mubr.msk.f32.vlgmr.msra.gmra.mrb[32].mxu1 %vm432_vm2, %v1848_v46  ;;  %13046 = vmatprep.subr.mxu0 %v16522_v30 }
 0x3f2   : > { %v13595_v1 = vpop.eup %13594  ;;  %12972 = vmatpush3.msra.mxu1 %v14218_v35  ;;  %12973 = vmatprep.mubr.msk.f32.mxu1 %vm13867_vm1, %v16522_v30 }
 0x3f3   : > { %v3773_v10 = vpop.permute.xlu1 %3772  ;;  %12981 = vmatprep.subr.mxu1 %v16522_v30  ;;  %v1850_v37 = vmul.f32 %v13595_v1, %v14334_v5  ;;  %v4007_v5 = vpop.permute.xlu0 %4006 }
 0x3f4   : > { %13039 = vmatmul.mubr.msk.f32.vlgmr.msra.gmra.mrb[50].mxu0 %vm432_vm2, %v3773_v10 }
 0x3f5   : > { %12974 = vmatmul.mubr.msk.f32.vlgmr.msra.gmra.mrb[34].mxu1 %vm432_vm2, %v1850_v37  ;;  %13048 = vmatprep.mubr.msk.f32.mxu0 %vm13867_vm1, %v16522_v30 }
 0x3f6   : > { %v13597_v63 = vpop.eup %13596  ;;  %12982 = vmatpush3.msra.mxu1 %v16523_v60  ;;  %12983 = vmatprep.mubr.msk.f32.mxu1 %vm13867_vm1, %v16522_v30 }
 0x3f7   : > { %v3931_v35 = vpop.permute.xlu1 %3930  ;;  %v1852_v3 = vmul.f32 %v13597_v63, %v14340_v41  ;;  %12991 = vmatprep.subr.mxu1 %v16522_v30  ;;  %v4165_v62 = vpop.permute.xlu0 %4164 }
 0x3f8   : > { %13047 = vmatpush3.xpose.msk.msra.mxu0 %vm432_vm2, %v3931_v35 }
 0x3f9   : > { %12984 = vmatmul.mubr.msk.f32.vlgmr.msra.gmra.mrb[36].mxu1 %vm432_vm2, %v1852_v3  ;;  %13056 = vmatprep.subr.mxu0 %v16522_v30 }
 0x3fa   : > { %12993 = vmatprep.mubr.msk.f32.mxu1 %vm13867_vm1, %v16522_v30 }
 0x3fb   : > { %v3929_v49 = vpop.permute.xlu1 %3928  ;;  %v4163_v54 = vpop.permute.xlu0 %4162 }
 0x3fc   : > { %13049 = vmatmul.mubr.msk.f32.vlgmr.msra.gmra.mrb[52].mxu0 %vm432_vm2, %v3929_v49 }
 0x3fd   : > { %12992 = vmatpush3.xpose.msk.msra.mxu1 %vm432_vm2, %v16524_v59  ;;  %13058 = vmatprep.mubr.msk.f32.mxu0 %vm13867_vm1, %v16522_v30 }
 0x3fe   : > { %13001 = vmatprep.subr.mxu1 %v16522_v30 }
 0x3ff   : > { %v4087_v41 = vpop.permute.xlu1 %4086  ;;  %v4587_v4 = vpop.permute.xlu0 %4586 }
 0x400   : > { %12994 = vmatmul.mubr.msk.f32.vlgmr.msra.gmra.mrb[38].mxu1 %vm432_vm2, %v16525_v7  ;;  %13057 = vmatpush3.xpose.msk.msra.mxu0 %vm432_vm2, %v4087_v41 }
 0x401   : > { %13002 = vmatpush3.xpose.msk.msra.mxu1 %vm432_vm2, %v16526_v28  ;;  %13003 = vmatprep.mubr.msk.f32.mxu1 %vm13867_vm1, %v16522_v30 }
 0x402   : > { %13011 = vmatprep.subr.mxu1 %v16522_v30  ;;  %13066 = vmatprep.subr.mxu0 %v16522_v30 }
 0x403   : > { %v4085_v0 = vpop.permute.xlu1 %4084 }
 0x404   : > { %13004 = vmatmul.mubr.msk.f32.vlgmr.msra.gmra.mrb[40].mxu1 %vm432_vm2, %v16527_v9  ;;  %13059 = vmatmul.mubr.msk.f32.vlgmr.msra.gmra.mrb[54].mxu0 %vm432_vm2, %v4085_v0 }
 0x405   : > { %13012 = vmatpush3.xpose.msk.msra.mxu1 %vm432_vm2, %v16528_v8  ;;  %13013 = vmatprep.mubr.msk.f32.mxu1 %vm13867_vm1, %v16522_v30 }
 0x406   : > { %13021 = vmatprep.subr.mxu1 %v16522_v30  ;;  %13068 = vmatprep.mubr.msk.f32.mxu0 %vm13867_vm1, %v16522_v30 }
 0x407   : > { %v4243_v31 = vpop.permute.xlu1 %4242 }
 0x408   : > { %13014 = vmatmul.mubr.msk.f32.vlgmr.msra.gmra.mrb[42].mxu1 %vm432_vm2, %v14348_v44  ;;  %13067 = vmatpush3.xpose.msk.msra.mxu0 %vm432_vm2, %v4243_v31 }
 0x409   : > { %13022 = vmatpush3.xpose.msk.msra.mxu1 %vm432_vm2, %v14468_v61  ;;  %13023 = vmatprep.mubr.msk.f32.mxu1 %vm13867_vm1, %v16522_v30 }
 0x40a   : > { %13031 = vmatprep.subr.mxu1 %v16522_v30  ;;  %13076 = vmatprep.subr.mxu0 %v16522_v30 }
 0x40b   : > { %v4241_v58 = vpop.permute.xlu1 %4240 }
 0x40c   : > { %13024 = vmatmul.mubr.msk.f32.vlgmr.msra.gmra.mrb[44].mxu1 %vm432_vm2, %v14510_v34  ;;  %13069 = vmatmul.mubr.msk.f32.vlgmr.msra.gmra.mrb[56].mxu0 %vm432_vm2, %v4241_v58 }
 0x40d   : > { %13032 = vmatpush3.xpose.msk.msra.mxu1 %vm432_vm2, %v14519_v39  ;;  %13077 = vmatpush3.msra.mxu0 %v4587_v4 }
 0x40e   : > { %13033 = vmatprep.mubr.msk.f32.mxu1 %vm13867_vm1, %v16522_v30  ;;  %13041 = vmatprep.subr.mxu1 %v16522_v30 }
 0x40f   : > { %13078 = vmatprep.mubr.msk.f32.mxu0 %vm13867_vm1, %v16522_v30  ;;  %13086 = vmatprep.subr.mxu0 %v16522_v30  ;;  %v4511_v44 = vpop.permute.xlu1 %4510 }
 0x410   : > { %13034 = vmatmul.mubr.msk.f32.vlgmr.msra.gmra.mrb[46].mxu1 %vm432_vm2, %v14524_v42 }
 0x411   : > { %13042 = vmatpush3.xpose.msk.msra.mxu1 %vm432_vm2, %v14526_v40  ;;  %13043 = vmatprep.mubr.msk.f32.mxu1 %vm13867_vm1, %v16522_v30 }
 0x412   : > { %13051 = vmatprep.subr.mxu1 %v16522_v30 }
 0x414   : > { %13044 = vmatmul.mubr.msk.f32.vlgmr.msra.gmra.mrb[48].mxu1 %vm432_vm2, %v14528_v56 }
 0x415   : > { %13052 = vmatpush3.xpose.msk.msra.mxu1 %vm432_vm2, %v4009_v57  ;;  %13053 = vmatprep.mubr.msk.f32.mxu1 %vm13867_vm1, %v16522_v30 }
 0x416   : > { %13061 = vmatprep.subr.mxu1 %v16522_v30 }
 0x418   : > { %13054 = vmatmul.mubr.msk.f32.vlgmr.msra.gmra.mrb[50].mxu1 %vm432_vm2, %v4007_v5 }
 0x419   : > { %13062 = vmatpush3.xpose.msk.msra.mxu1 %vm432_vm2, %v4165_v62  ;;  %13063 = vmatprep.mubr.msk.f32.mxu1 %vm13867_vm1, %v16522_v30 }
 0x41a   : > { %13071 = vmatprep.subr.mxu1 %v16522_v30 }
 0x41c   : > { %13064 = vmatmul.mubr.msk.f32.vlgmr.msra.gmra.mrb[52].mxu1 %vm432_vm2, %v4163_v54 }
 0x41d   : > { %13072 = vmatpush3.msra.mxu1 %v4511_v44  ;;  %13073 = vmatprep.mubr.msk.f32.mxu1 %vm13867_vm1, %v16522_v30 }
 0x41e   : > { %13081 = vmatprep.subr.mxu1 %v16522_v30 }
 0x446   : > { %v14620_v29 = vpop.f32.mrb[26].mxu0 }
 0x447   : > { %16529 = vst [vmem:[#allocation2_spill] sm:$0xff] %v14620_v29  ;;  %v12920_v32 = vpop.f32.mrb[27].mxu0 }
 0x449   : > { %v14622_v52 = vpop.f32.mrb[22].mxu1 }
 0x44a   : > { %16530 = vst [vmem:[#allocation3_spill] sm:$0xff] %v14622_v52  ;;  %v12915_v61 = vpop.f32.mrb[23].mxu1 }
 0x44d   : > { %v14624_v38 = vpop.f32.mrb[24].mxu1 }
 0x44e   : > { %16531 = vst [vmem:[#allocation4_spill] sm:$0xff] %v14624_v38  ;;  %v12925_v53 = vpop.f32.mrb[25].mxu1 }
 0x451   : > { %v14626_v27 = vpop.f32.mrb[28].mxu0 }
 0x452   : > { %16532 = vst [vmem:[#allocation5_spill] sm:$0xff] %v14626_v27  ;;  %v12930_v6 = vpop.f32.mrb[29].mxu0 }
 0x453   : > { %v14628_v55 = vpop.f32.mrb[26].mxu1 }
 0x454   : > { %16533 = vst [vmem:[#allocation6_spill] sm:$0xff] %v14628_v55  ;;  %v12935_v47 = vpop.f32.mrb[27].mxu1 }
 0x456   : > { %v14630_v50 = vpop.f32.mrb[30].mxu0 }
 0x457   : > { %16534 = vst [vmem:[#allocation7_spill] sm:$0xff] %v14630_v50  ;;  %v12940_v33 = vpop.f32.mrb[31].mxu0 }
 0x45a   : > { %v14632_v34 = vpop.f32.mrb[28].mxu1 }
 0x45b   : > { %16535 = vst [vmem:[#allocation8_spill] sm:$0xff] %v14632_v34  ;;  %v12945_v36 = vpop.f32.mrb[29].mxu1 }
 0x463   : > { %v14634_v39 = vpop.f32.mrb[32].mxu0 }
 0x464   : > { %16536 = vst [vmem:[#allocation9_spill] sm:$0xff] %v14634_v39  ;;  %v12950_v42 = vpop.f32.mrb[33].mxu0 }
 0x467   : > { %v14636_v45 = vpop.f32.mrb[34].mxu0 }
 0x468   : > { %16537 = vst [vmem:[#allocation10_spill] sm:$0xff] %v14636_v45  ;;  %v12960_v48 = vpop.f32.mrb[35].mxu0 }
 0x46b   : > { %v14638_v40 = vpop.f32.mrb[36].mxu0 }
 0x46c   : > { %16538 = vst [vmem:[#allocation11_spill] sm:$0xff] %v14638_v40  ;;  %v12970_v43 = vpop.f32.mrb[37].mxu0 }
 0x48f   : > { %v14640_v51 = vpop.f32.mrb[30].mxu1 }
 0x490   : > { %16539 = vst [vmem:[#allocation12_spill] sm:$0xff] %v14640_v51  ;;  %v12955_v56 = vpop.f32.mrb[31].mxu1 }
 0x498   : > { %v14642_v2 = vpop.f32.mrb[38].mxu0 }
 0x499   : > { %16540 = vst [vmem:[#allocation13_spill] sm:$0xff] %v14642_v2  ;;  %v12980_v46 = vpop.f32.mrb[39].mxu0 }
 0x49c   : > { %v14644_v1 = vpop.f32.mrb[40].mxu0 }
 0x49d   : > { %16541 = vst [vmem:[#allocation14_spill] sm:$0xff] %v14644_v1  ;;  %v12990_v10 = vpop.f32.mrb[41].mxu0 }
 0x4a3   : > { %v3222_v37 = vpop.f32.mrb[42].mxu0 }
 0x4a4   : > { %v14646_v57 = vmul.f32 0.35355338, %v3222_v37  ;;  %v13000_v63 = vpop.f32.mrb[43].mxu0 }
 0x4a6   : > { %v4337_v60 = vsel %vm432_vm2, %v14646_v57, -inf }
 0x4a7   : > { %4338 = vmax.xlane.f32.xlu1 %v4337_v60  ;;  %v3378_v35 = vpop.f32.mrb[44].mxu0 }
 0x4a8   : > { %v13010_v3 = vpop.f32.mrb[45].mxu0  ;;  %v14662_v48 = vmul.f32 0.35355338, %v3378_v35 }
 0x4aa   : > { %v4343_v60 = vsel %vm432_vm2, %v14662_v48, -inf }
 0x4ab   : > { %v3534_v5 = vpop.f32.mrb[46].mxu0 }
 0x4ac   : > { %v13020_v49 = vpop.f32.mrb[47].mxu0  ;;  %v14668_v37 = vmul.f32 0.35355338, %v3534_v5 }
 0x4af   : > { %v3690_v59 = vpop.f32.mrb[48].mxu0 }
 0x4b0   : > { %v13030_v41 = vpop.f32.mrb[49].mxu0 }
 0x4c4   : > { %v14650_v62 = vpop.f32.mrb[32].mxu1 }
 0x4c5   : > { %16542 = vst [vmem:[#allocation15_spill] sm:$0xff] %v14650_v62  ;;  %v12965_v7 = vpop.f32.mrb[33].mxu1 }
 0x4c7   : > { %v3846_v28 = vpop.f32.mrb[50].mxu0 }
 0x4c8   : > { %v14652_v0 = vpop.f32.mrb[34].mxu1  ;;  %v13040_v9 = vpop.f32.mrb[51].mxu0 }
 0x4c9   : > { %16543 = vst [vmem:[#allocation16_spill] sm:$0xff] %v14652_v0  ;;  %v12975_v8 = vpop.f32.mrb[35].mxu1  ;;  %v14676_v9 = vmul.f32 0.35355338, %v3690_v59 }
 0x4ca   : > { %v4349_v8 = vsel %vm432_vm2, %v14668_v37, -inf }
 0x4cb   : > { %v4355_v59 = vsel %vm432_vm2, %v14676_v9, -inf }
 0x4cc   : > { %v14654_v54 = vpop.f32.mrb[36].mxu1 }
 0x4cd   : > { %16544 = vst [vmem:[#allocation17_spill] sm:$0xff] %v14654_v54  ;;  %v12985_v31 = vpop.f32.mrb[37].mxu1 }
 0x4cf   : > { %v4002_v58 = vpop.f32.mrb[52].mxu0 }
 0x4d0   : > { %v13050_v4 = vpop.f32.mrb[53].mxu0 }
 0x4d3   : > { %v3144_v44 = vpop.f32.mrb[38].mxu1 }
 0x4d4   : > { %v14656_v32 = vmul.f32 0.35355338, %v3144_v44  ;;  %v12995_v61 = vpop.f32.mrb[39].mxu1 }
 0x4d5   : > { %v14684_v61 = vmul.f32 0.35355338, %v3846_v28 }
 0x4d6   : > { %v4334_v53 = vsel %vm432_vm2, %v14656_v32, -inf }
 0x4d7   : > { %v3300_v6 = vpop.f32.mrb[40].mxu1  ;;  %4335 = vmax.xlane.f32.xlu0 %v4334_v53  ;;  %v4158_v47 = vpop.f32.mrb[54].mxu0  ;;  %v4361_v28 = vsel %vm432_vm2, %v14684_v61, -inf }
 0x4d8   : > { %v14660_v33 = vmul.f32 0.35355338, %v3300_v6  ;;  %v13005_v36 = vpop.f32.mrb[41].mxu1  ;;  %v13060_v42 = vpop.f32.mrb[55].mxu0 }
 0x4da   : > { %v4340_v43 = vsel %vm432_vm2, %v14660_v33, -inf }
 0x4db   : > { %4341 = vmax.xlane.f32.xlu0 %v4340_v43  ;;  %v3456_v56 = vpop.f32.mrb[42].mxu1  ;;  %v14692_v43 = vmul.f32 0.35355338, %v4002_v58 }
 0x4dc   : > { %v14666_v46 = vmul.f32 0.35355338, %v3456_v56  ;;  %v13015_v10 = vpop.f32.mrb[43].mxu1 }
 0x4de   : > { %v4346_v63 = vsel %vm432_vm2, %v14666_v46, -inf }
 0x4df   : > { %v3612_v3 = vpop.f32.mrb[44].mxu1  ;;  %4347 = vmax.xlane.f32.xlu1 %v4346_v63  ;;  %4344 = vmax.xlane.f32.xlu0 %v4343_v60  ;;  %v4314_v35 = vpop.f32.mrb[56].mxu0 }
 0x4e0   : > { %v14674_v49 = vmul.f32 0.35355338, %v3612_v3  ;;  %v13025_v41 = vpop.f32.mrb[45].mxu1  ;;  %v13070_v7 = vpop.f32.mrb[57].mxu0 }
 0x4e1   : > { %v14700_v3 = vpop.permute.xlu1 %4662  ;;  %v14702_v41 = vmul.f32 0.35355338, %v4158_v47  ;;  %v4367_v7 = vsel %vm432_vm2, %v14692_v43, -inf }
 0x4e2   : > { %v4352_v5 = vsel %vm432_vm2, %v14674_v49, -inf }
 0x4e3   : > { %v3768_v31 = vpop.f32.mrb[46].mxu1  ;;  %4353 = vmax.xlane.f32.xlu1 %v4352_v5  ;;  %4350 = vmax.xlane.f32.xlu0 %v4349_v8  ;;  %v4373_v47 = vsel %vm432_vm2, %v14702_v41, -inf }
 0x4e4   : > { %v14682_v4 = vmul.f32 0.35355338, %v3768_v31  ;;  %v13035_v44 = vpop.f32.mrb[47].mxu1 }
 0x4e5   : > { %v14710_v44 = vmul.f32 0.35355338, %v4314_v35 }
 0x4e6   : > { %v4358_v53 = vsel %vm432_vm2, %v14682_v4, -inf }
 0x4e7   : > { %v3924_v6 = vpop.f32.mrb[48].mxu1  ;;  %4359 = vmax.xlane.f32.xlu1 %v4358_v53  ;;  %4356 = vmax.xlane.f32.xlu0 %v4355_v59  ;;  %v14716_v59 = vpop.permute.xlu1 %4814 }
 0x4e8   : > { %v14690_v36 = vmul.f32 0.35355338, %v3924_v6  ;;  %v13045_v42 = vpop.f32.mrb[49].mxu1  ;;  %v4379_v6 = vsel %vm432_vm2, %v14710_v44, -inf }
 0x4ea   : > { %v4364_v56 = vsel %vm432_vm2, %v14690_v36, -inf }
 0x4eb   : > { %v4080_v10 = vpop.f32.mrb[50].mxu1  ;;  %4365 = vmax.xlane.f32.xlu1 %v4364_v56  ;;  %4362 = vmax.xlane.f32.xlu0 %v4361_v28  ;;  %v14720_v42 = vpop.permute.xlu1 %4890 }
 0x4ec   : > { %v14698_v63 = vmul.f32 0.35355338, %v4080_v10  ;;  %v13055_v60 = vpop.f32.mrb[51].mxu1 }
 0x4ee   : > { %v4370_v58 = vsel %vm432_vm2, %v14698_v63, -inf }
 0x4ef   : > { %v4236_v5 = vpop.f32.mrb[52].mxu1  ;;  %4371 = vmax.xlane.f32.xlu1 %v4370_v58  ;;  %4368 = vmax.xlane.f32.xlu0 %v4367_v7  ;;  %v14722_v56 = vpop.permute.xlu1 %5042 }
 0x4f0   : > { %v14708_v8 = vmul.f32 0.35355338, %v4236_v5  ;;  %v13065_v31 = vpop.f32.mrb[53].mxu1  ;;  %v14748_v5 = vpop.permute.xlu0 %4738 }
 0x4f2   : > { %v4376_v53 = vsel %vm432_vm2, %v14708_v8, -inf }
 0x4f3   : > { %4377 = vmax.xlane.f32.xlu1 %v4376_v53  ;;  %4374 = vmax.xlane.f32.xlu0 %v4373_v47  ;;  %v14726_v35 = vpop.permute.xlu1 %5194 }
 0x4f4   : > { %v14752_v53 = vpop.permute.xlu0 %4966 }
 0x4f7   : > { %4380 = vmax.xlane.f32.xlu0 %v4379_v6  ;;  %v14730_v28 = vpop.permute.xlu1 %5346 }
 0x4f8   : > { %v14757_v1 = vpop.permute.xlu0 %5118 }
 0x4fb   : > { %v14738_v10 = vpop.permute.xlu1 %5498 }
 0x4fc   : > { %v14759_v2 = vpop.permute.xlu0 %5270 }
 0x4ff   : > { %v14742_v60 = vpop.permute.xlu1 %5650 }
 0x500   : > { %v14761_v62 = vpop.permute.xlu0 %5422 }
 0x503   : > { %v14744_v58 = vpop.permute.xlu1 %5806 }
 0x504   : > { %6118 = vrot.lane.b32.xlu1 %v13964_v18, %s13873_s9  ;;  %16545 = vst [vmem:[#allocation18_spill] sm:$0xff] %v14744_v58  ;;  %v14767_v45 = vpop.permute.xlu0 %5574 }
 0x507   : > { %v14746_v7 = vpop.permute.xlu1 %5804 }
 0x508   : > { %6116 = vrot.lane.b32.xlu1 %v13964_v18, %s13874_s10  ;;  %16546 = vst [vmem:[#allocation19_spill] sm:$0xff] %v14746_v7  ;;  %v14769_v39 = vpop.permute.xlu0 %5728 }
 0x50b   : > { %v14750_v31 = vpop.permute.xlu1 %5962 }
 0x50c   : > { %6274 = vrot.lane.b32.xlu1 %v13962_v17, %s13873_s9  ;;  %16547 = vst [vmem:[#allocation20_spill] sm:$0xff] %v14750_v31  ;;  %v14771_v50 = vpop.permute.xlu0 %5726 }
 0x50d   : > { %6040 = vrot.lane.b32.xlu0 %v13960_v16, %s13873_s9 }
 0x50f   : > { %v14754_v47 = vpop.permute.xlu1 %5960 }
 0x510   : > { %16548 = vst [vmem:[#allocation21_spill] sm:$0xff] %v14754_v47 }
 0x511   : > { %6038 = vrot.lane.b32.xlu0 %v13960_v16, %s13874_s10 }
 0x515   : > { %6196 = vrot.lane.b32.xlu0 %v13958_v15, %s13873_s9 }
 0x534   : > { %v4339_v6 = vpop.xlane.xlu1 %4338 }
 0x535   : > { %v4383_v54 = vsub.f32 %v14646_v57, %v4339_v6  ;;  %v14773_v57 = vpop.permute.xlu0 %5884 }
 0x537   : > { %v4400_v0 = vmul.f32 1.442695, %v4383_v54 }
 0x539   : > { %13598 = vpow2.f32 %v4400_v0  ;;  %v14775_v54 = vpop.permute.xlu0 %5882 }
 0x53a   : > { %16549 = vst [vmem:[#allocation22_spill] sm:$0xff] %v14775_v54 }
 0x543   : > { %v14763_v40 = vpop.eup %13598 }
 0x544   : > { %v4433_v51 = vsel %vm432_vm2, %v14763_v40, 0.0 }
 0x545   : > { %4434 = vadd.xlane.f32.xlu0 %v4433_v51 }
 0x564   : > { %v4336_v0 = vpop.xlane.xlu0 %4335 }
 0x565   : > { %v4382_v6 = vsub.f32 %v14656_v32, %v4336_v0 }
 0x567   : > { %v4398_v38 = vmul.f32 1.442695, %v4382_v6 }
 0x568   : > { %v4342_v27 = vpop.xlane.xlu0 %4341 }
 0x569   : > { %13600 = vpow2.f32 %v4398_v38  ;;  %v4384_v52 = vsub.f32 %v14660_v33, %v4342_v27 }
 0x56b   : > { %v4402_v29 = vmul.f32 1.442695, %v4384_v52 }
 0x56c   : > { %v4348_v51 = vpop.xlane.xlu1 %4347  ;;  %v4345_v34 = vpop.xlane.xlu0 %4344 }
 0x56d   : > { %13602 = vpow2.f32 %v4402_v29  ;;  %v4386_v55 = vsub.f32 %v14666_v46, %v4348_v51  ;;  %v4385_v47 = vsub.f32 %v14662_v48, %v4345_v34 }
 0x56f   : > { %v4406_v31 = vmul.f32 1.442695, %v4386_v55  ;;  %v4404_v7 = vmul.f32 1.442695, %v4385_v47 }
 0x570   : > { %v4354_v58 = vpop.xlane.xlu1 %4353  ;;  %v4351_v54 = vpop.xlane.xlu0 %4350 }
 0x571   : > { %13604 = vpow2.f32 %v4406_v31  ;;  %v4388_v32 = vsub.f32 %v14674_v49, %v4354_v58  ;;  %v4387_v0 = vsub.f32 %v14668_v37, %v4351_v54 }
 0x572   : > { %13606 = vpow2.f32 %v4404_v7 }
 0x573   : > { %v14783_v38 = vpop.eup %13600  ;;  %v4410_v52 = vmul.f32 1.442695, %v4388_v32  ;;  %v4408_v27 = vmul.f32 1.442695, %v4387_v0 }
 0x574   : > { %v4360_v33 = vpop.xlane.xlu1 %4359  ;;  %v4357_v29 = vpop.xlane.xlu0 %4356  ;;  %v4430_v46 = vsel %vm432_vm2, %v14783_v38, 0.0 }
 0x575   : > { %13608 = vpow2.f32 %v4410_v52  ;;  %v4390_v55 = vsub.f32 %v14682_v4, %v4360_v33  ;;  %v4389_v34 = vsub.f32 %v14676_v9, %v4357_v29  ;;  %4431 = vadd.xlane.f32.xlu1 %v4430_v46 }
 0x576   : > { %13610 = vpow2.f32 %v4408_v27 }
 0x577   : > { %v14789_v48 = vpop.eup %13602  ;;  %v4414_v37 = vmul.f32 1.442695, %v4390_v55  ;;  %v4412_v49 = vmul.f32 1.442695, %v4389_v34 }
 0x578   : > { %v4366_v58 = vpop.xlane.xlu1 %4365  ;;  %v4363_v7 = vpop.xlane.xlu0 %4362  ;;  %v4436_v31 = vsel %vm432_vm2, %v14789_v48, 0.0 }
 0x579   : > { %13612 = vpow2.f32 %v4414_v37  ;;  %v4392_v47 = vsub.f32 %v14690_v36, %v4366_v58  ;;  %v4391_v54 = vsub.f32 %v14684_v61, %v4363_v7  ;;  %4437 = vadd.xlane.f32.xlu1 %v4436_v31 }
 0x57a   : > { %13614 = vpow2.f32 %v4412_v49 }
 0x57b   : > { %v14795_v4 = vpop.eup %13604  ;;  %v4418_v9 = vmul.f32 1.442695, %v4392_v47  ;;  %v4416_v6 = vmul.f32 1.442695, %v4391_v54 }
 0x57c   : > { %v14797_v51 = vpop.eup %13606  ;;  %v4372_v32 = vpop.xlane.xlu1 %4371  ;;  %v4442_v52 = vsel %vm432_vm2, %v14795_v4, 0.0 }
 0x57d   : > { %v4369_v0 = vpop.xlane.xlu0 %4368  ;;  %13616 = vpow2.f32 %v4418_v9  ;;  %v4394_v27 = vsub.f32 %v14698_v63, %v4372_v32  ;;  %4443 = vadd.xlane.f32.xlu1 %v4442_v52  ;;  %v4439_v61 = vsel %vm432_vm2, %v14797_v51, 0.0 }
 0x57e   : > { %v4393_v36 = vsub.f32 %v14692_v43, %v4369_v0  ;;  %13618 = vpow2.f32 %v4416_v6  ;;  %4440 = vadd.xlane.f32.xlu0 %v4439_v61 }
 0x57f   : > { %v14805_v33 = vpop.eup %13608  ;;  %v4422_v29 = vmul.f32 1.442695, %v4394_v27 }
 0x580   : > { %v4420_v46 = vmul.f32 1.442695, %v4393_v36  ;;  %v14807_v55 = vpop.eup %13610  ;;  %v4378_v34 = vpop.xlane.xlu1 %4377  ;;  %v4448_v49 = vsel %vm432_vm2, %v14805_v33, 0.0 }
 0x581   : > { %v4375_v37 = vpop.xlane.xlu0 %4374  ;;  %13620 = vpow2.f32 %v4422_v29  ;;  %v4396_v43 = vsub.f32 %v14708_v8, %v4378_v34  ;;  %4449 = vadd.xlane.f32.xlu1 %v4448_v49  ;;  %v4445_v58 = vsel %vm432_vm2, %v14807_v55, 0.0 }
 0x582   : > { %v4395_v63 = vsub.f32 %v14702_v41, %v4375_v37  ;;  %13622 = vpow2.f32 %v4420_v46  ;;  %4446 = vadd.xlane.f32.xlu0 %v4445_v58 }
 0x583   : > { %v14815_v7 = vpop.eup %13612  ;;  %v4426_v31 = vmul.f32 1.442695, %v4396_v43 }
 0x584   : > { %v4424_v47 = vmul.f32 1.442695, %v4395_v63  ;;  %v14817_v54 = vpop.eup %13614  ;;  %v4454_v6 = vsel %vm432_vm2, %v14815_v7, 0.0 }
 0x585   : > { %v4381_v9 = vpop.xlane.xlu0 %4380  ;;  %13624 = vpow2.f32 %v4426_v31  ;;  %4455 = vadd.xlane.f32.xlu1 %v4454_v6  ;;  %v4451_v41 = vsel %vm432_vm2, %v14817_v54, 0.0 }
 0x586   : > { %v4397_v8 = vsub.f32 %v14710_v44, %v4381_v9  ;;  %13626 = vpow2.f32 %v4424_v47  ;;  %4452 = vadd.xlane.f32.xlu0 %v4451_v41 }
 0x587   : > { %v14824_v32 = vpop.eup %13616 }
 0x588   : > { %v4428_v0 = vmul.f32 1.442695, %v4397_v8  ;;  %v14826_v52 = vpop.eup %13618  ;;  %v4460_v27 = vsel %vm432_vm2, %v14824_v32, 0.0 }
 0x589   : > { %4461 = vadd.xlane.f32.xlu1 %v4460_v27  ;;  %v4457_v36 = vsel %vm432_vm2, %v14826_v52, 0.0  ;;  %v14880_v31 = vpop.permute.xlu0 %6040 }
 0x58a   : > { %13628 = vpow2.f32 %v4428_v0  ;;  %4458 = vadd.xlane.f32.xlu0 %v4457_v36 }
 0x58b   : > { %v14832_v44 = vpop.eup %13620 }
 0x58c   : > { %v14834_v61 = vpop.eup %13622  ;;  %v4466_v29 = vsel %vm432_vm2, %v14832_v44, 0.0 }
 0x58d   : > { %4467 = vadd.xlane.f32.xlu1 %v4466_v29  ;;  %v4463_v46 = vsel %vm432_vm2, %v14834_v61, 0.0  ;;  %v14887_v47 = vpop.permute.xlu0 %6038 }
 0x58e   : > { %4464 = vadd.xlane.f32.xlu0 %v4463_v46 }
 0x58f   : > { %v14840_v34 = vpop.eup %13624 }
 0x590   : > { %v14842_v37 = vpop.eup %13626  ;;  %v4472_v49 = vsel %vm432_vm2, %v14840_v34, 0.0 }
 0x591   : > { %4473 = vadd.xlane.f32.xlu1 %v4472_v49  ;;  %v4469_v43 = vsel %vm432_vm2, %v14842_v37, 0.0  ;;  %v14894_v9 = vpop.permute.xlu0 %6196 }
 0x592   : > { %4470 = vadd.xlane.f32.xlu0 %v4469_v43 }
 0x594   : > { %v14848_v63 = vpop.eup %13628 }
 0x595   : > { %v4475_v58 = vsel %vm432_vm2, %v14848_v63, 0.0 }
 0x596   : > { %4476 = vadd.xlane.f32.xlu0 %v4475_v58 }
 0x5a2   : > { %6272 = vrot.lane.b32.xlu1 %v13962_v17, %s13874_s10 }
 0x5a6   : > { %6430 = vrot.lane.b32.xlu1 %v13976_v22, %s13873_s9 }
 0x5aa   : > { %6428 = vrot.lane.b32.xlu1 %v13976_v22, %s13874_s10 }
 0x5ac   : > { %6194 = vrot.lane.b32.xlu0 %v13958_v15, %s13874_s10 }
 0x5ae   : > { %6586 = vrot.lane.b32.xlu1 %v13974_v21, %s13873_s9 }
 0x5b0   : > { %6352 = vrot.lane.b32.xlu0 %v13972_v20, %s13873_s9 }
 0x5b2   : > { %6584 = vrot.lane.b32.xlu1 %v13974_v21, %s13874_s10 }
 0x5b4   : > { %6350 = vrot.lane.b32.xlu0 %v13972_v20, %s13874_s10 }
 0x5b6   : > { %6742 = vrot.lane.b32.xlu1 %v13988_v26, %s13873_s9 }
 0x5b8   : > { %6508 = vrot.lane.b32.xlu0 %v13970_v19, %s13873_s9 }
 0x5ba   : > { %6740 = vrot.lane.b32.xlu1 %v13988_v26, %s13874_s10 }
 0x5bc   : > { %6506 = vrot.lane.b32.xlu0 %v13970_v19, %s13874_s10 }
 0x5be   : > { %6898 = vrot.lane.b32.xlu1 %v13986_v25, %s13873_s9 }
 0x5c0   : > { %6664 = vrot.lane.b32.xlu0 %v13984_v24, %s13873_s9 }
 0x5c2   : > { %6896 = vrot.lane.b32.xlu1 %v13986_v25, %s13874_s10 }
 0x5c4   : > { %6662 = vrot.lane.b32.xlu0 %v13984_v24, %s13874_s10 }
 0x5c6   : > { %7166 = vrot.lane.b32.xlu1 %v13948_v12, %s13875_s11 }
 0x5c8   : > { %6820 = vrot.lane.b32.xlu0 %v13982_v23, %s13873_s9 }
 0x5ca   : > { %7318 = vrot.lane.b32.xlu1 %v13946_v11, %s13875_s11 }
 0x5cc   : > { %6818 = vrot.lane.b32.xlu0 %v13982_v23, %s13874_s10 }
 0x5ce   : > { %7470 = vrot.lane.b32.xlu1 %v13960_v16, %s13875_s11 }
 0x5d0   : > { %7242 = vrot.lane.b32.xlu0 %v13953_v14, %s13875_s11 }
 0x5d2   : > { %v4435_v6 = vpop.xlane.xlu0 %4434  ;;  %7546 = vrot.lane.b32.xlu1 %v13964_v18, %s13875_s11 }
 0x5d3   : > { %13630 = vrcp.f32 %v4435_v6 }
 0x5d4   : > { %7394 = vrot.lane.b32.xlu0 %v13950_v13, %s13875_s11 }
 0x5d6   : > { %7698 = vrot.lane.b32.xlu1 %v13962_v17, %s13875_s11 }
 0x5d8   : > { %7622 = vrot.lane.b32.xlu0 %v13958_v15, %s13875_s11 }
 0x5da   : > { %7850 = vrot.lane.b32.xlu1 %v13976_v22, %s13875_s11 }
 0x5dc   : > { %7774 = vrot.lane.b32.xlu0 %v13972_v20, %s13875_s11 }
 0x5dd   : > { %v13631_v8 = vpop.eup %13630 }
 0x5de   : > { %8002 = vrot.lane.b32.xlu1 %v13974_v21, %s13875_s11  ;;  %v4495_v41 = vmul.f32 %v13631_v8, %v14763_v40  ;;  %v14924_v40 = vpop.permute.xlu1 %6118 }
 0x5e0   : > { %7926 = vrot.lane.b32.xlu0 %v13970_v19, %s13875_s11  ;;  %13079 = vmatmul.mubr.msk.f32.vlgmr.msra.gmra.mrb[58].mxu0 %vm432_vm2, %v4495_v41 }
 0x5e1   : > { %13087 = vmatpush3.msra.mxu0 %v14748_v5  ;;  %13088 = vmatprep.mubr.msk.f32.mxu0 %vm13867_vm1, %v16522_v30 }
 0x5e2   : > { %8154 = vrot.lane.b32.xlu1 %v13988_v26, %s13875_s11  ;;  %13096 = vmatprep.subr.mxu0 %v16522_v30  ;;  %v14932_v5 = vpop.permute.xlu1 %6116 }
 0x5e4   : > { %8078 = vrot.lane.b32.xlu0 %v13984_v24, %s13875_s11 }
 0x5e6   : > { %8306 = vrot.lane.b32.xlu1 %v13986_v25, %s13875_s11  ;;  %v14940_v0 = vpop.permute.xlu1 %6274 }
 0x5e8   : > { %8230 = vrot.lane.b32.xlu0 %v13982_v23, %s13875_s11 }
 0x5ea   : > { %8462 = vrot.lane.b32.xlu1 %v13953_v14, %s13876_s12 }
 0x5ec   : > { %8384 = vrot.lane.b32.xlu0 %v13948_v12, %s13876_s12 }
 0x5ee   : > { %8460 = vrot.lane.b32.xlu1 %v13953_v14, %s13877_s13 }
 0x5f0   : > { %8382 = vrot.lane.b32.xlu0 %v13948_v12, %s13877_s13 }
 0x5f2   : > { %8618 = vrot.lane.b32.xlu1 %v13950_v13, %s13876_s12 }
 0x5f4   : > { %8540 = vrot.lane.b32.xlu0 %v13946_v11, %s13876_s12 }
 0x5f6   : > { %8616 = vrot.lane.b32.xlu1 %v13950_v13, %s13877_s13 }
 0x5f8   : > { %8538 = vrot.lane.b32.xlu0 %v13946_v11, %s13877_s13 }
 0x5fa   : > { %8774 = vrot.lane.b32.xlu1 %v13964_v18, %s13876_s12 }
 0x5fc   : > { %8696 = vrot.lane.b32.xlu0 %v13960_v16, %s13876_s12 }
 0x5fe   : > { %8772 = vrot.lane.b32.xlu1 %v13964_v18, %s13877_s13 }
 0x600   : > { %8694 = vrot.lane.b32.xlu0 %v13960_v16, %s13877_s13 }
 0x602   : > { %v4432_v27 = vpop.xlane.xlu1 %4431 }
 0x603   : > { %13632 = vrcp.f32 %v4432_v27 }
 0x606   : > { %v4438_v36 = vpop.xlane.xlu1 %4437 }
 0x607   : > { %13634 = vrcp.f32 %v4438_v36 }
 0x60a   : > { %v4444_v29 = vpop.xlane.xlu1 %4443 }
 0x60b   : > { %13636 = vrcp.f32 %v4444_v29  ;;  %v4441_v46 = vpop.xlane.xlu0 %4440 }
 0x60c   : > { %13638 = vrcp.f32 %v4441_v46 }
 0x60d   : > { %v13633_v49 = vpop.eup %13632 }
 0x60e   : > { %v4450_v43 = vpop.xlane.xlu1 %4449  ;;  %v4494_v58 = vmul.f32 %v13633_v49, %v14783_v38 }
 0x60f   : > { %13640 = vrcp.f32 %v4450_v43  ;;  %v4447_v6 = vpop.xlane.xlu0 %4446 }
 0x610   : > { %13642 = vrcp.f32 %v4447_v6  ;;  %13074 = vmatmul.mubr.msk.f32.vlgmr.msra.gmra.mrb[54].mxu1 %vm432_vm2, %v4494_v58 }
 0x611   : > { %v13635_v8 = vpop.eup %13634  ;;  %13082 = vmatpush3.msra.mxu1 %v14700_v3  ;;  %13083 = vmatprep.mubr.msk.f32.mxu1 %vm13867_vm1, %v16522_v30 }
 0x612   : > { %v4456_v41 = vpop.xlane.xlu1 %4455  ;;  %13091 = vmatprep.subr.mxu1 %v16522_v30  ;;  %v4496_v27 = vmul.f32 %v13635_v8, %v14789_v48 }
 0x613   : > { %13644 = vrcp.f32 %v4456_v41  ;;  %v4453_v36 = vpop.xlane.xlu0 %4452 }
 0x614   : > { %13646 = vrcp.f32 %v4453_v36  ;;  %13084 = vmatmul.mubr.msk.f32.vlgmr.msra.gmra.mrb[56].mxu1 %vm432_vm2, %v4496_v27 }
 0x615   : > { %v13637_v38 = vpop.eup %13636  ;;  %13092 = vmatpush3.msra.mxu1 %v14716_v59  ;;  %13093 = vmatprep.mubr.msk.f32.mxu1 %vm13867_vm1, %v16522_v30 }
 0x616   : > { %v13639_v3 = vpop.eup %13638  ;;  %v4462_v29 = vpop.xlane.xlu1 %4461  ;;  %13101 = vmatprep.subr.mxu1 %v16522_v30  ;;  %v4498_v46 = vmul.f32 %v13637_v38, %v14795_v4 }
 0x617   : > { %13648 = vrcp.f32 %v4462_v29  ;;  %v4459_v49 = vpop.xlane.xlu0 %4458  ;;  %v4497_v48 = vmul.f32 %v13639_v3, %v14797_v51 }
 0x618   : > { %13650 = vrcp.f32 %v4459_v49  ;;  %13094 = vmatmul.mubr.msk.f32.vlgmr.msra.gmra.mrb[58].mxu1 %vm432_vm2, %v4498_v46 }
 0x619   : > { %v13641_v43 = vpop.eup %13640  ;;  %13089 = vmatmul.mubr.msk.f32.vlgmr.msra.gmra.mrb[60].mxu0 %vm432_vm2, %v4497_v48  ;;  %13102 = vmatpush3.msra.mxu1 %v14752_v53 }
 0x61a   : > { %v13643_v59 = vpop.eup %13642  ;;  %13097 = vmatpush3.msra.mxu0 %v14720_v42  ;;  %v4468_v58 = vpop.xlane.xlu1 %4467  ;;  %13098 = vmatprep.mubr.msk.f32.mxu0 %vm13867_vm1, %v16522_v30  ;;  %v4500_v4 = vmul.f32 %v13641_v43, %v14805_v33 }
 0x61b   : > { %13652 = vrcp.f32 %v4468_v58  ;;  %v4465_v6 = vpop.xlane.xlu0 %4464  ;;  %13103 = vmatprep.mubr.msk.f32.mxu1 %vm13867_vm1, %v16522_v30  ;;  %13106 = vmatprep.subr.mxu0 %v16522_v30  ;;  %v4499_v51 = vmul.f32 %v13643_v59, %v14807_v55  ;;  %v16554_v59 = vld [vmem:[#allocation21_spill] sm:$0xff] }
 0x61c   : > { %13654 = vrcp.f32 %v4465_v6  ;;  %13111 = vmatprep.subr.mxu1 %v16522_v30  ;;  %13104 = vmatmul.mubr.msk.f32.vlgmr.msra.gmra.mrb[60].mxu1 %vm432_vm2, %v4500_v4 }
 0x61d   : > { %v13645_v42 = vpop.eup %13644  ;;  %13099 = vmatmul.mubr.msk.f32.vlgmr.msra.gmra.mrb[62].mxu0 %vm432_vm2, %v4499_v51  ;;  %13112 = vmatpush3.msra.mxu1 %v14757_v1 }
 0x61e   : > { %v13647_v53 = vpop.eup %13646  ;;  %13107 = vmatpush3.msra.mxu0 %v14722_v56  ;;  %v4474_v33 = vpop.xlane.xlu1 %4473  ;;  %13108 = vmatprep.mubr.msk.f32.mxu0 %vm13867_vm1, %v16522_v30  ;;  %v4502_v8 = vmul.f32 %v13645_v42, %v14815_v7 }
 0x61f   : > { %13656 = vrcp.f32 %v4474_v33  ;;  %v4471_v55 = vpop.xlane.xlu0 %4470  ;;  %13113 = vmatprep.mubr.msk.f32.mxu1 %vm13867_vm1, %v16522_v30  ;;  %13116 = vmatprep.subr.mxu0 %v16522_v30  ;;  %v4501_v41 = vmul.f32 %v13647_v53, %v14817_v54 }
 0x620   : > { %13658 = vrcp.f32 %v4471_v55  ;;  %13121 = vmatprep.subr.mxu1 %v16522_v30  ;;  %13114 = vmatmul.mubr.msk.f32.vlgmr.msra.gmra.mrb[62].mxu1 %vm432_vm2, %v4502_v8 }
 0x621   : > { %v13649_v1 = vpop.eup %13648  ;;  %13109 = vmatmul.mubr.msk.f32.vlgmr.msra.gmra.mrb[64].mxu0 %vm432_vm2, %v4501_v41  ;;  %13122 = vmatpush3.msra.mxu1 %v14759_v2 }
 0x622   : > { %v13651_v56 = vpop.eup %13650  ;;  %13117 = vmatpush3.msra.mxu0 %v14726_v35  ;;  %v14988_v7 = vpop.permute.xlu1 %6272  ;;  %13118 = vmatprep.mubr.msk.f32.mxu0 %vm13867_vm1, %v16522_v30  ;;  %v4504_v54 = vmul.f32 %v13649_v1, %v14824_v32 }
 0x623   : > { %v4477_v27 = vpop.xlane.xlu0 %4476  ;;  %13123 = vmatprep.mubr.msk.f32.mxu1 %vm13867_vm1, %v16522_v30  ;;  %13126 = vmatprep.subr.mxu0 %v16522_v30  ;;  %v4503_v36 = vmul.f32 %v13651_v56, %v14826_v52 }
 0x624   : > { %13660 = vrcp.f32 %v4477_v27  ;;  %13131 = vmatprep.subr.mxu1 %v16522_v30  ;;  %13124 = vmatmul.mubr.msk.f32.vlgmr.msra.gmra.mrb[64].mxu1 %vm432_vm2, %v4504_v54 }
 0x625   : > { %v13653_v2 = vpop.eup %13652  ;;  %13119 = vmatmul.mubr.msk.f32.vlgmr.msra.gmra.mrb[66].mxu0 %vm432_vm2, %v4503_v36  ;;  %13132 = vmatpush3.msra.mxu1 %v14761_v62 }
 0x626   : > { %v13655_v35 = vpop.eup %13654  ;;  %13127 = vmatpush3.msra.mxu0 %v14730_v28  ;;  %v15002_v32 = vpop.permute.xlu1 %6430  ;;  %13128 = vmatprep.mubr.msk.f32.mxu0 %vm13867_vm1, %v16522_v30  ;;  %v4506_v52 = vmul.f32 %v13653_v2, %v14832_v44 }
 0x627   : > { %v6195_v38 = vpop.permute.xlu0 %6194  ;;  %13133 = vmatprep.mubr.msk.f32.mxu1 %vm13867_vm1, %v16522_v30  ;;  %13136 = vmatprep.subr.mxu0 %v16522_v30  ;;  %v4505_v3 = vmul.f32 %v13655_v35, %v14834_v61 }
 0x628   : > { %13141 = vmatprep.subr.mxu1 %v16522_v30  ;;  %13134 = vmatmul.mubr.msk.f32.vlgmr.msra.gmra.mrb[66].mxu1 %vm432_vm2, %v4506_v52 }
 0x629   : > { %v13657_v62 = vpop.eup %13656  ;;  %13129 = vmatmul.mubr.msk.f32.vlgmr.msra.gmra.mrb[68].mxu0 %vm432_vm2, %v4505_v3  ;;  %13142 = vmatpush3.msra.mxu1 %v14767_v45 }
 0x62a   : > { %v13659_v28 = vpop.eup %13658  ;;  %13137 = vmatpush3.msra.mxu0 %v14738_v10  ;;  %v15016_v44 = vpop.permute.xlu1 %6428  ;;  %13138 = vmatprep.mubr.msk.f32.mxu0 %vm13867_vm1, %v16522_v30  ;;  %v4508_v29 = vmul.f32 %v13657_v62, %v14840_v34 }
 0x62b   : > { %v6353_v61 = vpop.permute.xlu0 %6352  ;;  %13143 = vmatprep.mubr.msk.f32.mxu1 %vm13867_vm1, %v16522_v30  ;;  %13146 = vmatprep.subr.mxu0 %v16522_v30  ;;  %v4507_v46 = vmul.f32 %v13659_v28, %v14842_v37 }
 0x62c   : > { %13144 = vmatmul.mubr.msk.f32.vlgmr.msra.gmra.mrb[68].mxu1 %vm432_vm2, %v4508_v29  ;;  %13151 = vmatprep.subr.mxu1 %v16522_v30 }
 0x62d   : > { %13139 = vmatmul.mubr.msk.f32.vlgmr.msra.gmra.mrb[70].mxu0 %vm432_vm2, %v4507_v46  ;;  %13153 = vmatprep.mubr.msk.f32.mxu1 %vm13867_vm1, %v16522_v30 }
 0x62e   : > { %v13661_v45 = vpop.eup %13660  ;;  %13147 = vmatpush3.msra.mxu0 %v14742_v60  ;;  %v6587_v10 = vpop.permute.xlu1 %6586  ;;  %13148 = vmatprep.mubr.msk.f32.mxu0 %vm13867_vm1, %v16522_v30 }
 0x62f   : > { %v6351_v34 = vpop.permute.xlu0 %6350  ;;  %v4509_v49 = vmul.f32 %v13661_v45, %v14848_v63  ;;  %13156 = vmatprep.subr.mxu0 %v16522_v30  ;;  %v16550_v63 = vld [vmem:[#allocation18_spill] sm:$0xff] }
 0x630   : > { %13152 = vmatpush3.xpose.msk.msra.mxu1 %vm432_vm2, %v14769_v39  ;;  %v16551_v39 = vld [vmem:[#allocation22_spill] sm:$0xff] }
 0x631   : > { %13149 = vmatmul.mubr.msk.f32.vlgmr.msra.gmra.mrb[72].mxu0 %vm432_vm2, %v4509_v49  ;;  %13161 = vmatprep.subr.mxu1 %v16522_v30 }
 0x632   : > { %v6585_v37 = vpop.permute.xlu1 %6584  ;;  %13158 = vmatprep.mubr.msk.f32.mxu0 %vm13867_vm1, %v16522_v30 }
 0x633   : > { %13154 = vmatmul.mubr.msk.f32.vlgmr.msra.gmra.mrb[70].mxu1 %vm432_vm2, %v14771_v50  ;;  %v6509_v60 = vpop.permute.xlu0 %6508  ;;  %v16552_v50 = vld [vmem:[#allocation19_spill] sm:$0xff] }
 0x634   : > { %13162 = vmatpush3.xpose.msk.msra.mxu1 %vm432_vm2, %v14773_v57  ;;  %13163 = vmatprep.mubr.msk.f32.mxu1 %vm13867_vm1, %v16522_v30  ;;  %v16553_v57 = vld [vmem:[#allocation20_spill] sm:$0xff] }
 0x635   : > { %13157 = vmatpush3.xpose.msk.msra.mxu0 %vm432_vm2, %v16550_v63  ;;  %13171 = vmatprep.subr.mxu1 %v16522_v30 }
 0x636   : > { %13166 = vmatprep.subr.mxu0 %v16522_v30  ;;  %v6743_v48 = vpop.permute.xlu1 %6742 }
 0x637   : > { %13164 = vmatmul.mubr.msk.f32.vlgmr.msra.gmra.mrb[72].mxu1 %vm432_vm2, %v16551_v39  ;;  %v6507_v43 = vpop.permute.xlu0 %6506 }
 0x638   : > { %13159 = vmatmul.mubr.msk.f32.vlgmr.msra.gmra.mrb[74].mxu0 %vm432_vm2, %v16552_v50  ;;  %13172 = vmatpush3.xpose.msk.msra.mxu1 %vm432_vm2, %v14880_v31 }
 0x639   : > { %13167 = vmatpush3.xpose.msk.msra.mxu0 %vm432_vm2, %v16553_v57  ;;  %13168 = vmatprep.mubr.msk.f32.mxu0 %vm13867_vm1, %v16522_v30 }
 0x63a   : > { %13173 = vmatprep.mubr.msk.f32.mxu1 %vm13867_vm1, %v16522_v30  ;;  %13176 = vmatprep.subr.mxu0 %v16522_v30  ;;  %v6741_v58 = vpop.permute.xlu1 %6740 }
 0x63b   : > { %13174 = vmatmul.mubr.msk.f32.vlgmr.msra.gmra.mrb[74].mxu1 %vm432_vm2, %v14887_v47  ;;  %13181 = vmatprep.subr.mxu1 %v16522_v30  ;;  %v6665_v31 = vpop.permute.xlu0 %6664 }
 0x63c   : > { %13169 = vmatmul.mubr.msk.f32.vlgmr.msra.gmra.mrb[76].mxu0 %vm432_vm2, %v16554_v59  ;;  %13182 = vmatpush3.xpose.msk.msra.mxu1 %vm432_vm2, %v14894_v9 }
 0x63d   : > { %13177 = vmatpush3.xpose.msk.msra.mxu0 %vm432_vm2, %v14924_v40  ;;  %13178 = vmatprep.mubr.msk.f32.mxu0 %vm13867_vm1, %v16522_v30 }
 0x63e   : > { %13183 = vmatprep.mubr.msk.f32.mxu1 %vm13867_vm1, %v16522_v30  ;;  %13186 = vmatprep.subr.mxu0 %v16522_v30  ;;  %v6899_v9 = vpop.permute.xlu1 %6898 }
 0x63f   : > { %13184 = vmatmul.mubr.msk.f32.vlgmr.msra.gmra.mrb[76].mxu1 %vm432_vm2, %v6195_v38  ;;  %13191 = vmatprep.subr.mxu1 %v16522_v30  ;;  %v6663_v47 = vpop.permute.xlu0 %6662 }
 0x640   : > { %13179 = vmatmul.mubr.msk.f32.vlgmr.msra.gmra.mrb[78].mxu0 %vm432_vm2, %v14932_v5  ;;  %13192 = vmatpush3.xpose.msk.msra.mxu1 %vm432_vm2, %v6353_v61 }
 0x641   : > { %13187 = vmatpush3.xpose.msk.msra.mxu0 %vm432_vm2, %v14940_v0  ;;  %13188 = vmatprep.mubr.msk.f32.mxu0 %vm13867_vm1, %v16522_v30 }
 0x642   : > { %13193 = vmatprep.mubr.msk.f32.mxu1 %vm13867_vm1, %v16522_v30  ;;  %13196 = vmatprep.subr.mxu0 %v16522_v30  ;;  %v6897_v5 = vpop.permute.xlu1 %6896 }
 0x643   : > { %13194 = vmatmul.mubr.msk.f32.vlgmr.msra.gmra.mrb[78].mxu1 %vm432_vm2, %v6351_v34  ;;  %13201 = vmatprep.subr.mxu1 %v16522_v30  ;;  %v6821_v40 = vpop.permute.xlu0 %6820 }
 0x644   : > { %13189 = vmatmul.mubr.msk.f32.vlgmr.msra.gmra.mrb[80].mxu0 %vm432_vm2, %v14988_v7  ;;  %13202 = vmatpush3.xpose.msk.msra.mxu1 %vm432_vm2, %v6509_v60 }
 0x645   : > { %13197 = vmatpush3.xpose.msk.msra.mxu0 %vm432_vm2, %v15002_v32  ;;  %13198 = vmatprep.mubr.msk.f32.mxu0 %vm13867_vm1, %v16522_v30 }
 0x646   : > { %13203 = vmatprep.mubr.msk.f32.mxu1 %vm13867_vm1, %v16522_v30  ;;  %13206 = vmatprep.subr.mxu0 %v16522_v30  ;;  %v7167_v4 = vpop.permute.xlu1 %7166 }
 0x647   : > { %13204 = vmatmul.mubr.msk.f32.vlgmr.msra.gmra.mrb[80].mxu1 %vm432_vm2, %v6507_v43  ;;  %13211 = vmatprep.subr.mxu1 %v16522_v30  ;;  %v6819_v0 = vpop.permute.xlu0 %6818 }
 0x648   : > { %13199 = vmatmul.mubr.msk.f32.vlgmr.msra.gmra.mrb[82].mxu0 %vm432_vm2, %v15016_v44  ;;  %13212 = vmatpush3.xpose.msk.msra.mxu1 %vm432_vm2, %v6665_v31 }
 0x649   : > { %13207 = vmatpush3.xpose.msk.msra.mxu0 %vm432_vm2, %v6587_v10  ;;  %13208 = vmatprep.mubr.msk.f32.mxu0 %vm13867_vm1, %v16522_v30 }
 0x64a   : > { %13213 = vmatprep.mubr.msk.f32.mxu1 %vm13867_vm1, %v16522_v30  ;;  %13216 = vmatprep.subr.mxu0 %v16522_v30 }
 0x64b   : > { %13214 = vmatmul.mubr.msk.f32.vlgmr.msra.gmra.mrb[82].mxu1 %vm432_vm2, %v6663_v47  ;;  %13221 = vmatprep.subr.mxu1 %v16522_v30  ;;  %v7243_v6 = vpop.permute.xlu0 %7242 }
 0x64c   : > { %13209 = vmatmul.mubr.msk.f32.vlgmr.msra.gmra.mrb[84].mxu0 %vm432_vm2, %v6585_v37  ;;  %13222 = vmatpush3.xpose.msk.msra.mxu1 %vm432_vm2, %v6821_v40 }
 0x64d   : > { %13217 = vmatpush3.xpose.msk.msra.mxu0 %vm432_vm2, %v6743_v48  ;;  %13218 = vmatprep.mubr.msk.f32.mxu0 %vm13867_vm1, %v16522_v30 }
 0x64e   : > { %13223 = vmatprep.mubr.msk.f32.mxu1 %vm13867_vm1, %v16522_v30  ;;  %13226 = vmatprep.subr.mxu0 %v16522_v30 }
 0x64f   : > { %13224 = vmatmul.mubr.msk.f32.vlgmr.msra.gmra.mrb[84].mxu1 %vm432_vm2, %v6819_v0  ;;  %13231 = vmatprep.subr.mxu1 %v16522_v30 }
 0x650   : > { %13219 = vmatmul.mubr.msk.f32.vlgmr.msra.gmra.mrb[86].mxu0 %vm432_vm2, %v6741_v58  ;;  %13232 = vmatpush3.msra.mxu1 %v7167_v4 }
 0x651   : > { %13227 = vmatpush3.xpose.msk.msra.mxu0 %vm432_vm2, %v6899_v9  ;;  %13228 = vmatprep.mubr.msk.f32.mxu0 %vm13867_vm1, %v16522_v30 }
 0x652   : > { %13236 = vmatprep.subr.mxu0 %v16522_v30  ;;  %13233 = vmatprep.mubr.msk.f32.mxu1 %vm13867_vm1, %v16522_v30 }
 0x653   : > { %13241 = vmatprep.subr.mxu1 %v16522_v30 }
 0x654   : > { %13229 = vmatmul.mubr.msk.f32.vlgmr.msra.gmra.mrb[88].mxu0 %vm432_vm2, %v6897_v5 }
 0x655   : > { %13237 = vmatpush3.msra.mxu0 %v7243_v6  ;;  %13238 = vmatprep.mubr.msk.f32.mxu0 %vm13867_vm1, %v16522_v30 }
 0x656   : > { %13246 = vmatprep.subr.mxu0 %v16522_v30 }
 0x6b3   : > { %v15137_v51 = vpop.f32.mrb[58].mxu0 }
 0x6b4   : > { %16555 = vst [vmem:[#allocation18_spill] sm:$0xff] %v15137_v51  ;;  %v13080_v42 = vpop.f32.mrb[59].mxu0 }
 0x6e3   : > { %v15139_v53 = vpop.f32.mrb[54].mxu1 }
 0x6e4   : > { %16556 = vst [vmem:[#allocation22_spill] sm:$0xff] %v15139_v53  ;;  %v13075_v33 = vpop.f32.mrb[55].mxu1 }
 0x6e7   : > { %v15141_v8 = vpop.f32.mrb[56].mxu1 }
 0x6e8   : > { %16557 = vst [vmem:[#allocation19_spill] sm:$0xff] %v15141_v8  ;;  %v13085_v55 = vpop.f32.mrb[57].mxu1 }
 0x6eb   : > { %v15143_v41 = vpop.f32.mrb[58].mxu1 }
 0x6ec   : > { %16558 = vst [vmem:[#allocation20_spill] sm:$0xff] %v15143_v41  ;;  %v15145_v1 = vpop.f32.mrb[60].mxu0  ;;  %v13095_v56 = vpop.f32.mrb[59].mxu1 }
 0x6ed   : > { %16559 = vst [vmem:[#allocation21_spill] sm:$0xff] %v15145_v1  ;;  %v13090_v7 = vpop.f32.mrb[61].mxu0 }
 0x6ef   : > { %v15147_v54 = vpop.f32.mrb[60].mxu1 }
 0x6f0   : > { %16560 = vst [vmem:[#allocation23_spill] sm:$0xff] %v15147_v54  ;;  %v15149_v27 = vpop.f32.mrb[62].mxu0  ;;  %v13105_v36 = vpop.f32.mrb[61].mxu1 }
 0x6f1   : > { %16561 = vst [vmem:[#allocation24_spill] sm:$0xff] %v15149_v27  ;;  %v13100_v2 = vpop.f32.mrb[63].mxu0 }
 0x6f3   : > { %v15151_v35 = vpop.f32.mrb[62].mxu1 }
 0x6f4   : > { %16562 = vst [vmem:[#allocation25_spill] sm:$0xff] %v15151_v35  ;;  %v15153_v32 = vpop.f32.mrb[64].mxu0  ;;  %v13115_v52 = vpop.f32.mrb[63].mxu1 }
 0x6f5   : > { %16563 = vst [vmem:[#allocation26_spill] sm:$0xff] %v15153_v32  ;;  %v13110_v38 = vpop.f32.mrb[65].mxu0 }
 0x6f7   : > { %v15155_v3 = vpop.f32.mrb[64].mxu1 }
 0x6f8   : > { %16564 = vst [vmem:[#allocation27_spill] sm:$0xff] %v15155_v3  ;;  %v15157_v62 = vpop.f32.mrb[66].mxu0  ;;  %v13125_v28 = vpop.f32.mrb[65].mxu1 }
 0x6f9   : > { %16565 = vst [vmem:[#allocation28_spill] sm:$0xff] %v15157_v62  ;;  %v13120_v44 = vpop.f32.mrb[67].mxu0 }
 0x6fb   : > { %v15159_v29 = vpop.f32.mrb[66].mxu1 }
 0x6fc   : > { %16566 = vst [vmem:[#allocation29_spill] sm:$0xff] %v15159_v29  ;;  %v15161_v61 = vpop.f32.mrb[68].mxu0  ;;  %v13135_v46 = vpop.f32.mrb[67].mxu1 }
 0x6fd   : > { %16567 = vst [vmem:[#allocation30_spill] sm:$0xff] %v15161_v61  ;;  %v13130_v45 = vpop.f32.mrb[69].mxu0 }
 0x6ff   : > { %v15163_v10 = vpop.f32.mrb[68].mxu1 }
 0x700   : > { %16568 = vst [vmem:[#allocation31_spill] sm:$0xff] %v15163_v10  ;;  %v15165_v34 = vpop.f32.mrb[70].mxu0  ;;  %v13145_v49 = vpop.f32.mrb[69].mxu1 }
 0x701   : > { %16569 = vst [vmem:[#allocation32_spill] sm:$0xff] %v15165_v34  ;;  %v13140_v37 = vpop.f32.mrb[71].mxu0 }
 0x704   : > { %v15167_v60 = vpop.f32.mrb[72].mxu0 }
 0x705   : > { %16570 = vst [vmem:[#allocation33_spill] sm:$0xff] %v15167_v60  ;;  %v13150_v63 = vpop.f32.mrb[73].mxu0 }
 0x706   : > { %v5800_v39 = vpop.f32.mrb[70].mxu1 }
 0x707   : > { %v15169_v48 = vmul.f32 0.35355338, %v5800_v39  ;;  %v13155_v43 = vpop.f32.mrb[71].mxu1 }
 0x709   : > { %v6990_v50 = vsel %vm432_vm2, %v15169_v48, -inf }
 0x70a   : > { %v5956_v57 = vpop.f32.mrb[72].mxu1  ;;  %6991 = vmax.xlane.f32.xlu0 %v6990_v50 }
 0x70b   : > { %v15173_v59 = vmul.f32 0.35355338, %v5956_v57  ;;  %v5878_v31 = vpop.f32.mrb[74].mxu0  ;;  %v13165_v58 = vpop.f32.mrb[73].mxu1 }
 0x70c   : > { %v15175_v47 = vmul.f32 0.35355338, %v5878_v31  ;;  %v13160_v9 = vpop.f32.mrb[75].mxu0 }
 0x70d   : > { %v6996_v40 = vsel %vm432_vm2, %v15173_v59, -inf }
 0x70e   : > { %6997 = vmax.xlane.f32.xlu0 %v6996_v40  ;;  %v6112_v5 = vpop.f32.mrb[74].mxu1  ;;  %v6993_v0 = vsel %vm432_vm2, %v15175_v47, -inf }
 0x70f   : > { %v15181_v4 = vmul.f32 0.35355338, %v6112_v5  ;;  %6994 = vmax.xlane.f32.xlu1 %v6993_v0  ;;  %v6034_v6 = vpop.f32.mrb[76].mxu0  ;;  %v13175_v42 = vpop.f32.mrb[75].mxu1 }
 0x710   : > { %v15183_v33 = vmul.f32 0.35355338, %v6034_v6  ;;  %v13170_v55 = vpop.f32.mrb[77].mxu0 }
 0x711   : > { %v7002_v56 = vsel %vm432_vm2, %v15181_v4, -inf }
 0x712   : > { %v6268_v7 = vpop.f32.mrb[76].mxu1  ;;  %v6999_v36 = vsel %vm432_vm2, %v15183_v33, -inf }
 0x713   : > { %v15189_v2 = vmul.f32 0.35355338, %v6268_v7  ;;  %7003 = vmax.xlane.f32.xlu1 %v7002_v56  ;;  %7000 = vmax.xlane.f32.xlu0 %v6999_v36  ;;  %v6190_v52 = vpop.f32.mrb[78].mxu0  ;;  %v13185_v38 = vpop.f32.mrb[77].mxu1 }
 0x714   : > { %v15191_v28 = vmul.f32 0.35355338, %v6190_v52  ;;  %v13180_v44 = vpop.f32.mrb[79].mxu0 }
 0x715   : > { %v7008_v46 = vsel %vm432_vm2, %v15189_v2, -inf }
 0x716   : > { %v6424_v45 = vpop.f32.mrb[78].mxu1  ;;  %v7005_v49 = vsel %vm432_vm2, %v15191_v28, -inf }
 0x717   : > { %v15197_v37 = vmul.f32 0.35355338, %v6424_v45  ;;  %7009 = vmax.xlane.f32.xlu1 %v7008_v46  ;;  %7006 = vmax.xlane.f32.xlu0 %v7005_v49  ;;  %v6346_v63 = vpop.f32.mrb[80].mxu0  ;;  %v13195_v39 = vpop.f32.mrb[79].mxu1 }
 0x718   : > { %v15199_v43 = vmul.f32 0.35355338, %v6346_v63  ;;  %v13190_v50 = vpop.f32.mrb[81].mxu0 }
 0x719   : > { %v7014_v57 = vsel %vm432_vm2, %v15197_v37, -inf }
 0x71a   : > { %v6580_v31 = vpop.f32.mrb[80].mxu1  ;;  %v7011_v58 = vsel %vm432_vm2, %v15199_v43, -inf }
 0x71b   : > { %v15205_v9 = vmul.f32 0.35355338, %v6580_v31  ;;  %7015 = vmax.xlane.f32.xlu1 %v7014_v57  ;;  %7012 = vmax.xlane.f32.xlu0 %v7011_v58  ;;  %v6502_v40 = vpop.f32.mrb[82].mxu0  ;;  %v13205_v5 = vpop.f32.mrb[81].mxu1 }
 0x71c   : > { %v15207_v0 = vmul.f32 0.35355338, %v6502_v40  ;;  %v13200_v6 = vpop.f32.mrb[83].mxu0 }
 0x71d   : > { %v7020_v42 = vsel %vm432_vm2, %v15205_v9, -inf }
 0x71e   : > { %v6736_v55 = vpop.f32.mrb[82].mxu1  ;;  %v7017_v56 = vsel %vm432_vm2, %v15207_v0, -inf }
 0x71f   : > { %v15213_v7 = vmul.f32 0.35355338, %v6736_v55  ;;  %7021 = vmax.xlane.f32.xlu1 %v7020_v42  ;;  %7018 = vmax.xlane.f32.xlu0 %v7017_v56  ;;  %v6658_v36 = vpop.f32.mrb[84].mxu0  ;;  %v13215_v52 = vpop.f32.mrb[83].mxu1 }
 0x720   : > { %v15215_v38 = vmul.f32 0.35355338, %v6658_v36  ;;  %v13210_v44 = vpop.f32.mrb[85].mxu0  ;;  %v15237_v56 = vpop.permute.xlu1 %7318 }
 0x721   : > { %v7026_v46 = vsel %vm432_vm2, %v15213_v7, -inf  ;;  %v15241_v52 = vpop.permute.xlu0 %7394 }
 0x722   : > { %v6892_v45 = vpop.f32.mrb[84].mxu1  ;;  %v7023_v49 = vsel %vm432_vm2, %v15215_v38, -inf }
 0x723   : > { %v15221_v63 = vmul.f32 0.35355338, %v6892_v45  ;;  %7027 = vmax.xlane.f32.xlu1 %v7026_v46  ;;  %7024 = vmax.xlane.f32.xlu0 %v7023_v49  ;;  %v6814_v39 = vpop.f32.mrb[86].mxu0  ;;  %v13225_v50 = vpop.f32.mrb[85].mxu1 }
 0x724   : > { %v15223_v57 = vmul.f32 0.35355338, %v6814_v39  ;;  %v13220_v31 = vpop.f32.mrb[87].mxu0  ;;  %v15239_v36 = vpop.permute.xlu1 %7470 }
 0x725   : > { %v7032_v58 = vsel %vm432_vm2, %v15221_v63, -inf  ;;  %v15245_v46 = vpop.permute.xlu0 %7622 }
 0x726   : > { %v7029_v40 = vsel %vm432_vm2, %v15223_v57, -inf }
 0x727   : > { %7033 = vmax.xlane.f32.xlu1 %v7032_v58  ;;  %7030 = vmax.xlane.f32.xlu0 %v7029_v40  ;;  %v6970_v5 = vpop.f32.mrb[88].mxu0 }
 0x728   : > { %v15229_v6 = vmul.f32 0.35355338, %v6970_v5  ;;  %v13230_v42 = vpop.f32.mrb[89].mxu0  ;;  %v15243_v44 = vpop.permute.xlu1 %7546 }
 0x729   : > { %v15249_v49 = vpop.permute.xlu0 %7774 }
 0x72a   : > { %v7035_v55 = vsel %vm432_vm2, %v15229_v6, -inf }
 0x72b   : > { %7036 = vmax.xlane.f32.xlu0 %v7035_v55 }
 0x72c   : > { %v15247_v45 = vpop.permute.xlu1 %7698 }
 0x72d   : > { %v15253_v50 = vpop.permute.xlu0 %7926 }
 0x730   : > { %v15251_v39 = vpop.permute.xlu1 %7850 }
 0x731   : > { %v15257_v58 = vpop.permute.xlu0 %8078 }
 0x734   : > { %v15255_v31 = vpop.permute.xlu1 %8002 }
 0x735   : > { %v15261_v5 = vpop.permute.xlu0 %8230 }
 0x738   : > { %8930 = vrot.lane.b32.xlu1 %v13962_v17, %s13876_s12  ;;  %v15259_v40 = vpop.permute.xlu1 %8154 }
 0x739   : > { %v15265_v55 = vpop.permute.xlu0 %8384 }
 0x73c   : > { %v15263_v42 = vpop.permute.xlu1 %8306 }
 0x73d   : > { %v15269_v29 = vpop.permute.xlu0 %8382 }
 0x740   : > { %v15267_v10 = vpop.permute.xlu1 %8462 }
 0x741   : > { %8852 = vrot.lane.b32.xlu0 %v13958_v15, %s13876_s12  ;;  %16571 = vst [vmem:[#allocation34_spill] sm:$0xff] %v15267_v10  ;;  %v15273_v34 = vpop.permute.xlu0 %8540 }
 0x744   : > { %v15271_v60 = vpop.permute.xlu1 %8460 }
 0x745   : > { %16572 = vst [vmem:[#allocation35_spill] sm:$0xff] %v15271_v60  ;;  %v15277_v53 = vpop.permute.xlu0 %8538 }
 0x746   : > { %16574 = vst [vmem:[#allocation37_spill] sm:$0xff] %v15277_v53 }
 0x748   : > { %v15275_v8 = vpop.permute.xlu1 %8618 }
 0x749   : > { %16573 = vst [vmem:[#allocation36_spill] sm:$0xff] %v15275_v8  ;;  %v15281_v51 = vpop.permute.xlu0 %8696 }
 0x74a   : > { %16576 = vst [vmem:[#allocation39_spill] sm:$0xff] %v15281_v51 }
 0x74c   : > { %v15279_v1 = vpop.permute.xlu1 %8616 }
 0x74d   : > { %16575 = vst [vmem:[#allocation38_spill] sm:$0xff] %v15279_v1  ;;  %v15285_v35 = vpop.permute.xlu0 %8694 }
 0x74e   : > { %16578 = vst [vmem:[#allocation41_spill] sm:$0xff] %v15285_v35 }
 0x750   : > { %v15283_v3 = vpop.permute.xlu1 %8774 }
 0x751   : > { %16577 = vst [vmem:[#allocation40_spill] sm:$0xff] %v15283_v3 }
 0x754   : > { %v15287_v62 = vpop.permute.xlu1 %8772 }
 0x755   : > { %16579 = vst [vmem:[#allocation42_spill] sm:$0xff] %v15287_v62 }
 0x797   : > { %v6992_v61 = vpop.xlane.xlu0 %6991 }
 0x798   : > { %v7038_v54 = vsub.f32 %v15169_v48, %v6992_v61 }
 0x79a   : > { %v7054_v41 = vmul.f32 1.442695, %v7038_v54 }
 0x79b   : > { %v6998_v32 = vpop.xlane.xlu0 %6997 }
 0x79c   : > { %13662 = vpow2.f32 %v7054_v41  ;;  %v7040_v27 = vsub.f32 %v15173_v59, %v6998_v32  ;;  %v6995_v8 = vpop.xlane.xlu1 %6994 }
 0x79d   : > { %v7039_v60 = vsub.f32 %v15175_v47, %v6995_v8 }
 0x79e   : > { %v7058_v1 = vmul.f32 1.442695, %v7040_v27 }
 0x79f   : > { %v7056_v53 = vmul.f32 1.442695, %v7039_v60 }
 0x7a0   : > { %13664 = vpow2.f32 %v7058_v1  ;;  %v7004_v51 = vpop.xlane.xlu1 %7003  ;;  %v7001_v3 = vpop.xlane.xlu0 %7000 }
 0x7a1   : > { %13666 = vpow2.f32 %v7056_v53  ;;  %v7042_v35 = vsub.f32 %v15181_v4, %v7004_v51  ;;  %v7041_v62 = vsub.f32 %v15183_v33, %v7001_v3 }
 0x7a3   : > { %v7062_v10 = vmul.f32 1.442695, %v7042_v35  ;;  %v7060_v61 = vmul.f32 1.442695, %v7041_v62 }
 0x7a4   : > { %v7010_v54 = vpop.xlane.xlu1 %7009  ;;  %v7007_v48 = vpop.xlane.xlu0 %7006 }
 0x7a5   : > { %13668 = vpow2.f32 %v7062_v10  ;;  %v7044_v41 = vsub.f32 %v15189_v2, %v7010_v54  ;;  %v7043_v32 = vsub.f32 %v15191_v28, %v7007_v48 }
 0x7a6   : > { %v15296_v8 = vpop.eup %13662  ;;  %13670 = vpow2.f32 %v7060_v61 }
 0x7a7   : > { %v7066_v1 = vmul.f32 1.442695, %v7044_v41  ;;  %v7064_v27 = vmul.f32 1.442695, %v7043_v32  ;;  %v7086_v53 = vsel %vm432_vm2, %v15296_v8, 0.0 }
 0x7a8   : > { %v7016_v51 = vpop.xlane.xlu1 %7015  ;;  %v7013_v60 = vpop.xlane.xlu0 %7012  ;;  %7087 = vadd.xlane.f32.xlu1 %v7086_v53 }
 0x7a9   : > { %13672 = vpow2.f32 %v7066_v1  ;;  %v7046_v35 = vsub.f32 %v15197_v37, %v7016_v51  ;;  %v7045_v3 = vsub.f32 %v15199_v43, %v7013_v60 }
 0x7aa   : > { %v15302_v62 = vpop.eup %13664  ;;  %13674 = vpow2.f32 %v7064_v27 }
 0x7ab   : > { %v15304_v10 = vpop.eup %13666  ;;  %v7070_v59 = vmul.f32 1.442695, %v7046_v35  ;;  %v7068_v47 = vmul.f32 1.442695, %v7045_v3  ;;  %v7092_v4 = vsel %vm432_vm2, %v15302_v62, 0.0 }
 0x7ac   : > { %v7022_v33 = vpop.xlane.xlu1 %7021  ;;  %v7019_v2 = vpop.xlane.xlu0 %7018  ;;  %7093 = vadd.xlane.f32.xlu1 %v7092_v4  ;;  %v7089_v28 = vsel %vm432_vm2, %v15304_v10, 0.0 }
 0x7ad   : > { %13676 = vpow2.f32 %v7070_v59  ;;  %v7048_v37 = vsub.f32 %v15205_v9, %v7022_v33  ;;  %v7047_v43 = vsub.f32 %v15207_v0, %v7019_v2  ;;  %7090 = vadd.xlane.f32.xlu0 %v7089_v28 }
 0x7ae   : > { %13678 = vpow2.f32 %v7068_v47 }
 0x7af   : > { %v15312_v61 = vpop.eup %13668  ;;  %v7074_v54 = vmul.f32 1.442695, %v7048_v37  ;;  %v7072_v48 = vmul.f32 1.442695, %v7047_v43 }
 0x7b0   : > { %v15314_v41 = vpop.eup %13670  ;;  %v7028_v32 = vpop.xlane.xlu1 %7027  ;;  %v7098_v27 = vsel %vm432_vm2, %v15312_v61, 0.0 }
 0x7b1   : > { %v7025_v1 = vpop.xlane.xlu0 %7024  ;;  %13680 = vpow2.f32 %v7074_v54  ;;  %v7050_v53 = vsub.f32 %v15213_v7, %v7028_v32  ;;  %7099 = vadd.xlane.f32.xlu1 %v7098_v27  ;;  %v7095_v0 = vsel %vm432_vm2, %v15314_v41, 0.0 }
 0x7b2   : > { %v7049_v9 = vsub.f32 %v15215_v38, %v7025_v1  ;;  %13682 = vpow2.f32 %v7072_v48  ;;  %7096 = vadd.xlane.f32.xlu0 %v7095_v0 }
 0x7b3   : > { %v15322_v51 = vpop.eup %13672  ;;  %v7078_v60 = vmul.f32 1.442695, %v7050_v53 }
 0x7b4   : > { %v7076_v35 = vmul.f32 1.442695, %v7049_v9  ;;  %v15324_v3 = vpop.eup %13674  ;;  %v7104_v47 = vsel %vm432_vm2, %v15322_v51, 0.0 }
 0x7b5   : > { %v7031_v59 = vpop.xlane.xlu0 %7030  ;;  %13684 = vpow2.f32 %v7078_v60  ;;  %7105 = vadd.xlane.f32.xlu1 %v7104_v47  ;;  %v7101_v38 = vsel %vm432_vm2, %v15324_v3, 0.0  ;;  %v7034_v60 = vpop.xlane.xlu1 %7033 }
 0x7b6   : > { %v7051_v7 = vsub.f32 %v15223_v57, %v7031_v59  ;;  %13686 = vpow2.f32 %v7076_v35  ;;  %7102 = vadd.xlane.f32.xlu0 %v7101_v38  ;;  %v7052_v35 = vsub.f32 %v15221_v63, %v7034_v60 }
 0x7b7   : > { %v15331_v4 = vpop.eup %13676 }
 0x7b8   : > { %v7080_v33 = vmul.f32 1.442695, %v7051_v7  ;;  %v15333_v2 = vpop.eup %13678  ;;  %v7110_v28 = vsel %vm432_vm2, %v15331_v4, 0.0  ;;  %v7082_v47 = vmul.f32 1.442695, %v7052_v35 }
 0x7b9   : > { %7111 = vadd.xlane.f32.xlu1 %v7110_v28  ;;  %v7107_v37 = vsel %vm432_vm2, %v15333_v2, 0.0  ;;  %v7037_v59 = vpop.xlane.xlu0 %7036  ;;  %v15411_v63 = vpop.permute.xlu1 %8930 }
 0x7ba   : > { %13688 = vpow2.f32 %v7080_v33  ;;  %7108 = vadd.xlane.f32.xlu0 %v7107_v37  ;;  %v7053_v7 = vsub.f32 %v15229_v6, %v7037_v59 }
 0x7bb   : > { %v15339_v57 = vpop.eup %13680  ;;  %13690 = vpow2.f32 %v7082_v47 }
 0x7bc   : > { %v15341_v43 = vpop.eup %13682  ;;  %v7116_v54 = vsel %vm432_vm2, %v15339_v57, 0.0  ;;  %v7084_v38 = vmul.f32 1.442695, %v7053_v7 }
 0x7bd   : > { %7117 = vadd.xlane.f32.xlu1 %v7116_v54  ;;  %v7113_v48 = vsel %vm432_vm2, %v15341_v43, 0.0  ;;  %v15419_v6 = vpop.permute.xlu0 %8852 }
 0x7be   : > { %7114 = vadd.xlane.f32.xlu0 %v7113_v48  ;;  %13692 = vpow2.f32 %v7084_v38 }
 0x7bf   : > { %v15347_v32 = vpop.eup %13684 }
 0x7c0   : > { %v15349_v1 = vpop.eup %13686  ;;  %v7122_v27 = vsel %vm432_vm2, %v15347_v32, 0.0 }
 0x7c1   : > { %7123 = vadd.xlane.f32.xlu1 %v7122_v27  ;;  %v7119_v53 = vsel %vm432_vm2, %v15349_v1, 0.0 }
 0x7c2   : > { %7120 = vadd.xlane.f32.xlu0 %v7119_v53 }
 0x7c4   : > { %v15355_v9 = vpop.eup %13688 }
 0x7c5   : > { %v7125_v0 = vsel %vm432_vm2, %v15355_v9, 0.0  ;;  %v15365_v33 = vpop.eup %13690 }
 0x7c6   : > { %7126 = vadd.xlane.f32.xlu0 %v7125_v0  ;;  %v7128_v28 = vsel %vm432_vm2, %v15365_v33, 0.0 }
 0x7c8   : > { %v15369_v37 = vpop.eup %13692 }
 0x7c9   : > { %v7131_v54 = vsel %vm432_vm2, %v15369_v37, 0.0 }
 0x7d2   : > { %8928 = vrot.lane.b32.xlu1 %v13962_v17, %s13877_s13 }
 0x7dc   : > { %8850 = vrot.lane.b32.xlu0 %v13958_v15, %s13877_s13 }
 0x7f6   : > { %7129 = vadd.xlane.f32.xlu1 %v7128_v28 }
 0x7fb   : > { %7132 = vadd.xlane.f32.xlu0 %v7131_v54 }
 0x807   : > { %9086 = vrot.lane.b32.xlu1 %v13976_v22, %s13876_s12 }
 0x80b   : > { %9084 = vrot.lane.b32.xlu1 %v13976_v22, %s13877_s13 }
 0x80f   : > { %9242 = vrot.lane.b32.xlu1 %v13974_v21, %s13876_s12 }
 0x811   : > { %9008 = vrot.lane.b32.xlu0 %v13972_v20, %s13876_s12 }
 0x813   : > { %9240 = vrot.lane.b32.xlu1 %v13974_v21, %s13877_s13 }
 0x815   : > { %9006 = vrot.lane.b32.xlu0 %v13972_v20, %s13877_s13 }
 0x817   : > { %9398 = vrot.lane.b32.xlu1 %v13988_v26, %s13876_s12 }
 0x819   : > { %9164 = vrot.lane.b32.xlu0 %v13970_v19, %s13876_s12 }
 0x81b   : > { %9396 = vrot.lane.b32.xlu1 %v13988_v26, %s13877_s13 }
 0x81d   : > { %9162 = vrot.lane.b32.xlu0 %v13970_v19, %s13877_s13 }
 0x81f   : > { %9554 = vrot.lane.b32.xlu1 %v13986_v25, %s13876_s12 }
 0x821   : > { %9320 = vrot.lane.b32.xlu0 %v13984_v24, %s13876_s12 }
 0x823   : > { %9552 = vrot.lane.b32.xlu1 %v13986_v25, %s13877_s13 }
 0x825   : > { %9318 = vrot.lane.b32.xlu0 %v13984_v24, %s13877_s13 }
 0x827   : > { %9822 = vrot.lane.b32.xlu1 %v13948_v12, %s13878_s14 }
 0x829   : > { %9476 = vrot.lane.b32.xlu0 %v13982_v23, %s13876_s12 }
 0x82b   : > { %9974 = vrot.lane.b32.xlu1 %v13946_v11, %s13878_s14 }
 0x82d   : > { %9474 = vrot.lane.b32.xlu0 %v13982_v23, %s13877_s13 }
 0x82f   : > { %10126 = vrot.lane.b32.xlu1 %v13960_v16, %s13878_s14 }
 0x831   : > { %9898 = vrot.lane.b32.xlu0 %v13953_v14, %s13878_s14 }
 0x833   : > { %10202 = vrot.lane.b32.xlu1 %v13964_v18, %s13878_s14 }
 0x835   : > { %10050 = vrot.lane.b32.xlu0 %v13950_v13, %s13878_s14  ;;  %v7088_v12 = vpop.xlane.xlu1 %7087 }
 0x836   : > { %13694 = vrcp.f32 %v7088_v12 }
 0x837   : > { %10354 = vrot.lane.b32.xlu1 %v13962_v17, %s13878_s14 }
 0x839   : > { %10278 = vrot.lane.b32.xlu0 %v13958_v15, %s13878_s14  ;;  %v7094_v11 = vpop.xlane.xlu1 %7093 }
 0x83a   : > { %13696 = vrcp.f32 %v7094_v11  ;;  %v7091_v16 = vpop.xlane.xlu0 %7090 }
 0x83b   : > { %13698 = vrcp.f32 %v7091_v16  ;;  %10506 = vrot.lane.b32.xlu1 %v13976_v22, %s13878_s14 }
 0x83d   : > { %10430 = vrot.lane.b32.xlu0 %v13972_v20, %s13878_s14 }
 0x83e   : > { %v7100_v13 = vpop.xlane.xlu1 %7099 }
 0x83f   : > { %13700 = vrcp.f32 %v7100_v13  ;;  %v7097_v14 = vpop.xlane.xlu0 %7096 }
 0x840   : > { %v13695_v18 = vpop.eup %13694  ;;  %13702 = vrcp.f32 %v7097_v14 }
 0x841   : > { %v7150_v17 = vmul.f32 %v13695_v18, %v15296_v8 }
 0x842   : > { %v7106_v48 = vpop.xlane.xlu1 %7105 }
 0x843   : > { %13704 = vrcp.f32 %v7106_v48  ;;  %v7103_v15 = vpop.xlane.xlu0 %7102  ;;  %13234 = vmatmul.mubr.msk.f32.vlgmr.msra.gmra.mrb[86].mxu1 %vm432_vm2, %v7150_v17  ;;  %v16582_v48 = vld [vmem:[#allocation35_spill] sm:$0xff] }
 0x844   : > { %v13697_v27 = vpop.eup %13696  ;;  %13706 = vrcp.f32 %v7103_v15  ;;  %13242 = vmatpush3.msra.mxu1 %v15237_v56  ;;  %13243 = vmatprep.mubr.msk.f32.mxu1 %vm13867_vm1, %v16522_v30  ;;  %v16584_v15 = vld [vmem:[#allocation36_spill] sm:$0xff] }
 0x845   : > { %v13699_v20 = vpop.eup %13698  ;;  %13251 = vmatprep.subr.mxu1 %v16522_v30  ;;  %v7152_v22 = vmul.f32 %v13697_v27, %v15302_v62  ;;  %v16585_v27 = vld [vmem:[#allocation41_spill] sm:$0xff] }
 0x846   : > { %v7112_v53 = vpop.xlane.xlu1 %7111  ;;  %v7151_v8 = vmul.f32 %v13699_v20, %v15304_v10 }
 0x847   : > { %13708 = vrcp.f32 %v7112_v53  ;;  %v7109_v0 = vpop.xlane.xlu0 %7108  ;;  %13244 = vmatmul.mubr.msk.f32.vlgmr.msra.gmra.mrb[88].mxu1 %vm432_vm2, %v7152_v22  ;;  %v16586_v22 = vld [vmem:[#allocation38_spill] sm:$0xff] }
 0x848   : > { %13710 = vrcp.f32 %v7109_v0  ;;  %13239 = vmatmul.mubr.msk.f32.vlgmr.msra.gmra.mrb[90].mxu0 %vm432_vm2, %v7151_v8  ;;  %13252 = vmatpush3.msra.mxu1 %v15239_v36  ;;  %v16587_v8 = vld [vmem:[#allocation40_spill] sm:$0xff]  ;;  %v16588_v0 = vld [vmem:[#allocation42_spill] sm:$0xff] }
 0x849   : > { %v13701_v56 = vpop.eup %13700  ;;  %13247 = vmatpush3.msra.mxu0 %v15241_v52  ;;  %13248 = vmatprep.mubr.msk.f32.mxu0 %vm13867_vm1, %v16522_v30 }
 0x84a   : > { %v13703_v60 = vpop.eup %13702  ;;  %v7118_v62 = vpop.xlane.xlu1 %7117  ;;  %13253 = vmatprep.mubr.msk.f32.mxu1 %vm13867_vm1, %v16522_v30  ;;  %13256 = vmatprep.subr.mxu0 %v16522_v30  ;;  %v7154_v10 = vmul.f32 %v13701_v56, %v15312_v61 }
 0x84b   : > { %13712 = vrcp.f32 %v7118_v62  ;;  %v7115_v35 = vpop.xlane.xlu0 %7114  ;;  %13261 = vmatprep.subr.mxu1 %v16522_v30  ;;  %v7153_v36 = vmul.f32 %v13703_v60, %v15314_v41 }
 0x84c   : > { %13714 = vrcp.f32 %v7115_v35  ;;  %13254 = vmatmul.mubr.msk.f32.vlgmr.msra.gmra.mrb[90].mxu1 %vm432_vm2, %v7154_v10 }
 0x84d   : > { %v13705_v52 = vpop.eup %13704  ;;  %13249 = vmatmul.mubr.msk.f32.vlgmr.msra.gmra.mrb[92].mxu0 %vm432_vm2, %v7153_v36  ;;  %13262 = vmatpush3.msra.mxu1 %v15245_v46 }
 0x84e   : > { %v13707_v59 = vpop.eup %13706  ;;  %13257 = vmatpush3.msra.mxu0 %v15243_v44  ;;  %v7124_v47 = vpop.xlane.xlu1 %7123  ;;  %13258 = vmatprep.mubr.msk.f32.mxu0 %vm13867_vm1, %v16522_v30  ;;  %v7156_v61 = vmul.f32 %v13705_v52, %v15322_v51 }
 0x84f   : > { %13716 = vrcp.f32 %v7124_v47  ;;  %v7121_v7 = vpop.xlane.xlu0 %7120  ;;  %13263 = vmatprep.mubr.msk.f32.mxu1 %vm13867_vm1, %v16522_v30  ;;  %13266 = vmatprep.subr.mxu0 %v16522_v30  ;;  %v7155_v41 = vmul.f32 %v13707_v59, %v15324_v3 }
 0x850   : > { %13718 = vrcp.f32 %v7121_v7  ;;  %13271 = vmatprep.subr.mxu1 %v16522_v30  ;;  %13264 = vmatmul.mubr.msk.f32.vlgmr.msra.gmra.mrb[92].mxu1 %vm432_vm2, %v7156_v61 }
 0x851   : > { %v13709_v44 = vpop.eup %13708  ;;  %13259 = vmatmul.mubr.msk.f32.vlgmr.msra.gmra.mrb[94].mxu0 %vm432_vm2, %v7155_v41  ;;  %13272 = vmatpush3.msra.mxu1 %v15249_v49 }
 0x852   : > { %v13711_v46 = vpop.eup %13710  ;;  %13267 = vmatpush3.msra.mxu0 %v15247_v45  ;;  %13268 = vmatprep.mubr.msk.f32.mxu0 %vm13867_vm1, %v16522_v30  ;;  %v7158_v51 = vmul.f32 %v13709_v44, %v15331_v4 }
 0x853   : > { %v7127_v38 = vpop.xlane.xlu0 %7126  ;;  %13273 = vmatprep.mubr.msk.f32.mxu1 %vm13867_vm1, %v16522_v30  ;;  %13276 = vmatprep.subr.mxu0 %v16522_v30  ;;  %v7157_v3 = vmul.f32 %v13711_v46, %v15333_v2 }
 0x854   : > { %13720 = vrcp.f32 %v7127_v38  ;;  %13281 = vmatprep.subr.mxu1 %v16522_v30  ;;  %13274 = vmatmul.mubr.msk.f32.vlgmr.msra.gmra.mrb[94].mxu1 %vm432_vm2, %v7158_v51 }
 0x855   : > { %v13713_v49 = vpop.eup %13712  ;;  %13269 = vmatmul.mubr.msk.f32.vlgmr.msra.gmra.mrb[96].mxu0 %vm432_vm2, %v7157_v3  ;;  %13282 = vmatpush3.msra.mxu1 %v15253_v50 }
 0x856   : > { %v13715_v45 = vpop.eup %13714  ;;  %13277 = vmatpush3.msra.mxu0 %v15251_v39  ;;  %13278 = vmatprep.mubr.msk.f32.mxu0 %vm13867_vm1, %v16522_v30  ;;  %v7160_v4 = vmul.f32 %v13713_v49, %v15339_v57 }
 0x857   : > { %13283 = vmatprep.mubr.msk.f32.mxu1 %vm13867_vm1, %v16522_v30  ;;  %13286 = vmatprep.subr.mxu0 %v16522_v30  ;;  %v7159_v2 = vmul.f32 %v13715_v45, %v15341_v43 }
 0x858   : > { %13291 = vmatprep.subr.mxu1 %v16522_v30  ;;  %13284 = vmatmul.mubr.msk.f32.vlgmr.msra.gmra.mrb[96].mxu1 %vm432_vm2, %v7160_v4 }
 0x859   : > { %v13717_v50 = vpop.eup %13716  ;;  %13279 = vmatmul.mubr.msk.f32.vlgmr.msra.gmra.mrb[98].mxu0 %vm432_vm2, %v7159_v2  ;;  %13292 = vmatpush3.msra.mxu1 %v15257_v58 }
 0x85a   : > { %v13719_v39 = vpop.eup %13718  ;;  %13287 = vmatpush3.msra.mxu0 %v15255_v31  ;;  %13288 = vmatprep.mubr.msk.f32.mxu0 %vm13867_vm1, %v16522_v30  ;;  %v7162_v57 = vmul.f32 %v13717_v50, %v15347_v32  ;;  %v8851_v32 = vpop.permute.xlu0 %8850 }
 0x85b   : > { %13293 = vmatprep.mubr.msk.f32.mxu1 %vm13867_vm1, %v16522_v30  ;;  %13296 = vmatprep.subr.mxu0 %v16522_v30  ;;  %v7161_v43 = vmul.f32 %v13719_v39, %v15349_v1 }
 0x85c   : > { %13301 = vmatprep.subr.mxu1 %v16522_v30  ;;  %13294 = vmatmul.mubr.msk.f32.vlgmr.msra.gmra.mrb[98].mxu1 %vm432_vm2, %v7162_v57 }
 0x85d   : > { %13289 = vmatmul.mubr.msk.f32.vlgmr.msra.gmra.mrb[100].mxu0 %vm432_vm2, %v7161_v43  ;;  %13302 = vmatpush3.msra.mxu1 %v15261_v5 }
 0x85e   : > { %v13721_v31 = vpop.eup %13720  ;;  %13297 = vmatpush3.msra.mxu0 %v15259_v40  ;;  %13298 = vmatprep.mubr.msk.f32.mxu0 %vm13867_vm1, %v16522_v30  ;;  %v8929_v40 = vpop.permute.xlu1 %8928 }
 0x85f   : > { %13306 = vmatprep.subr.mxu0 %v16522_v30  ;;  %v7163_v58 = vmul.f32 %v13721_v31, %v15355_v9  ;;  %13303 = vmatprep.mubr.msk.f32.mxu1 %vm13867_vm1, %v16522_v30 }
 0x860   : > { %13311 = vmatprep.subr.mxu1 %v16522_v30 }
 0x861   : > { %13299 = vmatmul.mubr.msk.f32.vlgmr.msra.gmra.mrb[102].mxu0 %vm432_vm2, %v7163_v58 }
 0x862   : > { %13307 = vmatpush3.msra.mxu0 %v15263_v42  ;;  %13308 = vmatprep.mubr.msk.f32.mxu0 %vm13867_vm1, %v16522_v30 }
 0x863   : > { %13316 = vmatprep.subr.mxu0 %v16522_v30 }
 0x883   : > { %v7130_v5 = vpop.xlane.xlu1 %7129 }
 0x884   : > { %13722 = vrcp.f32 %v7130_v5 }
 0x887   : > { %v9087_v1 = vpop.permute.xlu1 %9086 }
 0x888   : > { %v7133_v9 = vpop.xlane.xlu0 %7132 }
 0x889   : > { %13724 = vrcp.f32 %v7133_v9 }
 0x88b   : > { %v9085_v28 = vpop.permute.xlu1 %9084 }
 0x88c   : > { %v9009_v54 = vpop.permute.xlu0 %9008 }
 0x88e   : > { %v13723_v12 = vpop.eup %13722 }
 0x88f   : > { %v9243_v11 = vpop.permute.xlu1 %9242  ;;  %v7164_v16 = vmul.f32 %v13723_v12, %v15365_v33  ;;  %v16580_v33 = vld [vmem:[#allocation34_spill] sm:$0xff] }
 0x890   : > { %v9007_v13 = vpop.permute.xlu0 %9006 }
 0x891   : > { %13304 = vmatmul.mubr.msk.f32.vlgmr.msra.gmra.mrb[100].mxu1 %vm432_vm2, %v7164_v16 }
 0x892   : > { %13312 = vmatpush3.xpose.msk.msra.mxu1 %vm432_vm2, %v15265_v55  ;;  %13313 = vmatprep.mubr.msk.f32.mxu1 %vm13867_vm1, %v16522_v30 }
 0x893   : > { %v13725_v42 = vpop.eup %13724  ;;  %v9241_v14 = vpop.permute.xlu1 %9240  ;;  %13321 = vmatprep.subr.mxu1 %v16522_v30 }
 0x894   : > { %v9165_v18 = vpop.permute.xlu0 %9164  ;;  %v7165_v17 = vmul.f32 %v13725_v42, %v15369_v37 }
 0x895   : > { %13314 = vmatmul.mubr.msk.f32.vlgmr.msra.gmra.mrb[102].mxu1 %vm432_vm2, %v15269_v29  ;;  %v16581_v29 = vld [vmem:[#allocation37_spill] sm:$0xff] }
 0x896   : > { %13309 = vmatmul.mubr.msk.f32.vlgmr.msra.gmra.mrb[104].mxu0 %vm432_vm2, %v7165_v17  ;;  %13322 = vmatpush3.xpose.msk.msra.mxu1 %vm432_vm2, %v15273_v34  ;;  %v16583_v34 = vld [vmem:[#allocation39_spill] sm:$0xff] }
 0x897   : > { %13317 = vmatpush3.xpose.msk.msra.mxu0 %vm432_vm2, %v16580_v33  ;;  %13318 = vmatprep.mubr.msk.f32.mxu0 %vm13867_vm1, %v16522_v30  ;;  %v9399_v37 = vpop.permute.xlu1 %9398 }
 0x898   : > { %v9163_v55 = vpop.permute.xlu0 %9162  ;;  %13323 = vmatprep.mubr.msk.f32.mxu1 %vm13867_vm1, %v16522_v30  ;;  %13326 = vmatprep.subr.mxu0 %v16522_v30 }
 0x899   : > { %13331 = vmatprep.subr.mxu1 %v16522_v30  ;;  %13324 = vmatmul.mubr.msk.f32.vlgmr.msra.gmra.mrb[104].mxu1 %vm432_vm2, %v16581_v29 }
 0x89a   : > { %13319 = vmatmul.mubr.msk.f32.vlgmr.msra.gmra.mrb[106].mxu0 %vm432_vm2, %v16582_v48  ;;  %13332 = vmatpush3.xpose.msk.msra.mxu1 %vm432_vm2, %v16583_v34 }
 0x89b   : > { %13327 = vmatpush3.xpose.msk.msra.mxu0 %vm432_vm2, %v16584_v15  ;;  %13328 = vmatprep.mubr.msk.f32.mxu0 %vm13867_vm1, %v16522_v30  ;;  %v9397_v53 = vpop.permute.xlu1 %9396 }
 0x89c   : > { %13333 = vmatprep.mubr.msk.f32.mxu1 %vm13867_vm1, %v16522_v30  ;;  %13336 = vmatprep.subr.mxu0 %v16522_v30  ;;  %v9321_v20 = vpop.permute.xlu0 %9320 }
 0x89d   : > { %13341 = vmatprep.subr.mxu1 %v16522_v30  ;;  %13334 = vmatmul.mubr.msk.f32.vlgmr.msra.gmra.mrb[106].mxu1 %vm432_vm2, %v16585_v27 }
 0x89e   : > { %13329 = vmatmul.mubr.msk.f32.vlgmr.msra.gmra.mrb[108].mxu0 %vm432_vm2, %v16586_v22  ;;  %13342 = vmatpush3.xpose.msk.msra.mxu1 %vm432_vm2, %v15419_v6 }
 0x89f   : > { %13337 = vmatpush3.xpose.msk.msra.mxu0 %vm432_vm2, %v16587_v8  ;;  %13338 = vmatprep.mubr.msk.f32.mxu0 %vm13867_vm1, %v16522_v30  ;;  %v9555_v56 = vpop.permute.xlu1 %9554 }
 0x8a0   : > { %13343 = vmatprep.mubr.msk.f32.mxu1 %vm13867_vm1, %v16522_v30  ;;  %13346 = vmatprep.subr.mxu0 %v16522_v30  ;;  %v9319_v6 = vpop.permute.xlu0 %9318 }
 0x8a1   : > { %13351 = vmatprep.subr.mxu1 %v16522_v30  ;;  %13344 = vmatmul.mubr.msk.f32.vlgmr.msra.gmra.mrb[108].mxu1 %vm432_vm2, %v8851_v32 }
 0x8a2   : > { %13339 = vmatmul.mubr.msk.f32.vlgmr.msra.gmra.mrb[110].mxu0 %vm432_vm2, %v16588_v0  ;;  %13352 = vmatpush3.xpose.msk.msra.mxu1 %vm432_vm2, %v9009_v54 }
 0x8a3   : > { %13347 = vmatpush3.xpose.msk.msra.mxu0 %vm432_vm2, %v15411_v63  ;;  %13348 = vmatprep.mubr.msk.f32.mxu0 %vm13867_vm1, %v16522_v30  ;;  %v9553_v60 = vpop.permute.xlu1 %9552 }
 0x8a4   : > { %13353 = vmatprep.mubr.msk.f32.mxu1 %vm13867_vm1, %v16522_v30  ;;  %13356 = vmatprep.subr.mxu0 %v16522_v30  ;;  %v9477_v63 = vpop.permute.xlu0 %9476 }
 0x8a5   : > { %13361 = vmatprep.subr.mxu1 %v16522_v30  ;;  %13354 = vmatmul.mubr.msk.f32.vlgmr.msra.gmra.mrb[110].mxu1 %vm432_vm2, %v9007_v13 }
 0x8a6   : > { %13349 = vmatmul.mubr.msk.f32.vlgmr.msra.gmra.mrb[112].mxu0 %vm432_vm2, %v8929_v40  ;;  %13362 = vmatpush3.xpose.msk.msra.mxu1 %vm432_vm2, %v9165_v18 }
 0x8a7   : > { %13357 = vmatpush3.xpose.msk.msra.mxu0 %vm432_vm2, %v9087_v1  ;;  %13358 = vmatprep.mubr.msk.f32.mxu0 %vm13867_vm1, %v16522_v30  ;;  %v9823_v10 = vpop.permute.xlu1 %9822 }
 0x8a8   : > { %13363 = vmatprep.mubr.msk.f32.mxu1 %vm13867_vm1, %v16522_v30  ;;  %13366 = vmatprep.subr.mxu0 %v16522_v30  ;;  %v9475_v62 = vpop.permute.xlu0 %9474 }
 0x8a9   : > { %13371 = vmatprep.subr.mxu1 %v16522_v30  ;;  %13364 = vmatmul.mubr.msk.f32.vlgmr.msra.gmra.mrb[112].mxu1 %vm432_vm2, %v9163_v55 }
 0x8aa   : > { %13359 = vmatmul.mubr.msk.f32.vlgmr.msra.gmra.mrb[114].mxu0 %vm432_vm2, %v9085_v28  ;;  %13372 = vmatpush3.xpose.msk.msra.mxu1 %vm432_vm2, %v9321_v20 }
 0x8ab   : > { %13367 = vmatpush3.xpose.msk.msra.mxu0 %vm432_vm2, %v9243_v11  ;;  %13368 = vmatprep.mubr.msk.f32.mxu0 %vm13867_vm1, %v16522_v30 }
 0x8ac   : > { %13373 = vmatprep.mubr.msk.f32.mxu1 %vm13867_vm1, %v16522_v30  ;;  %13376 = vmatprep.subr.mxu0 %v16522_v30  ;;  %v9899_v35 = vpop.permute.xlu0 %9898 }
 0x8ad   : > { %13381 = vmatprep.subr.mxu1 %v16522_v30  ;;  %13374 = vmatmul.mubr.msk.f32.vlgmr.msra.gmra.mrb[114].mxu1 %vm432_vm2, %v9319_v6 }
 0x8ae   : > { %13369 = vmatmul.mubr.msk.f32.vlgmr.msra.gmra.mrb[116].mxu0 %vm432_vm2, %v9241_v14  ;;  %13382 = vmatpush3.xpose.msk.msra.mxu1 %vm432_vm2, %v9477_v63 }
 0x8af   : > { %13377 = vmatpush3.xpose.msk.msra.mxu0 %vm432_vm2, %v9399_v37  ;;  %13378 = vmatprep.mubr.msk.f32.mxu0 %vm13867_vm1, %v16522_v30 }
 0x8b0   : > { %13383 = vmatprep.mubr.msk.f32.mxu1 %vm13867_vm1, %v16522_v30  ;;  %13386 = vmatprep.subr.mxu0 %v16522_v30 }
 0x8b1   : > { %13391 = vmatprep.subr.mxu1 %v16522_v30  ;;  %13384 = vmatmul.mubr.msk.f32.vlgmr.msra.gmra.mrb[116].mxu1 %vm432_vm2, %v9475_v62 }
 0x8b2   : > { %13379 = vmatmul.mubr.msk.f32.vlgmr.msra.gmra.mrb[118].mxu0 %vm432_vm2, %v9397_v53  ;;  %13392 = vmatpush3.msra.mxu1 %v9823_v10 }
 0x8b3   : > { %13387 = vmatpush3.xpose.msk.msra.mxu0 %vm432_vm2, %v9555_v56  ;;  %13388 = vmatprep.mubr.msk.f32.mxu0 %vm13867_vm1, %v16522_v30 }
 0x8b4   : > { %13396 = vmatprep.subr.mxu0 %v16522_v30  ;;  %13393 = vmatprep.mubr.msk.f32.mxu1 %vm13867_vm1, %v16522_v30 }
 0x8b5   : > { %13401 = vmatprep.subr.mxu1 %v16522_v30 }
 0x8b6   : > { %13389 = vmatmul.mubr.msk.f32.vlgmr.msra.gmra.mrb[120].mxu0 %vm432_vm2, %v9553_v60 }
 0x8b7   : > { %13397 = vmatpush3.msra.mxu0 %v9899_v35  ;;  %13398 = vmatprep.mubr.msk.f32.mxu0 %vm13867_vm1, %v16522_v30 }
 0x8b8   : > { %13406 = vmatprep.subr.mxu0 %v16522_v30 }
 0x916   : > { %v15617_v36 = vpop.f32.mrb[86].mxu1 }
 0x917   : > { %v13235_v52 = vpop.f32.mrb[87].mxu1 }
 0x91a   : > { %v15619_v59 = vpop.f32.mrb[88].mxu1 }
 0x91b   : > { %v15621_v47 = vpop.f32.mrb[90].mxu0  ;;  %v13245_v61 = vpop.f32.mrb[89].mxu1 }
 0x91c   : > { %v13240_v7 = vpop.f32.mrb[91].mxu0 }
 0x91f   : > { %v15623_v41 = vpop.f32.mrb[90].mxu1 }
 0x920   : > { %v15625_v44 = vpop.f32.mrb[92].mxu0  ;;  %v13255_v46 = vpop.f32.mrb[91].mxu1 }
 0x921   : > { %v13250_v51 = vpop.f32.mrb[93].mxu0 }
 0x923   : > { %v15627_v38 = vpop.f32.mrb[92].mxu1 }
 0x924   : > { %v15629_v3 = vpop.f32.mrb[94].mxu0  ;;  %v13265_v49 = vpop.f32.mrb[93].mxu1 }
 0x925   : > { %v13260_v45 = vpop.f32.mrb[95].mxu0 }
 0x927   : > { %v15631_v4 = vpop.f32.mrb[94].mxu1 }
 0x928   : > { %v15633_v2 = vpop.f32.mrb[96].mxu0  ;;  %v13275_v50 = vpop.f32.mrb[95].mxu1 }
 0x929   : > { %v13270_v39 = vpop.f32.mrb[97].mxu0 }
 0x92b   : > { %v15635_v57 = vpop.f32.mrb[96].mxu1 }
 0x92c   : > { %v15637_v43 = vpop.f32.mrb[98].mxu0  ;;  %v13285_v31 = vpop.f32.mrb[97].mxu1 }
 0x92d   : > { %v13280_v58 = vpop.f32.mrb[99].mxu0 }
 0x92f   : > { %v15639_v40 = vpop.f32.mrb[98].mxu1 }
 0x930   : > { %v15641_v5 = vpop.f32.mrb[100].mxu0  ;;  %v13295_v32 = vpop.f32.mrb[99].mxu1 }
 0x931   : > { %v13290_v1 = vpop.f32.mrb[101].mxu0 }
 0x934   : > { %v15643_v9 = vpop.f32.mrb[102].mxu0 }
 0x935   : > { %v13300_v28 = vpop.f32.mrb[103].mxu0 }
 0x964   : > { %v15645_v54 = vpop.f32.mrb[100].mxu1 }
 0x965   : > { %v13305_v12 = vpop.f32.mrb[101].mxu1 }
 0x968   : > { %v8456_v11 = vpop.f32.mrb[102].mxu1 }
 0x969   : > { %v15647_v16 = vpop.f32.mrb[104].mxu0  ;;  %v15649_v13 = vmul.f32 0.35355338, %v8456_v11  ;;  %v13315_v42 = vpop.f32.mrb[103].mxu1 }
 0x96a   : > { %v13310_v14 = vpop.f32.mrb[105].mxu0 }
 0x96b   : > { %v9646_v18 = vsel %vm432_vm2, %v15649_v13, -inf }
 0x96c   : > { %v8612_v17 = vpop.f32.mrb[104].mxu1  ;;  %9647 = vmax.xlane.f32.xlu0 %v9646_v18 }
 0x96d   : > { %v15653_v33 = vmul.f32 0.35355338, %v8612_v17  ;;  %v8534_v55 = vpop.f32.mrb[106].mxu0  ;;  %v13325_v37 = vpop.f32.mrb[105].mxu1 }
 0x96e   : > { %v15655_v29 = vmul.f32 0.35355338, %v8534_v55  ;;  %v13320_v48 = vpop.f32.mrb[107].mxu0 }
 0x96f   : > { %v9652_v34 = vsel %vm432_vm2, %v15653_v33, -inf }
 0x970   : > { %v8768_v15 = vpop.f32.mrb[106].mxu1  ;;  %9653 = vmax.xlane.f32.xlu0 %v9652_v34  ;;  %v9649_v27 = vsel %vm432_vm2, %v15655_v29, -inf }
 0x971   : > { %v15661_v20 = vmul.f32 0.35355338, %v8768_v15  ;;  %9650 = vmax.xlane.f32.xlu1 %v9649_v27  ;;  %v8690_v22 = vpop.f32.mrb[108].mxu0  ;;  %v13335_v53 = vpop.f32.mrb[107].mxu1 }
 0x972   : > { %v15663_v8 = vmul.f32 0.35355338, %v8690_v22  ;;  %v13330_v0 = vpop.f32.mrb[109].mxu0 }
 0x973   : > { %v9658_v6 = vsel %vm432_vm2, %v15661_v20, -inf }
 0x974   : > { %v8924_v56 = vpop.f32.mrb[108].mxu1  ;;  %v9655_v63 = vsel %vm432_vm2, %v15663_v8, -inf }
 0x975   : > { %v15669_v60 = vmul.f32 0.35355338, %v8924_v56  ;;  %9659 = vmax.xlane.f32.xlu1 %v9658_v6  ;;  %9656 = vmax.xlane.f32.xlu0 %v9655_v63  ;;  %v8846_v62 = vpop.f32.mrb[110].mxu0  ;;  %v13345_v10 = vpop.f32.mrb[109].mxu1 }
 0x976   : > { %v15671_v35 = vmul.f32 0.35355338, %v8846_v62  ;;  %v13340_v52 = vpop.f32.mrb[111].mxu0 }
 0x977   : > { %v9664_v61 = vsel %vm432_vm2, %v15669_v60, -inf }
 0x978   : > { %v9080_v7 = vpop.f32.mrb[110].mxu1  ;;  %v9661_v46 = vsel %vm432_vm2, %v15671_v35, -inf }
 0x979   : > { %v15677_v51 = vmul.f32 0.35355338, %v9080_v7  ;;  %9665 = vmax.xlane.f32.xlu1 %v9664_v61  ;;  %9662 = vmax.xlane.f32.xlu0 %v9661_v46  ;;  %v9002_v49 = vpop.f32.mrb[112].mxu0  ;;  %v13355_v45 = vpop.f32.mrb[111].mxu1 }
 0x97a   : > { %v15679_v50 = vmul.f32 0.35355338, %v9002_v49  ;;  %v13350_v39 = vpop.f32.mrb[113].mxu0  ;;  %v15721_v45 = vpop.permute.xlu1 %9974 }
 0x97b   : > { %v9670_v31 = vsel %vm432_vm2, %v15677_v51, -inf }
 0x97c   : > { %v9236_v58 = vpop.f32.mrb[112].mxu1  ;;  %v9667_v32 = vsel %vm432_vm2, %v15679_v50, -inf }
 0x97d   : > { %v15685_v1 = vmul.f32 0.35355338, %v9236_v58  ;;  %9671 = vmax.xlane.f32.xlu1 %v9670_v31  ;;  %9668 = vmax.xlane.f32.xlu0 %v9667_v32  ;;  %v9158_v28 = vpop.f32.mrb[114].mxu0  ;;  %v13365_v12 = vpop.f32.mrb[113].mxu1 }
 0x97e   : > { %v15687_v11 = vmul.f32 0.35355338, %v9158_v28  ;;  %v13360_v42 = vpop.f32.mrb[115].mxu0  ;;  %v15723_v39 = vpop.permute.xlu1 %10126 }
 0x97f   : > { %v9676_v14 = vsel %vm432_vm2, %v15685_v1, -inf  ;;  %v15725_v31 = vpop.permute.xlu0 %10050 }
 0x980   : > { %v9392_v18 = vpop.f32.mrb[114].mxu1  ;;  %v9673_v17 = vsel %vm432_vm2, %v15687_v11, -inf }
 0x981   : > { %v15693_v55 = vmul.f32 0.35355338, %v9392_v18  ;;  %9677 = vmax.xlane.f32.xlu1 %v9676_v14  ;;  %9674 = vmax.xlane.f32.xlu0 %v9673_v17  ;;  %v9314_v37 = vpop.f32.mrb[116].mxu0  ;;  %v13375_v48 = vpop.f32.mrb[115].mxu1 }
 0x982   : > { %v15695_v34 = vmul.f32 0.35355338, %v9314_v37  ;;  %v13370_v15 = vpop.f32.mrb[117].mxu0  ;;  %v15727_v58 = vpop.permute.xlu1 %10202 }
 0x983   : > { %v9682_v27 = vsel %vm432_vm2, %v15693_v55, -inf  ;;  %v15729_v32 = vpop.permute.xlu0 %10278 }
 0x984   : > { %v9548_v22 = vpop.f32.mrb[116].mxu1  ;;  %v9679_v53 = vsel %vm432_vm2, %v15695_v34, -inf }
 0x985   : > { %v15701_v0 = vmul.f32 0.35355338, %v9548_v22  ;;  %9683 = vmax.xlane.f32.xlu1 %v9682_v27  ;;  %9680 = vmax.xlane.f32.xlu0 %v9679_v53  ;;  %v9470_v6 = vpop.f32.mrb[118].mxu0  ;;  %v13385_v56 = vpop.f32.mrb[117].mxu1 }
 0x986   : > { %v15703_v63 = vmul.f32 0.35355338, %v9470_v6  ;;  %v13380_v62 = vpop.f32.mrb[119].mxu0 }
 0x987   : > { %v9688_v10 = vsel %vm432_vm2, %v15701_v0, -inf  ;;  %v15733_v28 = vpop.permute.xlu0 %10430 }
 0x988   : > { %v9685_v52 = vsel %vm432_vm2, %v15703_v63, -inf }
 0x989   : > { %9689 = vmax.xlane.f32.xlu1 %v9688_v10  ;;  %9686 = vmax.xlane.f32.xlu0 %v9685_v52  ;;  %v9626_v61 = vpop.f32.mrb[120].mxu0 }
 0x98a   : > { %v15709_v7 = vmul.f32 0.35355338, %v9626_v61  ;;  %v13390_v46 = vpop.f32.mrb[121].mxu0 }
 0x98c   : > { %v9691_v49 = vsel %vm432_vm2, %v15709_v7, -inf }
 0x98d   : > { %9692 = vmax.xlane.f32.xlu0 %v9691_v49 }
 0x99a   : > { %10658 = vrot.lane.b32.xlu1 %v13974_v21, %s13878_s14  ;;  %v15731_v21 = vpop.permute.xlu1 %10354 }
 0x99e   : > { %10810 = vrot.lane.b32.xlu1 %v13988_v26, %s13878_s14  ;;  %v15735_v12 = vpop.permute.xlu1 %10506 }
 0x9a3   : > { %10582 = vrot.lane.b32.xlu0 %v13970_v19, %s13878_s14 }
 0x9a7   : > { %10734 = vrot.lane.b32.xlu0 %v13984_v24, %s13878_s14 }
 0x9f9   : > { %v9648_v26 = vpop.xlane.xlu0 %9647 }
 0x9fa   : > { %v9694_v19 = vsub.f32 %v15649_v13, %v9648_v26 }
 0x9fc   : > { %v9710_v24 = vmul.f32 1.442695, %v9694_v19 }
 0x9fd   : > { %v9654_v42 = vpop.xlane.xlu0 %9653 }
 0x9fe   : > { %13726 = vpow2.f32 %v9710_v24  ;;  %v9696_v14 = vsub.f32 %v15653_v33, %v9654_v42  ;;  %v9651_v18 = vpop.xlane.xlu1 %9650 }
 0x9ff   : > { %v9695_v17 = vsub.f32 %v15655_v29, %v9651_v18 }
 0xa00   : > { %v9714_v37 = vmul.f32 1.442695, %v9696_v14 }
 0xa01   : > { %v9712_v48 = vmul.f32 1.442695, %v9695_v17 }
 0xa02   : > { %13728 = vpow2.f32 %v9714_v37  ;;  %v9660_v15 = vpop.xlane.xlu1 %9659  ;;  %v9657_v27 = vpop.xlane.xlu0 %9656 }
 0xa03   : > { %13730 = vpow2.f32 %v9712_v48  ;;  %v9698_v22 = vsub.f32 %v15661_v20, %v9660_v15  ;;  %v9697_v53 = vsub.f32 %v15663_v8, %v9657_v27 }
 0xa05   : > { %v9718_v6 = vmul.f32 1.442695, %v9698_v22  ;;  %v9716_v13 = vmul.f32 1.442695, %v9697_v53 }
 0xa06   : > { %v9666_v56 = vpop.xlane.xlu1 %9665  ;;  %v9663_v62 = vpop.xlane.xlu0 %9662 }
 0xa07   : > { %13732 = vpow2.f32 %v9718_v6  ;;  %v9700_v33 = vsub.f32 %v15669_v60, %v9666_v56  ;;  %v9699_v10 = vsub.f32 %v15671_v35, %v9663_v62 }
 0xa08   : > { %v15744_v29 = vpop.eup %13726  ;;  %13734 = vpow2.f32 %v9716_v13 }
 0xa09   : > { %v9722_v52 = vmul.f32 1.442695, %v9700_v33  ;;  %v9720_v61 = vmul.f32 1.442695, %v9699_v10  ;;  %v9742_v46 = vsel %vm432_vm2, %v15744_v29, 0.0 }
 0xa0a   : > { %v9672_v20 = vpop.xlane.xlu1 %9671  ;;  %v9669_v49 = vpop.xlane.xlu0 %9668  ;;  %9743 = vadd.xlane.f32.xlu1 %v9742_v46 }
 0xa0b   : > { %13736 = vpow2.f32 %v9722_v52  ;;  %v9702_v8 = vsub.f32 %v15677_v51, %v9672_v20  ;;  %v9701_v26 = vsub.f32 %v15679_v50, %v9669_v49 }
 0xa0c   : > { %v15750_v19 = vpop.eup %13728  ;;  %13738 = vpow2.f32 %v9720_v61 }
 0xa0d   : > { %v15752_v60 = vpop.eup %13730  ;;  %v9726_v35 = vmul.f32 1.442695, %v9702_v8  ;;  %v9724_v24 = vmul.f32 1.442695, %v9701_v26  ;;  %v9748_v42 = vsel %vm432_vm2, %v15750_v19, 0.0 }
 0xa0e   : > { %v9678_v14 = vpop.xlane.xlu1 %9677  ;;  %v9675_v18 = vpop.xlane.xlu0 %9674  ;;  %9749 = vadd.xlane.f32.xlu1 %v9748_v42  ;;  %v9745_v17 = vsel %vm432_vm2, %v15752_v60, 0.0 }
 0xa0f   : > { %13740 = vpow2.f32 %v9726_v35  ;;  %v9704_v51 = vsub.f32 %v15685_v1, %v9678_v14  ;;  %v9703_v50 = vsub.f32 %v15687_v11, %v9675_v18  ;;  %9746 = vadd.xlane.f32.xlu0 %v9745_v17 }
 0xa10   : > { %13742 = vpow2.f32 %v9724_v24 }
 0xa11   : > { %v15760_v37 = vpop.eup %13732  ;;  %v9730_v48 = vmul.f32 1.442695, %v9704_v51  ;;  %v9728_v15 = vmul.f32 1.442695, %v9703_v50 }
 0xa12   : > { %v15762_v27 = vpop.eup %13734  ;;  %v9684_v22 = vpop.xlane.xlu1 %9683  ;;  %v9754_v6 = vsel %vm432_vm2, %v15760_v37, 0.0 }
 0xa13   : > { %v9681_v53 = vpop.xlane.xlu0 %9680  ;;  %13744 = vpow2.f32 %v9730_v48  ;;  %v9706_v13 = vsub.f32 %v15693_v55, %v9684_v22  ;;  %9755 = vadd.xlane.f32.xlu1 %v9754_v6  ;;  %v9751_v11 = vsel %vm432_vm2, %v15762_v27, 0.0 }
 0xa14   : > { %v9705_v1 = vsub.f32 %v15695_v34, %v9681_v53  ;;  %13746 = vpow2.f32 %v9728_v15  ;;  %9752 = vadd.xlane.f32.xlu0 %v9751_v11 }
 0xa15   : > { %v15770_v56 = vpop.eup %13736  ;;  %v9734_v62 = vmul.f32 1.442695, %v9706_v13 }
 0xa16   : > { %v9732_v33 = vmul.f32 1.442695, %v9705_v1  ;;  %v15772_v10 = vpop.eup %13738  ;;  %v9690_v52 = vpop.xlane.xlu1 %9689  ;;  %v9760_v46 = vsel %vm432_vm2, %v15770_v56, 0.0 }
 0xa17   : > { %v9687_v61 = vpop.xlane.xlu0 %9686  ;;  %13748 = vpow2.f32 %v9734_v62  ;;  %v9708_v55 = vsub.f32 %v15701_v0, %v9690_v52  ;;  %9761 = vadd.xlane.f32.xlu1 %v9760_v46  ;;  %v9757_v20 = vsel %vm432_vm2, %v15772_v10, 0.0  ;;  %v16590_v52 = vld [vmem:[#allocation26_spill] sm:$0xff]  ;;  %v16593_v46 = vld [vmem:[#allocation28_spill] sm:$0xff] }
 0xa18   : > { %v9707_v34 = vsub.f32 %v15703_v63, %v9687_v61  ;;  %13750 = vpow2.f32 %v9732_v33  ;;  %9758 = vadd.xlane.f32.xlu0 %v9757_v20  ;;  %v16589_v33 = vld [vmem:[#allocation24_spill] sm:$0xff] }
 0xa19   : > { %v15780_v49 = vpop.eup %13740  ;;  %v9738_v8 = vmul.f32 1.442695, %v9708_v55  ;;  %v16591_v61 = vld [vmem:[#allocation20_spill] sm:$0xff]  ;;  %v16594_v55 = vld [vmem:[#allocation30_spill] sm:$0xff] }
 0xa1a   : > { %v9736_v26 = vmul.f32 1.442695, %v9707_v34  ;;  %v15782_v35 = vpop.eup %13742  ;;  %v9766_v42 = vsel %vm432_vm2, %v15780_v49, 0.0 }
 0xa1b   : > { %v9693_v24 = vpop.xlane.xlu0 %9692  ;;  %13752 = vpow2.f32 %v9738_v8  ;;  %9767 = vadd.xlane.f32.xlu1 %v9766_v42  ;;  %v9763_v63 = vsel %vm432_vm2, %v15782_v35, 0.0 }
 0xa1c   : > { %v9709_v0 = vsub.f32 %v15709_v7, %v9693_v24  ;;  %13754 = vpow2.f32 %v9736_v26  ;;  %9764 = vadd.xlane.f32.xlu0 %v9763_v63 }
 0xa1d   : > { %v15789_v14 = vpop.eup %13744 }
 0xa1e   : > { %v9740_v18 = vmul.f32 1.442695, %v9709_v0  ;;  %v15791_v17 = vpop.eup %13746  ;;  %v9772_v51 = vsel %vm432_vm2, %v15789_v14, 0.0 }
 0xa1f   : > { %9773 = vadd.xlane.f32.xlu1 %v9772_v51  ;;  %v9769_v50 = vsel %vm432_vm2, %v15791_v17, 0.0 }
 0xa20   : > { %13756 = vpow2.f32 %v9740_v18  ;;  %9770 = vadd.xlane.f32.xlu0 %v9769_v50 }
 0xa21   : > { %v15797_v7 = vpop.eup %13748 }
 0xa22   : > { %v15799_v48 = vpop.eup %13750  ;;  %v9778_v15 = vsel %vm432_vm2, %v15797_v7, 0.0 }
 0xa23   : > { %9779 = vadd.xlane.f32.xlu1 %v9778_v15  ;;  %v9775_v22 = vsel %vm432_vm2, %v15799_v48, 0.0 }
 0xa24   : > { %9776 = vadd.xlane.f32.xlu0 %v9775_v22 }
 0xa25   : > { %v15805_v53 = vpop.eup %13752 }
 0xa26   : > { %v15807_v6 = vpop.eup %13754  ;;  %v9784_v13 = vsel %vm432_vm2, %v15805_v53, 0.0 }
 0xa27   : > { %9785 = vadd.xlane.f32.xlu1 %v9784_v13  ;;  %v9781_v1 = vsel %vm432_vm2, %v15807_v6, 0.0 }
 0xa28   : > { %9782 = vadd.xlane.f32.xlu0 %v9781_v1 }
 0xa2a   : > { %v15813_v11 = vpop.eup %13756 }
 0xa2b   : > { %v9787_v62 = vsel %vm432_vm2, %v15813_v11, 0.0 }
 0xa2c   : > { %9788 = vadd.xlane.f32.xlu0 %v9787_v62 }
 0xa38   : > { %10962 = vrot.lane.b32.xlu1 %v13986_v25, %s13878_s14  ;;  %v16592_v25 = vld [vmem:[#allocation23_spill] sm:$0xff] }
 0xa3c   : > { %11064 = vrot.lane.b32.xlu1 %v16589_v33, %s13879_s15 }
 0xa40   : > { %11068 = vrot.lane.b32.xlu1 %v16590_v52, %s13879_s15 }
 0xa42   : > { %10886 = vrot.lane.b32.xlu0 %v13982_v23, %s13878_s14  ;;  %v16595_v23 = vld [vmem:[#allocation25_spill] sm:$0xff] }
 0xa44   : > { %11128 = vrot.lane.b32.xlu1 %v15629_v3, %s13880_s16  ;;  %v16596_v3 = vld [vmem:[#allocation27_spill] sm:$0xff] }
 0xa46   : > { %11062 = vrot.lane.b32.xlu0 %v16591_v61, %s13879_s15 }
 0xa48   : > { %11132 = vrot.lane.b32.xlu1 %v15633_v2, %s13880_s16  ;;  %v16597_v2 = vld [vmem:[#allocation18_spill] sm:$0xff] }
 0xa4a   : > { %11066 = vrot.lane.b32.xlu0 %v16592_v25, %s13879_s15 }
 0xa4c   : > { %11072 = vrot.lane.b32.xlu1 %v16593_v46, %s13879_s15 }
 0xa4e   : > { %11126 = vrot.lane.b32.xlu0 %v15623_v41, %s13880_s16  ;;  %v16598_v41 = vld [vmem:[#allocation21_spill] sm:$0xff] }
 0xa50   : > { %11076 = vrot.lane.b32.xlu1 %v16594_v55, %s13879_s15 }
 0xa52   : > { %11130 = vrot.lane.b32.xlu0 %v15627_v38, %s13880_s16  ;;  %v16599_v38 = vld [vmem:[#allocation22_spill] sm:$0xff] }
 0xa54   : > { %11136 = vrot.lane.b32.xlu1 %v15637_v43, %s13880_s16  ;;  %v16600_v43 = vld [vmem:[#allocation19_spill] sm:$0xff] }
 0xa56   : > { %11070 = vrot.lane.b32.xlu0 %v16595_v23, %s13879_s15 }
 0xa58   : > { %11140 = vrot.lane.b32.xlu1 %v15641_v5, %s13880_s16  ;;  %v16601_v5 = vld [vmem:[#allocation32_spill] sm:$0xff] }
 0xa5a   : > { %11074 = vrot.lane.b32.xlu0 %v16596_v3, %s13879_s15 }
 0xa5c   : > { %11056 = vrot.lane.b32.xlu1 %v16597_v2, %s13879_s15  ;;  %v16605_v2 = vld [vmem:[#allocation6_spill] sm:$0xff] }
 0xa5e   : > { %11134 = vrot.lane.b32.xlu0 %v15631_v4, %s13880_s16  ;;  %v16602_v4 = vld [vmem:[#allocation33_spill] sm:$0xff] }
 0xa60   : > { %11060 = vrot.lane.b32.xlu1 %v16598_v41, %s13879_s15 }
 0xa62   : > { %11138 = vrot.lane.b32.xlu0 %v15635_v57, %s13880_s16  ;;  %v15871_v57 = vpop.permute.xlu0 %10582 }
 0xa64   : > { %11120 = vrot.lane.b32.xlu1 %v15621_v47, %s13880_s16  ;;  %v16603_v47 = vld [vmem:[#allocation29_spill] sm:$0xff] }
 0xa66   : > { %11054 = vrot.lane.b32.xlu0 %v16599_v38, %s13879_s15 }
 0xa68   : > { %11124 = vrot.lane.b32.xlu1 %v15625_v44, %s13880_s16  ;;  %v16604_v44 = vld [vmem:[#allocation31_spill] sm:$0xff] }
 0xa6a   : > { %11058 = vrot.lane.b32.xlu0 %v16600_v43, %s13879_s15 }
 0xa6c   : > { %11080 = vrot.lane.b32.xlu1 %v16601_v5, %s13879_s15 }
 0xa6e   : > { %11118 = vrot.lane.b32.xlu0 %v15617_v36, %s13880_s16  ;;  %v15869_v36 = vpop.permute.xlu1 %10658 }
 0xa70   : > { %11084 = vrot.lane.b32.xlu1 %v16602_v4, %s13879_s15  ;;  %v16606_v4 = vld [vmem:[#allocation8_spill] sm:$0xff] }
 0xa72   : > { %11122 = vrot.lane.b32.xlu0 %v15619_v59, %s13880_s16  ;;  %v15873_v34 = vpop.permute.xlu1 %10810 }
 0xa74   : > { %11144 = vrot.lane.b32.xlu1 %v15643_v9, %s13880_s16  ;;  %v15875_v9 = vpop.permute.xlu0 %10734 }
 0xa76   : > { %11078 = vrot.lane.b32.xlu0 %v16603_v47, %s13879_s15 }
 0xa78   : > { %11148 = vrot.lane.b32.xlu1 %v15647_v16, %s13880_s16 }
 0xa7a   : > { %11082 = vrot.lane.b32.xlu0 %v16604_v44, %s13879_s15 }
 0xa7e   : > { %11142 = vrot.lane.b32.xlu0 %v15639_v40, %s13880_s16 }
 0xa82   : > { %11146 = vrot.lane.b32.xlu0 %v15645_v54, %s13880_s16 }
 0xa97   : > { %v9744_v59 = vpop.xlane.xlu1 %9743 }
 0xa98   : > { %13758 = vrcp.f32 %v9744_v59 }
 0xa9b   : > { %v9750_v20 = vpop.xlane.xlu1 %9749 }
 0xa9c   : > { %13760 = vrcp.f32 %v9750_v20  ;;  %v9747_v16 = vpop.xlane.xlu0 %9746 }
 0xa9d   : > { %13762 = vrcp.f32 %v9747_v16 }
 0xaa0   : > { %v9756_v8 = vpop.xlane.xlu1 %9755 }
 0xaa1   : > { %13764 = vrcp.f32 %v9756_v8  ;;  %v9753_v26 = vpop.xlane.xlu0 %9752 }
 0xaa2   : > { %v13759_v40 = vpop.eup %13758  ;;  %13766 = vrcp.f32 %v9753_v26 }
 0xaa3   : > { %v9806_v54 = vmul.f32 %v13759_v40, %v15744_v29 }
 0xaa4   : > { %v9762_v24 = vpop.xlane.xlu1 %9761 }
 0xaa5   : > { %13768 = vrcp.f32 %v9762_v24  ;;  %v9759_v42 = vpop.xlane.xlu0 %9758  ;;  %13394 = vmatmul.mubr.msk.f32.vlgmr.msra.gmra.mrb[118].mxu1 %vm432_vm2, %v9806_v54 }
 0xaa6   : > { %v13761_v0 = vpop.eup %13760  ;;  %13770 = vrcp.f32 %v9759_v42  ;;  %13402 = vmatpush3.msra.mxu1 %v15721_v45  ;;  %13403 = vmatprep.mubr.msk.f32.mxu1 %vm13867_vm1, %v16522_v30 }
 0xaa7   : > { %v13763_v63 = vpop.eup %13762  ;;  %13411 = vmatprep.subr.mxu1 %v16522_v30  ;;  %v9808_v18 = vmul.f32 %v13761_v0, %v15750_v19 }
 0xaa8   : > { %v9768_v51 = vpop.xlane.xlu1 %9767  ;;  %v9807_v29 = vmul.f32 %v13763_v63, %v15752_v60 }
 0xaa9   : > { %13772 = vrcp.f32 %v9768_v51  ;;  %v9765_v50 = vpop.xlane.xlu0 %9764  ;;  %13404 = vmatmul.mubr.msk.f32.vlgmr.msra.gmra.mrb[120].mxu1 %vm432_vm2, %v9808_v18 }
 0xaaa   : > { %13774 = vrcp.f32 %v9765_v50  ;;  %13399 = vmatmul.mubr.msk.f32.vlgmr.msra.gmra.mrb[122].mxu0 %vm432_vm2, %v9807_v29  ;;  %13412 = vmatpush3.msra.mxu1 %v15723_v39 }
 0xaab   : > { %v13765_v45 = vpop.eup %13764  ;;  %13407 = vmatpush3.msra.mxu0 %v15725_v31  ;;  %13408 = vmatprep.mubr.msk.f32.mxu0 %vm13867_vm1, %v16522_v30 }
 0xaac   : > { %v13767_v15 = vpop.eup %13766  ;;  %v9774_v19 = vpop.xlane.xlu1 %9773  ;;  %13413 = vmatprep.mubr.msk.f32.mxu1 %vm13867_vm1, %v16522_v30  ;;  %13416 = vmatprep.subr.mxu0 %v16522_v30  ;;  %v9810_v60 = vmul.f32 %v13765_v45, %v15760_v37 }
 0xaad   : > { %13776 = vrcp.f32 %v9774_v19  ;;  %v9771_v22 = vpop.xlane.xlu0 %9770  ;;  %13421 = vmatprep.subr.mxu1 %v16522_v30  ;;  %v9809_v39 = vmul.f32 %v13767_v15, %v15762_v27 }
 0xaae   : > { %13778 = vrcp.f32 %v9771_v22  ;;  %13414 = vmatmul.mubr.msk.f32.vlgmr.msra.gmra.mrb[122].mxu1 %vm432_vm2, %v9810_v60 }
 0xaaf   : > { %v13769_v31 = vpop.eup %13768  ;;  %13409 = vmatmul.mubr.msk.f32.vlgmr.msra.gmra.mrb[124].mxu0 %vm432_vm2, %v9809_v39  ;;  %13422 = vmatpush3.msra.mxu1 %v15729_v32 }
 0xab0   : > { %v13771_v13 = vpop.eup %13770  ;;  %13417 = vmatpush3.msra.mxu0 %v15727_v58  ;;  %v9780_v1 = vpop.xlane.xlu1 %9779  ;;  %13418 = vmatprep.mubr.msk.f32.mxu0 %vm13867_vm1, %v16522_v30  ;;  %v9812_v37 = vmul.f32 %v13769_v31, %v15770_v56 }
 0xab1   : > { %13780 = vrcp.f32 %v9780_v1  ;;  %v9777_v62 = vpop.xlane.xlu0 %9776  ;;  %13423 = vmatprep.mubr.msk.f32.mxu1 %vm13867_vm1, %v16522_v30  ;;  %13426 = vmatprep.subr.mxu0 %v16522_v30  ;;  %v9811_v27 = vmul.f32 %v13771_v13, %v15772_v10 }
 0xab2   : > { %13782 = vrcp.f32 %v9777_v62  ;;  %13431 = vmatprep.subr.mxu1 %v16522_v30  ;;  %13424 = vmatmul.mubr.msk.f32.vlgmr.msra.gmra.mrb[124].mxu1 %vm432_vm2, %v9812_v37 }
 0xab3   : > { %v13773_v58 = vpop.eup %13772  ;;  %13419 = vmatmul.mubr.msk.f32.vlgmr.msra.gmra.mrb[126].mxu0 %vm432_vm2, %v9811_v27  ;;  %13432 = vmatpush3.msra.mxu1 %v15733_v28 }
 0xab4   : > { %v13775_v32 = vpop.eup %13774  ;;  %13427 = vmatpush3.msra.mxu0 %v15731_v21  ;;  %v9786_v56 = vpop.xlane.xlu1 %9785  ;;  %13428 = vmatprep.mubr.msk.f32.mxu0 %vm13867_vm1, %v16522_v30  ;;  %v9814_v33 = vmul.f32 %v13773_v58, %v15780_v49 }
 0xab5   : > { %13784 = vrcp.f32 %v9786_v56  ;;  %v9783_v10 = vpop.xlane.xlu0 %9782  ;;  %13433 = vmatprep.mubr.msk.f32.mxu1 %vm13867_vm1, %v16522_v30  ;;  %13436 = vmatprep.subr.mxu0 %v16522_v30  ;;  %v9813_v52 = vmul.f32 %v13775_v32, %v15782_v35 }
 0xab6   : > { %13786 = vrcp.f32 %v9783_v10  ;;  %13441 = vmatprep.subr.mxu1 %v16522_v30  ;;  %13434 = vmatmul.mubr.msk.f32.vlgmr.msra.gmra.mrb[126].mxu1 %vm432_vm2, %v9814_v33 }
 0xab7   : > { %v13777_v21 = vpop.eup %13776  ;;  %13429 = vmatmul.mubr.msk.f32.vlgmr.msra.gmra.mrb[128].mxu0 %vm432_vm2, %v9813_v52  ;;  %13442 = vmatpush3.msra.mxu1 %v15871_v57 }
 0xab8   : > { %v13779_v28 = vpop.eup %13778  ;;  %13437 = vmatpush3.msra.mxu0 %v15735_v12  ;;  %13438 = vmatprep.mubr.msk.f32.mxu0 %vm13867_vm1, %v16522_v30  ;;  %v9816_v49 = vmul.f32 %v13777_v21, %v15789_v14  ;;  %v10963_v38 = vpop.permute.xlu1 %10962 }
 0xab9   : > { %v9789_v61 = vpop.xlane.xlu0 %9788  ;;  %13443 = vmatprep.mubr.msk.f32.mxu1 %vm13867_vm1, %v16522_v30  ;;  %13446 = vmatprep.subr.mxu0 %v16522_v30  ;;  %v9815_v35 = vmul.f32 %v13779_v28, %v15791_v17 }
 0xaba   : > { %13788 = vrcp.f32 %v9789_v61  ;;  %13451 = vmatprep.subr.mxu1 %v16522_v30  ;;  %13444 = vmatmul.mubr.msk.f32.vlgmr.msra.gmra.mrb[128].mxu1 %vm432_vm2, %v9816_v49 }
 0xabb   : > { %v13781_v25 = vpop.eup %13780  ;;  %13439 = vmatmul.mubr.msk.f32.vlgmr.msra.gmra.mrb[130].mxu0 %vm432_vm2, %v9815_v35  ;;  %13452 = vmatpush3.msra.mxu1 %v15875_v9 }
 0xabc   : > { %v13783_v12 = vpop.eup %13782  ;;  %13447 = vmatpush3.msra.mxu0 %v15869_v36  ;;  %13448 = vmatprep.mubr.msk.f32.mxu0 %vm13867_vm1, %v16522_v30  ;;  %v9818_v14 = vmul.f32 %v13781_v25, %v15797_v7  ;;  %v15988_v39 = vpop.permute.xlu1 %11064 }
 0xabd   : > { %v10887_v46 = vpop.permute.xlu0 %10886  ;;  %13453 = vmatprep.mubr.msk.f32.mxu1 %vm13867_vm1, %v16522_v30  ;;  %13456 = vmatprep.subr.mxu0 %v16522_v30  ;;  %v9817_v17 = vmul.f32 %v13783_v12, %v15799_v48 }
 0xabe   : > { %13461 = vmatprep.subr.mxu1 %v16522_v30  ;;  %13454 = vmatmul.mubr.msk.f32.vlgmr.msra.gmra.mrb[130].mxu1 %vm432_vm2, %v9818_v14 }
 0xabf   : > { %v13785_v55 = vpop.eup %13784  ;;  %13449 = vmatmul.mubr.msk.f32.vlgmr.msra.gmra.mrb[132].mxu0 %vm432_vm2, %v9817_v17  ;;  %13462 = vmatpush3.msra.mxu1 %v10887_v46 }
 0xac0   : > { %v13787_v23 = vpop.eup %13786  ;;  %13457 = vmatpush3.msra.mxu0 %v15873_v34  ;;  %13458 = vmatprep.mubr.msk.f32.mxu0 %vm13867_vm1, %v16522_v30  ;;  %v9820_v7 = vmul.f32 %v13785_v55, %v15805_v53  ;;  %v11069_v56 = vpop.permute.xlu1 %11068 }
 0xac1   : > { %v11063_v3 = vpop.permute.xlu0 %11062  ;;  %13463 = vmatprep.mubr.msk.f32.mxu1 %vm13867_vm1, %v16522_v30  ;;  %13466 = vmatprep.subr.mxu0 %v16522_v30  ;;  %v9819_v48 = vmul.f32 %v13787_v23, %v15807_v6 }
 0xac2   : > { %v11234_v41 = vsel %vm432_vm2, %v16605_v2, %v11063_v3  ;;  %13464 = vmatmul.mubr.msk.f32.vlgmr.msra.gmra.mrb[132].mxu1 %vm432_vm2, %v9820_v7 }
 0xac3   : > { %13459 = vmatmul.mubr.msk.f32.vlgmr.msra.gmra.mrb[134].mxu0 %vm432_vm2, %v9819_v48 }
 0xac4   : > { %v13789_v43 = vpop.eup %13788  ;;  %13467 = vmatpush3.msra.mxu0 %v10963_v38  ;;  %13468 = vmatprep.mubr.msk.f32.mxu0 %vm13867_vm1, %v16522_v30  ;;  %v13532_v30 = vld [vmem:[%s16510_s2] sm:$0xff]   ;;  %v11129_v52 = vpop.permute.xlu1 %11128 }
 0xac5   : > { %v9821_v53 = vmul.f32 %v13789_v43, %v15813_v11  ;;  %v11067_v5 = vpop.permute.xlu0 %11066  ;;  %13471 = vmatprep.subr.bf16.mxu0 %v13532_v30  ;;  %13491 = vmatprep.subr.bf16.mxu1 %v13532_v30  ;;  %v13533_v11 = vld [vmem:[%s16510_s2 + $0x8] sm:$0xff]  }
 0xac6   : > { %v11236_v47 = vsel %vm432_vm2, %v16606_v4, %v11067_v5  ;;  %13493 = vmatpush3.bf16.msra.mxu1 %v13532_v30 }
 0xac7   : > { %13469 = vmatmul.mubr.msk.f32.vlgmr.msra.gmra.mrb[136].mxu0 %vm432_vm2, %v9821_v53  ;;  %13492 = vmatprep.subr.bf16.mxu1 %v13533_v11 }
 0xac8   : > { %13472 = vmatpush3.bf16.msra.mxu0 %v13532_v30  ;;  %v11133_v21 = vpop.permute.xlu1 %11132 }
 0xac9   : > { %v11127_v6 = vpop.permute.xlu0 %11126  ;;  %13473 = vmatprep.subr.bf16.mxu0 %v13533_v11 }
 0xaca   : > { %v15966_v44 = vsel %vm11246_vm3, %v11234_v41, %v11127_v6  ;;  %13494 = vmatpush3.bf16.msra.mxu1 %v13533_v11 }
 0xacc   : > { %13474 = vmatpush3.bf16.msra.mxu0 %v13533_v11  ;;  %v11073_v49 = vpop.permute.xlu1 %11072  ;;  %v16607_v11 = vld [vmem:[#allocation2_spill] sm:$0xff] }
 0xacd   : > { %v11131_v36 = vpop.permute.xlu0 %11130 }
 0xace   : > { %v15969_v57 = vsel %vm11246_vm3, %v11236_v47, %v11131_v36 }
 0xad0   : > { %v15999_v35 = vpop.permute.xlu1 %11076 }
 0xad1   : > { %v15995_v28 = vpop.permute.xlu0 %11070 }
 0xad4   : > { %v11137_v12 = vpop.permute.xlu1 %11136 }
 0xad5   : > { %v15997_v61 = vpop.permute.xlu0 %11074 }
 0xad8   : > { %v16003_v46 = vpop.permute.xlu1 %11140 }
 0xad9   : > { %v11135_v25 = vpop.permute.xlu0 %11134 }
 0xadc   : > { %v11057_v55 = vpop.permute.xlu1 %11056 }
 0xadd   : > { %v16001_v14 = vpop.permute.xlu0 %11138 }
 0xae0   : > { %v11061_v7 = vpop.permute.xlu1 %11060 }
 0xae1   : > { %v11055_v17 = vpop.permute.xlu0 %11054 }
 0xae4   : > { %v11121_v48 = vpop.permute.xlu1 %11120 }
 0xae5   : > { %v11059_v23 = vpop.permute.xlu0 %11058 }
 0xae8   : > { %v11125_v41 = vpop.permute.xlu1 %11124 }
 0xae9   : > { %v11119_v3 = vpop.permute.xlu0 %11118 }
 0xaec   : > { %v16007_v43 = vpop.permute.xlu1 %11080 }
 0xaed   : > { %v11123_v2 = vpop.permute.xlu0 %11122 }
 0xaf0   : > { %v16011_v5 = vpop.permute.xlu1 %11084 }
 0xaf1   : > { %v16005_v38 = vpop.permute.xlu0 %11078 }
 0xaf4   : > { %v16015_v47 = vpop.permute.xlu1 %11144 }
 0xaf5   : > { %v16009_v53 = vpop.permute.xlu0 %11082 }
 0xaf8   : > { %v16019_v30 = vpop.permute.xlu1 %11148 }
 0xaf9   : > { %v16013_v4 = vpop.permute.xlu0 %11142 }
 0xafd   : > { %v16017_v6 = vpop.permute.xlu0 %11146 }
 0xb78   : > { %v9894_v34 = vpop.f32.mrb[118].mxu1 }
 0xb79   : > { %v13395_v59 = vpop.f32.mrb[119].mxu1  ;;  %11182 = vrot.lane.b32.xlu0 %v9894_v34, %s13881_s23  ;;  %v11231_v34 = vsel %vm432_vm2, %v16607_v11, %v11057_v55  ;;  %v16615_v11 = vld [vmem:[#allocation11_spill] sm:$0xff] }
 0xb7a   : > { %v16608_v59 = vld [vmem:[#allocation3_spill] sm:$0xff] }
 0xb7c   : > { %v10046_v9 = vpop.f32.mrb[120].mxu1 }
 0xb7d   : > { %v9970_v20 = vpop.f32.mrb[122].mxu0  ;;  %v13405_v16 = vpop.f32.mrb[121].mxu1  ;;  %11186 = vrot.lane.b32.xlu0 %v10046_v9, %s13881_s23  ;;  %v11230_v9 = vsel %vm432_vm2, %v16608_v59, %v11055_v17 }
 0xb7e   : > { %11184 = vrot.lane.b32.xlu1 %v9970_v20, %s13881_s23  ;;  %v13400_v8 = vpop.f32.mrb[123].mxu0  ;;  %v11248_v16 = vsel %vm11246_vm3, %v11231_v34, %v11121_v48 }
 0xb7f   : > { %v11247_v8 = vsel %vm11246_vm3, %v11230_v9, %v11119_v3 }
 0xb81   : > { %v10198_v26 = vpop.f32.mrb[122].mxu1 }
 0xb82   : > { %v10122_v40 = vpop.f32.mrb[124].mxu0  ;;  %v13415_v54 = vpop.f32.mrb[123].mxu1  ;;  %11190 = vrot.lane.b32.xlu0 %v10198_v26, %s13881_s23 }
 0xb83   : > { %11188 = vrot.lane.b32.xlu1 %v10122_v40, %s13881_s23  ;;  %v13410_v24 = vpop.f32.mrb[125].mxu0 }
 0xb85   : > { %v10350_v42 = vpop.f32.mrb[124].mxu1 }
 0xb86   : > { %v10274_v0 = vpop.f32.mrb[126].mxu0  ;;  %v13425_v63 = vpop.f32.mrb[125].mxu1  ;;  %11194 = vrot.lane.b32.xlu0 %v10350_v42, %s13881_s23  ;;  %v16609_v42 = vld [vmem:[#allocation5_spill] sm:$0xff] }
 0xb87   : > { %11192 = vrot.lane.b32.xlu1 %v10274_v0, %s13881_s23  ;;  %v13420_v18 = vpop.f32.mrb[127].mxu0  ;;  %v11233_v0 = vsel %vm432_vm2, %v16609_v42, %v11061_v7  ;;  %v16610_v63 = vld [vmem:[#allocation4_spill] sm:$0xff] }
 0xb88   : > { %v11232_v18 = vsel %vm432_vm2, %v16610_v63, %v11059_v23  ;;  %v16613_v23 = vld [vmem:[#allocation10_spill] sm:$0xff] }
 0xb89   : > { %v10502_v51 = vpop.f32.mrb[126].mxu1  ;;  %v11239_v7 = vsel %vm432_vm2, %v16613_v23, %v11073_v49 }
 0xb8a   : > { %v10426_v29 = vpop.f32.mrb[128].mxu0  ;;  %v13435_v50 = vpop.f32.mrb[127].mxu1  ;;  %11198 = vrot.lane.b32.xlu0 %v10502_v51, %s13881_s23  ;;  %v11256_v48 = vsel %vm11246_vm3, %v11239_v7, %v11137_v12  ;;  %v16616_v12 = vld [vmem:[#allocation15_spill] sm:$0xff]  ;;  %v16164_v7 = vld [vmem:[%s16512_s4] ss:$0 sm:$0xff] }
 0xb8b   : > { %11196 = vrot.lane.b32.xlu1 %v10426_v29, %s13881_s23  ;;  %v13430_v45 = vpop.f32.mrb[129].mxu0  ;;  %v11250_v29 = vsel %vm11246_vm3, %v11233_v0, %v11125_v41  ;;  %v11249_v50 = vsel %vm11246_vm3, %v11232_v18, %v11123_v2 }
 0xb8d   : > { %v10654_v15 = vpop.f32.mrb[128].mxu1 }
 0xb8e   : > { %v10578_v19 = vpop.f32.mrb[130].mxu0  ;;  %11202 = vrot.lane.b32.xlu0 %v10654_v15, %s13881_s23  ;;  %v13445_v60 = vpop.f32.mrb[129].mxu1 }
 0xb8f   : > { %11200 = vrot.lane.b32.xlu1 %v10578_v19, %s13881_s23  ;;  %v13440_v22 = vpop.f32.mrb[131].mxu0 }
 0xb90   : > { %v16611_v22 = vld [vmem:[#allocation7_spill] sm:$0xff] }
 0xb91   : > { %v10806_v31 = vpop.f32.mrb[130].mxu1 }
 0xb92   : > { %v10730_v13 = vpop.f32.mrb[132].mxu0  ;;  %11206 = vrot.lane.b32.xlu0 %v10806_v31, %s13881_s23  ;;  %v13455_v1 = vpop.f32.mrb[131].mxu1  ;;  %v11235_v31 = vsel %vm432_vm2, %v16611_v22, %v15988_v39 }
 0xb93   : > { %11204 = vrot.lane.b32.xlu1 %v10730_v13, %s13881_s23  ;;  %v13450_v37 = vpop.f32.mrb[133].mxu0  ;;  %v11252_v1 = vsel %vm11246_vm3, %v11235_v31, %v11129_v52 }
 0xb95   : > { %v10958_v62 = vpop.f32.mrb[132].mxu1 }
 0xb96   : > { %v10882_v27 = vpop.f32.mrb[134].mxu0  ;;  %11210 = vrot.lane.b32.xlu0 %v10958_v62, %s13881_s23  ;;  %v13465_v58 = vpop.f32.mrb[133].mxu1 }
 0xb97   : > { %11208 = vrot.lane.b32.xlu1 %v10882_v27, %s13881_s23  ;;  %v13460_v32 = vpop.f32.mrb[135].mxu0 }
 0xb98   : > { %v16612_v32 = vld [vmem:[#allocation9_spill] sm:$0xff] }
 0xb9a   : > { %v11034_v33 = vpop.f32.mrb[136].mxu0 }
 0xb9b   : > { %11212 = vrot.lane.b32.xlu1 %v11034_v33, %s13881_s23  ;;  %v13470_v10 = vpop.f32.mrb[137].mxu0  ;;  %v11237_v33 = vsel %vm432_vm2, %v16612_v32, %v11069_v56  ;;  %v16614_v56 = vld [vmem:[#allocation12_spill] sm:$0xff] }
 0xb9c   : > { %v11254_v10 = vsel %vm11246_vm3, %v11237_v33, %v11133_v21  ;;  %v11238_v21 = vsel %vm432_vm2, %v16614_v56, %v15995_v28  ;;  %v11241_v28 = vsel %vm432_vm2, %v16615_v11, %v15999_v35 }
 0xb9d   : > { %v11255_v2 = vsel %vm11246_vm3, %v11238_v21, %v11135_v25  ;;  %v11240_v25 = vsel %vm432_vm2, %v16616_v12, %v15997_v61  ;;  %v11258_v34 = vsel %vm11246_vm3, %v11241_v28, %v16003_v46  ;;  %v16617_v61 = vld [vmem:[#allocation13_spill] sm:$0xff] }
 0xb9e   : > { %v11257_v59 = vsel %vm11246_vm3, %v11240_v25, %v16001_v14  ;;  %v11243_v46 = vsel %vm432_vm2, %v16617_v61, %v16007_v43 }
 0xbeb   : > { %v11183_v36 = vpop.permute.xlu0 %11182 }
 0xbec   : > { %v16028_v40 = vsel %vm11263_vm4, %v11247_v8, %v11183_v36 }
 0xbef   : > { %v11187_v20 = vpop.permute.xlu0 %11186 }
 0xbf0   : > { %v11185_v26 = vpop.permute.xlu1 %11184  ;;  %v16043_v15 = vsel %vm11263_vm4, %v11249_v50, %v11187_v20 }
 0xbf1   : > { %v16031_v54 = vsel %vm11263_vm4, %v11248_v16, %v11185_v26  ;;  %v16618_v26 = vld [vmem:[#allocation16_spill] sm:$0xff] }
 0xbf2   : > { %v11280_v24 = vpack.c.bf16 %v16031_v54, %v16028_v40  ;;  %v11242_v14 = vsel %vm432_vm2, %v16618_v26, %v16005_v38  ;;  %v16619_v38 = vld [vmem:[#allocation14_spill] sm:$0xff] }
 0xbf3   : > { %v11259_v42 = vsel %vm11246_vm3, %v11242_v14, %v16013_v4 }
 0xbf4   : > { %v11191_v51 = vpop.permute.xlu0 %11190  ;;  %13475 = vmatprep.mubr.msk.bf16.mxu0 %vm307_vm0, %v11280_v24  ;;  %v11260_v24 = vsel %vm11246_vm3, %v11243_v46, %v16015_v47  ;;  %v11245_v47 = vsel %vm432_vm2, %v16619_v38, %v16011_v5 }
 0xbf5   : > { %v11189_v45 = vpop.permute.xlu1 %11188  ;;  %v16057_v62 = vsel %vm11263_vm4, %v15966_v44, %v11191_v51  ;;  %v11262_v50 = vsel %vm11246_vm3, %v11245_v47, %v16019_v30 }
 0xbf6   : > { %v16046_v19 = vsel %vm11263_vm4, %v11250_v29, %v11189_v45  ;;  %v16620_v29 = vld [vmem:[#allocation17_spill] sm:$0xff] }
 0xbf7   : > { %v11281_v60 = vpack.c.bf16 %v16046_v19, %v16043_v15  ;;  %v11244_v4 = vsel %vm432_vm2, %v16620_v29, %v16009_v53  ;;  %v16154_v53 = vld [vmem:[%s16511_s3] ss:$0 sm:$0xff] }
 0xbf8   : > { %v11195_v13 = vpop.permute.xlu0 %11194  ;;  %v11261_v45 = vsel %vm11246_vm3, %v11244_v4, %v16017_v6 }
 0xbf9   : > { %13476 = vmatmul.mubr.msk.bf16.vlgmr.msra.gmra.mrb[140].mxu0 %vm307_vm0, %v11281_v60  ;;  %v11193_v37 = vpop.permute.xlu1 %11192  ;;  %v16070_v17 = vsel %vm11263_vm4, %v15969_v57, %v11195_v13 }
 0xbfa   : > { %v16060_v27 = vsel %vm11263_vm4, %v11252_v1, %v11193_v37 }
 0xbfb   : > { %v11282_v58 = vpack.c.bf16 %v16060_v27, %v16057_v62 }
 0xbfc   : > { %v11199_v39 = vpop.permute.xlu0 %11198 }
 0xbfd   : > { %13479 = vmatprep.mubr.msk.bf16.mxu1 %vm307_vm0, %v11282_v58  ;;  %v11197_v52 = vpop.permute.xlu1 %11196  ;;  %v16086_v41 = vsel %vm11263_vm4, %v11255_v2, %v11199_v39 }
 0xbfe   : > { %v16073_v44 = vsel %vm11263_vm4, %v11254_v10, %v11197_v52 }
 0xbff   : > { %v11283_v55 = vpack.c.bf16 %v16073_v44, %v16070_v17 }
 0xc00   : > { %v11203_v3 = vpop.permute.xlu0 %11202 }
 0xc01   : > { %13480 = vmatmul.mubr.msk.bf16.vlgmr.msra.gmra.mrb[136].mxu1 %vm307_vm0, %v11283_v55  ;;  %v11201_v57 = vpop.permute.xlu1 %11200  ;;  %v16105_v16 = vsel %vm11263_vm4, %v11257_v59, %v11203_v3 }
 0xc02   : > { %v16089_v36 = vsel %vm11263_vm4, %v11256_v48, %v11201_v57 }
 0xc03   : > { %v11284_v49 = vpack.c.bf16 %v16089_v36, %v16086_v41 }
 0xc04   : > { %v11207_v9 = vpop.permute.xlu0 %11206 }
 0xc05   : > { %13483 = vmatprep.mubr.msk.bf16.mxu1 %vm307_vm0, %v11284_v49  ;;  %v11205_v20 = vpop.permute.xlu1 %11204  ;;  %v16124_v63 = vsel %vm11263_vm4, %v11259_v42, %v11207_v9 }
 0xc06   : > { %v16108_v8 = vsel %vm11263_vm4, %v11258_v34, %v11205_v20 }
 0xc07   : > { %v11285_v35 = vpack.c.bf16 %v16108_v8, %v16105_v16 }
 0xc08   : > { %v11211_v43 = vpop.permute.xlu0 %11210 }
 0xc09   : > { %13484 = vmatmul.mubr.msk.bf16.gmra.mrb[140].mxu1 %vm307_vm0, %v11285_v35  ;;  %v11209_v0 = vpop.permute.xlu1 %11208  ;;  %v16143_v22 = vsel %vm11263_vm4, %v11261_v45, %v11211_v43 }
 0xc0a   : > { %v16127_v18 = vsel %vm11263_vm4, %v11260_v24, %v11209_v0 }
 0xc0b   : > { %v11286_v51 = vpack.c.bf16 %v16127_v18, %v16124_v63 }
 0xc0d   : > { %13487 = vmatprep.mubr.msk.bf16.mxu1 %vm307_vm0, %v11286_v51  ;;  %v11213_v60 = vpop.permute.xlu1 %11212 }
 0xc0e   : > { %v16146_v31 = vsel %vm11263_vm4, %v11262_v50, %v11213_v60 }
 0xc0f   : > { %v11287_v5 = vpack.c.bf16 %v16146_v31, %v16143_v22 }
 0xc11   : > { %13488 = vmatmul.mubr.msk.bf16.gmra.mrb[144].mxu1 %vm307_vm0, %v11287_v5 }
 0xccc   : > { %v13477_v6 = vpop.f32.mrb[140].mxu0 }
 0xccd   : > { %v11429_v30 = vadd.f32 %v13477_v6, %v16154_v53  ;;  %v11358_v13 = vpop.f32.mrb[141].mxu0 }
 0xcce   : > { %v11427_v1 = vadd.f32 %v16154_v53, %v11358_v13  ;;  %v13478_v37 = vpop.f32.mrb[142].mxu0 }
 0xccf   : > { %13790 = vtanh.f32 %v11429_v30  ;;  %v11361_v58 = vpop.f32.mrb[143].mxu0  ;;  %v11430_v33 = vadd.f32 %v13478_v37, %v16154_v53 }
 0xcd0   : > { %v11428_v32 = vadd.f32 %v16154_v53, %v11361_v58  ;;  %13792 = vtanh.f32 %v11427_v1 }
 0xcd2   : > { %13794 = vtanh.f32 %v11428_v32 }
 0xcd3   : > { %13796 = vtanh.f32 %v11430_v33 }
 0xcd4   : > { %v13481_v39 = vpop.f32.mrb[136].mxu1 }
 0xcd5   : > { %v11433_v10 = vadd.f32 %v13481_v39, %v16154_v53  ;;  %v11374_v52 = vpop.f32.mrb[137].mxu1 }
 0xcd6   : > { %v13482_v55 = vpop.f32.mrb[138].mxu1  ;;  %v11431_v21 = vadd.f32 %v16154_v53, %v11374_v52 }
 0xcd7   : > { %v11377_v23 = vpop.f32.mrb[139].mxu1  ;;  %13798 = vtanh.f32 %v11433_v10  ;;  %v11434_v14 = vadd.f32 %v13482_v55, %v16154_v53 }
 0xcd8   : > { %v11432_v57 = vadd.f32 %v16154_v53, %v11377_v23  ;;  %13800 = vtanh.f32 %v11431_v21 }
 0xcd9   : > { %v13791_v56 = vpop.eup %13790 }
 0xcda   : > { %v11467_v3 = vmul.f32 %v13791_v56, %v16164_v7  ;;  %v13793_v48 = vpop.eup %13792 }
 0xcdb   : > { %v11465_v34 = vmul.f32 %v13793_v48, %v16164_v7 }
 0xcdc   : > { %v13795_v2 = vpop.eup %13794  ;;  %v13485_v49 = vpop.f32.mrb[140].mxu1  ;;  %11485 = vadd.xlane.f32.xlu0 %v11467_v3 }
 0xcdd   : > { %v11437_v11 = vadd.f32 %v13485_v49, %v16154_v53  ;;  %v11390_v28 = vpop.f32.mrb[141].mxu1  ;;  %v11466_v12 = vmul.f32 %v13795_v2, %v16164_v7  ;;  %v13797_v59 = vpop.eup %13796  ;;  %v11529_v49 = vlaneseq }
 0xcde   : > { %v13486_v25 = vpop.f32.mrb[142].mxu1  ;;  %v11435_v35 = vadd.f32 %v16154_v53, %v11390_v28  ;;  %v11468_v46 = vmul.f32 %v13797_v59, %v16164_v7 }
 0xcdf   : > { %13802 = vtanh.f32 %v11437_v11  ;;  %v11438_v9 = vadd.f32 %v13486_v25, %v16154_v53  ;;  %v11393_v20 = vpop.f32.mrb[143].mxu1  ;;  %11483 = vadd.xlane.f32.xlu1 %v11466_v12  ;;  %v11530_v28 = vand.u32 127, %v11529_v49  ;;  %v16199_v12 = vshrl.u32 %v11529_v49, 7 }
 0xce0   : > { %13804 = vtanh.f32 %v11432_v57  ;;  %11481 = vadd.xlane.f32.xlu0 %v11465_v34  ;;  %v11436_v61 = vadd.f32 %v16154_v53, %v11393_v20 }
 0xce1   : > { %13806 = vtanh.f32 %v11438_v9  ;;  %v13799_v26 = vpop.eup %13798  ;;  %v16206_v59 = vsub.s32 %v11530_v28, %v16199_v12 }
 0xce2   : > { %13808 = vtanh.f32 %v11435_v35  ;;  %v11471_v51 = vmul.f32 %v13799_v26, %v16164_v7  ;;  %v13801_v38 = vpop.eup %13800 }
 0xce3   : > { %13810 = vtanh.f32 %v11436_v61  ;;  %v11469_v60 = vmul.f32 %v13801_v38, %v16164_v7 }
 0xce4   : > { %v13489_v24 = vpop.f32.mrb[144].mxu1  ;;  %11487 = vadd.xlane.f32.xlu0 %v11468_v46  ;;  %13812 = vtanh.f32 %v11434_v14 }
 0xce5   : > { %v11406_v42 = vpop.f32.mrb[145].mxu1  ;;  %v11441_v30 = vadd.f32 %v13489_v24, %v16154_v53 }
 0xce6   : > { %v11439_v0 = vadd.f32 %v16154_v53, %v11406_v42  ;;  %v13490_v43 = vpop.f32.mrb[146].mxu1 }
 0xce7   : > { %v11409_v47 = vpop.f32.mrb[147].mxu1  ;;  %v11442_v29 = vadd.f32 %v13490_v43, %v16154_v53 }
 0xce8   : > { %11493 = vadd.xlane.f32.xlu0 %v11471_v51  ;;  %13814 = vtanh.f32 %v11439_v0  ;;  %v11440_v50 = vadd.f32 %v16154_v53, %v11409_v47 }
 0xce9   : > { %v13803_v4 = vpop.eup %13802  ;;  %13816 = vtanh.f32 %v11442_v29 }
 0xcea   : > { %v13805_v45 = vpop.eup %13804  ;;  %v11475_v5 = vmul.f32 %v13803_v4, %v16164_v7  ;;  %13818 = vtanh.f32 %v11440_v50 }
 0xceb   : > { %v13807_v6 = vpop.eup %13806  ;;  %v11470_v1 = vmul.f32 %v13805_v45, %v16164_v7  ;;  %13820 = vtanh.f32 %v11441_v30 }
 0xcec   : > { %11489 = vadd.xlane.f32.xlu0 %v11469_v60  ;;  %11501 = vadd.xlane.f32.xlu1 %v11475_v5  ;;  %v13809_v13 = vpop.eup %13808  ;;  %v11476_v37 = vmul.f32 %v13807_v6, %v16164_v7 }
 0xced   : > { %v13811_v58 = vpop.eup %13810  ;;  %v11473_v33 = vmul.f32 %v13809_v13, %v16164_v7 }
 0xcee   : > { %v13813_v32 = vpop.eup %13812  ;;  %v11474_v39 = vmul.f32 %v13811_v58, %v16164_v7 }
 0xcef   : > { %v11472_v53 = vmul.f32 %v13813_v32, %v16164_v7 }
 0xcf0   : > { %11491 = vadd.xlane.f32.xlu0 %v11470_v1  ;;  %11503 = vadd.xlane.f32.xlu1 %v11476_v37 }
 0xcf2   : > { %v13815_v10 = vpop.eup %13814 }
 0xcf3   : > { %v13817_v52 = vpop.eup %13816  ;;  %v11477_v55 = vmul.f32 %v13815_v10, %v16164_v7 }
 0xcf4   : > { %11497 = vadd.xlane.f32.xlu0 %v11473_v33  ;;  %11499 = vadd.xlane.f32.xlu1 %v11474_v39  ;;  %v13819_v23 = vpop.eup %13818  ;;  %v11480_v56 = vmul.f32 %v13817_v52, %v16164_v7 }
 0xcf5   : > { %v11478_v21 = vmul.f32 %v13819_v23, %v16164_v7  ;;  %v13821_v3 = vpop.eup %13820 }
 0xcf6   : > { %v11479_v48 = vmul.f32 %v13821_v3, %v16164_v7 }
 0xcf8   : > { %11495 = vadd.xlane.f32.xlu0 %v11472_v53  ;;  %11505 = vadd.xlane.f32.xlu1 %v11477_v55 }
 0xcfc   : > { %11511 = vadd.xlane.f32.xlu0 %v11480_v56  ;;  %11507 = vadd.xlane.f32.xlu1 %v11478_v21 }
 0xd00   : > { %11509 = vadd.xlane.f32.xlu1 %v11479_v48 }
 0xd69   : > { %v16193_v2 = vpop.xlane.xlu0 %11485 }
 0xd6a   : > { %v11542_v24 = vrot.slane %v16193_v2, %v16206_v59 }
 0xd6c   : > { %v16201_v25 = vpop.xlane.xlu1 %11483 }
 0xd6d   : > { %v16195_v57 = vpop.xlane.xlu0 %11481  ;;  %v11538_v20 = vrot.slane %v16201_v25, %v16206_v59 }
 0xd6e   : > { %v11534_v35 = vrot.slane %v16195_v57, %v16206_v59 }
 0xd70   : > { %v11596_v26 = vsel %vm11595_vm5, %v11538_v20, %v11534_v35 }
 0xd71   : > { %v16197_v11 = vpop.xlane.xlu0 %11487  ;;  %v11598_v43 = vsel %vm11597_vm6, %v11542_v24, %v11596_v26  ;;  %v13882_v26 = vmov 0   ;;  %v16273_v24 = vsub.s32 1, %v16199_v12 }
 0xd72   : > { %v11546_v14 = vrot.slane %v16197_v11, %v16206_v59  ;;  %13521 = vset.pattern.permute.xlu0 %v13882_v26  ;;  %13520 = vset.pattern.permute.xlu1 %v13882_v26 }
 0xd74   : > { %v11600_v47 = vsel %vm11599_vm7, %v11546_v14, %v11598_v43  ;;  %v16270_v14 = vsub.s32 0, %v16199_v12 }
 0xd75   : > { %v16203_v34 = vpop.xlane.xlu0 %11493 }
 0xd76   : > { %v11558_v60 = vrot.slane %v16203_v34, %v16206_v59 }
 0xd79   : > { %v16208_v9 = vpop.xlane.xlu0 %11489  ;;  %v16210_v7 = vpop.xlane.xlu1 %11501 }
 0xd7a   : > { %v11550_v42 = vrot.slane %v16208_v9, %v16206_v59  ;;  %v11574_v13 = vrot.slane %v16210_v7, %v16206_v59 }
 0xd7c   : > { %v11602_v50 = vsel %vm11601_vm8, %v11550_v42, %v11600_v47  ;;  %v16276_v42 = vsub.s32 2, %v16199_v12 }
 0xd7d   : > { %v16216_v61 = vpop.xlane.xlu0 %11491  ;;  %v16218_v46 = vpop.xlane.xlu1 %11503 }
 0xd7e   : > { %v11554_v0 = vrot.slane %v16216_v61, %v16206_v59  ;;  %v11578_v33 = vrot.slane %v16218_v46, %v16206_v59 }
 0xd80   : > { %v11604_v45 = vsel %vm11603_vm9, %v11554_v0, %v11602_v50  ;;  %v16279_v0 = vsub.s32 3, %v16199_v12  ;;  %v16285_v50 = vsub.s32 4, %v16199_v12 }
 0xd81   : > { %v16230_v51 = vpop.xlane.xlu0 %11497  ;;  %v16232_v38 = vpop.xlane.xlu1 %11499  ;;  %v11606_v37 = vsel %vm11605_vm10, %v11558_v60, %v11604_v45 }
 0xd82   : > { %v11566_v29 = vrot.slane %v16230_v51, %v16206_v59  ;;  %v11570_v4 = vrot.slane %v16232_v38, %v16206_v59 }
 0xd84   : > { %v11609_v5 = vsel %vm11595_vm5, %v11570_v4, %v11566_v29 }
 0xd85   : > { %v16244_v6 = vpop.xlane.xlu0 %11495  ;;  %v11506_v30 = vpop.xlane.xlu1 %11505  ;;  %v11610_v58 = vsel %vm11597_vm6, %v11574_v13, %v11609_v5 }
 0xd86   : > { %v11562_v1 = vrot.slane %v16244_v6, %v16206_v59  ;;  %v11582_v52 = vrot.slane %v11506_v30, %v16206_v59  ;;  %v11611_v53 = vsel %vm11599_vm7, %v11578_v33, %v11610_v58  ;;  %v16292_v58 = vsub.s32 5, %v16199_v12 }
 0xd88   : > { %v11608_v32 = vsel %vm11607_vm11, %v11562_v1, %v11606_v37  ;;  %v11612_v21 = vsel %vm11601_vm8, %v11582_v52, %v11611_v53 }
 0xd89   : > { %v11508_v39 = vpop.xlane.xlu1 %11507  ;;  %v11618_v10 = vsel %vm432_vm2, %v11608_v32, -inf  ;;  %v16259_v23 = vpop.xlane.xlu0 %11511 }
 0xd8a   : > { %11619 = vmax.xlane.f32.xlu1 %v11618_v10  ;;  %v11586_v55 = vrot.slane %v11508_v39, %v16206_v59  ;;  %v11594_v48 = vrot.slane %v16259_v23, %v16206_v59 }
 0xd8c   : > { %v11613_v49 = vsel %vm11603_vm9, %v11586_v55, %v11612_v21  ;;  %v16308_v21 = vsub.s32 7, %v16199_v12 }
 0xd8d   : > { %v11510_v56 = vpop.xlane.xlu1 %11509 }
 0xd8e   : > { %v11590_v3 = vrot.slane %v11510_v56, %v16206_v59 }
 0xd90   : > { %v11614_v28 = vsel %vm11605_vm10, %v11590_v3, %v11613_v49 }
 0xd91   : > { %v11615_v20 = vsel %vm11607_vm11, %v11594_v48, %v11614_v28 }
 0xd92   : > { %v11621_v35 = vsel %vm432_vm2, %v11615_v20, -inf }
 0xd93   : > { %11622 = vmax.xlane.f32.xlu0 %v11621_v35 }
 0xe17   : > { %v11620_v43 = vpop.xlane.xlu1 %11619 }
 0xe18   : > { %v11629_v47 = vrot.slane %v11620_v43, %v16270_v14  ;;  %v11633_v29 = vrot.slane %v11620_v43, %v16273_v24  ;;  %v11637_v4 = vrot.slane %v11620_v43, %v16276_v42  ;;  %v11641_v45 = vrot.slane %v11620_v43, %v16279_v0 }
 0xe19   : > { %v11645_v32 = vrot.slane %v11620_v43, %v16285_v50 }
 0xe1a   : > { %v11706_v60 = vsub.f32 %v16195_v57, %v11629_v47  ;;  %v11707_v5 = vsub.f32 %v16201_v25, %v11633_v29  ;;  %v11708_v13 = vsub.f32 %v16193_v2, %v11637_v4  ;;  %v11709_v33 = vsub.f32 %v16197_v11, %v11641_v45 }
 0xe1b   : > { %v16299_v57 = vsub.s32 6, %v16199_v12  ;;  %v11649_v25 = vrot.slane %v11620_v43, %v16292_v58  ;;  %v11710_v2 = vsub.f32 %v16208_v9, %v11645_v32  ;;  %v11657_v12 = vrot.slane %v11620_v43, %v16308_v21 }
 0xe1c   : > { %v11722_v1 = vmul.f32 1.442695, %v11706_v60  ;;  %v11724_v37 = vmul.f32 1.442695, %v11707_v5  ;;  %v11726_v10 = vmul.f32 1.442695, %v11708_v13 }
 0xe1d   : > { %v11728_v53 = vmul.f32 1.442695, %v11709_v33  ;;  %v11653_v48 = vrot.slane %v11620_v43, %v16299_v57  ;;  %v11711_v49 = vsub.f32 %v16216_v61, %v11649_v25  ;;  %v11730_v28 = vmul.f32 1.442695, %v11710_v2 }
 0xe1e   : > { %13822 = vpow2.f32 %v11722_v1 }
 0xe1f   : > { %13824 = vpow2.f32 %v11724_v37  ;;  %v11732_v29 = vmul.f32 1.442695, %v11711_v49 }
 0xe20   : > { %v16296_v52 = vpop.xlane.xlu0 %11622  ;;  %13826 = vpow2.f32 %v11726_v10 }
 0xe21   : > { %v11677_v55 = vrot.slane %v16296_v52, %v16285_v50  ;;  %v11681_v11 = vrot.slane %v16296_v52, %v16292_v58  ;;  %13828 = vpow2.f32 %v11728_v53  ;;  %v11685_v9 = vrot.slane %v16296_v52, %v16299_v57 }
 0xe22   : > { %13830 = vpow2.f32 %v11730_v28  ;;  %v11661_v43 = vrot.slane %v16296_v52, %v16270_v14  ;;  %v11669_v32 = vrot.slane %v16296_v52, %v16276_v42  ;;  %v11673_v2 = vrot.slane %v16296_v52, %v16279_v0 }
 0xe23   : > { %v11718_v3 = vsub.f32 %v11506_v30, %v11677_v55  ;;  %v11719_v35 = vsub.f32 %v11508_v39, %v11681_v11  ;;  %v11712_v30 = vsub.f32 %v16203_v34, %v11653_v48  ;;  %v11720_v4 = vsub.f32 %v11510_v56, %v11685_v9 }
 0xe24   : > { %v11713_v39 = vsub.f32 %v16244_v6, %v11657_v12  ;;  %v11665_v56 = vrot.slane %v16296_v52, %v16273_v24  ;;  %v11714_v1 = vsub.f32 %v16230_v51, %v11661_v43  ;;  %v11716_v53 = vsub.f32 %v16210_v7, %v11669_v32 }
 0xe25   : > { %v11746_v26 = vmul.f32 1.442695, %v11718_v3  ;;  %v11748_v45 = vmul.f32 1.442695, %v11719_v35  ;;  %v11734_v60 = vmul.f32 1.442695, %v11712_v30  ;;  %v11689_v3 = vrot.slane %v16296_v52, %v16308_v21 }
 0xe26   : > { %v11750_v34 = vmul.f32 1.442695, %v11720_v4  ;;  %v11736_v13 = vmul.f32 1.442695, %v11713_v39  ;;  %v11715_v33 = vsub.f32 %v16232_v38, %v11665_v56  ;;  %v11738_v10 = vmul.f32 1.442695, %v11714_v1 }
 0xe27   : > { %13832 = vpow2.f32 %v11746_v26  ;;  %v11717_v48 = vsub.f32 %v16218_v46, %v11673_v2  ;;  %v11742_v49 = vmul.f32 1.442695, %v11716_v53  ;;  %v11721_v28 = vsub.f32 %v16259_v23, %v11689_v3 }
 0xe28   : > { %v16312_v20 = vpop.eup %13822  ;;  %13834 = vpow2.f32 %v11732_v29  ;;  %v11740_v55 = vmul.f32 1.442695, %v11715_v33 }
 0xe29   : > { %v16316_v47 = vpop.eup %13824  ;;  %11771 = vperm.xlu1 %13520, %v16312_v20   ;;  %13836 = vpow2.f32 %v11748_v45  ;;  %v11744_v9 = vmul.f32 1.442695, %v11717_v48  ;;  %v11752_v52 = vmul.f32 1.442695, %v11721_v28 }
 0xe2a   : > { %11774 = vperm.xlu0 %13521, %v16316_v47   ;;  %v16322_v61 = vpop.eup %13826  ;;  %13838 = vpow2.f32 %v11734_v60 }
 0xe2b   : > { %v16328_v5 = vpop.eup %13828  ;;  %13840 = vpow2.f32 %v11750_v34 }
 0xe2c   : > { %v16334_v37 = vpop.eup %13830  ;;  %13842 = vpow2.f32 %v11736_v13 }
 0xe2d   : > { %11777 = vperm.xlu1 %13520, %v16322_v61   ;;  %13844 = vpow2.f32 %v11738_v10 }
 0xe2e   : > { %13846 = vpow2.f32 %v11740_v55 }
 0xe2f   : > { %13848 = vpow2.f32 %v11742_v49 }
 0xe30   : > { %13850 = vpow2.f32 %v11744_v9 }
 0xe31   : > { %11780 = vperm.xlu1 %13520, %v16328_v5   ;;  %v16337_v6 = vpop.eup %13832  ;;  %13852 = vpow2.f32 %v11752_v52 }
 0xe32   : > { %11807 = vperm.xlu0 %13521, %v16337_v6   ;;  %v16343_v25 = vpop.eup %13834 }
 0xe33   : > { %v16346_v51 = vpop.eup %13836 }
 0xe34   : > { %v16352_v11 = vpop.eup %13838 }
 0xe35   : > { %11783 = vperm.xlu1 %13520, %v16334_v37   ;;  %v16355_v38 = vpop.eup %13840 }
 0xe36   : > { %11810 = vperm.xlu0 %13521, %v16346_v51   ;;  %v16361_v7 = vpop.eup %13842 }
 0xe37   : > { %v16365_v35 = vpop.eup %13844 }
 0xe38   : > { %v16368_v26 = vpop.eup %13846 }
 0xe39   : > { %11786 = vperm.xlu1 %13520, %v16343_v25   ;;  %v16371_v46 = vpop.eup %13848 }
 0xe3a   : > { %11813 = vperm.xlu0 %13521, %v16355_v38   ;;  %v16374_v12 = vpop.eup %13850 }
 0xe3b   : > { %v16377_v23 = vpop.eup %13852 }
 0xe3d   : > { %11789 = vperm.xlu1 %13520, %v16352_v11  }
 0xe41   : > { %11792 = vperm.xlu1 %13520, %v16361_v7  }
 0xe45   : > { %11795 = vperm.xlu1 %13520, %v16365_v35  }
 0xe49   : > { %11798 = vperm.xlu1 %13520, %v16368_v26  }
 0xe4d   : > { %11801 = vperm.xlu1 %13520, %v16371_v46  }
 0xe51   : > { %11804 = vperm.xlu1 %13520, %v16374_v12  }
 0xe55   : > { %11816 = vperm.xlu1 %13520, %v16377_v23  }
 0xea8   : > { %v11772_v30 = vpop.permute.xlu1 %11771 }
 0xea9   : > { %v11775_v39 = vpop.permute.xlu0 %11774  ;;  %v11821_v34 = vrot.slane %v11772_v30, %v16206_v59 }
 0xeaa   : > { %v11825_v43 = vrot.slane %v11775_v39, %v16206_v59 }
 0xeac   : > { %v11778_v29 = vpop.permute.xlu1 %11777  ;;  %v11882_v33 = vsel %vm11595_vm5, %v11825_v43, %v11821_v34 }
 0xead   : > { %v11829_v13 = vrot.slane %v11778_v29, %v16206_v59 }
 0xeaf   : > { %v11883_v2 = vsel %vm11597_vm6, %v11829_v13, %v11882_v33 }
 0xeb0   : > { %v11781_v4 = vpop.permute.xlu1 %11780 }
 0xeb1   : > { %v11833_v56 = vrot.slane %v11781_v4, %v16206_v59  ;;  %v11808_v4 = vpop.permute.xlu0 %11807 }
 0xeb3   : > { %v11884_v55 = vsel %vm11599_vm7, %v11833_v56, %v11883_v2 }
 0xeb4   : > { %v11784_v45 = vpop.permute.xlu1 %11783 }
 0xeb5   : > { %v11837_v1 = vrot.slane %v11784_v45, %v16206_v59  ;;  %v11811_v39 = vpop.permute.xlu0 %11810 }
 0xeb7   : > { %v11885_v3 = vsel %vm11601_vm8, %v11837_v1, %v11884_v55 }
 0xeb8   : > { %v11787_v60 = vpop.permute.xlu1 %11786 }
 0xeb9   : > { %v11841_v10 = vrot.slane %v11787_v60, %v16206_v59  ;;  %v11814_v1 = vpop.permute.xlu0 %11813 }
 0xebb   : > { %v11886_v49 = vsel %vm11603_vm9, %v11841_v10, %v11885_v3  ;;  %v11869_v10 = vrot.slane %v11808_v4, %v16206_v59  ;;  %v11877_v3 = vrot.slane %v11814_v1, %v16206_v59 }
 0xebc   : > { %v11790_v32 = vpop.permute.xlu1 %11789 }
 0xebd   : > { %v11845_v53 = vrot.slane %v11790_v32, %v16206_v59 }
 0xebf   : > { %v11887_v9 = vsel %vm11605_vm10, %v11845_v53, %v11886_v49  ;;  %v11873_v53 = vrot.slane %v11811_v39, %v16206_v59 }
 0xec0   : > { %v11793_v48 = vpop.permute.xlu1 %11792 }
 0xec1   : > { %v11849_v28 = vrot.slane %v11793_v48, %v16206_v59 }
 0xec3   : > { %v11888_v52 = vsel %vm11607_vm11, %v11849_v28, %v11887_v9 }
 0xec4   : > { %v11796_v30 = vpop.permute.xlu1 %11795  ;;  %v11898_v29 = vsel %vm432_vm2, %v11888_v52, 0.0 }
 0xec5   : > { %11899 = vadd.xlane.f32.xlu0 %v11898_v29  ;;  %v11853_v13 = vrot.slane %v11796_v30, %v16206_v59 }
 0xec8   : > { %v11799_v45 = vpop.permute.xlu1 %11798 }
 0xec9   : > { %v11857_v43 = vrot.slane %v11799_v45, %v16206_v59 }
 0xecb   : > { %v11889_v32 = vsel %vm11595_vm5, %v11857_v43, %v11853_v13 }
 0xecc   : > { %v11802_v60 = vpop.permute.xlu1 %11801 }
 0xecd   : > { %v11861_v34 = vrot.slane %v11802_v60, %v16206_v59 }
 0xecf   : > { %v11890_v2 = vsel %vm11597_vm6, %v11861_v34, %v11889_v32 }
 0xed0   : > { %v11805_v56 = vpop.permute.xlu1 %11804 }
 0xed1   : > { %v11865_v33 = vrot.slane %v11805_v56, %v16206_v59 }
 0xed3   : > { %v11891_v55 = vsel %vm11599_vm7, %v11865_v33, %v11890_v2 }
 0xed4   : > { %v11892_v48 = vsel %vm11601_vm8, %v11869_v10, %v11891_v55  ;;  %v11817_v49 = vpop.permute.xlu1 %11816 }
 0xed5   : > { %v11881_v28 = vrot.slane %v11817_v49, %v16206_v59  ;;  %v11893_v9 = vsel %vm11603_vm9, %v11873_v53, %v11892_v48 }
 0xed6   : > { %v11894_v52 = vsel %vm11605_vm10, %v11877_v3, %v11893_v9 }
 0xed7   : > { %v11895_v30 = vsel %vm11607_vm11, %v11881_v28, %v11894_v52 }
 0xed8   : > { %v11901_v29 = vsel %vm432_vm2, %v11895_v30, 0.0 }
 0xed9   : > { %11902 = vadd.xlane.f32.xlu1 %v11901_v29 }
 0xf52   : > { %v11900_v4 = vpop.xlane.xlu0 %11899 }
 0xf53   : > { %13854 = vrcp.f32 %v11900_v4 }
 0xf5d   : > { %v13855_v45 = vpop.eup %13854 }
 0xf5e   : > { %v11911_v39 = vrot.slane %v13855_v45, %v16270_v14  ;;  %v11915_v60 = vrot.slane %v13855_v45, %v16273_v24  ;;  %v11919_v34 = vrot.slane %v13855_v45, %v16276_v42  ;;  %v11923_v13 = vrot.slane %v13855_v45, %v16279_v0 }
 0xf5f   : > { %v11927_v32 = vrot.slane %v13855_v45, %v16285_v50  ;;  %v11935_v2 = vrot.slane %v13855_v45, %v16299_v57  ;;  %v11939_v49 = vrot.slane %v13855_v45, %v16308_v21 }
 0xf60   : > { %v11988_v43 = vmul.f32 %v16312_v20, %v11911_v39  ;;  %v11989_v59 = vmul.f32 %v16316_v47, %v11915_v60  ;;  %v11990_v56 = vmul.f32 %v16322_v61, %v11919_v34  ;;  %v11991_v1 = vmul.f32 %v16328_v5, %v11923_v13 }
 0xf61   : > { %v11992_v20 = vmul.f32 %v16334_v37, %v11927_v32  ;;  %v11931_v47 = vrot.slane %v13855_v45, %v16292_v58  ;;  %v11994_v61 = vmul.f32 %v16352_v11, %v11935_v2  ;;  %v11995_v11 = vmul.f32 %v16361_v7, %v11939_v49 }
 0xf62   : > { %12006 = vperm.xlu0 %13521, %v11988_v43   ;;  %12011 = vperm.xlu1 %13520, %v11989_v59  }
 0xf63   : > { %v11993_v10 = vmul.f32 %v16343_v25, %v11931_v47 }
 0xf66   : > { %12016 = vperm.xlu0 %13521, %v11990_v56   ;;  %12021 = vperm.xlu1 %13520, %v11991_v1   ;;  %v11903_v33 = vpop.xlane.xlu1 %11902 }
 0xf67   : > { %13856 = vrcp.f32 %v11903_v33 }
 0xf6a   : > { %12026 = vperm.xlu1 %13520, %v11992_v20  }
 0xf6e   : > { %12031 = vperm.xlu1 %13520, %v11993_v10  }
 0xf71   : > { %v13857_v53 = vpop.eup %13856 }
 0xf72   : > { %12036 = vperm.xlu1 %13520, %v11994_v61   ;;  %v11947_v5 = vrot.slane %v13857_v53, %v16273_v24  ;;  %v11943_v55 = vrot.slane %v13857_v53, %v16270_v14  ;;  %v11951_v48 = vrot.slane %v13857_v53, %v16276_v42  ;;  %v11955_v28 = vrot.slane %v13857_v53, %v16279_v0 }
 0xf73   : > { %v11971_v24 = vrot.slane %v13857_v53, %v16308_v21  ;;  %v11959_v42 = vrot.slane %v13857_v53, %v16285_v50  ;;  %v11967_v0 = vrot.slane %v13857_v53, %v16299_v57 }
 0xf74   : > { %v11997_v3 = vmul.f32 %v16368_v26, %v11947_v5  ;;  %v11996_v37 = vmul.f32 %v16365_v35, %v11943_v55  ;;  %v11998_v25 = vmul.f32 %v16371_v46, %v11951_v48  ;;  %v11999_v14 = vmul.f32 %v16374_v12, %v11955_v28 }
 0xf75   : > { %v12003_v35 = vmul.f32 %v16377_v23, %v11971_v24  ;;  %v12000_v26 = vmul.f32 %v16337_v6, %v11959_v42  ;;  %v11963_v46 = vrot.slane %v13857_v53, %v16292_v58  ;;  %v12002_v21 = vmul.f32 %v16355_v38, %v11967_v0 }
 0xf76   : > { %12051 = vperm.xlu0 %13521, %v11997_v3   ;;  %12046 = vperm.xlu1 %13520, %v11996_v37  }
 0xf77   : > { %v12001_v7 = vmul.f32 %v16346_v51, %v11963_v46 }
 0xf7a   : > { %12056 = vperm.xlu0 %13521, %v11998_v25   ;;  %12041 = vperm.xlu1 %13520, %v11995_v11  }
 0xf7e   : > { %12061 = vperm.xlu0 %13521, %v11999_v14   ;;  %12081 = vperm.xlu1 %13520, %v12003_v35  }
 0xf82   : > { %12066 = vperm.xlu0 %13521, %v12000_v26  }
 0xf86   : > { %12071 = vperm.xlu0 %13521, %v12001_v7  }
 0xf8a   : > { %12076 = vperm.xlu0 %13521, %v12002_v21  }
 0xfe1   : > { %v12007_v12 = vpop.permute.xlu0 %12006  ;;  %v12012_v9 = vpop.permute.xlu1 %12011 }
 0xfe2   : > { %v12084_v23 = vmul.f32 %v12007_v12, %v16028_v40  ;;  %v12085_v50 = vmul.f32 %v12012_v9, %v16031_v54 }
 0xfe4   : > { %v12100_v52 = vsel %vm307_vm0, %v12084_v23, 0.0  ;;  %v12107_v6 = vsel %vm307_vm0, %v12085_v50, 0.0 }
 0xfe5   : > { %v12017_v58 = vpop.permute.xlu0 %12016  ;;  %v12022_v30 = vpop.permute.xlu1 %12021  ;;  %v12101_v29 = vrot.slane %v12100_v52, 4  ;;  %v12108_v4 = vrot.slane %v12107_v6, 4 }
 0xfe6   : > { %v12086_v51 = vmul.f32 %v12017_v58, %v16043_v15  ;;  %v12087_v57 = vmul.f32 %v12022_v30, %v16046_v19 }
 0xfe7   : > { %v12102_v60 = vadd.f32 %v12101_v29, %v12100_v52  ;;  %v12109_v43 = vadd.f32 %v12108_v4, %v12107_v6 }
 0xfe8   : > { %v12114_v38 = vsel %vm307_vm0, %v12086_v51, 0.0  ;;  %v12121_v39 = vsel %vm307_vm0, %v12087_v57, 0.0 }
 0xfe9   : > { %v12115_v45 = vrot.slane %v12114_v38, 4  ;;  %v12027_v40 = vpop.permute.xlu1 %12026  ;;  %v12122_v59 = vrot.slane %v12121_v39, 4  ;;  %v12103_v1 = vrot.slane %v12102_v60, 2  ;;  %v12110_v32 = vrot.slane %v12109_v43, 2 }
 0xfea   : > { %v12088_v54 = vmul.f32 %v12027_v40, %v16057_v62 }
 0xfeb   : > { %v12116_v13 = vadd.f32 %v12115_v45, %v12114_v38  ;;  %v12123_v33 = vadd.f32 %v12122_v59, %v12121_v39  ;;  %v12104_v53 = vadd.f32 %v12103_v1, %v12102_v60  ;;  %v12111_v5 = vadd.f32 %v12110_v32, %v12109_v43 }
 0xfec   : > { %v12128_v34 = vsel %vm307_vm0, %v12088_v54, 0.0 }
 0xfed   : > { %v12032_v56 = vpop.permute.xlu1 %12031  ;;  %v12129_v15 = vrot.slane %v12128_v34, 4  ;;  %v12117_v47 = vrot.slane %v12116_v13, 2  ;;  %v12124_v3 = vrot.slane %v12123_v33, 2  ;;  %v12105_v14 = vrot.slane %v12104_v53, 1 }
 0xfee   : > { %v12089_v19 = vmul.f32 %v12032_v56, %v16060_v27  ;;  %v12112_v35 = vrot.slane %v12111_v5, 1 }
 0xfef   : > { %v12130_v10 = vadd.f32 %v12129_v15, %v12128_v34  ;;  %v12118_v48 = vadd.f32 %v12117_v47, %v12116_v13  ;;  %v12125_v26 = vadd.f32 %v12124_v3, %v12123_v33 }
 0xff0   : > { %v12135_v20 = vsel %vm307_vm0, %v12089_v19, 0.0  ;;  %v12113_v52 = vadd.f32 %v12112_v35, %v12111_v5 }
 0xff1   : > { %v12136_v2 = vrot.slane %v12135_v20, 4  ;;  %v12037_v61 = vpop.permute.xlu1 %12036  ;;  %v12131_v49 = vrot.slane %v12130_v10, 2  ;;  %v12119_v7 = vrot.slane %v12118_v48, 1  ;;  %v12126_v30 = vrot.slane %v12125_v26, 1 }
 0xff2   : > { %v12090_v62 = vmul.f32 %v12037_v61, %v16070_v17 }
 0xff3   : > { %v12137_v55 = vadd.f32 %v12136_v2, %v12135_v20  ;;  %v12132_v0 = vadd.f32 %v12131_v49, %v12130_v10  ;;  %v12120_v4 = vadd.f32 %v12119_v7, %v12118_v48  ;;  %v12127_v13 = vadd.f32 %v12126_v30, %v12125_v26 }
 0xff4   : > { %v12142_v37 = vsel %vm307_vm0, %v12090_v62, 0.0 }
 0xff5   : > { %v12143_v27 = vrot.slane %v12142_v37, 4  ;;  %v12052_v25 = vpop.permute.xlu0 %12051  ;;  %v12047_v11 = vpop.permute.xlu1 %12046  ;;  %v12138_v42 = vrot.slane %v12137_v55, 2  ;;  %v12133_v38 = vrot.slane %v12132_v0, 1 }
 0xff6   : > { %v12093_v28 = vmul.f32 %v12052_v25, %v16089_v36  ;;  %v12092_v24 = vmul.f32 %v12047_v11, %v16086_v41  ;;  %v12106_v36 = vadd.f32 %v12105_v14, %v12104_v53 }
 0xff7   : > { %v12144_v17 = vadd.f32 %v12143_v27, %v12142_v37  ;;  %v12139_v6 = vadd.f32 %v12138_v42, %v12137_v55  ;;  %v12134_v47 = vadd.f32 %v12133_v38, %v12132_v0 }
 0xff8   : > { %v12163_v46 = vsel %vm307_vm0, %v12093_v28, 0.0  ;;  %v12156_v12 = vsel %vm307_vm0, %v12092_v24, 0.0  ;;  %v12228_v43 = vsel %vm11595_vm5, %v12113_v52, %v12106_v36 }
 0xff9   : > { %v12145_v21 = vrot.slane %v12144_v17, 2  ;;  %v12057_v9 = vpop.permute.xlu0 %12056  ;;  %v12042_v23 = vpop.permute.xlu1 %12041  ;;  %v12164_v58 = vrot.slane %v12163_v46, 4  ;;  %v12157_v51 = vrot.slane %v12156_v12, 4  ;;  %v12140_v59 = vrot.slane %v12139_v6, 1 }
 0xffa   : > { %v12094_v50 = vmul.f32 %v12057_v9, %v16105_v16  ;;  %v12091_v41 = vmul.f32 %v12042_v23, %v16073_v44 }
 0xffb   : > { %v12146_v45 = vadd.f32 %v12145_v21, %v12144_v17  ;;  %v12165_v34 = vadd.f32 %v12164_v58, %v12163_v46  ;;  %v12158_v56 = vadd.f32 %v12157_v51, %v12156_v12  ;;  %v12141_v61 = vadd.f32 %v12140_v59, %v12139_v6 }
 0xffc   : > { %v12170_v57 = vsel %vm307_vm0, %v12094_v50, 0.0  ;;  %v12149_v29 = vsel %vm307_vm0, %v12091_v41, 0.0 }
 0xffd   : > { %v12062_v39 = vpop.permute.xlu0 %12061  ;;  %v12082_v16 = vpop.permute.xlu1 %12081  ;;  %v12171_v40 = vrot.slane %v12170_v57, 4  ;;  %v12150_v54 = vrot.slane %v12149_v29, 4  ;;  %v12147_v1 = vrot.slane %v12146_v45, 1  ;;  %v12166_v62 = vrot.slane %v12165_v34, 2 }
 0xffe   : > { %v12095_v44 = vmul.f32 %v12062_v39, %v16108_v8  ;;  %v12099_v60 = vmul.f32 %v12082_v16, %v16146_v31  ;;  %v12229_v31 = vsel %vm11597_vm6, %v12120_v4, %v12228_v43  ;;  %v12159_v5 = vrot.slane %v12158_v56, 2 }
 0xfff   : > { %v12151_v15 = vadd.f32 %v12150_v54, %v12149_v29  ;;  %v12172_v32 = vadd.f32 %v12171_v40, %v12170_v57  ;;  %v12230_v48 = vsel %vm11599_vm7, %v12127_v13, %v12229_v31  ;;  %v12148_v49 = vadd.f32 %v12147_v1, %v12146_v45 }
0x1000   : > { %v12177_v19 = vsel %vm307_vm0, %v12095_v44, 0.0  ;;  %v12205_v20 = vsel %vm307_vm0, %v12099_v60, 0.0  ;;  %v12231_v28 = vsel %vm11601_vm8, %v12134_v47, %v12230_v48  ;;  %v12167_v42 = vadd.f32 %v12166_v62, %v12165_v34 }
0x1001   : > { %v12178_v33 = vrot.slane %v12177_v19, 4  ;;  %v12067_v8 = vpop.permute.xlu0 %12066  ;;  %v12152_v10 = vrot.slane %v12151_v15, 2  ;;  %v12206_v3 = vrot.slane %v12205_v20, 4  ;;  %v12173_v27 = vrot.slane %v12172_v32, 2 }
0x1002   : > { %v12096_v2 = vmul.f32 %v12067_v8, %v16124_v63  ;;  %v12232_v35 = vsel %vm11603_vm9, %v12141_v61, %v12231_v28  ;;  %v12160_v26 = vadd.f32 %v12159_v5, %v12158_v56  ;;  %v12168_v58 = vrot.slane %v12167_v42, 1 }
0x1003   : > { %v12179_v53 = vadd.f32 %v12178_v33, %v12177_v19  ;;  %v12153_v55 = vadd.f32 %v12152_v10, %v12151_v15  ;;  %v12207_v7 = vadd.f32 %v12206_v3, %v12205_v20  ;;  %v12233_v21 = vsel %vm11605_vm10, %v12148_v49, %v12232_v35 }
0x1004   : > { %v12184_v37 = vsel %vm307_vm0, %v12096_v2, 0.0  ;;  %v12174_v12 = vadd.f32 %v12173_v27, %v12172_v32  ;;  %v12161_v30 = vrot.slane %v12160_v26, 1  ;;  %v12169_v54 = vadd.f32 %v12168_v58, %v12167_v42 }
0x1005   : > { %v12185_v25 = vrot.slane %v12184_v37, 4  ;;  %v12072_v11 = vpop.permute.xlu0 %12071  ;;  %v12154_v24 = vrot.slane %v12153_v55, 1  ;;  %v12180_v14 = vrot.slane %v12179_v53, 2  ;;  %v12208_v51 = vrot.slane %v12207_v7, 2 }
0x1006   : > { %v12097_v63 = vmul.f32 %v12072_v11, %v16127_v18  ;;  %v12175_v29 = vrot.slane %v12174_v12, 1  ;;  %v12162_v44 = vadd.f32 %v12161_v30, %v12160_v26 }
0x1007   : > { %v12186_v17 = vadd.f32 %v12185_v25, %v12184_v37  ;;  %v12155_v46 = vadd.f32 %v12154_v24, %v12153_v55  ;;  %v12181_v41 = vadd.f32 %v12180_v14, %v12179_v53  ;;  %v12209_v60 = vadd.f32 %v12208_v51, %v12207_v7 }
0x1008   : > { %v12191_v0 = vsel %vm307_vm0, %v12097_v63, 0.0  ;;  %v12235_v15 = vsel %vm11595_vm5, %v12169_v54, %v12162_v44 }
0x1009   : > { %v12187_v9 = vrot.slane %v12186_v17, 2  ;;  %v12192_v18 = vrot.slane %v12191_v0, 4  ;;  %v12077_v23 = vpop.permute.xlu0 %12076  ;;  %v12234_v50 = vsel %vm11607_vm11, %v12155_v46, %v12233_v21  ;;  %v12182_v45 = vrot.slane %v12181_v41, 1 }
0x100a   : > { %v12098_v36 = vmul.f32 %v12077_v23, %v16143_v22  ;;  %12244 = vst.msk [vmem:[%s16487_s6] sm:$0xff] %vm307_vm0, %v12234_v50  ;;  %v12176_v22 = vadd.f32 %v12175_v29, %v12174_v12  ;;  %v12210_v19 = vrot.slane %v12209_v60, 1 }
0x100b   : > { %v12188_v52 = vadd.f32 %v12187_v9, %v12186_v17  ;;  %v12193_v6 = vadd.f32 %v12192_v18, %v12191_v0  ;;  %v12183_v34 = vadd.f32 %v12182_v45, %v12181_v41 }
0x100c   : > { %v12198_v57 = vsel %vm307_vm0, %v12098_v36, 0.0  ;;  %v12236_v32 = vsel %vm11597_vm6, %v12176_v22, %v12235_v15  ;;  %v12211_v47 = vadd.f32 %v12210_v19, %v12209_v60 }
0x100d   : > { %v12194_v4 = vrot.slane %v12193_v6, 2  ;;  %v12199_v38 = vrot.slane %v12198_v57, 4  ;;  %v12189_v39 = vrot.slane %v12188_v52, 1  ;;  %v12237_v20 = vsel %vm11599_vm7, %v12183_v34, %v12236_v32 }
0x100f   : > { %v12195_v16 = vadd.f32 %v12194_v4, %v12193_v6  ;;  %v12200_v40 = vadd.f32 %v12199_v38, %v12198_v57  ;;  %v12190_v13 = vadd.f32 %v12189_v39, %v12188_v52 }
0x1011   : > { %v12196_v43 = vrot.slane %v12195_v16, 1  ;;  %v12201_v59 = vrot.slane %v12200_v40, 2  ;;  %v12238_v8 = vsel %vm11601_vm8, %v12190_v13, %v12237_v20 }
0x1013   : > { %v12202_v56 = vadd.f32 %v12201_v59, %v12200_v40  ;;  %v12197_v1 = vadd.f32 %v12196_v43, %v12195_v16 }
0x1015   : > { %v12203_v33 = vrot.slane %v12202_v56, 1  ;;  %v12239_v10 = vsel %vm11603_vm9, %v12197_v1, %v12238_v8 }
0x1017   : > { %v12204_v31 = vadd.f32 %v12203_v33, %v12202_v56 }
0x1019   : > { %v12240_v2 = vsel %vm11605_vm10, %v12204_v31, %v12239_v10 }
0x101a   : > { %v12241_v61 = vsel %vm11607_vm11, %v12211_v47, %v12240_v2 }
0x101b   : > { %12245 = vst.msk [vmem:[%s16487_s6 + $0x8] sm:$0xff] %vm307_vm0, %v12241_v61 }
0x101c PF: > { %s15_s18 = sadd.s32 1, %s13864_s18  }
0x101d   : > { %p12_p5 = scmp.ge.s32.totalorder %s15_s18, 4  }
0x101f   :  { %14 = sbr.rel (!%p12_p5) target bundleno = 1 (0x1), region = 70 }

</bundles_post_ra>
